<compile_context>
chip_gen: v7x
topology: tpu7x:2x2x1
jax: 0.10.0
libtpu: 0.0.40
codegen_flags: <defaults>
</compile_context>

<pallas_src>
import jax
import jax.numpy as jnp
from jax.experimental import pallas as pl
from jax.experimental.pallas import tpu as pltpu


def mlp_relu_kernel(x_ref, w1t_ref, vecs_ref, scal_ref, out_ref):
    """x_ref:    (TB*S, D)   bf16/f32  flattened batch of inputs
       w1t_ref:  (D, D)      bf16/f32  fc1 weight, pre-transposed (= W1^T)
       vecs_ref: (4 + S, D)  f32       rows = [b1, gamma, beta, wo, w2[0..S-1] bcast over D]
       scal_ref: (2,)        SMEM f32  [b2, bo]
       out_ref:  (1, TB)     f32       one lane-dense row of results
    """
    tbs, d = x_ref.shape
    tb = out_ref.shape[1]
    s = tbs // tb

    b1 = vecs_ref[0:1, :]                     # (1, D)
    gamma = vecs_ref[1:2, :]
    beta = vecs_ref[2:3, :]
    wo = vecs_ref[3:4, :]
    w2b = vecs_ref[4:4 + s, :]                # (S, D), row s = w2[s] broadcast over D

    # --- fc1 + relu: one big flattened MXU matmul, f32 accumulation ---------
    h = jnp.dot(x_ref[...], w1t_ref[...], preferred_element_type=jnp.float32)
    h = jnp.maximum(h + b1, 0.0)              # (TB*S, D) f32

    # --- LayerNorm over D (eps=1e-5, biased variance), all f32 --------------
    inv_d = 1.0 / d
    mean = jnp.sum(h, axis=-1, keepdims=True) * inv_d           # (TB*S, 1)
    ex2 = jnp.sum(h * h, axis=-1, keepdims=True) * inv_d        # (TB*S, 1)
    var = jnp.maximum(ex2 - mean * mean, 0.0)                   # guard cancellation
    h1 = (h - mean) * jax.lax.rsqrt(var + 1e-5)
    h1 = h1 * gamma + beta                                      # (TB*S, D)

    # --- fc2 over the stacked dim: broadcast-mul + sublane reduce (XLU) -----
    h1_3d = h1.reshape(tb, s, d)                                # layout-friendly (S==8)
    acc = jnp.sum(h1_3d * w2b[None, :, :], axis=1)              # (TB, D)
    h2t = jnp.maximum(acc + scal_ref[0], 0.0)                   # (TB, D)

    # --- output layer over D: transpose-B matmul -> lane-dense (1, TB) row --
    row = jax.lax.dot_general(wo, h2t, (((1,), (1,)), ((), ())),
                              preferred_element_type=jnp.float32)  # (1, TB)
    out_ref[...] = row + scal_ref[1]


def pack_params(params):
    """Host-side, one-time packing of the static parameters."""
    w1, b1, gamma, beta, w2, b2, wo, bo = params
    d = w1.shape[0]
    s = w2.reshape(-1).shape[0]
    w1t = jnp.asarray(w1, jnp.float32).T                               # (D, D)
    w2_rows = jnp.broadcast_to(jnp.reshape(w2, (s, 1)), (s, d))        # (S, D)
    vecs = jnp.concatenate(
        [jnp.reshape(b1, (1, d)), jnp.reshape(gamma, (1, d)),
         jnp.reshape(beta, (1, d)), jnp.reshape(wo, (1, d)), w2_rows],
        axis=0).astype(jnp.float32)                                    # (4+S, D)
    scal = jnp.concatenate(
        [jnp.reshape(b2, (-1,)), jnp.reshape(bo, (-1,))]).astype(jnp.float32)  # (2,)
    return w1t, vecs, scal


def _round_up(n, m):
    return ((n + m - 1) // m) * m


def _pick_batch_tile(batch, tb_req):
    """TB: multiple of 128 (unmasked lane-dense stores), no larger than the
    padded batch, and <= ceil(B/2) for large batches so the grid keeps >= 2
    steps (v7x megacore; a no-op on v5e/v6e)."""
    tb = _round_up(max(tb_req, 1), 128)
    tb = min(tb, _round_up(batch, 128))
    if batch >= 256:
        tb = min(tb, _round_up((batch + 1) // 2, 128))
    return max(tb, 128)


def mlp_relu_forward_batched(xb, packed, *, tb=512, input_dtype=jnp.bfloat16):
    """Batched: xb (B, S, D) float32 -> (B, 1, 1) float32.

    TB independent instances are processed per grid step (amortizing the
    ~0.35 us per-step overhead); the batch axis is marked parallel.
    With the default TB the per-step VMEM footprint is well under the 16 MiB
    v5e default scoped limit, so no vmem_limit_bytes override is needed.
    """
    B, S, D = xb.shape
    w1t, vecs, scal = packed

    tb = _pick_batch_tile(B, tb)
    Bp = _round_up(B, tb)
    num_steps = Bp // tb

    if Bp != B:
        xb = jnp.pad(xb, ((0, Bp - B), (0, 0), (0, 0)))   # zero tail; sliced off below
    x2d = xb.reshape(Bp * S, D).astype(input_dtype)        # flattened, bf16-streamed
    w1t_c = w1t.astype(input_dtype)

    out_row = pl.pallas_call(
        mlp_relu_kernel,
        out_shape=jax.ShapeDtypeStruct((1, Bp), jnp.float32),
        grid=(num_steps,),
        in_specs=[
            pl.BlockSpec((tb * S, D), lambda i: (i, 0)),           # streamed inputs
            pl.BlockSpec((D, D), lambda i: (0, 0)),                # resident weight
            pl.BlockSpec((4 + S, D), lambda i: (0, 0)),            # resident vectors
            pl.BlockSpec(memory_space=pltpu.MemorySpace.SMEM),     # [b2, bo]
        ],
        out_specs=pl.BlockSpec((1, tb), lambda i: (0, i)),         # lane-dense row
        compiler_params=pltpu.CompilerParams(
            dimension_semantics=("parallel",)),
    )(x2d, w1t_c, vecs, scal)

    return out_row.reshape(Bp)[:B].reshape(B, 1, 1)


def mlp_relu_forward(x, packed, *, input_dtype=jnp.bfloat16):
    """Single instance x (S, D) -> (1, 1); routed through the batched path."""
    return mlp_relu_forward_batched(x[None], packed, input_dtype=input_dtype)[0]


def init_params(key, input_dim, stacked_dim):
    """Deterministic synthetic parameters (shapes match nn.Module __init__)."""
    k1, k2, k3, k4, k5, k6 = jax.random.split(key, 6)
    s1 = 1.0 / jnp.sqrt(input_dim)
    s2 = 1.0 / jnp.sqrt(stacked_dim)
    w1 = jax.random.uniform(k1, (input_dim, input_dim), jnp.float32, -s1, s1)   # fc1.weight
    b1 = jax.random.uniform(k2, (1, input_dim), jnp.float32, -s1, s1)           # fc1.bias
    gamma = jnp.ones((1, input_dim), jnp.float32)                               # ln.weight
    beta = jnp.zeros((1, input_dim), jnp.float32)                               # ln.bias
    w2 = jax.random.uniform(k3, (1, stacked_dim), jnp.float32, -s2, s2)         # fc2.weight
    b2 = jax.random.uniform(k4, (1, 1), jnp.float32, -s2, s2)                   # fc2.bias
    wo = jax.random.uniform(k5, (1, input_dim), jnp.float32, -s1, s1)           # output.weight
    bo = jax.random.uniform(k6, (1, 1), jnp.float32, -s1, s1)                   # output.bias
    return (w1, b1, gamma, beta, w2, b2, wo, bo)


def reference_forward(x, params):
    """Pure-JAX reference identical to the PyTorch forward (unpacked params)."""
    w1, b1, gamma, beta, w2, b2, wo, bo = params
    h = jnp.maximum(x @ w1.T + b1, 0.0)
    mean = jnp.mean(h, axis=-1, keepdims=True)
    var = jnp.mean((h - mean) ** 2, axis=-1, keepdims=True)
    h1 = (h - mean) / jnp.sqrt(var + 1e-5) * gamma + beta
    h2 = jnp.maximum(h1.T @ w2.T + b2, 0.0)
    return h2.T @ wo.T + bo


if __name__ == "__main__":
    input_dim = 32
    stacked_dim = 8
    batch_small = 4
    batch_multi = 260   # forces 2 grid steps (TB=256) + a padded tail

    key = jax.random.PRNGKey(0)
    kx, kb, kb2, kp = jax.random.split(key, 4)
    x = jax.random.normal(kx, (stacked_dim, input_dim), jnp.float32)
    xb = jax.random.normal(kb, (batch_small, stacked_dim, input_dim), jnp.float32)
    xb2 = jax.random.normal(kb2, (batch_multi, stacked_dim, input_dim), jnp.float32)
    params = init_params(kp, input_dim, stacked_dim)
    packed = pack_params(params)

    refb = jax.vmap(lambda xi: reference_forward(xi, params))(xb)
    refb2 = jax.vmap(lambda xi: reference_forward(xi, params))(xb2)
    ref1 = reference_forward(x, params)

    # 1) Exact-semantics check (f32 streaming): single-step grid, padded 4->128.
    out32 = jax.block_until_ready(
        mlp_relu_forward_batched(xb, packed, input_dtype=jnp.float32))
    assert out32.shape == (batch_small, 1, 1)
    assert jnp.allclose(out32, refb, atol=2e-4, rtol=2e-4), (out32, refb)

    # 2) Exact-semantics check on the multi-step + tail-padded grid (f32).
    out32b = jax.block_until_ready(
        mlp_relu_forward_batched(xb2, packed, input_dtype=jnp.float32))
    assert out32b.shape == (batch_multi, 1, 1)
    assert jnp.allclose(out32b, refb2, atol=2e-4, rtol=2e-4), (out32b, refb2)

    # 3) Default perf path: bf16-streamed x / W1^T (f32 MXU accumulation and
    #    f32 LayerNorm/fc2/output math); tolerance covers bf16 input quantization.
    outbf = jax.block_until_ready(mlp_relu_forward_batched(xb2, packed))
    assert outbf.shape == (batch_multi, 1, 1)
    assert jnp.allclose(outbf, refb2, atol=5e-2, rtol=5e-2), (outbf, refb2)

    # 4) Single-instance entry (matches the PyTorch module's forward exactly),
    #    routed through the batched kernel with B=1.
    out1 = jax.block_until_ready(
        mlp_relu_forward(x, packed, input_dtype=jnp.float32))
    assert out1.shape == (1, 1)
    assert jnp.allclose(out1, ref1, atol=2e-4, rtol=2e-4), (out1, ref1)

    print("KERNEL_OK")
</pallas_src>

<mosaic_0001>
module attributes {stable_mosaic.version = 11 : i64} {
  func.func @mlp_relu_kernel(%arg0: i32, %arg1: memref<1024x32xf32, #tpu.memory_space<vmem>>, %arg2: memref<32x32xf32, #tpu.memory_space<vmem>>, %arg3: memref<12x32xf32, #tpu.memory_space<vmem>>, %arg4: memref<2xf32, #tpu.memory_space<smem>>, %arg5: memref<1x128xf32, #tpu.memory_space<vmem>>) attributes {dimension_semantics = [#tpu.dimension_semantics<parallel>], iteration_bounds = array<i64: 1>, scalar_prefetch = 0 : i64, scratch_operands = 0 : i64, tpu.core_type = #tpu.core_type<tc>, window_params = [{transform_indices = @transform_0, window_bounds = array<i64: 1024, 32>}, {pipeline_mode = #tpu.pipeline_mode<synchronous>, transform_indices = @transform_1, window_bounds = array<i64: 32, 32>}, {pipeline_mode = #tpu.pipeline_mode<synchronous>, transform_indices = @transform_2, window_bounds = array<i64: 12, 32>}, {transform_indices = @transform_3, window_bounds = array<i64: 2>}, {transform_indices = @transform_4, window_bounds = array<i64: 1, 128>}]} {
    %c0 = arith.constant 0 : index
    %c0_0 = arith.constant 0 : index
    %0 = vector.load %arg3[%c0, %c0_0] : memref<12x32xf32, #tpu.memory_space<vmem>>, vector<1x32xf32>
    %c1 = arith.constant 1 : index
    %c0_1 = arith.constant 0 : index
    %1 = vector.load %arg3[%c1, %c0_1] : memref<12x32xf32, #tpu.memory_space<vmem>>, vector<1x32xf32>
    %c2 = arith.constant 2 : index
    %c0_2 = arith.constant 0 : index
    %2 = vector.load %arg3[%c2, %c0_2] : memref<12x32xf32, #tpu.memory_space<vmem>>, vector<1x32xf32>
    %c3 = arith.constant 3 : index
    %c0_3 = arith.constant 0 : index
    %3 = vector.load %arg3[%c3, %c0_3] : memref<12x32xf32, #tpu.memory_space<vmem>>, vector<1x32xf32>
    %c4 = arith.constant 4 : index
    %c0_4 = arith.constant 0 : index
    %4 = vector.load %arg3[%c4, %c0_4] : memref<12x32xf32, #tpu.memory_space<vmem>>, vector<8x32xf32>
    %c0_5 = arith.constant 0 : index
    %c0_6 = arith.constant 0 : index
    %5 = vector.load %arg1[%c0_5, %c0_6] : memref<1024x32xf32, #tpu.memory_space<vmem>>, vector<1024x32xf32>
    %c0_7 = arith.constant 0 : index
    %c0_8 = arith.constant 0 : index
    %6 = vector.load %arg2[%c0_7, %c0_8] : memref<32x32xf32, #tpu.memory_space<vmem>>, vector<32x32xf32>
    %cst = arith.constant dense<0.000000e+00> : vector<1024x32xf32>
    %7 = tpu.matmul %5, %6, %cst {dimension_numbers = #tpu.dot_dimension_numbers<[1], [0], [0], [1], [0, 0, 1, 1], [], []>} : vector<1024x32xf32>, vector<32x32xf32>, vector<1024x32xf32> -> vector<1024x32xf32>
    %8 = vector.broadcast %0 : vector<1x32xf32> to vector<1024x32xf32>
    %9 = arith.addf %7, %8 : vector<1024x32xf32>
    %cst_9 = arith.constant 0.000000e+00 : f32
    %10 = vector.broadcast %cst_9 : f32 to vector<1024x32xf32>
    %11 = arith.maximumf %9, %10 : vector<1024x32xf32>
    %cst_10 = arith.constant dense<0.000000e+00> : vector<1024xf32>
    %12 = vector.multi_reduction <add>, %11, %cst_10 [1] : vector<1024x32xf32> to vector<1024xf32>
    %13 = vector.shape_cast %12 : vector<1024xf32> to vector<1024x1xf32>
    %cst_11 = arith.constant 3.125000e-02 : f32
    %14 = vector.broadcast %cst_11 : f32 to vector<1024x1xf32>
    %15 = arith.mulf %13, %14 : vector<1024x1xf32>
    %16 = arith.mulf %11, %11 : vector<1024x32xf32>
    %cst_12 = arith.constant dense<0.000000e+00> : vector<1024xf32>
    %17 = vector.multi_reduction <add>, %16, %cst_12 [1] : vector<1024x32xf32> to vector<1024xf32>
    %18 = vector.shape_cast %17 : vector<1024xf32> to vector<1024x1xf32>
    %cst_13 = arith.constant 3.125000e-02 : f32
    %19 = vector.broadcast %cst_13 : f32 to vector<1024x1xf32>
    %20 = arith.mulf %18, %19 : vector<1024x1xf32>
    %21 = arith.mulf %15, %15 : vector<1024x1xf32>
    %22 = arith.subf %20, %21 : vector<1024x1xf32>
    %cst_14 = arith.constant 0.000000e+00 : f32
    %23 = vector.broadcast %cst_14 : f32 to vector<1024x1xf32>
    %24 = arith.maximumf %22, %23 : vector<1024x1xf32>
    %25 = vector.broadcast %15 : vector<1024x1xf32> to vector<1024x32xf32>
    %26 = arith.subf %11, %25 : vector<1024x32xf32>
    %cst_15 = arith.constant 9.99999974E-6 : f32
    %27 = vector.broadcast %cst_15 : f32 to vector<1024x1xf32>
    %28 = arith.addf %24, %27 : vector<1024x1xf32>
    %29 = math.rsqrt %28 : vector<1024x1xf32>
    %30 = vector.broadcast %29 : vector<1024x1xf32> to vector<1024x32xf32>
    %31 = arith.mulf %26, %30 : vector<1024x32xf32>
    %32 = vector.broadcast %1 : vector<1x32xf32> to vector<1024x32xf32>
    %33 = arith.mulf %31, %32 : vector<1024x32xf32>
    %34 = vector.broadcast %2 : vector<1x32xf32> to vector<1024x32xf32>
    %35 = arith.addf %33, %34 : vector<1024x32xf32>
    %36 = vector.shape_cast %35 : vector<1024x32xf32> to vector<128x8x32xf32>
    %37 = vector.shape_cast %4 : vector<8x32xf32> to vector<1x8x32xf32>
    %38 = vector.broadcast %37 : vector<1x8x32xf32> to vector<128x8x32xf32>
    %39 = arith.mulf %36, %38 : vector<128x8x32xf32>
    %cst_16 = arith.constant dense<0.000000e+00> : vector<128x32xf32>
    %40 = vector.multi_reduction <add>, %39, %cst_16 [1] : vector<128x8x32xf32> to vector<128x32xf32>
    %c0_17 = arith.constant 0 : index
    %41 = memref.load %arg4[%c0_17] : memref<2xf32, #tpu.memory_space<smem>>
    %42 = vector.broadcast %41 : f32 to vector<128x32xf32>
    %43 = arith.addf %40, %42 : vector<128x32xf32>
    %cst_18 = arith.constant 0.000000e+00 : f32
    %44 = vector.broadcast %cst_18 : f32 to vector<128x32xf32>
    %45 = arith.maximumf %43, %44 : vector<128x32xf32>
    %cst_19 = arith.constant dense<0.000000e+00> : vector<1x128xf32>
    %46 = tpu.matmul %3, %45, %cst_19 {dimension_numbers = #tpu.dot_dimension_numbers<[1], [1], [0], [0], [0, 0, 1, 0], [], []>} : vector<1x32xf32>, vector<128x32xf32>, vector<1x128xf32> -> vector<1x128xf32>
    %c1_20 = arith.constant 1 : index
    %47 = memref.load %arg4[%c1_20] : memref<2xf32, #tpu.memory_space<smem>>
    %48 = vector.broadcast %47 : f32 to vector<1x128xf32>
    %49 = arith.addf %46, %48 : vector<1x128xf32>
    %c0_21 = arith.constant 0 : index
    %c0_22 = arith.constant 0 : index
    %50 = vector.load %arg5[%c0_21, %c0_22] : memref<1x128xf32, #tpu.memory_space<vmem>>, vector<1x128xf32>
    tpu.vector_store %arg5[%c0_21, %c0_22], %49 {strides = array<i32>} : memref<1x128xf32, #tpu.memory_space<vmem>>, vector<1x128xf32>,
    return
  }
  func.func @transform_0(%arg0: i32) -> (i32, i32) {
    %c0_i32 = arith.constant 0 : i32
    %c0_i32_0 = arith.constant 0 : i32
    return %arg0, %c0_i32 : i32, i32
  }
  func.func @transform_1(%arg0: i32) -> (i32, i32) {
    %c0_i32 = arith.constant 0 : i32
    %c0_i32_0 = arith.constant 0 : i32
    %c0_i32_1 = arith.constant 0 : i32
    return %c0_i32, %c0_i32_0 : i32, i32
  }
  func.func @transform_2(%arg0: i32) -> (i32, i32) {
    %c0_i32 = arith.constant 0 : i32
    %c0_i32_0 = arith.constant 0 : i32
    %c0_i32_1 = arith.constant 0 : i32
    return %c0_i32, %c0_i32_0 : i32, i32
  }
  func.func @transform_3(%arg0: i32) -> i32 {
    %c0_i32 = arith.constant 0 : i32
    %c0_i32_0 = arith.constant 0 : i32
    return %c0_i32 : i32
  }
  func.func @transform_4(%arg0: i32) -> (i32, i32) {
    %c0_i32 = arith.constant 0 : i32
    %c0_i32_0 = arith.constant 0 : i32
    return %c0_i32, %arg0 : i32, i32
  }
}

</mosaic_0001>

<bundles_post_ra>
// kernel: tpu_custom_call.1
= control target key start
LH: loop header
LB: loop body
LE: loop exit
PB: predicated region body
PF: predicated region fallthrough
CT: control target
= control target key end

     0   :  { %9 = vsyncpa [#allocation4], 0  ;;  %s11508_s0 = inlined_call_operand.vmem [shape: f32[1024,32], index: 0, kind: input, shape index: {}]   ;;  %s11509_s1 = inlined_call_operand.vmem [shape: f32[32,32], index: 1, kind: input, shape index: {}]   ;;  %s11510_s2 = inlined_call_operand.vmem [shape: f32[12,32], index: 2, kind: input, shape index: {}]   ;;  %s11511_s3 = inlined_call_operand.vmem [shape: f32[2], index: 3, kind: input, shape index: {}]   ;;  %s11512_s4 = inlined_call_operand.hbm [shape: f32[1,128], index: 4, kind: output, shape index: {}]  }
   0x1   :  { %10 = vsyncpa [#allocation3], 0  ;;  %s23_s17 = sshll.u32 %s11511_s3, 4  ;;  %s24_s17 = int_to_ptr.vmem [resolvable:$true] %s23_s17 }
   0x2   :  { %s6215_s18 = scalar_lea.vmem %s24_s17, 16  ;;  %p6220_p1 = scmp.lt.s32.totalorder %s24_s17, %s24_s17 }
   0x3   :  { %p6216_p0 = scmp.ne.s32.totalorder %s24_s17, %s6215_s18  ;;  %p6221_p2 = scmp.lt.s32.totalorder %s6215_s18, %s6215_s18 }
   0x5   :  { %p6222_p3 = por %p6221_p2, %p6220_p1 }
   0x7   :  { %p6223_p4 = pnand %p6222_p3, %p6216_p0 }
   0x9   :  { %6226 = shalt.err (!%p6223_p4)
}
   0xa   :  { %s6253_s19 = smov [#allocation2]  }
   0xb   :  { %26 = dma.vmem_to_smem %s24_s17, 16, %s6253_s19, [#allocation4]  }
   0xc   :  { %6249 = dma.done.wait [#allocation4], 16  }
   0xd   :  { %6250 = vsyncadd [#allocation4], 4294967280 }
   0xe   :  { %30 = sfence }
   0xf   :  { %v164_v0 = vld [vmem:[%s11509_s1] sm:$0xff]  ;;  %v165_v1 = vld [vmem:[%s11509_s1 + $0x8] sm:$0xff]  ;;  %v166_v2 = vld [vmem:[%s11509_s1 + $0x10] sm:$0xff]  ;;  %vm172_vm0 = vcmask 261120   ;;  %s7212_s22 = sld [smem:[#allocation2]]  ;;  %vm5114_vm1 = vcmask 1041409  }
  0x10   :  { %v5887_v3 = vpack.c.bf16 %v165_v1, %v164_v0  ;;  %v167_v4 = vld [vmem:[%s11509_s1 + $0x18] sm:$0xff]  ;;  %v36_v5 = vld [vmem:[%s11508_s0] sm:$0xff]  ;;  %v102_v7 = vld [vmem:[%s11508_s0 + $0x210] sm:$0xff]  ;;  %vm5116_vm2 = vcmask 1042434   ;;  %vm5118_vm3 = vcmask 1043459   ;;  %vm5120_vm4 = vcmask 1044484  }
  0x11   :  { %v5891_v6 = vpack.c.bf16 %v167_v4, %v166_v2  ;;  %5660 = vmatprep.mubr.msk.f32.mxu0 %vm172_vm0, %v36_v5  ;;  %5759 = vmatprep.mubr.msk.f32.mxu1 %vm172_vm0, %v102_v7  ;;  %v37_v8 = vld [vmem:[%s11508_s0 + $0x8] sm:$0xff]  ;;  %v103_v9 = vld [vmem:[%s11508_s0 + $0x218] sm:$0xff]  ;;  %v38_v10 = vld [vmem:[%s11508_s0 + $0x10] sm:$0xff]  ;;  %vm5122_vm5 = vcmask 1045509   ;;  %vm5124_vm6 = vcmask 1046534   ;;  %vm5126_vm7 = vcmask 1047559  }
  0x12   :  { %5888 = vmatprep.subr.bf16.mxu0 %v5887_v3  ;;  %5927 = vmatprep.subr.bf16.mxu1 %v5887_v3  ;;  %v104_v11 = vld [vmem:[%s11508_s0 + $0x220] sm:$0xff]  ;;  %v39_v12 = vld [vmem:[%s11508_s0 + $0x18] sm:$0xff]  ;;  %v105_v13 = vld [vmem:[%s11508_s0 + $0x228] sm:$0xff]  ;;  %vm6255_vm9 = vmmov 0   ;;  %s5485_s30 = sld [smem:[#allocation2 + $0x1]]  ;;  %s6257_s1 = smov [#allocation5]  }
  0x13   :  { %5890 = vmatpush3.bf16.msra.mxu0 %v5887_v3  ;;  %5929 = vmatpush3.bf16.msra.mxu1 %v5887_v3  ;;  %v40_v14 = vld [vmem:[%s11508_s0 + $0x20] sm:$0xff]  ;;  %v106_v15 = vld [vmem:[%s11508_s0 + $0x230] sm:$0xff]  ;;  %v41_v16 = vld [vmem:[%s11508_s0 + $0x28] sm:$0xff]  ;;  %s5345_s5 = sshll.u32 %s6257_s1, 4  ;;  %s5346_s5 = int_to_ptr.vmem [resolvable:$true] %s5345_s5 }
  0x14   :  { %5892 = vmatprep.subr.bf16.mxu0 %v5891_v6  ;;  %5928 = vmatprep.subr.bf16.mxu1 %v5891_v6  ;;  %v107_v17 = vld [vmem:[%s11508_s0 + $0x238] sm:$0xff]  ;;  %v42_v18 = vld [vmem:[%s11508_s0 + $0x30] sm:$0xff]  ;;  %v108_v19 = vld [vmem:[%s11508_s0 + $0x240] sm:$0xff]  ;;  %s6227_s6 = scalar_lea.vmem %s5346_s5, 16  ;;  %s6231_s7 = scalar_lea.vmem %s5346_s5, 32 }
  0x15   :  { %v43_v20 = vld [vmem:[%s11508_s0 + $0x38] sm:$0xff]  ;;  %v109_v21 = vld [vmem:[%s11508_s0 + $0x248] sm:$0xff]  ;;  %v44_v22 = vld [vmem:[%s11508_s0 + $0x40] sm:$0xff]  ;;  %p6228_p5 = scmp.ne.s32.totalorder %s5346_s5, %s6227_s6  ;;  %p6232_p6 = scmp.lt.s32.totalorder %s5346_s5, %s5346_s5 }
  0x16   :  { %v110_v23 = vld [vmem:[%s11508_s0 + $0x250] sm:$0xff]  ;;  %v45_v24 = vld [vmem:[%s11508_s0 + $0x48] sm:$0xff]  ;;  %v111_v25 = vld [vmem:[%s11508_s0 + $0x258] sm:$0xff]  ;;  %p6233_p7 = scmp.lt.s32.totalorder %s6231_s7, %s6227_s6 }
  0x17   :  { %5894 = vmatpush3.bf16.msra.mxu0 %v5891_v6  ;;  %5930 = vmatpush3.bf16.msra.mxu1 %v5891_v6  ;;  %v46_v26 = vld [vmem:[%s11508_s0 + $0x50] sm:$0xff]  ;;  %v112_v27 = vld [vmem:[%s11508_s0 + $0x260] sm:$0xff]  ;;  %v47_v28 = vld [vmem:[%s11508_s0 + $0x58] sm:$0xff] }
  0x18   :  { %v113_v29 = vld [vmem:[%s11508_s0 + $0x268] sm:$0xff]  ;;  %v48_v30 = vld [vmem:[%s11508_s0 + $0x60] sm:$0xff]  ;;  %v114_v31 = vld [vmem:[%s11508_s0 + $0x270] sm:$0xff]  ;;  %p6234_p8 = por %p6233_p7, %p6232_p6 }
  0x19   :  { %v49_v32 = vld [vmem:[%s11508_s0 + $0x68] sm:$0xff]  ;;  %v115_v33 = vld [vmem:[%s11508_s0 + $0x278] sm:$0xff]  ;;  %v50_v34 = vld [vmem:[%s11508_s0 + $0x70] sm:$0xff] }
  0x1a   :  { %5661 = vmatmul.mubr.msk.f32.vlgmr.msra.gmra.mrb[0].mxu0 %vm172_vm0, %v37_v8  ;;  %5760 = vmatmul.mubr.msk.f32.vlgmr.msra.gmra.mrb[0].mxu1 %vm172_vm0, %v103_v9  ;;  %v116_v35 = vld [vmem:[%s11508_s0 + $0x280] sm:$0xff]  ;;  %v51_v36 = vld [vmem:[%s11508_s0 + $0x78] sm:$0xff]  ;;  %v117_v37 = vld [vmem:[%s11508_s0 + $0x288] sm:$0xff]  ;;  %p6235_p9 = pnand %p6234_p8, %p6228_p5 }
  0x1b   :  { %5663 = vmatprep.mubr.msk.f32.mxu0 %vm172_vm0, %v38_v10  ;;  %5762 = vmatprep.mubr.msk.f32.mxu1 %vm172_vm0, %v104_v11  ;;  %v118_v38 = vld [vmem:[%s11508_s0 + $0x290] sm:$0xff]  ;;  %v52_v39 = vld [vmem:[%s11508_s0 + $0x80] sm:$0xff]  ;;  %v119_v40 = vld [vmem:[%s11508_s0 + $0x298] sm:$0xff] }
  0x1c   :  { %v53_v41 = vld [vmem:[%s11508_s0 + $0x88] sm:$0xff]  ;;  %v54_v42 = vld [vmem:[%s11508_s0 + $0x90] sm:$0xff]  ;;  %v120_v43 = vld [vmem:[%s11508_s0 + $0x2a0] sm:$0xff] }
  0x1d   :  { %v55_v44 = vld [vmem:[%s11508_s0 + $0x98] sm:$0xff]  ;;  %v121_v45 = vld [vmem:[%s11508_s0 + $0x2a8] sm:$0xff]  ;;  %v56_v46 = vld [vmem:[%s11508_s0 + $0xa0] sm:$0xff] }
  0x1e   :  { %5664 = vmatmul.mubr.msk.f32.gmra.mrb[2].mxu0 %vm172_vm0, %v39_v12  ;;  %5763 = vmatmul.mubr.msk.f32.gmra.mrb[2].mxu1 %vm172_vm0, %v105_v13  ;;  %v122_v47 = vld [vmem:[%s11508_s0 + $0x2b0] sm:$0xff]  ;;  %v57_v48 = vld [vmem:[%s11508_s0 + $0xa8] sm:$0xff]  ;;  %v123_v49 = vld [vmem:[%s11508_s0 + $0x2b8] sm:$0xff] }
  0x1f   :  { %5666 = vmatprep.mubr.msk.f32.mxu0 %vm172_vm0, %v40_v14  ;;  %5765 = vmatprep.mubr.msk.f32.mxu1 %vm172_vm0, %v106_v15  ;;  %v58_v50 = vld [vmem:[%s11508_s0 + $0xb0] sm:$0xff]  ;;  %v124_v51 = vld [vmem:[%s11508_s0 + $0x2c0] sm:$0xff]  ;;  %v59_v52 = vld [vmem:[%s11508_s0 + $0xb8] sm:$0xff] }
  0x20   :  { %v125_v53 = vld [vmem:[%s11508_s0 + $0x2c8] sm:$0xff]  ;;  %v60_v54 = vld [vmem:[%s11508_s0 + $0xc0] sm:$0xff]  ;;  %v126_v55 = vld [vmem:[%s11508_s0 + $0x2d0] sm:$0xff] }
  0x21   :  { %v61_v56 = vld [vmem:[%s11508_s0 + $0xc8] sm:$0xff]  ;;  %v127_v57 = vld [vmem:[%s11508_s0 + $0x2d8] sm:$0xff]  ;;  %v62_v58 = vld [vmem:[%s11508_s0 + $0xd0] sm:$0xff] }
  0x22   :  { %5667 = vmatmul.mubr.msk.f32.gmra.mrb[4].mxu0 %vm172_vm0, %v41_v16  ;;  %5766 = vmatmul.mubr.msk.f32.gmra.mrb[4].mxu1 %vm172_vm0, %v107_v17  ;;  %v128_v59 = vld [vmem:[%s11508_s0 + $0x2e0] sm:$0xff]  ;;  %v63_v60 = vld [vmem:[%s11508_s0 + $0xd8] sm:$0xff]  ;;  %v129_v61 = vld [vmem:[%s11508_s0 + $0x2e8] sm:$0xff] }
  0x23   :  { %5669 = vmatprep.mubr.msk.f32.mxu0 %vm172_vm0, %v42_v18  ;;  %5768 = vmatprep.mubr.msk.f32.mxu1 %vm172_vm0, %v108_v19  ;;  %v64_v62 = vld [vmem:[%s11508_s0 + $0xe0] sm:$0xff]  ;;  %v65_v63 = vld [vmem:[%s11508_s0 + $0xe8] sm:$0xff]  ;;  %v66_v0 = vld [vmem:[%s11508_s0 + $0xf0] sm:$0xff] }
  0x24   :  { %v67_v1 = vld [vmem:[%s11508_s0 + $0xf8] sm:$0xff]  ;;  %v68_v2 = vld [vmem:[%s11508_s0 + $0x100] sm:$0xff]  ;;  %v69_v3 = vld [vmem:[%s11508_s0 + $0x108] sm:$0xff] }
  0x25   :  { %v70_v4 = vld [vmem:[%s11508_s0 + $0x110] sm:$0xff]  ;;  %v71_v5 = vld [vmem:[%s11508_s0 + $0x118] sm:$0xff]  ;;  %v72_v6 = vld [vmem:[%s11508_s0 + $0x120] sm:$0xff] }
  0x26   :  { %5670 = vmatmul.mubr.msk.f32.gmra.mrb[6].mxu0 %vm172_vm0, %v43_v20  ;;  %5769 = vmatmul.mubr.msk.f32.gmra.mrb[6].mxu1 %vm172_vm0, %v109_v21  ;;  %v73_v7 = vld [vmem:[%s11508_s0 + $0x128] sm:$0xff]  ;;  %v74_v8 = vld [vmem:[%s11508_s0 + $0x130] sm:$0xff]  ;;  %v75_v9 = vld [vmem:[%s11508_s0 + $0x138] sm:$0xff] }
  0x27   :  { %5672 = vmatprep.mubr.msk.f32.mxu0 %vm172_vm0, %v44_v22  ;;  %5771 = vmatprep.mubr.msk.f32.mxu1 %vm172_vm0, %v110_v23  ;;  %v76_v10 = vld [vmem:[%s11508_s0 + $0x140] sm:$0xff]  ;;  %v77_v11 = vld [vmem:[%s11508_s0 + $0x148] sm:$0xff]  ;;  %v78_v12 = vld [vmem:[%s11508_s0 + $0x150] sm:$0xff] }
  0x28   :  { %v79_v13 = vld [vmem:[%s11508_s0 + $0x158] sm:$0xff]  ;;  %v80_v14 = vld [vmem:[%s11508_s0 + $0x160] sm:$0xff]  ;;  %v81_v15 = vld [vmem:[%s11508_s0 + $0x168] sm:$0xff] }
  0x29   :  { %v82_v16 = vld [vmem:[%s11508_s0 + $0x170] sm:$0xff]  ;;  %v83_v17 = vld [vmem:[%s11508_s0 + $0x178] sm:$0xff]  ;;  %v84_v18 = vld [vmem:[%s11508_s0 + $0x180] sm:$0xff] }
  0x2a   :  { %5673 = vmatmul.mubr.msk.f32.gmra.mrb[8].mxu0 %vm172_vm0, %v45_v24  ;;  %5772 = vmatmul.mubr.msk.f32.gmra.mrb[8].mxu1 %vm172_vm0, %v111_v25  ;;  %v85_v19 = vld [vmem:[%s11508_s0 + $0x188] sm:$0xff]  ;;  %v86_v20 = vld [vmem:[%s11508_s0 + $0x190] sm:$0xff]  ;;  %v87_v21 = vld [vmem:[%s11508_s0 + $0x198] sm:$0xff] }
  0x2b   :  { %5675 = vmatprep.mubr.msk.f32.mxu0 %vm172_vm0, %v46_v26  ;;  %5774 = vmatprep.mubr.msk.f32.mxu1 %vm172_vm0, %v112_v27  ;;  %v88_v22 = vld [vmem:[%s11508_s0 + $0x1a0] sm:$0xff]  ;;  %v89_v23 = vld [vmem:[%s11508_s0 + $0x1a8] sm:$0xff]  ;;  %v90_v24 = vld [vmem:[%s11508_s0 + $0x1b0] sm:$0xff] }
  0x2c   :  { %v91_v25 = vld [vmem:[%s11508_s0 + $0x1b8] sm:$0xff]  ;;  %v92_v26 = vld [vmem:[%s11508_s0 + $0x1c0] sm:$0xff]  ;;  %v93_v27 = vld [vmem:[%s11508_s0 + $0x1c8] sm:$0xff] }
  0x2d   :  { %vm8819_vm8 = vmpackc.low %vm172_vm0, %vm172_vm0 }
  0x2e   :  { %5676 = vmatmul.mubr.msk.f32.gmra.mrb[10].mxu0 %vm172_vm0, %v47_v28  ;;  %5775 = vmatmul.mubr.msk.f32.gmra.mrb[10].mxu1 %vm172_vm0, %v113_v29  ;;  %v94_v28 = vld [vmem:[%s11508_s0 + $0x1d0] sm:$0xff]  ;;  %v95_v29 = vld [vmem:[%s11508_s0 + $0x1d8] sm:$0xff] }
  0x2f   :  { %5678 = vmatprep.mubr.msk.f32.mxu0 %vm172_vm0, %v48_v30  ;;  %5777 = vmatprep.mubr.msk.f32.mxu1 %vm172_vm0, %v114_v31  ;;  %v96_v30 = vld [vmem:[%s11508_s0 + $0x1e0] sm:$0xff]  ;;  %v97_v31 = vld [vmem:[%s11508_s0 + $0x1e8] sm:$0xff] }
  0x32   :  { %5679 = vmatmul.mubr.msk.f32.gmra.mrb[12].mxu0 %vm172_vm0, %v49_v32  ;;  %5778 = vmatmul.mubr.msk.f32.gmra.mrb[12].mxu1 %vm172_vm0, %v115_v33  ;;  %v98_v32 = vld [vmem:[%s11508_s0 + $0x1f0] sm:$0xff]  ;;  %v6664_v33 = vld [vmem:[%s11510_s2] ss:$0 sm:$0xff] }
  0x33   :  { %5681 = vmatprep.mubr.msk.f32.mxu0 %vm172_vm0, %v50_v34  ;;  %5780 = vmatprep.mubr.msk.f32.mxu1 %vm172_vm0, %v116_v35  ;;  %v99_v34 = vld [vmem:[%s11508_s0 + $0x1f8] sm:$0xff] }
  0x36   :  { %5682 = vmatmul.mubr.msk.f32.gmra.mrb[14].mxu0 %vm172_vm0, %v51_v36  ;;  %5781 = vmatmul.mubr.msk.f32.gmra.mrb[14].mxu1 %vm172_vm0, %v117_v37 }
  0x37   :  { %5783 = vmatprep.mubr.msk.f32.mxu1 %vm172_vm0, %v118_v38  ;;  %5684 = vmatprep.mubr.msk.f32.mxu0 %vm172_vm0, %v52_v39 }
  0x3a   :  { %5784 = vmatmul.mubr.msk.f32.gmra.mrb[16].mxu1 %vm172_vm0, %v119_v40  ;;  %5685 = vmatmul.mubr.msk.f32.gmra.mrb[16].mxu0 %vm172_vm0, %v53_v41 }
  0x3b   :  { %5687 = vmatprep.mubr.msk.f32.mxu0 %vm172_vm0, %v54_v42  ;;  %5786 = vmatprep.mubr.msk.f32.mxu1 %vm172_vm0, %v120_v43 }
  0x3e   :  { %5688 = vmatmul.mubr.msk.f32.gmra.mrb[18].mxu0 %vm172_vm0, %v55_v44  ;;  %5787 = vmatmul.mubr.msk.f32.gmra.mrb[18].mxu1 %vm172_vm0, %v121_v45 }
  0x3f   :  { %5690 = vmatprep.mubr.msk.f32.mxu0 %vm172_vm0, %v56_v46  ;;  %5789 = vmatprep.mubr.msk.f32.mxu1 %vm172_vm0, %v122_v47 }
  0x42   :  { %5691 = vmatmul.mubr.msk.f32.gmra.mrb[20].mxu0 %vm172_vm0, %v57_v48  ;;  %5790 = vmatmul.mubr.msk.f32.gmra.mrb[20].mxu1 %vm172_vm0, %v123_v49 }
  0x43   :  { %5693 = vmatprep.mubr.msk.f32.mxu0 %vm172_vm0, %v58_v50  ;;  %5792 = vmatprep.mubr.msk.f32.mxu1 %vm172_vm0, %v124_v51 }
  0x46   :  { %5694 = vmatmul.mubr.msk.f32.gmra.mrb[22].mxu0 %vm172_vm0, %v59_v52  ;;  %5793 = vmatmul.mubr.msk.f32.gmra.mrb[22].mxu1 %vm172_vm0, %v125_v53 }
  0x47   :  { %5696 = vmatprep.mubr.msk.f32.mxu0 %vm172_vm0, %v60_v54  ;;  %5795 = vmatprep.mubr.msk.f32.mxu1 %vm172_vm0, %v126_v55 }
  0x4a   :  { %5697 = vmatmul.mubr.msk.f32.gmra.mrb[24].mxu0 %vm172_vm0, %v61_v56  ;;  %5796 = vmatmul.mubr.msk.f32.gmra.mrb[24].mxu1 %vm172_vm0, %v127_v57 }
  0x4b   :  { %5699 = vmatprep.mubr.msk.f32.mxu0 %vm172_vm0, %v62_v58  ;;  %5798 = vmatprep.mubr.msk.f32.mxu1 %vm172_vm0, %v128_v59 }
  0x4e   :  { %5700 = vmatmul.mubr.msk.f32.gmra.mrb[26].mxu0 %vm172_vm0, %v63_v60  ;;  %5799 = vmatmul.mubr.msk.f32.gmra.mrb[26].mxu1 %vm172_vm0, %v129_v61 }
  0x4f   :  { %5702 = vmatprep.mubr.msk.f32.mxu0 %vm172_vm0, %v64_v62  ;;  %v100_v62 = vld [vmem:[%s11508_s0 + $0x200] sm:$0xff] }
  0x52   :  { %5703 = vmatmul.mubr.msk.f32.gmra.mrb[28].mxu0 %vm172_vm0, %v65_v63  ;;  %v101_v63 = vld [vmem:[%s11508_s0 + $0x208] sm:$0xff] }
  0x53   :  { %5705 = vmatprep.mubr.msk.f32.mxu0 %vm172_vm0, %v66_v0 }
  0x56   :  { %5706 = vmatmul.mubr.msk.f32.gmra.mrb[30].mxu0 %vm172_vm0, %v67_v1 }
  0x57   :  { %5708 = vmatprep.mubr.msk.f32.mxu0 %vm172_vm0, %v68_v2 }
  0x5a   :  { %5709 = vmatmul.mubr.msk.f32.gmra.mrb[32].mxu0 %vm172_vm0, %v69_v3 }
  0x5b   :  { %5711 = vmatprep.mubr.msk.f32.mxu0 %vm172_vm0, %v70_v4 }
  0x5e   :  { %5712 = vmatmul.mubr.msk.f32.gmra.mrb[34].mxu0 %vm172_vm0, %v71_v5 }
  0x5f   :  { %5714 = vmatprep.mubr.msk.f32.mxu0 %vm172_vm0, %v72_v6 }
  0x62   :  { %5715 = vmatmul.mubr.msk.f32.gmra.mrb[36].mxu0 %vm172_vm0, %v73_v7 }
  0x63   :  { %5717 = vmatprep.mubr.msk.f32.mxu0 %vm172_vm0, %v74_v8 }
  0x66   :  { %5718 = vmatmul.mubr.msk.f32.gmra.mrb[38].mxu0 %vm172_vm0, %v75_v9 }
  0x67   :  { %5720 = vmatprep.mubr.msk.f32.mxu0 %vm172_vm0, %v76_v10 }
  0x6a   :  { %5721 = vmatmul.mubr.msk.f32.gmra.mrb[40].mxu0 %vm172_vm0, %v77_v11 }
  0x6b   :  { %5723 = vmatprep.mubr.msk.f32.mxu0 %vm172_vm0, %v78_v12 }
  0x6e   :  { %5724 = vmatmul.mubr.msk.f32.gmra.mrb[42].mxu0 %vm172_vm0, %v79_v13 }
  0x6f   :  { %5726 = vmatprep.mubr.msk.f32.mxu0 %vm172_vm0, %v80_v14 }
  0x72   :  { %5727 = vmatmul.mubr.msk.f32.gmra.mrb[44].mxu0 %vm172_vm0, %v81_v15 }
  0x73   :  { %5729 = vmatprep.mubr.msk.f32.mxu0 %vm172_vm0, %v82_v16 }
  0x76   :  { %5730 = vmatmul.mubr.msk.f32.gmra.mrb[46].mxu0 %vm172_vm0, %v83_v17 }
  0x77   :  { %5732 = vmatprep.mubr.msk.f32.mxu0 %vm172_vm0, %v84_v18 }
  0x7a   :  { %5733 = vmatmul.mubr.msk.f32.gmra.mrb[48].mxu0 %vm172_vm0, %v85_v19 }
  0x7b   :  { %5735 = vmatprep.mubr.msk.f32.mxu0 %vm172_vm0, %v86_v20  ;;  %v130_v20 = vld [vmem:[%s11508_s0 + $0x2f0] sm:$0xff] }
  0x7c   :  { %5801 = vmatprep.mubr.msk.f32.mxu1 %vm172_vm0, %v130_v20 }
  0x7e   :  { %5736 = vmatmul.mubr.msk.f32.gmra.mrb[50].mxu0 %vm172_vm0, %v87_v21 }
  0x7f   :  { %5738 = vmatprep.mubr.msk.f32.mxu0 %vm172_vm0, %v88_v22 }
  0x82   :  { %5739 = vmatmul.mubr.msk.f32.gmra.mrb[52].mxu0 %vm172_vm0, %v89_v23 }
  0x83   :  { %5741 = vmatprep.mubr.msk.f32.mxu0 %vm172_vm0, %v90_v24 }
  0x86   :  { %5742 = vmatmul.mubr.msk.f32.gmra.mrb[54].mxu0 %vm172_vm0, %v91_v25  ;;  %v131_v25 = vld [vmem:[%s11508_s0 + $0x2f8] sm:$0xff] }
  0x87   :  { %5744 = vmatprep.mubr.msk.f32.mxu0 %vm172_vm0, %v92_v26  ;;  %5802 = vmatmul.mubr.msk.f32.gmra.mrb[28].mxu1 %vm172_vm0, %v131_v25 }
  0x8a   :  { %5745 = vmatmul.mubr.msk.f32.gmra.mrb[56].mxu0 %vm172_vm0, %v93_v27 }
  0x8b   :  { %5747 = vmatprep.mubr.msk.f32.mxu0 %vm172_vm0, %v94_v28 }
  0x8e   :  { %5748 = vmatmul.mubr.msk.f32.gmra.mrb[58].mxu0 %vm172_vm0, %v95_v29 }
  0x8f   :  { %5750 = vmatprep.mubr.msk.f32.mxu0 %vm172_vm0, %v96_v30 }
  0x92   :  { %5751 = vmatmul.mubr.msk.f32.gmra.mrb[60].mxu0 %vm172_vm0, %v97_v31 }
  0x93   :  { %5753 = vmatprep.mubr.msk.f32.mxu0 %vm172_vm0, %v98_v32 }
  0x96   :  { %5754 = vmatmul.mubr.msk.f32.gmra.mrb[62].mxu0 %vm172_vm0, %v99_v34 }
  0x97   :  { %5756 = vmatprep.mubr.msk.f32.mxu0 %vm172_vm0, %v100_v62 }
  0x9a   :  { %5757 = vmatmul.mubr.msk.f32.gmra.mrb[64].mxu0 %vm172_vm0, %v101_v63 }
  0xed   :  { %v5662_v35 = vpop.f32.mrb[0].mxu0  ;;  %v5761_v36 = vpop.f32.mrb[0].mxu1 }
  0xee   :  { %v629_v37 = vadd.f32 %v5662_v35, %v6664_v33  ;;  %v623_v38 = vpop.f32.mrb[1].mxu0  ;;  %v959_v39 = vadd.f32 %v5761_v36, %v6664_v33  ;;  %v953_v40 = vpop.f32.mrb[1].mxu1 }
  0xef   :  { %v624_v41 = vadd.f32 %v6664_v33, %v623_v38  ;;  %v954_v58 = vadd.f32 %v6664_v33, %v953_v40  ;;  %v132_v38 = vld [vmem:[%s11508_s0 + $0x300] sm:$0xff] }
  0xf0   :  { %v6674_v42 = vmax.f32 %v629_v37, 0.0  ;;  %v6676_v43 = vmax.f32 %v959_v39, 0.0  ;;  %5804 = vmatprep.mubr.msk.f32.mxu1 %vm172_vm0, %v132_v38 }
  0xf1   :  { %v6678_v44 = vmax.f32 %v624_v41, 0.0  ;;  %v5665_v45 = vpop.f32.mrb[2].mxu0  ;;  %v5764_v46 = vpop.f32.mrb[2].mxu1  ;;  %v6712_v3 = vmax.f32 %v954_v58, 0.0  ;;  %v133_v41 = vld [vmem:[%s11508_s0 + $0x308] sm:$0xff]  ;;  %v135_v58 = vld [vmem:[%s11508_s0 + $0x318] sm:$0xff] }
  0xf2   :  { %v1393_v47 = vsel %vm172_vm0, %v6674_v42, 0.0  ;;  %v639_v48 = vadd.f32 %v5665_v45, %v6664_v33  ;;  %v633_v49 = vpop.f32.mrb[3].mxu0  ;;  %v6683_v50 = vpop.f32.mrb[3].mxu1  ;;  %v1591_v53 = vsel %vm172_vm0, %v6676_v43, 0.0  ;;  %v1903_v12 = vmul.f32 %v6674_v42, %v6674_v42  ;;  %5805 = vmatmul.mubr.msk.f32.gmra.mrb[30].mxu1 %vm172_vm0, %v133_v41 }
  0xf3   :  { %1394 = vadd.xlane.f32.xlu0 %v1393_v47  ;;  %v1902_v51 = vmul.f32 %v6678_v44, %v6678_v44  ;;  %v634_v54 = vadd.f32 %v6664_v33, %v633_v49  ;;  %v1390_v4 = vsel %vm172_vm0, %v6678_v44, 0.0  ;;  %v1588_v11 = vsel %vm172_vm0, %v6712_v3, 0.0 }
  0xf4   :  { %v6687_v52 = vmax.f32 %v639_v48, 0.0  ;;  %v2033_v21 = vsel %vm172_vm0, %v1903_v12, 0.0  ;;  %v1969_v22 = vmul.f32 %v6676_v43, %v6676_v43  ;;  %v969_v27 = vadd.f32 %v5764_v46, %v6664_v33 }
  0xf5   :  { %v2030_v55 = vsel %vm172_vm0, %v1902_v51, 0.0  ;;  %v5668_v56 = vpop.f32.mrb[4].mxu0  ;;  %v6693_v57 = vpop.f32.mrb[4].mxu1  ;;  %v6707_v0 = vmax.f32 %v634_v54, 0.0  ;;  %v1968_v34 = vmul.f32 %v6712_v3, %v6712_v3  ;;  %v964_v40 = vadd.f32 %v6664_v33, %v6683_v50 }
  0xf6   :  { %2031 = vadd.xlane.f32.xlu1 %v2030_v55  ;;  %v643_v59 = vpop.f32.mrb[5].mxu0  ;;  %v6696_v60 = vpop.f32.mrb[5].mxu1  ;;  %v1399_v61 = vsel %vm172_vm0, %v6687_v52, 0.0  ;;  %v1905_v8 = vmul.f32 %v6687_v52, %v6687_v52  ;;  %v649_v15 = vadd.f32 %v5668_v56, %v6664_v33  ;;  %v2231_v32 = vsel %vm172_vm0, %v1969_v22, 0.0  ;;  %v134_v56 = vld [vmem:[%s11508_s0 + $0x310] sm:$0xff] }
  0xf7   :  { %1592 = vadd.xlane.f32.xlu0 %v1591_v53  ;;  %v1396_v7 = vsel %vm172_vm0, %v6707_v0, 0.0  ;;  %v1904_v17 = vmul.f32 %v6707_v0, %v6707_v0  ;;  %v644_v28 = vadd.f32 %v6664_v33, %v643_v59  ;;  %v6780_v39 = vmax.f32 %v969_v27, 0.0  ;;  %5807 = vmatprep.mubr.msk.f32.mxu1 %vm172_vm0, %v134_v56 }
  0xf8   :  { %v2039_v16 = vsel %vm172_vm0, %v1905_v8, 0.0  ;;  %v6758_v26 = vmax.f32 %v649_v15, 0.0  ;;  %v2228_v49 = vsel %vm172_vm0, %v1968_v34, 0.0  ;;  %v6803_v54 = vmax.f32 %v964_v40, 0.0  ;;  %5808 = vmatmul.mubr.msk.f32.gmra.mrb[32].mxu1 %vm172_vm0, %v135_v58  ;;  %v137_v15 = vld [vmem:[%s11508_s0 + $0x328] sm:$0xff] }
  0xf9   :  { %v5671_v1 = vpop.f32.mrb[6].mxu0  ;;  %v6709_v2 = vpop.f32.mrb[6].mxu1  ;;  %v2036_v29 = vsel %vm172_vm0, %v1904_v17, 0.0  ;;  %11719 = vst [vmem:[#allocation8_spill] sm:$0xff] %v6780_v39  ;;  %v6788_v45 = vmax.f32 %v644_v28, 0.0  ;;  %v1597_v55 = vsel %vm172_vm0, %v6780_v39, 0.0 }
  0xfa   :  { %1400 = vadd.xlane.f32.xlu1 %v1399_v61  ;;  %v6716_v5 = vpop.f32.mrb[7].mxu0  ;;  %v6718_v6 = vpop.f32.mrb[7].mxu1  ;;  %v1405_v37 = vsel %vm172_vm0, %v6758_v26, 0.0  ;;  %v1907_v46 = vmul.f32 %v6758_v26, %v6758_v26  ;;  %v659_v53 = vadd.f32 %v5671_v1, %v6664_v33  ;;  %11721 = vst [vmem:[#allocation10_spill] sm:$0xff] %v6803_v54  ;;  %v989_v8 = vadd.f32 %v6709_v2, %v6664_v33  ;;  %v138_v28 = vld [vmem:[%s11508_s0 + $0x330] sm:$0xff] }
  0xfb   :  { %1391 = vadd.xlane.f32.xlu0 %v1390_v4  ;;  %11720 = vst [vmem:[#allocation9_spill] sm:$0xff] %v6788_v45  ;;  %v1906_v61 = vmul.f32 %v6788_v45, %v6788_v45  ;;  %v1594_v12 = vsel %vm172_vm0, %v6803_v54, 0.0  ;;  %v1971_v2 = vmul.f32 %v6780_v39, %v6780_v39  ;;  %v1970_v40 = vmul.f32 %v6803_v54, %v6803_v54 }
  0xfc   :  { %v2045_v59 = vsel %vm172_vm0, %v1907_v46, 0.0  ;;  %v6851_v25 = vmax.f32 %v989_v8, 0.0 }
  0xfd   :  { %v6724_v9 = vpop.f32.mrb[8].mxu0  ;;  %v6726_v10 = vpop.f32.mrb[8].mxu1  ;;  %v2237_v38 = vsel %vm172_vm0, %v1971_v2, 0.0  ;;  %v2234_v8 = vsel %vm172_vm0, %v1970_v40, 0.0  ;;  %v974_v2 = vadd.f32 %v6664_v33, %v6696_v60  ;;  %v1402_v60 = vsel %vm172_vm0, %v6788_v45, 0.0 }
  0xfe   :  { %1397 = vadd.xlane.f32.xlu1 %v1396_v7  ;;  %v6732_v13 = vpop.f32.mrb[9].mxu0  ;;  %v6734_v14 = vpop.f32.mrb[9].mxu1  ;;  %v6826_v7 = vmax.f32 %v659_v53, 0.0  ;;  %11723 = vst [vmem:[#allocation12_spill] sm:$0xff] %v6851_v25  ;;  %v141_v53 = vld [vmem:[%s11508_s0 + $0x348] sm:$0xff] }
  0xff   :  { %1589 = vadd.xlane.f32.xlu0 %v1588_v11  ;;  %v136_v11 = vld [vmem:[%s11508_s0 + $0x320] sm:$0xff]  ;;  %v6917_v40 = vmax.f32 %v974_v2, 0.0 }
 0x100   :  { %11722 = vst [vmem:[#allocation11_spill] sm:$0xff] %v6826_v7  ;;  %5810 = vmatprep.mubr.msk.f32.mxu1 %vm172_vm0, %v136_v11  ;;  %v1411_v27 = vsel %vm172_vm0, %v6826_v7, 0.0  ;;  %v1909_v56 = vmul.f32 %v6826_v7, %v6826_v7 }
 0x101   :  { %v6740_v18 = vpop.f32.mrb[10].mxu0  ;;  %v6742_v19 = vpop.f32.mrb[10].mxu1  ;;  %5811 = vmatmul.mubr.msk.f32.gmra.mrb[34].mxu1 %vm172_vm0, %v137_v15  ;;  %11726 = vst [vmem:[#allocation15_spill] sm:$0xff] %v6917_v40 }
 0x102   :  { %2040 = vadd.xlane.f32.xlu1 %v2039_v16  ;;  %v6750_v23 = vpop.f32.mrb[11].mxu0  ;;  %v6752_v24 = vpop.f32.mrb[11].mxu1  ;;  %v2042_v16 = vsel %vm172_vm0, %v1906_v61, 0.0  ;;  %5813 = vmatprep.mubr.msk.f32.mxu1 %vm172_vm0, %v138_v28  ;;  %v2051_v15 = vsel %vm172_vm0, %v1909_v56, 0.0  ;;  %v669_v28 = vadd.f32 %v6724_v9, %v6664_v33 }
 0x103   :  { %2034 = vadd.xlane.f32.xlu0 %v2033_v21 }
 0x104   :  { %v6926_v9 = vmax.f32 %v669_v28, 0.0 }
 0x105   :  { %v6764_v30 = vpop.f32.mrb[12].mxu0  ;;  %v6766_v31 = vpop.f32.mrb[12].mxu1 }
 0x106   :  { %2037 = vadd.xlane.f32.xlu1 %v2036_v29  ;;  %v6771_v35 = vpop.f32.mrb[13].mxu0  ;;  %v6773_v36 = vpop.f32.mrb[13].mxu1  ;;  %v139_v29 = vld [vmem:[%s11508_s0 + $0x338] sm:$0xff]  ;;  %11727 = vst [vmem:[#allocation16_spill] sm:$0xff] %v6926_v9 }
 0x107   :  { %2232 = vadd.xlane.f32.xlu0 %v2231_v32  ;;  %5814 = vmatmul.mubr.msk.f32.gmra.mrb[36].mxu1 %vm172_vm0, %v139_v29 }
 0x109   :  { %v6792_v47 = vpop.f32.mrb[14].mxu0  ;;  %v6794_v48 = vpop.f32.mrb[14].mxu1 }
 0x10a   :  { %1406 = vadd.xlane.f32.xlu1 %v1405_v37  ;;  %v6798_v50 = vpop.f32.mrb[15].mxu0  ;;  %v6800_v51 = vpop.f32.mrb[15].mxu1  ;;  %v979_v37 = vadd.f32 %v6693_v57, %v6664_v33  ;;  %v140_v57 = vld [vmem:[%s11508_s0 + $0x340] sm:$0xff] }
 0x10b   :  { %2229 = vadd.xlane.f32.xlu0 %v2228_v49  ;;  %v1609_v49 = vsel %vm172_vm0, %v6851_v25, 0.0  ;;  %5816 = vmatprep.mubr.msk.f32.mxu1 %vm172_vm0, %v140_v57  ;;  %v142_v57 = vld [vmem:[%s11508_s0 + $0x350] sm:$0xff] }
 0x10c   :  { %v6893_v61 = vmax.f32 %v979_v37, 0.0  ;;  %5817 = vmatmul.mubr.msk.f32.gmra.mrb[38].mxu1 %vm172_vm0, %v141_v53  ;;  %v999_v53 = vadd.f32 %v6726_v10, %v6664_v33  ;;  %v1417_v10 = vsel %vm172_vm0, %v6926_v9, 0.0 }
 0x10d   :  { %v6816_v62 = vpop.f32.mrb[16].mxu1  ;;  %v6818_v63 = vpop.f32.mrb[16].mxu0  ;;  %5819 = vmatprep.mubr.msk.f32.mxu1 %vm172_vm0, %v142_v57 }
 0x10e   :  { %2046 = vadd.xlane.f32.xlu1 %v2045_v59  ;;  %v6821_v1 = vpop.f32.mrb[17].mxu0  ;;  %v6823_v4 = vpop.f32.mrb[17].mxu1  ;;  %11724 = vst [vmem:[#allocation13_spill] sm:$0xff] %v6893_v61 }
 0x10f   :  { %1598 = vadd.xlane.f32.xlu0 %v1597_v55  ;;  %v654_v55 = vadd.f32 %v6664_v33, %v6716_v5 }
 0x111   :  { %v6840_v17 = vpop.f32.mrb[18].mxu0  ;;  %v6842_v20 = vpop.f32.mrb[18].mxu1  ;;  %v6901_v5 = vmax.f32 %v654_v55, 0.0  ;;  %v143_v55 = vld [vmem:[%s11508_s0 + $0x358] sm:$0xff] }
 0x112   :  { %2043 = vadd.xlane.f32.xlu1 %v2042_v16  ;;  %v6846_v21 = vpop.f32.mrb[19].mxu0  ;;  %v6848_v22 = vpop.f32.mrb[19].mxu1  ;;  %v1975_v16 = vmul.f32 %v6851_v25, %v6851_v25  ;;  %5820 = vmatmul.mubr.msk.f32.gmra.mrb[40].mxu1 %vm172_vm0, %v143_v55 }
 0x113   :  { %1595 = vadd.xlane.f32.xlu0 %v1594_v12  ;;  %11725 = vst [vmem:[#allocation14_spill] sm:$0xff] %v6901_v5  ;;  %v1908_v37 = vmul.f32 %v6901_v5, %v6901_v5 }
 0x114   :  { %v2249_v29 = vsel %vm172_vm0, %v1975_v16, 0.0  ;;  %v6940_v16 = vmax.f32 %v999_v53, 0.0  ;;  %v664_v53 = vadd.f32 %v6664_v33, %v6732_v13 }
 0x115   :  { %v6862_v32 = vpop.f32.mrb[20].mxu0  ;;  %v6864_v34 = vpop.f32.mrb[20].mxu1  ;;  %v2048_v56 = vsel %vm172_vm0, %v1908_v37, 0.0 }
 0x116   :  { %1412 = vadd.xlane.f32.xlu1 %v1411_v27  ;;  %v6871_v41 = vpop.f32.mrb[21].mxu0  ;;  %v6873_v46 = vpop.f32.mrb[21].mxu1  ;;  %v1603_v27 = vsel %vm172_vm0, %v6893_v61, 0.0  ;;  %11728 = vst [vmem:[#allocation17_spill] sm:$0xff] %v6940_v16  ;;  %v1615_v57 = vsel %vm172_vm0, %v6940_v16, 0.0 }
 0x117   :  { %2238 = vadd.xlane.f32.xlu0 %v2237_v38 }
 0x119   :  { %v6889_v58 = vpop.f32.mrb[22].mxu0  ;;  %v6891_v59 = vpop.f32.mrb[22].mxu1 }
 0x11a   :  { %1610 = vadd.xlane.f32.xlu1 %v1609_v49  ;;  %v6896_v11 = vpop.f32.mrb[23].mxu0  ;;  %v6898_v12 = vpop.f32.mrb[23].mxu1 }
 0x11b   :  { %2235 = vadd.xlane.f32.xlu0 %v2234_v8  ;;  %v1600_v8 = vsel %vm172_vm0, %v6917_v40, 0.0 }
 0x11d   :  { %v6915_v38 = vpop.f32.mrb[24].mxu0  ;;  %v6944_v2 = vpop.f32.mrb[24].mxu1 }
 0x11e   :  { %2052 = vadd.xlane.f32.xlu1 %v2051_v15  ;;  %v6921_v49 = vpop.f32.mrb[25].mxu0  ;;  %v1973_v15 = vmul.f32 %v6893_v61, %v6893_v61 }
 0x11f   :  { %1604 = vadd.xlane.f32.xlu0 %v1603_v27  ;;  %v994_v27 = vadd.f32 %v6664_v33, %v6734_v14  ;;  %v984_v14 = vadd.f32 %v6664_v33, %v6718_v6  ;;  %v1408_v6 = vsel %vm172_vm0, %v6901_v5, 0.0 }
 0x120   :  { %v2243_v37 = vsel %vm172_vm0, %v1973_v15, 0.0  ;;  %v6966_v15 = vmax.f32 %v664_v53, 0.0 }
 0x121   :  { %v6948_v28 = vpop.f32.mrb[26].mxu0  ;;  %v6959_v55 = vmax.f32 %v994_v27, 0.0  ;;  %v6972_v13 = vmax.f32 %v984_v14, 0.0  ;;  %v679_v14 = vadd.f32 %v6740_v18, %v6664_v33  ;;  %v144_v18 = vld [vmem:[%s11508_s0 + $0x360] sm:$0xff] }
 0x122   :  { %2250 = vadd.xlane.f32.xlu1 %v2249_v29  ;;  %v6950_v29 = vpop.f32.mrb[25].mxu1  ;;  %11730 = vst [vmem:[#allocation19_spill] sm:$0xff] %v6966_v15  ;;  %5822 = vmatprep.mubr.msk.f32.mxu1 %vm172_vm0, %v144_v18 }
 0x123   :  { %1403 = vadd.xlane.f32.xlu0 %v1402_v60  ;;  %v1972_v60 = vmul.f32 %v6917_v40, %v6917_v40  ;;  %11729 = vst [vmem:[#allocation18_spill] sm:$0xff] %v6959_v55  ;;  %11731 = vst [vmem:[#allocation20_spill] sm:$0xff] %v6972_v13  ;;  %v1974_v53 = vmul.f32 %v6972_v13, %v6972_v13  ;;  %v1044_v40 = vadd.f32 %v6664_v33, %v6848_v22 }
 0x124   :  { %v1069_v22 = vadd.f32 %v6891_v59, %v6664_v33  ;;  %v1059_v59 = vadd.f32 %v6864_v34, %v6664_v33 }
 0x126   :  { %2049 = vadd.xlane.f32.xlu1 %v2048_v56  ;;  %v2240_v56 = vsel %vm172_vm0, %v1972_v60, 0.0  ;;  %v1910_v60 = vmul.f32 %v6966_v15, %v6966_v15 }
 0x127   :  { %1601 = vadd.xlane.f32.xlu0 %v1600_v8  ;;  %v6964_v8 = vpop.f32.mrb[27].mxu0 }
 0x12a   :  { %1418 = vadd.xlane.f32.xlu1 %v1417_v10  ;;  %v1612_v10 = vsel %vm172_vm0, %v6959_v55, 0.0 }
 0x12b   :  { %2244 = vadd.xlane.f32.xlu0 %v2243_v37  ;;  %v1977_v37 = vmul.f32 %v6940_v16, %v6940_v16 }
 0x12d   :  { %v2255_v27 = vsel %vm172_vm0, %v1977_v37, 0.0  ;;  %v2246_v37 = vsel %vm172_vm0, %v1974_v53, 0.0  ;;  %v1911_v53 = vmul.f32 %v6926_v9, %v6926_v9 }
 0x12e   :  { %1616 = vadd.xlane.f32.xlu1 %v1615_v57  ;;  %v1606_v57 = vsel %vm172_vm0, %v6972_v13, 0.0  ;;  %v158_v13 = vld [vmem:[%s11508_s0 + $0x3d0] sm:$0xff] }
 0x12f   :  { %2241 = vadd.xlane.f32.xlu0 %v2240_v56  ;;  %v2054_v56 = vsel %vm172_vm0, %v1910_v60, 0.0  ;;  %v674_v60 = vadd.f32 %v6664_v33, %v6750_v23  ;;  %v7012_v23 = vpop.f32.mrb[28].mxu0  ;;  %v2057_v18 = vsel %vm172_vm0, %v1911_v53, 0.0  ;;  %v684_v53 = vadd.f32 %v6664_v33, %v6771_v35 }
 0x130   :  { %v769_v45 = vadd.f32 %v7012_v23, %v6664_v33 }
 0x132   :  { %1613 = vadd.xlane.f32.xlu1 %v1612_v10  ;;  %v1976_v10 = vmul.f32 %v6959_v55, %v6959_v55  ;;  %v7428_v7 = vmax.f32 %v769_v45, 0.0 }
 0x133   :  { %1409 = vadd.xlane.f32.xlu0 %v1408_v6  ;;  %v6989_v6 = vmax.f32 %v679_v14, 0.0 }
 0x134   :  { %v2252_v5 = vsel %vm172_vm0, %v1976_v10, 0.0  ;;  %v7016_v10 = vpop.f32.mrb[29].mxu0  ;;  %11767 = vst [vmem:[#allocation56_spill] sm:$0xff] %v7428_v7 }
 0x135   :  { %11732 = vst [vmem:[#allocation21_spill] sm:$0xff] %v6989_v6  ;;  %v7046_v35 = vpop.f32.mrb[30].mxu0 }
 0x136   :  { %2256 = vadd.xlane.f32.xlu1 %v2255_v27  ;;  %v1009_v27 = vadd.f32 %v6742_v19, %v6664_v33  ;;  %v145_v19 = vld [vmem:[%s11508_s0 + $0x368] sm:$0xff] }
 0x137   :  { %1607 = vadd.xlane.f32.xlu0 %v1606_v57  ;;  %v1414_v57 = vsel %vm172_vm0, %v6966_v15, 0.0  ;;  %5823 = vmatmul.mubr.msk.f32.gmra.mrb[42].mxu1 %vm172_vm0, %v145_v19 }
 0x138   :  { %v7007_v14 = vmax.f32 %v1009_v27, 0.0 }
 0x13a   :  { %2055 = vadd.xlane.f32.xlu1 %v2054_v56  ;;  %11733 = vst [vmem:[#allocation22_spill] sm:$0xff] %v7007_v14  ;;  %v1423_v56 = vsel %vm172_vm0, %v6989_v6, 0.0  ;;  %v1621_v27 = vsel %vm172_vm0, %v7007_v14, 0.0 }
 0x13b   :  { %2247 = vadd.xlane.f32.xlu0 %v2246_v37  ;;  %v7018_v37 = vmax.f32 %v674_v60, 0.0  ;;  %v689_v60 = vadd.f32 %v6764_v30, %v6664_v33  ;;  %v7044_v30 = vmax.f32 %v684_v53, 0.0  ;;  %v147_v53 = vld [vmem:[%s11508_s0 + $0x378] sm:$0xff] }
 0x13d   :  { %11734 = vst [vmem:[#allocation23_spill] sm:$0xff] %v7018_v37  ;;  %v1420_v19 = vsel %vm172_vm0, %v7018_v37, 0.0  ;;  %11737 = vst [vmem:[#allocation26_spill] sm:$0xff] %v7044_v30 }
 0x13e   :  { %2253 = vadd.xlane.f32.xlu1 %v2252_v5  ;;  %v1004_v5 = vadd.f32 %v6664_v33, %v6752_v24  ;;  %v1913_v24 = vmul.f32 %v6989_v6, %v6989_v6  ;;  %v7042_v6 = vmax.f32 %v689_v60, 0.0 }
 0x13f   :  { %1415 = vadd.xlane.f32.xlu0 %v1414_v57 }
 0x140   :  { %v7023_v57 = vmax.f32 %v1004_v5, 0.0  ;;  %v1979_v5 = vmul.f32 %v7007_v14, %v7007_v14  ;;  %11736 = vst [vmem:[#allocation25_spill] sm:$0xff] %v7042_v6 }
 0x142   :  { %1424 = vadd.xlane.f32.xlu1 %v1423_v56  ;;  %11735 = vst [vmem:[#allocation24_spill] sm:$0xff] %v7023_v57  ;;  %v1618_v56 = vsel %vm172_vm0, %v7023_v57, 0.0  ;;  %v2261_v15 = vsel %vm172_vm0, %v1979_v5, 0.0  ;;  %v1019_v5 = vadd.f32 %v6766_v31, %v6664_v33  ;;  %v148_v31 = vld [vmem:[%s11508_s0 + $0x380] sm:$0xff] }
 0x143   :  { %2058 = vadd.xlane.f32.xlu0 %v2057_v18  ;;  %v2063_v18 = vsel %vm172_vm0, %v1913_v24, 0.0  ;;  %v7053_v24 = vpop.f32.mrb[31].mxu0 }
 0x146   :  { %1622 = vadd.xlane.f32.xlu1 %v1621_v27  ;;  %v1912_v27 = vmul.f32 %v7018_v37, %v7018_v37  ;;  %v694_v37 = vadd.f32 %v6664_v33, %v6798_v50  ;;  %v150_v50 = vld [vmem:[%s11508_s0 + $0x390] sm:$0xff] }
 0x147   :  { %1421 = vadd.xlane.f32.xlu0 %v1420_v19  ;;  %v7040_v19 = vpop.f32.mrb[26].mxu1 }
 0x148   :  { %v7048_v9 = vpop.f32.mrb[27].mxu1  ;;  %v2060_v60 = vsel %vm172_vm0, %v1912_v27, 0.0 }
 0x14a   :  { %1619 = vadd.xlane.f32.xlu1 %v1618_v56  ;;  %v1978_v56 = vmul.f32 %v7023_v57, %v7023_v57  ;;  %v1426_v57 = vsel %vm172_vm0, %v7044_v30, 0.0 }
 0x14b   :  { %2064 = vadd.xlane.f32.xlu0 %v2063_v18  ;;  %v146_v18 = vld [vmem:[%s11508_s0 + $0x370] sm:$0xff] }
 0x14c   :  { %5825 = vmatprep.mubr.msk.f32.mxu1 %vm172_vm0, %v146_v18  ;;  %v2258_v27 = vsel %vm172_vm0, %v1978_v56, 0.0  ;;  %v7071_v18 = vmax.f32 %v1019_v5, 0.0  ;;  %v149_v56 = vld [vmem:[%s11508_s0 + $0x388] sm:$0xff]  ;;  %v1914_v5 = vmul.f32 %v7044_v30, %v7044_v30 }
 0x14d   :  { %5826 = vmatmul.mubr.msk.f32.gmra.mrb[44].mxu1 %vm172_vm0, %v147_v53 }
 0x14e   :  { %2262 = vadd.xlane.f32.xlu1 %v2261_v15  ;;  %v1915_v15 = vmul.f32 %v7042_v6, %v7042_v6  ;;  %11738 = vst [vmem:[#allocation27_spill] sm:$0xff] %v7071_v18  ;;  %5828 = vmatprep.mubr.msk.f32.mxu1 %vm172_vm0, %v148_v31  ;;  %v1024_v31 = vadd.f32 %v6664_v33, %v6800_v51  ;;  %v2066_v51 = vsel %vm172_vm0, %v1914_v5, 0.0 }
 0x14f   :  { %2061 = vadd.xlane.f32.xlu0 %v2060_v60  ;;  %v1429_v60 = vsel %vm172_vm0, %v7042_v6, 0.0  ;;  %v1981_v5 = vmul.f32 %v7071_v18, %v7071_v18 }
 0x150   :  { %v2069_v53 = vsel %vm172_vm0, %v1915_v15, 0.0  ;;  %v1627_v15 = vsel %vm172_vm0, %v7071_v18, 0.0  ;;  %v7116_v6 = vmax.f32 %v1024_v31, 0.0  ;;  %v154_v31 = vld [vmem:[%s11508_s0 + $0x3b0] sm:$0xff]  ;;  %v155_v18 = vld [vmem:[%s11508_s0 + $0x3b8] sm:$0xff] }
 0x151   :  { %5829 = vmatmul.mubr.msk.f32.gmra.mrb[46].mxu1 %vm172_vm0, %v149_v56 }
 0x152   :  { %2259 = vadd.xlane.f32.xlu1 %v2258_v27  ;;  %v7095_v27 = vmax.f32 %v694_v37, 0.0  ;;  %5831 = vmatprep.mubr.msk.f32.mxu1 %vm172_vm0, %v150_v50  ;;  %v699_v37 = vadd.f32 %v6792_v47, %v6664_v33  ;;  %v152_v50 = vld [vmem:[%s11508_s0 + $0x3a0] sm:$0xff]  ;;  %11741 = vst [vmem:[#allocation30_spill] sm:$0xff] %v7116_v6 }
 0x153   :  { %1427 = vadd.xlane.f32.xlu0 %v1426_v57  ;;  %v1014_v57 = vadd.f32 %v6664_v33, %v6773_v36  ;;  %v7099_v36 = vpop.f32.mrb[32].mxu0 }
 0x154   :  { %11739 = vst [vmem:[#allocation28_spill] sm:$0xff] %v7095_v27  ;;  %v7107_v56 = vpop.f32.mrb[33].mxu0 }
 0x156   :  { %1430 = vadd.xlane.f32.xlu1 %v1429_v60  ;;  %v151_v60 = vld [vmem:[%s11508_s0 + $0x398] sm:$0xff] }
 0x157   :  { %2070 = vadd.xlane.f32.xlu0 %v2069_v53  ;;  %v7105_v53 = vmax.f32 %v1014_v57, 0.0  ;;  %5832 = vmatmul.mubr.msk.f32.gmra.mrb[48].mxu1 %vm172_vm0, %v151_v60  ;;  %v1432_v57 = vsel %vm172_vm0, %v7095_v27, 0.0  ;;  %v153_v60 = vld [vmem:[%s11508_s0 + $0x3a8] sm:$0xff] }
 0x158   :  { %5834 = vmatprep.mubr.msk.f32.mxu1 %vm172_vm0, %v152_v50  ;;  %v7136_v50 = vpop.f32.mrb[34].mxu0 }
 0x159   :  { %11740 = vst [vmem:[#allocation29_spill] sm:$0xff] %v7105_v53  ;;  %v1624_v47 = vsel %vm172_vm0, %v7105_v53, 0.0 }
 0x15a   :  { %1628 = vadd.xlane.f32.xlu1 %v1627_v15  ;;  %v7129_v15 = vmax.f32 %v699_v37, 0.0  ;;  %v2267_v37 = vsel %vm172_vm0, %v1981_v5, 0.0  ;;  %v156_v5 = vld [vmem:[%s11508_s0 + $0x3c0] sm:$0xff] }
 0x15b   :  { %2067 = vadd.xlane.f32.xlu0 %v2066_v51  ;;  %5835 = vmatmul.mubr.msk.f32.gmra.mrb[50].mxu1 %vm172_vm0, %v153_v60  ;;  %v1630_v51 = vsel %vm172_vm0, %v7116_v6, 0.0  ;;  %v7145_v60 = vpop.f32.mrb[35].mxu0 }
 0x15c   :  { %11742 = vst [vmem:[#allocation31_spill] sm:$0xff] %v7129_v15  ;;  %5837 = vmatprep.mubr.msk.f32.mxu1 %vm172_vm0, %v154_v31  ;;  %v1029_v31 = vadd.f32 %v6794_v48, %v6664_v33  ;;  %v157_v48 = vld [vmem:[%s11508_s0 + $0x3c8] sm:$0xff] }
 0x15e   :  { %1625 = vadd.xlane.f32.xlu1 %v1624_v47  ;;  %v1917_v47 = vmul.f32 %v7129_v15, %v7129_v15 }
 0x15f   :  { %1433 = vadd.xlane.f32.xlu0 %v1432_v57  ;;  %v1980_v57 = vmul.f32 %v7105_v53, %v7105_v53  ;;  %5838 = vmatmul.mubr.msk.f32.gmra.mrb[52].mxu1 %vm172_vm0, %v155_v18  ;;  %v1916_v18 = vmul.f32 %v7095_v27, %v7095_v27  ;;  %v704_v27 = vadd.f32 %v6664_v33, %v6821_v1 }
 0x160   :  { %v2075_v53 = vsel %vm172_vm0, %v1917_v47, 0.0  ;;  %5840 = vmatprep.mubr.msk.f32.mxu1 %vm172_vm0, %v156_v5  ;;  %v1435_v47 = vsel %vm172_vm0, %v7129_v15, 0.0  ;;  %v709_v5 = vadd.f32 %v6818_v63, %v6664_v33  ;;  %v1034_v63 = vadd.f32 %v6664_v33, %v6823_v4 }
 0x161   :  { %v2264_v30 = vsel %vm172_vm0, %v1980_v57, 0.0  ;;  %v7170_v57 = vmax.f32 %v1029_v31, 0.0  ;;  %v714_v1 = vadd.f32 %v6664_v33, %v6846_v21  ;;  %v7197_v15 = vmax.f32 %v704_v27, 0.0 }
 0x162   :  { %2268 = vadd.xlane.f32.xlu1 %v2267_v37  ;;  %v7159_v37 = vpop.f32.mrb[36].mxu0  ;;  %v7204_v4 = vmax.f32 %v1034_v63, 0.0  ;;  %v729_v27 = vadd.f32 %v6862_v32, %v6664_v33  ;;  %v1049_v32 = vadd.f32 %v6842_v20, %v6664_v33 }
 0x163   :  { %1631 = vadd.xlane.f32.xlu0 %v1630_v51  ;;  %v7165_v51 = vpop.f32.mrb[37].mxu0  ;;  %5841 = vmatmul.mubr.msk.f32.gmra.mrb[54].mxu1 %vm172_vm0, %v157_v48  ;;  %11743 = vst [vmem:[#allocation32_spill] sm:$0xff] %v7170_v57  ;;  %v1982_v48 = vmul.f32 %v7116_v6, %v7116_v6  ;;  %v7195_v6 = vmax.f32 %v709_v5, 0.0  ;;  %11746 = vst [vmem:[#allocation35_spill] sm:$0xff] %v7197_v15  ;;  %v7208_v55 = vmax.f32 %v714_v1, 0.0 }
 0x164   :  { %v7183_v31 = vpop.f32.mrb[38].mxu0  ;;  %11748 = vst [vmem:[#allocation37_spill] sm:$0xff] %v7204_v4  ;;  %v724_v1 = vadd.f32 %v6664_v33, %v6871_v41  ;;  %v1636_v41 = vsel %vm172_vm0, %v7204_v4, 0.0  ;;  %v7240_v20 = vmax.f32 %v729_v27, 0.0  ;;  %5843 = vmatprep.mubr.msk.f32.mxu1 %vm172_vm0, %v158_v13  ;;  %v7260_v61 = vmax.f32 %v1049_v32, 0.0 }
 0x165   :  { %11745 = vst [vmem:[#allocation34_spill] sm:$0xff] %v7195_v6  ;;  %11749 = vst [vmem:[#allocation38_spill] sm:$0xff] %v7208_v55  ;;  %v7278_v32 = vstv %s7212_s22  ;;  %v7306_v34 = vsel %vm172_vm0, %v7208_v55, 0.0 }
 0x166   :  { %2265 = vadd.xlane.f32.xlu1 %v2264_v30  ;;  %v1039_v30 = vadd.f32 %v6816_v62, %v6664_v33  ;;  %v719_v62 = vadd.f32 %v6840_v17, %v6664_v33  ;;  %v1983_v17 = vmul.f32 %v7170_v57, %v7170_v57  ;;  %11750 = vst [vmem:[#allocation39_spill] sm:$0xff] %v7240_v20  ;;  %11752 = vst [vmem:[#allocation41_spill] sm:$0xff] %v7260_v61 }
 0x167   :  { %2076 = vadd.xlane.f32.xlu0 %v2075_v53  ;;  %v2072_v53 = vsel %vm172_vm0, %v1916_v18, 0.0  ;;  %v1633_v18 = vsel %vm172_vm0, %v7170_v57, 0.0  ;;  %11753 = vst [vmem:[#allocation42_spill] sm:$0xff] %v7278_v32 }
 0x168   :  { %v7185_v14 = vmax.f32 %v1039_v30, 0.0  ;;  %v2270_v30 = vsel %vm172_vm0, %v1982_v48, 0.0  ;;  %v1918_v48 = vmul.f32 %v7197_v15, %v7197_v15 }
 0x16a   :  { %1436 = vadd.xlane.f32.xlu1 %v1435_v47  ;;  %11744 = vst [vmem:[#allocation33_spill] sm:$0xff] %v7185_v14  ;;  %v7191_v47 = vpop.f32.mrb[39].mxu0  ;;  %v1639_v21 = vsel %vm172_vm0, %v7185_v14, 0.0  ;;  %v1985_v57 = vmul.f32 %v7185_v14, %v7185_v14  ;;  %v159_v14 = vld [vmem:[%s11508_s0 + $0x3d8] sm:$0xff] }
 0x16b   :  { %2073 = vadd.xlane.f32.xlu0 %v2072_v53  ;;  %v7202_v53 = vmax.f32 %v719_v62, 0.0  ;;  %v7214_v5 = vpop.f32.mrb[40].mxu0  ;;  %v1919_v62 = vmul.f32 %v7195_v6, %v7195_v6  ;;  %5844 = vmatmul.mubr.msk.f32.gmra.mrb[56].mxu1 %vm172_vm0, %v159_v14  ;;  %v1064_v14 = vadd.f32 %v6664_v33, %v6898_v12  ;;  %v749_v12 = vadd.f32 %v6915_v38, %v6664_v33 }
 0x16d   :  { %11747 = vst [vmem:[#allocation36_spill] sm:$0xff] %v7202_v53  ;;  %v1921_v63 = vmul.f32 %v7202_v53, %v7202_v53  ;;  %v1447_v16 = vsel %vm172_vm0, %v7202_v53, 0.0  ;;  %v2081_v27 = vsel %vm172_vm0, %v1919_v62, 0.0  ;;  %v2279_v53 = vsel %vm172_vm0, %v1985_v57, 0.0 }
 0x16e   :  { %1634 = vadd.xlane.f32.xlu1 %v1633_v18  ;;  %v2273_v18 = vsel %vm172_vm0, %v1983_v17, 0.0  ;;  %v1441_v17 = vsel %vm172_vm0, %v7195_v6, 0.0  ;;  %v1984_v6 = vmul.f32 %v7204_v4, %v7204_v4  ;;  %v7258_v4 = vmax.f32 %v724_v1, 0.0 }
 0x16f   :  { %2271 = vadd.xlane.f32.xlu0 %v2270_v30  ;;  %v1438_v30 = vsel %vm172_vm0, %v7197_v15, 0.0  ;;  %v2078_v15 = vsel %vm172_vm0, %v1918_v48, 0.0  ;;  %v2087_v13 = vsel %vm172_vm0, %v1921_v63, 0.0  ;;  %v739_v48 = vadd.f32 %v6889_v58, %v6664_v33 }
 0x170   :  { %11751 = vst [vmem:[#allocation40_spill] sm:$0xff] %v7258_v4  ;;  %v734_v62 = vadd.f32 %v6664_v33, %v6896_v11  ;;  %v7275_v1 = vsel %vm172_vm0, %v1984_v6, 0.0  ;;  %v1923_v58 = vmul.f32 %v7240_v20, %v7240_v20  ;;  %v7282_v57 = vmax.f32 %v1044_v40, 0.0 }
 0x171   :  { %v7286_v11 = vsel %vm172_vm0, %v7240_v20, 0.0  ;;  %v7294_v6 = vsel %vm172_vm0, %v7260_v61, 0.0  ;;  %v1054_v40 = vadd.f32 %v6664_v33, %v6873_v46  ;;  %v7312_v61 = vmax.f32 %v1064_v14, 0.0 }
 0x172   :  { %2274 = vadd.xlane.f32.xlu1 %v2273_v18  ;;  %v7233_v18 = vpop.f32.mrb[41].mxu0  ;;  %11754 = vst [vmem:[#allocation43_spill] sm:$0xff] %v7282_v57  ;;  %v7308_v38 = vmax.f32 %v734_v62, 0.0  ;;  %v7317_v46 = vsel %vm172_vm0, %v1923_v58, 0.0  ;;  %v744_v20 = vadd.f32 %v6664_v33, %v6921_v49  ;;  %v7325_v62 = vmax.f32 %v1059_v59, 0.0 }
 0x173   :  { %1640 = vadd.xlane.f32.xlu0 %v1639_v21  ;;  %v1920_v21 = vmul.f32 %v7208_v55, %v7208_v55  ;;  %11758 = vst [vmem:[#allocation47_spill] sm:$0xff] %v7312_v61  ;;  %v1074_v55 = vadd.f32 %v6664_v33, %v6950_v29  ;;  %v7331_v14 = vmax.f32 %v749_v12, 0.0  ;;  %v759_v58 = vadd.f32 %v6948_v28, %v6664_v33 }
 0x174   :  { %11756 = vst [vmem:[#allocation45_spill] sm:$0xff] %v7308_v38  ;;  %11759 = vst [vmem:[#allocation48_spill] sm:$0xff] %v7325_v62  ;;  %v7335_v32 = vmax.f32 %v1054_v40, 0.0  ;;  %v1990_v28 = vmul.f32 %v7312_v61, %v7312_v61  ;;  %v754_v12 = vadd.f32 %v6664_v33, %v6964_v8  ;;  %v7360_v62 = vmax.f32 %v744_v20, 0.0 }
 0x175   :  { %v7272_v63 = vsel %vm172_vm0, %v1920_v21, 0.0  ;;  %v7302_v21 = vpop.f32.mrb[42].mxu0  ;;  %11760 = vst [vmem:[#allocation49_spill] sm:$0xff] %v7331_v14  ;;  %v1927_v8 = vmul.f32 %v7331_v14, %v7331_v14  ;;  %v7421_v25 = vsel %vm172_vm0, %v7331_v14, 0.0  ;;  %v779_v14 = vadd.f32 %v7046_v35, %v6664_v33 }
 0x176   :  { %1442 = vadd.xlane.f32.xlu1 %v1441_v17  ;;  %v7296_v17 = vmax.f32 %v739_v48, 0.0  ;;  %v7314_v48 = vpop.f32.mrb[43].mxu0  ;;  %11761 = vst [vmem:[#allocation50_spill] sm:$0xff] %v7335_v32  ;;  %11762 = vst [vmem:[#allocation51_spill] sm:$0xff] %v7360_v62  ;;  %v7364_v32 = vmax.f32 %v1074_v55, 0.0  ;;  %v7393_v23 = vsel %vm172_vm0, %v1990_v28, 0.0 }
 0x177   :  { %1439 = vadd.xlane.f32.xlu0 %v1438_v30  ;;  %v1922_v30 = vmul.f32 %v7258_v4, %v7258_v4  ;;  %v7443_v39 = vpop.f32.mrb[44].mxu0 }
 0x178   :  { %11755 = vst [vmem:[#allocation44_spill] sm:$0xff] %v7296_v17  ;;  %v1925_v29 = vmul.f32 %v7296_v17, %v7296_v17  ;;  %11764 = vst [vmem:[#allocation53_spill] sm:$0xff] %v7364_v32  ;;  %v7458_v35 = vpop.f32.mrb[45].mxu0 }
 0x179   :  { %v7338_v49 = vsel %vm172_vm0, %v1922_v30, 0.0  ;;  %v7358_v30 = vsel %vm172_vm0, %v7258_v4, 0.0 }
 0x17a   :  { %2079 = vadd.xlane.f32.xlu1 %v2078_v15  ;;  %v7310_v15 = vmax.f32 %v1069_v22, 0.0  ;;  %v7329_v22 = vsel %vm172_vm0, %v7282_v57, 0.0  ;;  %v7368_v57 = vsel %vm172_vm0, %v7308_v38, 0.0  ;;  %v7381_v55 = vsel %vm172_vm0, %v1925_v29, 0.0 }
 0x17b   :  { %1637 = vadd.xlane.f32.xlu0 %v1636_v41  ;;  %v1079_v41 = vadd.f32 %v6944_v2, %v6664_v33  ;;  %v7342_v2 = vsel %vm172_vm0, %v7296_v17, 0.0  ;;  %v7370_v17 = vmax.f32 %v759_v58, 0.0  ;;  %v1926_v58 = vmul.f32 %v7360_v62, %v7360_v62 }
 0x17c   :  { %11757 = vst [vmem:[#allocation46_spill] sm:$0xff] %v7310_v15  ;;  %v1991_v59 = vmul.f32 %v7310_v15, %v7310_v15  ;;  %v7378_v20 = vsel %vm172_vm0, %v7310_v15, 0.0  ;;  %v7398_v29 = vmax.f32 %v754_v12, 0.0  ;;  %v161_v12 = vld [vmem:[%s11508_s0 + $0x3e8] sm:$0xff] }
 0x17d   :  { %11765 = vst [vmem:[#allocation54_spill] sm:$0xff] %v7370_v17  ;;  %v7437_v54 = vsel %vm172_vm0, %v1926_v58, 0.0  ;;  %v1084_v58 = vadd.f32 %v6664_v33, %v7048_v9 }
 0x17e   :  { %1448 = vadd.xlane.f32.xlu1 %v1447_v16  ;;  %v1924_v16 = vmul.f32 %v7308_v38, %v7308_v38  ;;  %v7390_v4 = vsel %vm172_vm0, %v1991_v59, 0.0  ;;  %11766 = vst [vmem:[#allocation55_spill] sm:$0xff] %v7398_v29  ;;  %v764_v59 = vadd.f32 %v6664_v33, %v7016_v10  ;;  %v1929_v10 = vmul.f32 %v7370_v17, %v7370_v17 }
 0x17f   :  { %2082 = vadd.xlane.f32.xlu0 %v2081_v27  ;;  %v7362_v27 = vmax.f32 %v1079_v41, 0.0  ;;  %v7385_v41 = vsel %vm172_vm0, %v7312_v61, 0.0  ;;  %v160_v61 = vld [vmem:[%s11508_s0 + $0x3e0] sm:$0xff]  ;;  %11768 = vst [vmem:[#allocation57_spill] sm:$0xff] %v7437_v54 }
 0x180   :  { %v7354_v40 = vpop.xlane.xlu0 %1394  ;;  %5846 = vmatprep.mubr.msk.f32.mxu1 %vm172_vm0, %v160_v61  ;;  %v7460_v54 = vmax.f32 %v764_v59, 0.0  ;;  %v7473_v9 = vsel %vm172_vm0, %v1929_v10, 0.0  ;;  %v7479_v59 = vsel %vm172_vm0, %v7370_v17, 0.0  ;;  %v7493_v17 = vmax.f32 %v1084_v58, 0.0 }
 0x181   :  { %11763 = vst [vmem:[#allocation52_spill] sm:$0xff] %v7362_v27  ;;  %v1993_v28 = vmul.f32 %v7362_v27, %v7362_v27  ;;  %5847 = vmatmul.mubr.msk.f32.gmra.mrb[58].mxu1 %vm172_vm0, %v161_v12  ;;  %v7434_v61 = vsel %vm172_vm0, %v7362_v27, 0.0  ;;  %v7452_v12 = vsel %vm172_vm0, %v7364_v32, 0.0  ;;  %11774 = vst [vmem:[#allocation63_spill] sm:$0xff] %v7479_v59 }
 0x182   :  { %2088 = vadd.xlane.f32.xlu1 %v2087_v13  ;;  %v7396_v13 = vsel %vm172_vm0, %v1924_v16, 0.0  ;;  %v1992_v16 = vmul.f32 %v7364_v32, %v7364_v32  ;;  %11770 = vst [vmem:[#allocation59_spill] sm:$0xff] %v7452_v12  ;;  %11771 = vst [vmem:[#allocation60_spill] sm:$0xff] %v7460_v54 }
 0x183   :  { %v2032_v38 = vpop.xlane.xlu1 %2031  ;;  %2280 = vadd.xlane.f32.xlu0 %v2279_v53  ;;  %v7407_v53 = vsel %vm172_vm0, %v7360_v62, 0.0  ;;  %v7424_v62 = vsel %vm172_vm0, %v1927_v8, 0.0  ;;  %v1089_v8 = vadd.f32 %v7040_v19, %v6664_v33  ;;  %v774_v19 = vadd.f32 %v6664_v33, %v7053_v24  ;;  %11777 = vst [vmem:[#allocation66_spill] sm:$0xff] %v7493_v17 }
 0x184   :  { %v7403_v15 = vpop.xlane.xlu0 %1592  ;;  %v7468_v32 = vsel %vm172_vm0, %v1992_v16, 0.0  ;;  %v1931_v24 = vmul.f32 %v7428_v7, %v7428_v7  ;;  %v784_v16 = vadd.f32 %v6664_v33, %v7107_v56  ;;  %v2414_v10 = vmul.f32 0.03125, %v2032_v38  ;;  %v7509_v56 = vld [vmem:[%s11510_s2] ss:$0 sm:$0xff] }
 0x185   :  { %11773 = vst [vmem:[#allocation62_spill] sm:$0xff] %v7468_v32  ;;  %v7504_v33 = vsel %vm172_vm0, %v7460_v54, 0.0  ;;  %v7514_v38 = vmul.f32 0.03125, %v7354_v40 }
 0x186   :  { %2085 = vadd.xlane.f32.xlu1 %v7272_v63  ;;  %v7448_v63 = vsel %vm172_vm0, %v7398_v29, 0.0  ;;  %v7517_v58 = vsel %vm172_vm0, %v1931_v24, 0.0 }
 0x187   :  { %v1401_v45 = vpop.xlane.xlu1 %1400  ;;  %2277 = vadd.xlane.f32.xlu0 %v7275_v1  ;;  %11769 = vst [vmem:[#allocation58_spill] sm:$0xff] %v7448_v63  ;;  %v7463_v1 = vsel %vm172_vm0, %v1993_v28, 0.0  ;;  %v1928_v63 = vmul.f32 %v7398_v29, %v7398_v29  ;;  %v7482_v28 = vmax.f32 %v1089_v8, 0.0  ;;  %v7484_v29 = vmax.f32 %v779_v14, 0.0 }
 0x188   :  { %v1392_v27 = vpop.xlane.xlu0 %1391  ;;  %11772 = vst [vmem:[#allocation61_spill] sm:$0xff] %v7463_v1  ;;  %v7497_v8 = vmul.f32 0.03125, %v1401_v45 }
 0x189   :  { %v7470_v12 = vmul.f32 0.03125, %v1392_v27  ;;  %11775 = vst [vmem:[#allocation64_spill] sm:$0xff] %v7482_v28  ;;  %11776 = vst [vmem:[#allocation65_spill] sm:$0xff] %v7484_v29  ;;  %v1930_v27 = vmul.f32 %v7460_v54, %v7460_v54  ;;  %v7500_v59 = vsel %vm172_vm0, %v1928_v63, 0.0  ;;  %v7521_v63 = vsel %vm172_vm0, %v7428_v7, 0.0 }
 0x18a   :  { %1454 = vadd.xlane.f32.xlu1 %v7286_v11  ;;  %v7495_v11 = vmax.f32 %v774_v19, 0.0  ;;  %11779 = vst [vmem:[#allocation68_spill] sm:$0xff] %v7521_v63  ;;  %v1933_v54 = vmul.f32 %v7484_v29, %v7484_v29 }
 0x18b   :  { %v2542_v32 = vmul.f32 %v7470_v12, %v7470_v12  ;;  %v1398_v1 = vpop.xlane.xlu1 %1397  ;;  %1646 = vadd.xlane.f32.xlu0 %v7294_v6  ;;  %v789_v6 = vadd.f32 %v7509_v56, %v7099_v36  ;;  %v7525_v19 = vsel %vm172_vm0, %v1930_v27, 0.0  ;;  %v7529_v36 = vmax.f32 %v784_v16, 0.0 }
 0x18c   :  { %11778 = vst [vmem:[#allocation67_spill] sm:$0xff] %v7495_v11  ;;  %v1590_v14 = vpop.xlane.xlu0 %1589  ;;  %11780 = vst [vmem:[#allocation69_spill] sm:$0xff] %v7525_v19  ;;  %v7544_v27 = vsel %vm172_vm0, %v7493_v17, 0.0  ;;  %v2545_v16 = vmul.f32 %v7497_v8, %v7497_v8  ;;  %v7548_v7 = vmul.f32 0.03125, %v1398_v1 }
 0x18d   :  { %v2670_v45 = vsub.f32 %v2414_v10, %v2542_v32  ;;  %11781 = vst [vmem:[#allocation70_spill] sm:$0xff] %v7529_v36  ;;  %v1932_v32 = vmul.f32 %v7495_v11, %v7495_v11  ;;  %v7536_v10 = vsel %vm172_vm0, %v7482_v28, 0.0  ;;  %11783 = vst [vmem:[#allocation72_spill] sm:$0xff] %v7544_v27  ;;  %v2543_v28 = vmul.f32 %v7514_v38, %v7514_v38 }
 0x18e   :  { %2094 = vadd.xlane.f32.xlu1 %v7317_v46  ;;  %11782 = vst [vmem:[#allocation71_spill] sm:$0xff] %v7536_v10  ;;  %v7540_v46 = vsel %vm172_vm0, %v7495_v11, 0.0  ;;  %v7556_v11 = vsel %vm172_vm0, %v7484_v29, 0.0  ;;  %v7560_v27 = vsel %vm172_vm0, %v1933_v54, 0.0  ;;  %v7575_v54 = vpop.f32.mrb[46].mxu0 }
 0x18f   :  { %v2798_v40 = vmax.f32 %v2670_v45, 0.0  ;;  %v2041_v24 = vpop.xlane.xlu1 %2040  ;;  %1445 = vadd.xlane.f32.xlu0 %v7306_v34  ;;  %v7550_v34 = vmax.f32 %v789_v6, 0.0  ;;  %11785 = vst [vmem:[#allocation74_spill] sm:$0xff] %v7556_v11  ;;  %v7563_v1 = vsel %vm172_vm0, %v1932_v32, 0.0  ;;  %v7567_v6 = vsel %vm172_vm0, %v7529_v36, 0.0 }
 0x190   :  { %v2417_v45 = vmul.f32 0.03125, %v2041_v24  ;;  %v2035_v63 = vpop.xlane.xlu0 %2034  ;;  %11786 = vst [vmem:[#allocation75_spill] sm:$0xff] %v7563_v1  ;;  %11787 = vst [vmem:[#allocation76_spill] sm:$0xff] %v7567_v6  ;;  %v2544_v32 = vmul.f32 %v7548_v7, %v7548_v7  ;;  %v794_v11 = vadd.f32 %v7509_v56, %v7145_v60  ;;  %v804_v1 = vadd.f32 %v7509_v56, %v7165_v51 }
 0x191   :  { %11784 = vst [vmem:[#allocation73_spill] sm:$0xff] %v7550_v34  ;;  %v3054_v10 = vadd.f32 1e-05, %v2798_v40  ;;  %v2415_v19 = vmul.f32 0.03125, %v2035_v63  ;;  %v7570_v40 = vmul.f32 0.03125, %v7403_v15  ;;  %v7581_v15 = vsel %vm172_vm0, %v7550_v34, 0.0 }
 0x192   :  { %v2673_v17 = vsub.f32 %v2417_v45, %v2545_v16  ;;  %2091 = vadd.xlane.f32.xlu1 %v7338_v49  ;;  %v799_v49 = vadd.f32 %v7509_v56, %v7136_v50  ;;  %11788 = vst [vmem:[#allocation77_spill] sm:$0xff] %v7581_v15  ;;  %v1934_v51 = vmul.f32 %v7529_v36, %v7529_v36 }
 0x193   :  { %5936 = vrsqrt.f32 %v3054_v10  ;;  %v2671_v63 = vsub.f32 %v2415_v19, %v2543_v28  ;;  %v2038_v24 = vpop.xlane.xlu1 %2037  ;;  %1643 = vadd.xlane.f32.xlu0 %v7329_v22  ;;  %v7583_v10 = vpop.f32.mrb[47].mxu0  ;;  %v162_v22 = vld [vmem:[%s11508_s0 + $0x3f0] sm:$0xff]  ;;  %v2609_v50 = vmul.f32 %v7570_v40, %v7570_v40  ;;  %v7590_v28 = vmul.f32 0.03125, %v1590_v14 }
 0x194   :  { %v2801_v16 = vmax.f32 %v2673_v17, 0.0  ;;  %v2416_v45 = vmul.f32 0.03125, %v2038_v24  ;;  %v2233_v29 = vpop.xlane.xlu0 %2232  ;;  %5849 = vmatprep.mubr.msk.f32.mxu1 %vm172_vm0, %v162_v22  ;;  %v163_v17 = vld [vmem:[%s11508_s0 + $0x3f8] sm:$0xff]  ;;  %v7603_v22 = vmax.f32 %v799_v49, 0.0  ;;  %v7614_v49 = vmax.f32 %v794_v11, 0.0 }
 0x195   :  { %v2799_v19 = vmax.f32 %v2671_v63, 0.0  ;;  %v2481_v6 = vmul.f32 0.03125, %v2233_v29  ;;  %5850 = vmatmul.mubr.msk.f32.gmra.mrb[60].mxu1 %vm172_vm0, %v163_v17 }
 0x196   :  { %v3057_v24 = vadd.f32 1e-05, %v2801_v16  ;;  %v2672_v15 = vsub.f32 %v2416_v45, %v2544_v32  ;;  %1460 = vadd.xlane.f32.xlu1 %v7342_v2  ;;  %11789 = vst [vmem:[#allocation78_spill] sm:$0xff] %v7603_v22  ;;  %v1935_v32 = vmul.f32 %v7550_v34, %v7550_v34  ;;  %v2608_v45 = vmul.f32 %v7590_v28, %v7590_v28 }
 0x197   :  { %v3055_v14 = vadd.f32 1e-05, %v2799_v19  ;;  %v2737_v29 = vsub.f32 %v2481_v6, %v2609_v50  ;;  %v1407_v63 = vpop.xlane.xlu1 %1406  ;;  %1451 = vadd.xlane.f32.xlu0 %v7358_v30  ;;  %11790 = vst [vmem:[#allocation79_spill] sm:$0xff] %v7614_v49  ;;  %v7618_v19 = vmax.f32 %v804_v1, 0.0 }
 0x198   :  { %5938 = vrsqrt.f32 %v3057_v24  ;;  %v2800_v2 = vmax.f32 %v2672_v15, 0.0  ;;  %v7607_v16 = vmul.f32 0.03125, %v1407_v63  ;;  %v2230_v60 = vpop.xlane.xlu0 %2229  ;;  %v809_v15 = vadd.f32 %v7509_v56, %v7159_v37 }
 0x199   :  { %5940 = vrsqrt.f32 %v3055_v14  ;;  %v2865_v6 = vmax.f32 %v2737_v29, 0.0  ;;  %v2480_v50 = vmul.f32 0.03125, %v2230_v60  ;;  %11791 = vst [vmem:[#allocation80_spill] sm:$0xff] %v7618_v19  ;;  %v814_v14 = vadd.f32 %v7509_v56, %v7191_v47 }
 0x19a   :  { %v3056_v30 = vadd.f32 1e-05, %v2800_v2  ;;  %1658 = vadd.xlane.f32.xlu1 %v7378_v20  ;;  %v1937_v29 = vmul.f32 %v7603_v22, %v7603_v22  ;;  %v2926_v20 = vsub.f32 %v6678_v44, %v7470_v12  ;;  %v2547_v37 = vmul.f32 %v7607_v16, %v7607_v16 }
 0x19b   :  { %v3121_v17 = vadd.f32 1e-05, %v2865_v6  ;;  %v2736_v24 = vsub.f32 %v2480_v50, %v2608_v45  ;;  %v2047_v63 = vpop.xlane.xlu1 %2046  ;;  %1457 = vadd.xlane.f32.xlu0 %v7368_v57  ;;  %v819_v57 = vadd.f32 %v7509_v56, %v7183_v31  ;;  %v1936_v47 = vmul.f32 %v7614_v49, %v7614_v49 }
 0x19c   :  { %5942 = vrsqrt.f32 %v3056_v30  ;;  %v2419_v11 = vmul.f32 0.03125, %v2047_v63  ;;  %v1599_v1 = vpop.xlane.xlu0 %1598  ;;  %v7635_v44 = vsel %vm172_vm0, %v1935_v32, 0.0  ;;  %v7637_v12 = vmax.f32 %v809_v15, 0.0  ;;  %v7653_v32 = vpop.f32.mrb[48].mxu0 }
 0x19d   :  { %v5937_v2 = vpop.eup %5936  ;;  %5944 = vrsqrt.f32 %v3121_v17  ;;  %v2864_v60 = vmax.f32 %v2736_v24, 0.0  ;;  %v7643_v17 = vsel %vm172_vm0, %v1934_v51, 0.0  ;;  %v7647_v31 = vsel %vm172_vm0, %v7614_v49, 0.0 }
 0x19e   :  { %v3310_v45 = vmul.f32 %v5937_v2, %v2926_v20  ;;  %v2675_v6 = vsub.f32 %v2419_v11, %v2547_v37  ;;  %2100 = vadd.xlane.f32.xlu1 %v7381_v55  ;;  %11792 = vst [vmem:[#allocation81_spill] sm:$0xff] %v7637_v12  ;;  %v7651_v55 = vsel %vm172_vm0, %v7603_v22, 0.0  ;;  %v7657_v63 = vmax.f32 %v814_v14, 0.0  ;;  %v7666_v20 = vpop.f32.mrb[49].mxu0 }
 0x19f   :  { %v3120_v50 = vadd.f32 1e-05, %v2864_v60  ;;  %v7639_v30 = vpop.xlane.xlu1 %2043  ;;  %1655 = vadd.xlane.f32.xlu0 %v7385_v41  ;;  %v7661_v41 = vsel %vm172_vm0, %v7618_v19, 0.0  ;;  %v7664_v51 = vsel %vm172_vm0, %v1937_v29, 0.0  ;;  %v2929_v37 = vsub.f32 %v6687_v52, %v7497_v8  ;;  %v7680_v29 = vld [vmem:[%s11510_s2 + $0x1] ss:$0 sm:$0xff] }
 0x1a0   :  { %v2803_v15 = vmax.f32 %v2675_v6, 0.0  ;;  %v7655_v24 = vpop.xlane.xlu0 %1595  ;;  %11793 = vst [vmem:[#allocation82_spill] sm:$0xff] %v7657_v63  ;;  %v7670_v11 = vmax.f32 %v819_v57, 0.0  ;;  %v7673_v2 = vsel %vm172_vm0, %v1936_v47, 0.0  ;;  %v2927_v60 = vsub.f32 %v6674_v42, %v7514_v38 }
 0x1a1   :  { %5946 = vrsqrt.f32 %v3120_v50  ;;  %v824_v52 = vadd.f32 %v7509_v56, %v7233_v18  ;;  %v7687_v8 = vsel %vm172_vm0, %v7637_v12, 0.0  ;;  %v7691_v50 = vmul.f32 0.03125, %v1599_v1 }
 0x1a2   :  { %11794 = vst [vmem:[#allocation83_spill] sm:$0xff] %v7670_v11  ;;  %v5939_v14 = vpop.eup %5938  ;;  %v3059_v6 = vadd.f32 1e-05, %v2803_v15  ;;  %2298 = vadd.xlane.f32.xlu1 %v7390_v4  ;;  %v829_v38 = vadd.f32 %v7509_v56, %v7214_v5  ;;  %v1939_v4 = vmul.f32 %v7637_v12, %v7637_v12  ;;  %v1938_v1 = vmul.f32 %v7618_v19, %v7618_v19 }
 0x1a3   :  { %v5941_v57 = vpop.eup %5940  ;;  %v7689_v47 = vmul.f32 %v5939_v14, %v2929_v37  ;;  %v7693_v42 = vpop.xlane.xlu1 %1412  ;;  %2295 = vadd.xlane.f32.xlu0 %v7393_v23  ;;  %v7704_v37 = vsel %vm172_vm0, %v7657_v63, 0.0  ;;  %v3442_v14 = vmul.f32 %v7680_v29, %v3310_v45  ;;  %v2928_v23 = vsub.f32 %v6707_v0, %v7548_v7 }
 0x1a4   :  { %v7700_v18 = vmul.f32 %v5941_v57, %v2927_v60  ;;  %5948 = vrsqrt.f32 %v3059_v6  ;;  %v2239_v15 = vpop.xlane.xlu0 %2238  ;;  %v2611_v5 = vmul.f32 %v7691_v50, %v7691_v50  ;;  %v2993_v6 = vsub.f32 %v6676_v43, %v7570_v40  ;;  %v7718_v57 = vld [vmem:[%s11510_s2 + $0x2] ss:$0 sm:$0xff] }
 0x1a5   :  { %v2483_v12 = vmul.f32 0.03125, %v2239_v15  ;;  %v7721_v19 = vmax.f32 %v824_v52, 0.0  ;;  %v839_v0 = vadd.f32 %v7509_v56, %v7302_v21  ;;  %v1941_v7 = vmul.f32 %v7670_v11, %v7670_v11  ;;  %v7736_v52 = vpop.f32.mrb[50].mxu0 }
 0x1a6   :  { %v5943_v60 = vpop.eup %5942  ;;  %2097 = vadd.xlane.f32.xlu1 %v7396_v13  ;;  %v7732_v40 = vmax.f32 %v829_v38, 0.0  ;;  %v834_v13 = vadd.f32 %v7509_v56, %v7314_v48  ;;  %v7741_v36 = vsel %vm172_vm0, %v1939_v4, 0.0  ;;  %v3574_v38 = vadd.f32 %v7718_v57, %v3442_v14  ;;  %v7760_v4 = vld [vmem:[%s11510_s2 + $0x4] sm:$0xff] }
 0x1a7   :  { %11795 = vst [vmem:[#allocation84_spill] sm:$0xff] %v7721_v19  ;;  %v5945_v45 = vpop.eup %5944  ;;  %v7727_v15 = vmul.f32 %v5943_v60, %v2928_v23  ;;  %v2739_v22 = vsub.f32 %v2483_v12, %v2611_v5  ;;  %v7729_v43 = vpop.xlane.xlu1 %1610  ;;  %1463 = vadd.xlane.f32.xlu0 %v7407_v53  ;;  %v7744_v23 = vsel %vm172_vm0, %v1938_v1, 0.0  ;;  %v849_v12 = vadd.f32 %v7509_v56, %v7443_v39 }
 0x1a8   :  { %11796 = vst [vmem:[#allocation85_spill] sm:$0xff] %v7732_v40  ;;  %v7738_v49 = vmul.f32 %v5945_v45, %v2993_v6  ;;  %v2236_v21 = vpop.xlane.xlu0 %2235  ;;  %v7748_v53 = vpop.f32.mrb[51].mxu0  ;;  %v7753_v48 = vsel %vm172_vm0, %v7670_v11, 0.0  ;;  %v1940_v60 = vmul.f32 %v7657_v63, %v7657_v63  ;;  %v2992_v39 = vsub.f32 %v6712_v3, %v7590_v28 }
 0x1a9   :  { %11797 = vst [vmem:[#allocation86_spill] sm:$0xff] %v7748_v53  ;;  %v2867_v5 = vmax.f32 %v2739_v22, 0.0  ;;  %11798 = vst [vmem:[#allocation87_spill] sm:$0xff] %v7753_v48  ;;  %v7767_v22 = vsel %vm172_vm0, %v7721_v19, 0.0  ;;  %v7769_v1 = vmax.f32 %v839_v0, 0.0  ;;  %v7772_v14 = vsel %vm172_vm0, %v1941_v7, 0.0 }
 0x1aa   :  { %1466 = vadd.xlane.f32.xlu1 %v7421_v25  ;;  %11800 = vst [vmem:[#allocation89_spill] sm:$0xff] %v7772_v14  ;;  %v7775_v63 = vmax.f32 %v834_v13, 0.0  ;;  %v1943_v3 = vmul.f32 %v7732_v40, %v7732_v40  ;;  %v1942_v25 = vmul.f32 %v7721_v19, %v7721_v19  ;;  %v7784_v0 = vmul.f32 0.03125, %v7655_v24  ;;  %v11820_v14 = vld [vmem:[#allocation61_spill] sm:$0xff] }
 0x1ab   :  { %11799 = vst [vmem:[#allocation88_spill] sm:$0xff] %v7769_v1  ;;  %v5947_v6 = vpop.eup %5946  ;;  %v3123_v45 = vadd.f32 1e-05, %v2867_v5  ;;  %v2053_v11 = vpop.xlane.xlu1 %2052  ;;  %2106 = vadd.xlane.f32.xlu0 %v7424_v62  ;;  %v7788_v34 = vmax.f32 %v849_v12, 0.0  ;;  %v844_v62 = vadd.f32 %v7509_v56, %v7458_v35  ;;  %v3702_v13 = vmul.f32 %v3574_v38, %v7760_v4 }
 0x1ac   :  { %11801 = vst [vmem:[#allocation90_spill] sm:$0xff] %v7775_v63  ;;  %v7781_v28 = vmul.f32 %v5947_v6, %v2992_v39  ;;  %v7786_v7 = vpop.xlane.xlu0 %1604  ;;  %v2931_v5 = vsub.f32 %v6758_v26, %v7607_v16  ;;  %v859_v39 = vadd.f32 %v7509_v56, %v7575_v54  ;;  %v2482_v19 = vmul.f32 0.03125, %v2236_v21  ;;  %v11805_v16 = vld [vmem:[#allocation58_spill] sm:$0xff] }
 0x1ad   :  { %11802 = vst [vmem:[#allocation91_spill] sm:$0xff] %v7788_v34  ;;  %5950 = vrsqrt.f32 %v3123_v45  ;;  %v1945_v24 = vmul.f32 %v7769_v1, %v7769_v1  ;;  %v7801_v12 = vsel %vm172_vm0, %v1940_v60, 0.0  ;;  %v7805_v35 = vsel %vm172_vm0, %v7732_v40, 0.0 }
 0x1ae   :  { %v5949_v6 = vpop.eup %5948  ;;  %1664 = vadd.xlane.f32.xlu1 %v7434_v61  ;;  %11803 = vst [vmem:[#allocation92_spill] sm:$0xff] %v7801_v12  ;;  %11804 = vst [vmem:[#allocation93_spill] sm:$0xff] %v7805_v35  ;;  %v7813_v54 = vsel %vm172_vm0, %v1943_v3, 0.0  ;;  %v1944_v61 = vmul.f32 %v7775_v63, %v7775_v63  ;;  %v854_v21 = vadd.f32 %v7509_v56, %v7583_v10  ;;  %v7830_v3 = vpop.f32.mrb[52].mxu0  ;;  %v3830_v40 = vsel %vm172_vm0, %v3702_v13, 0.0  ;;  %v11810_v12 = vld [vmem:[#allocation59_spill] sm:$0xff] }
 0x1af   :  { %v7807_v38 = vmul.f32 %v5949_v6, %v2931_v5  ;;  %v7809_v26 = vpop.xlane.xlu1 %2250  ;;  %1469 = vadd.xlane.f32.xlu0 %v11805_v16  ;;  %v3445_v60 = vmul.f32 %v7680_v29, %v7689_v47  ;;  %v2610_v45 = vmul.f32 %v7784_v0, %v7784_v0  ;;  %v7825_v6 = vmax.f32 %v844_v62, 0.0  ;;  %11808 = vst [vmem:[#allocation95_spill] sm:$0xff] %v7830_v3 }
 0x1b0   :  { %v7823_v5 = vpop.xlane.xlu0 %1403  ;;  %v7828_v16 = vsel %vm172_vm0, %v1942_v25, 0.0  ;;  %v7835_v10 = vsel %vm172_vm0, %v7775_v63, 0.0  ;;  %v1947_v47 = vmul.f32 %v7788_v34, %v7788_v34  ;;  %v7839_v53 = vmax.f32 %v859_v39, 0.0 }
 0x1b1   :  { %11806 = vst [vmem:[#allocation58_spill] sm:$0xff] %v7825_v6  ;;  %11807 = vst [vmem:[#allocation94_spill] sm:$0xff] %v7828_v16  ;;  %v2738_v35 = vsub.f32 %v2482_v19, %v2610_v45  ;;  %v7843_v62 = vsel %vm172_vm0, %v1945_v24, 0.0  ;;  %v1946_v25 = vmul.f32 %v7825_v6, %v7825_v6  ;;  %v7849_v13 = vsel %vm172_vm0, %v7769_v1, 0.0 }
 0x1b2   :  { %11809 = vst [vmem:[#allocation96_spill] sm:$0xff] %v7839_v53  ;;  %1661 = vadd.xlane.f32.xlu1 %v11810_v12  ;;  %11811 = vst [vmem:[#allocation59_spill] sm:$0xff] %v7843_v62  ;;  %v3443_v63 = vmul.f32 %v7680_v29, %v7700_v18  ;;  %v7854_v3 = vmul.f32 0.03125, %v7693_v42  ;;  %v7860_v19 = vsel %vm172_vm0, %v1944_v61, 0.0  ;;  %v7862_v24 = vmax.f32 %v854_v21, 0.0 }
 0x1b3   :  { %11812 = vst [vmem:[#allocation97_spill] sm:$0xff] %v7849_v13  ;;  %v7856_v39 = vpop.xlane.xlu1 %2049  ;;  %2112 = vadd.xlane.f32.xlu0 %v7473_v9  ;;  %11813 = vst [vmem:[#allocation98_spill] sm:$0xff] %v7860_v19  ;;  %v3831_v12 = vrot.slane %v3830_v40, 4  ;;  %v3577_v45 = vadd.f32 %v7718_v57, %v3445_v60  ;;  %v2866_v1 = vmax.f32 %v2738_v35, 0.0  ;;  %v7867_v18 = vsel %vm172_vm0, %v7825_v6, 0.0  ;;  %v7880_v60 = vpop.f32.mrb[53].mxu0 }
 0x1b4   :  { %11814 = vst [vmem:[#allocation99_spill] sm:$0xff] %v7862_v24  ;;  %v1602_v13 = vpop.xlane.xlu0 %1601  ;;  %11815 = vst [vmem:[#allocation100_spill] sm:$0xff] %v7867_v18  ;;  %v7870_v42 = vsel %vm172_vm0, %v1947_v47, 0.0  ;;  %v1949_v9 = vmul.f32 %v7839_v53, %v7839_v53  ;;  %v7876_v61 = vsel %vm172_vm0, %v7788_v34, 0.0  ;;  %v1948_v21 = vmul.f32 %v7862_v24, %v7862_v24  ;;  %v11819_v35 = vld [vmem:[#allocation8_spill] sm:$0xff] }
 0x1b5   :  { %11816 = vst [vmem:[#allocation101_spill] sm:$0xff] %v7870_v42  ;;  %11817 = vst [vmem:[#allocation102_spill] sm:$0xff] %v7876_v61  ;;  %v2995_v16 = vsub.f32 %v11819_v35, %v7691_v50  ;;  %v3122_v6 = vadd.f32 1e-05, %v2866_v1  ;;  %v2421_v18 = vmul.f32 0.03125, %v2053_v11  ;;  %v7886_v47 = vsel %vm172_vm0, %v1946_v25, 0.0 }
 0x1b6   :  { %11818 = vst [vmem:[#allocation103_spill] sm:$0xff] %v7880_v60  ;;  %2304 = vadd.xlane.f32.xlu1 %v11820_v14  ;;  %11821 = vst [vmem:[#allocation8_spill] sm:$0xff] %v7886_v47  ;;  %v3575_v19 = vadd.f32 %v7718_v57, %v3443_v63  ;;  %v2549_v34 = vmul.f32 %v7854_v3, %v7854_v3  ;;  %v7892_v61 = vmul.f32 0.03125, %v7729_v43  ;;  %v7899_v11 = vsel %vm172_vm0, %v7862_v24, 0.0 }
 0x1b7   :  { %v5951_v42 = vpop.eup %5950  ;;  %v7894_v60 = vpop.xlane.xlu1 %1418  ;;  %2109 = vadd.xlane.f32.xlu0 %v7500_v59  ;;  %11822 = vst [vmem:[#allocation61_spill] sm:$0xff] %v7899_v11  ;;  %v3832_v50 = vadd.f32 %v3831_v12, %v3830_v40  ;;  %v3705_v1 = vmul.f32 %v3577_v45, %v7760_v4  ;;  %5952 = vrsqrt.f32 %v3122_v6  ;;  %v2418_v25 = vmul.f32 0.03125, %v7639_v30  ;;  %v11827_v45 = vld [vmem:[#allocation57_spill] sm:$0xff] }
 0x1b8   :  { %v7902_v14 = vmul.f32 %v5951_v42, %v2995_v16  ;;  %v2245_v63 = vpop.xlane.xlu0 %2244  ;;  %v7906_v43 = vsel %vm172_vm0, %v1949_v9, 0.0  ;;  %v7909_v35 = vsel %vm172_vm0, %v1948_v21, 0.0  ;;  %v7913_v59 = vsel %vm172_vm0, %v7839_v53, 0.0  ;;  %v11826_v16 = vld [vmem:[#allocation10_spill] sm:$0xff] }
 0x1b9   :  { %11823 = vst [vmem:[#allocation104_spill] sm:$0xff] %v7906_v43  ;;  %11824 = vst [vmem:[#allocation105_spill] sm:$0xff] %v7909_v35  ;;  %v3444_v40 = vmul.f32 %v7680_v29, %v7727_v15  ;;  %v2994_v12 = vsub.f32 %v11826_v16, %v7784_v0  ;;  %v2677_v6 = vsub.f32 %v2421_v18, %v2549_v34  ;;  %v2487_v15 = vmul.f32 0.03125, %v7809_v26  ;;  %v7931_v34 = vpop.f32.mrb[54].mxu0 }
 0x1ba   :  { %11825 = vst [vmem:[#allocation106_spill] sm:$0xff] %v7913_v59  ;;  %2103 = vadd.xlane.f32.xlu1 %v11827_v45  ;;  %v7922_v30 = vadd.f32 %v7509_v56, %v7666_v20  ;;  %v3703_v42 = vmul.f32 %v3575_v19, %v7760_v4  ;;  %v3509_v9 = vmul.f32 %v7680_v29, %v7738_v49  ;;  %11828 = vst [vmem:[#allocation10_spill] sm:$0xff] %v7931_v34  ;;  %v11829_v49 = vld [vmem:[#allocation11_spill] sm:$0xff] }
 0x1bb   :  { %v2615_v21 = vmul.f32 %v7892_v61, %v7892_v61  ;;  %v1617_v53 = vpop.xlane.xlu1 %1616  ;;  %1475 = vadd.xlane.f32.xlu0 %v7504_v33  ;;  %v3833_v0 = vrot.slane %v3832_v50, 2  ;;  %v3851_v18 = vsel %vm172_vm0, %v3705_v1, 0.0  ;;  %v2805_v20 = vmax.f32 %v2677_v6, 0.0  ;;  %v11830_v6 = vld [vmem:[#allocation62_spill] sm:$0xff] }
 0x1bc   :  { %v7935_v16 = vmul.f32 0.03125, %v7823_v5  ;;  %v2242_v19 = vpop.xlane.xlu0 %2241  ;;  %v7940_v24 = vmul.f32 0.03125, %v7786_v7  ;;  %v7944_v33 = vadd.f32 %v7509_v56, %v7653_v32  ;;  %v3576_v34 = vadd.f32 %v7718_v57, %v3444_v40 }
 0x1bd   :  { %v2743_v26 = vsub.f32 %v2487_v15, %v2615_v21  ;;  %v3061_v59 = vadd.f32 1e-05, %v2805_v20  ;;  %v7949_v5 = vmul.f32 0.03125, %v1602_v13  ;;  %v3852_v35 = vrot.slane %v3851_v18, 4 }
 0x1be   :  { %v2546_v1 = vmul.f32 %v7935_v16, %v7935_v16  ;;  %2301 = vadd.xlane.f32.xlu1 %v11830_v6  ;;  %v3837_v45 = vsel %vm172_vm0, %v3703_v42, 0.0  ;;  %v3641_v7 = vadd.f32 %v7718_v57, %v3509_v9  ;;  %v7955_v56 = vadd.f32 %v3833_v0, %v3832_v50  ;;  %v11831_v0 = vld [vmem:[#allocation63_spill] sm:$0xff] }
 0x1bf   :  { %v2871_v21 = vmax.f32 %v2743_v26, 0.0  ;;  %v1614_v15 = vpop.xlane.xlu1 %1613  ;;  %2118 = vadd.xlane.f32.xlu0 %v7517_v58  ;;  %v3508_v32 = vmul.f32 %v7680_v29, %v7781_v28  ;;  %5954 = vrsqrt.f32 %v3061_v59  ;;  %v2613_v20 = vmul.f32 %v7940_v24, %v7940_v24  ;;  %v7966_v28 = vpop.f32.mrb[55].mxu0 }
 0x1c0   :  { %v2674_v40 = vsub.f32 %v2418_v25, %v2546_v1  ;;  %v1410_v13 = vpop.xlane.xlu0 %1409  ;;  %v2485_v43 = vmul.f32 0.03125, %v2245_v63  ;;  %v7961_v42 = vmul.f32 0.03125, %v1617_v53  ;;  %v3838_v26 = vrot.slane %v3837_v45, 4  ;;  %11832 = vst [vmem:[#allocation57_spill] sm:$0xff] %v7966_v28  ;;  %v11833_v53 = vld [vmem:[#allocation69_spill] sm:$0xff] }
 0x1c1   :  { %v3127_v6 = vadd.f32 1e-05, %v2871_v21  ;;  %v5953_v9 = vpop.eup %5952  ;;  %v2612_v58 = vmul.f32 %v7949_v5, %v7949_v5  ;;  %v2484_v50 = vmul.f32 0.03125, %v2242_v19  ;;  %v3704_v25 = vmul.f32 %v3576_v34, %v7760_v4 }
 0x1c2   :  { %v2802_v11 = vmax.f32 %v2674_v40, 0.0  ;;  %1472 = vadd.xlane.f32.xlu1 %v11831_v0  ;;  %v7969_v59 = vmul.f32 %v5953_v9, %v2994_v12  ;;  %v2741_v1 = vsub.f32 %v2485_v43, %v2613_v20  ;;  %v7972_v21 = vadd.f32 %v3852_v35, %v3851_v18  ;;  %v11834_v40 = vld [vmem:[#allocation12_spill] sm:$0xff]  ;;  %v11835_v18 = vld [vmem:[#allocation71_spill] sm:$0xff] }
 0x1c3   :  { %5956 = vrsqrt.f32 %v3127_v6  ;;  %v2257_v63 = vpop.xlane.xlu1 %2256  ;;  %2115 = vadd.xlane.f32.xlu0 %v11833_v53  ;;  %v2999_v47 = vsub.f32 %v11834_v40, %v7892_v61  ;;  %v2740_v19 = vsub.f32 %v2484_v50, %v2612_v58  ;;  %v3769_v0 = vmul.f32 %v3641_v7, %v7760_v4  ;;  %v11837_v40 = vld [vmem:[#allocation72_spill] sm:$0xff] }
 0x1c4   :  { %v3058_v48 = vadd.f32 1e-05, %v2802_v11  ;;  %v1608_v62 = vpop.xlane.xlu0 %1607  ;;  %v3640_v28 = vadd.f32 %v7718_v57, %v3508_v32  ;;  %v2869_v34 = vmax.f32 %v2741_v1, 0.0  ;;  %v2617_v12 = vmul.f32 %v7961_v42, %v7961_v42  ;;  %v7991_v1 = vpop.f32.mrb[56].mxu0 }
 0x1c5   :  { %v2868_v43 = vmax.f32 %v2740_v19, 0.0  ;;  %v7980_v20 = vmul.f32 0.03125, %v1410_v13  ;;  %v2489_v35 = vmul.f32 0.03125, %v2257_v63  ;;  %v7984_v11 = vadd.f32 %v3838_v26, %v3837_v45  ;;  %11836 = vst [vmem:[#allocation11_spill] sm:$0xff] %v7991_v1  ;;  %v11844_v1 = vld [vmem:[#allocation74_spill] sm:$0xff] }
 0x1c6   :  { %5958 = vrsqrt.f32 %v3058_v48  ;;  %1670 = vadd.xlane.f32.xlu1 %v11835_v18  ;;  %v3844_v6 = vsel %vm172_vm0, %v3704_v25, 0.0  ;;  %v3125_v7 = vadd.f32 1e-05, %v2869_v34  ;;  %v2420_v32 = vmul.f32 0.03125, %v7856_v39 }
 0x1c7   :  { %v2056_v9 = vpop.xlane.xlu1 %2055  ;;  %1481 = vadd.xlane.f32.xlu0 %v7540_v46  ;;  %v3124_v58 = vadd.f32 1e-05, %v2868_v43  ;;  %v2548_v48 = vmul.f32 %v7980_v20, %v7980_v20  ;;  %v2745_v13 = vsub.f32 %v2489_v35, %v2617_v12  ;;  %v3768_v63 = vmul.f32 %v3640_v28, %v7760_v4  ;;  %v8008_v28 = vpop.f32.mrb[57].mxu0 }
 0x1c8   :  { %v2248_v50 = vpop.xlane.xlu0 %2247  ;;  %5960 = vrsqrt.f32 %v3125_v7  ;;  %v7994_v45 = vmul.f32 0.03125, %v1614_v15  ;;  %v7996_v26 = vmul.f32 0.03125, %v1608_v62  ;;  %v3845_v19 = vrot.slane %v3844_v6, 4  ;;  %11839 = vst [vmem:[#allocation62_spill] sm:$0xff] %v8008_v28 }
 0x1c9   :  { %v5955_v25 = vpop.eup %5954  ;;  %5962 = vrsqrt.f32 %v3124_v58  ;;  %v2676_v46 = vsub.f32 %v2420_v32, %v2548_v48  ;;  %v2873_v53 = vmax.f32 %v2745_v13, 0.0  ;;  %v2486_v39 = vmul.f32 0.03125, %v2248_v50 }
 0x1ca   :  { %1667 = vadd.xlane.f32.xlu1 %v11837_v40  ;;  %v4299_v34 = vsel %vm172_vm0, %v3769_v0, 0.0  ;;  %v11838_v12 = vsub.f32 %v11829_v49, %v7854_v3  ;;  %v2614_v15 = vmul.f32 %v7996_v26, %v7996_v26  ;;  %v3840_v35 = vrot.slane %v7984_v11, 2  ;;  %v11840_v40 = vld [vmem:[#allocation68_spill] sm:$0xff] }
 0x1cb   :  { %v2254_v62 = vpop.xlane.xlu1 %2253  ;;  %2124 = vadd.xlane.f32.xlu0 %v7560_v27  ;;  %v2804_v18 = vmax.f32 %v2676_v46, 0.0  ;;  %v3129_v7 = vadd.f32 1e-05, %v2873_v53  ;;  %v3447_v3 = vmul.f32 %v7680_v29, %v7807_v38  ;;  %v2616_v49 = vmul.f32 %v7994_v45, %v7994_v45  ;;  %v11841_v46 = vld [vmem:[#allocation9_spill] sm:$0xff] }
 0x1cc   :  { %v8003_v43 = vmul.f32 %v5955_v25, %v11838_v12  ;;  %v2488_v32 = vmul.f32 0.03125, %v2254_v62  ;;  %v1416_v58 = vpop.xlane.xlu0 %1415  ;;  %v2742_v48 = vsub.f32 %v2486_v39, %v2614_v15  ;;  %v4292_v27 = vsel %vm172_vm0, %v3768_v63, 0.0  ;;  %v11842_v39 = vld [vmem:[#allocation75_spill] sm:$0xff] }
 0x1cd   :  { %v5957_v0 = vpop.eup %5956  ;;  %v8015_v13 = vmul.f32 0.03125, %v1416_v58  ;;  %v3060_v25 = vadd.f32 1e-05, %v2804_v18  ;;  %5964 = vrsqrt.f32 %v3129_v7  ;;  %v2930_v53 = vsub.f32 %v11841_v46, %v7935_v16 }
 0x1ce   :  { %v3383_v50 = vmul.f32 %v5957_v0, %v2999_v47  ;;  %1478 = vadd.xlane.f32.xlu1 %v11840_v40  ;;  %v2870_v12 = vmax.f32 %v2742_v48, 0.0  ;;  %v2744_v62 = vsub.f32 %v2488_v32, %v2616_v49  ;;  %v8026_v58 = vadd.f32 %v3845_v19, %v3844_v6  ;;  %v11843_v40 = vld [vmem:[#allocation13_spill] sm:$0xff] }
 0x1cf   :  { %v2550_v38 = vmul.f32 %v8015_v13, %v8015_v13  ;;  %v8023_v61 = vpop.xlane.xlu1 %1424  ;;  %2121 = vadd.xlane.f32.xlu0 %v11842_v39  ;;  %v4300_v47 = vrot.slane %v4299_v34, 4  ;;  %v3511_v63 = vmul.f32 %v7680_v29, %v7902_v14  ;;  %v2422_v18 = vmul.f32 0.03125, %v2056_v9  ;;  %v11845_v14 = vld [vmem:[#allocation15_spill] sm:$0xff] }
 0x1d0   :  { %v5959_v15 = vpop.eup %5958  ;;  %v2059_v7 = vpop.xlane.xlu0 %2058  ;;  %v4293_v0 = vrot.slane %v4292_v27, 4  ;;  %v3126_v48 = vadd.f32 1e-05, %v2870_v12  ;;  %v2872_v32 = vmax.f32 %v2744_v62, 0.0  ;;  %v3579_v49 = vadd.f32 %v7718_v57, %v3447_v3  ;;  %v11846_v12 = vld [vmem:[#allocation76_spill] sm:$0xff] }
 0x1d1   :  { %v3314_v16 = vmul.f32 %v5959_v15, %v2930_v53  ;;  %v2997_v46 = vsub.f32 %v11843_v40, %v7940_v24  ;;  %5966 = vrsqrt.f32 %v3060_v25  ;;  %v2678_v39 = vsub.f32 %v2422_v18, %v2550_v38 }
 0x1d2   :  { %1484 = vadd.xlane.f32.xlu1 %v11844_v1  ;;  %v5961_v6 = vpop.eup %5960  ;;  %v2996_v9 = vsub.f32 %v11845_v14, %v7949_v5  ;;  %5968 = vrsqrt.f32 %v3126_v48  ;;  %v3128_v28 = vadd.f32 1e-05, %v2872_v32  ;;  %v3841_v62 = vadd.f32 %v3840_v35, %v7984_v11  ;;  %v11847_v35 = vld [vmem:[#allocation77_spill] sm:$0xff] }
 0x1d3   :  { %v3446_v19 = vmul.f32 %v7680_v29, %v3314_v16  ;;  %v8037_v53 = vpop.xlane.xlu1 %1622  ;;  %1487 = vadd.xlane.f32.xlu0 %v11846_v12  ;;  %v5963_v3 = vpop.eup %5962  ;;  %v3643_v24 = vadd.f32 %v7718_v57, %v3511_v63  ;;  %v8042_v25 = vmul.f32 %v5961_v6, %v2997_v46  ;;  %v2806_v1 = vmax.f32 %v2678_v39, 0.0 }
 0x1d4   :  { %v8044_v38 = vpop.xlane.xlu0 %1421  ;;  %v4294_v15 = vadd.f32 %v4293_v0, %v4292_v27  ;;  %v8047_v18 = vmul.f32 0.03125, %v7894_v60  ;;  %v8049_v5 = vmul.f32 %v5963_v3, %v2996_v9  ;;  %5970 = vrsqrt.f32 %v3128_v28  ;;  %v11848_v27 = vld [vmem:[#allocation17_spill] sm:$0xff] }
 0x1d5   :  { %v4301_v16 = vadd.f32 %v4300_v47, %v4299_v34  ;;  %v3707_v48 = vmul.f32 %v3579_v49, %v7760_v4  ;;  %v3515_v32 = vmul.f32 %v7680_v29, %v3383_v50  ;;  %v3062_v11 = vadd.f32 1e-05, %v2806_v1 }
 0x1d6   :  { %1490 = vadd.xlane.f32.xlu1 %v11847_v35  ;;  %v3854_v63 = vrot.slane %v7972_v21, 2  ;;  %v3578_v40 = vadd.f32 %v7718_v57, %v3446_v19  ;;  %v3001_v0 = vsub.f32 %v11848_v27, %v7961_v42  ;;  %v2423_v60 = vmul.f32 0.03125, %v2059_v7  ;;  %v11853_v27 = vld [vmem:[#allocation42_spill] sm:$0xff] }
 0x1d7   :  { %v8058_v46 = vpop.xlane.xlu1 %1619  ;;  %2130 = vadd.xlane.f32.xlu0 %v7635_v44  ;;  %v5965_v34 = vpop.eup %5964  ;;  %v11849_v28 = vrot.slane %v7955_v56, 1  ;;  %v3847_v47 = vrot.slane %v8026_v58, 2  ;;  %v3771_v49 = vmul.f32 %v3643_v24, %v7760_v4  ;;  %5972 = vrsqrt.f32 %v3062_v11 }
 0x1d8   :  { %v8066_v39 = vpop.xlane.xlu0 %2064  ;;  %v3842_v6 = vrot.slane %v3841_v62, 1  ;;  %v4295_v19 = vrot.slane %v4294_v15, 2  ;;  %v2551_v42 = vmul.f32 %v8047_v18, %v8047_v18  ;;  %v8070_v7 = vmul.f32 %v5965_v34, %v3001_v0 }
 0x1d9   :  { %v3836_v50 = vadd.f32 %v11849_v28, %v7955_v56  ;;  %v4302_v44 = vrot.slane %v4301_v16, 2  ;;  %v3865_v14 = vsel %vm172_vm0, %v3707_v48, 0.0  ;;  %v3647_v9 = vadd.f32 %v7718_v57, %v3515_v32  ;;  %v11855_v28 = vld [vmem:[#allocation14_spill] sm:$0xff] }
 0x1da   :  { %2127 = vadd.xlane.f32.xlu1 %v7643_v17  ;;  %v8076_v56 = vmax.f32 %v7944_v33, 0.0  ;;  %v8079_v12 = vadd.f32 %v3854_v63, %v7972_v21  ;;  %v3706_v3 = vmul.f32 %v3578_v40, %v7760_v4  ;;  %v2679_v24 = vsub.f32 %v2423_v60, %v2551_v42  ;;  %v11852_v21 = vld [vmem:[#allocation20_spill] sm:$0xff] }
 0x1db   :  { %v8082_v1 = vpop.xlane.xlu1 %2262  ;;  %1493 = vadd.xlane.f32.xlu0 %v7647_v31  ;;  %v8086_v11 = vmax.f32 %v7922_v30, 0.0  ;;  %v5967_v48 = vpop.eup %5966  ;;  %v3848_v32 = vadd.f32 %v3847_v47, %v8026_v58  ;;  %v4313_v17 = vsel %vm172_vm0, %v3771_v49, 0.0  ;;  %v3510_v33 = vmul.f32 %v7680_v29, %v7969_v59 }
 0x1dc   :  { %11850 = vst [vmem:[#allocation63_spill] sm:$0xff] %v8076_v56  ;;  %v2998_v35 = vsub.f32 %v11852_v21, %v7996_v26  ;;  %v8094_v63 = vpop.xlane.xlu0 %2061  ;;  %v5969_v40 = vpop.eup %5968  ;;  %v8097_v0 = vadd.f32 %v11853_v27, %v3836_v50  ;;  %v3843_v31 = vadd.f32 %v3842_v6, %v3841_v62  ;;  %v4296_v30 = vadd.f32 %v4295_v19, %v4294_v15  ;;  %v11856_v50 = vld [vmem:[#allocation18_spill] sm:$0xff] }
 0x1dd   :  { %11851 = vst [vmem:[#allocation69_spill] sm:$0xff] %v8086_v11  ;;  %v3866_v60 = vrot.slane %v3865_v14, 4  ;;  %v8099_v34 = vadd.f32 %v4302_v44, %v4301_v16  ;;  %v3775_v58 = vmul.f32 %v3647_v9, %v7760_v4  ;;  %v2932_v47 = vsub.f32 %v11855_v28, %v7980_v20 }
 0x1de   :  { %v3382_v59 = vmul.f32 %v5969_v40, %v2998_v35  ;;  %1496 = vadd.xlane.f32.xlu1 %v7651_v55  ;;  %v5971_v26 = vpop.eup %5970  ;;  %v4314_v49 = vrot.slane %v4313_v17, 4  ;;  %v3858_v42 = vsel %vm172_vm0, %v3706_v3, 0.0  ;;  %v3000_v21 = vsub.f32 %v11856_v50, %v7994_v45 }
 0x1df   :  { %11854 = vst [vmem:[#allocation12_spill] sm:$0xff] %v8099_v34  ;;  %v2807_v62 = vmax.f32 %v2679_v24, 0.0  ;;  %v8108_v15 = vpop.xlane.xlu1 %2259  ;;  %1499 = vadd.xlane.f32.xlu0 %v7661_v41  ;;  %v3849_v16 = vrot.slane %v3848_v32, 1  ;;  %v3642_v6 = vadd.f32 %v7718_v57, %v3510_v33  ;;  %v3316_v19 = vmul.f32 %v5967_v48, %v2932_v47  ;;  %v11857_v48 = vld [vmem:[#allocation19_spill] sm:$0xff] }
 0x1e0   :  { %v8112_v20 = vpop.xlane.xlu0 %1427  ;;  %v8116_v55 = vsel %vm172_vm0, %v8086_v11, 0.0  ;;  %v4297_v9 = vrot.slane %v4296_v30, 1  ;;  %v8119_v3 = vadd.f32 %v3866_v60, %v3865_v14  ;;  %v3384_v45 = vmul.f32 %v5971_v26, %v3000_v21 }
 0x1e1   :  { %v5973_v24 = vpop.eup %5972  ;;  %v4341_v41 = vsel %vm172_vm0, %v3775_v58, 0.0  ;;  %v3859_v40 = vrot.slane %v3858_v42, 4  ;;  %v2934_v33 = vsub.f32 %v11857_v48, %v8015_v13  ;;  %v8127_v28 = vadd.f32 %v11853_v27, %v3843_v31 }
 0x1e2   :  { %2136 = vadd.xlane.f32.xlu1 %v7664_v51  ;;  %v8130_v50 = vadd.f32 %v4314_v49, %v4313_v17  ;;  %v3063_v14 = vadd.f32 1e-05, %v2807_v62  ;;  %v8135_v26 = vadd.f32 %v3849_v16, %v3848_v32  ;;  %v3770_v58 = vmul.f32 %v3642_v6, %v7760_v4 }
 0x1e3   :  { %v8132_v60 = vpop.xlane.xlu1 %1430  ;;  %1505 = vadd.xlane.f32.xlu0 %v7704_v37  ;;  %v3448_v13 = vmul.f32 %v7680_v29, %v3316_v19  ;;  %v3318_v21 = vmul.f32 %v5973_v24, %v2934_v33  ;;  %v8141_v31 = vadd.f32 %v4297_v9, %v4296_v30  ;;  %v4342_v17 = vrot.slane %v4341_v41, 4  ;;  %v11860_v37 = vld [vmem:[#allocation16_spill] sm:$0xff] }
 0x1e4   :  { %11858 = vst [vmem:[#allocation71_spill] sm:$0xff] %v8130_v50  ;;  %v8139_v51 = vpop.xlane.xlu0 %2070  ;;  %v8145_v49 = vmul.f32 0.03125, %v8023_v61  ;;  %v3860_v62 = vadd.f32 %v3859_v40, %v3858_v42  ;;  %v2935_v32 = vsub.f32 %v11860_v37, %v8047_v18  ;;  %v3517_v16 = vmul.f32 %v7680_v29, %v8070_v7  ;;  %v11863_v37 = vld [vmem:[#allocation87_spill] sm:$0xff] }
 0x1e5   :  { %11859 = vst [vmem:[#allocation72_spill] sm:$0xff] %v8141_v31  ;;  %v3514_v6 = vmul.f32 %v7680_v29, %v3382_v59  ;;  %v3449_v19 = vmul.f32 %v7680_v29, %v8003_v43  ;;  %5974 = vrsqrt.f32 %v3063_v14  ;;  %v8157_v61 = vmul.f32 0.03125, %v8037_v53  ;;  %v11864_v31 = vld [vmem:[#allocation98_spill] sm:$0xff] }
 0x1e6   :  { %2133 = vadd.xlane.f32.xlu1 %v7673_v2  ;;  %v4306_v9 = vsel %vm172_vm0, %v3770_v58, 0.0  ;;  %v3580_v7 = vadd.f32 %v7718_v57, %v3448_v13  ;;  %v3450_v59 = vmul.f32 %v7680_v29, %v3318_v21  ;;  %v2425_v2 = vmul.f32 0.03125, %v8066_v39 }
 0x1e7   :  { %v8159_v42 = vpop.xlane.xlu1 %1628  ;;  %1511 = vadd.xlane.f32.xlu0 %v7767_v22  ;;  %v4343_v40 = vadd.f32 %v4342_v17, %v4341_v41  ;;  %v3512_v43 = vmul.f32 %v7680_v29, %v8049_v5  ;;  %v2553_v53 = vmul.f32 %v8145_v49, %v8145_v49  ;;  %v8173_v33 = vmul.f32 0.03125, %v8044_v38 }
 0x1e8   :  { %v8166_v24 = vpop.xlane.xlu0 %2067  ;;  %v3861_v22 = vrot.slane %v3860_v62, 2  ;;  %v3649_v14 = vadd.f32 %v7718_v57, %v3517_v16  ;;  %v3646_v58 = vadd.f32 %v7718_v57, %v3514_v6  ;;  %v2491_v13 = vmul.f32 0.03125, %v8082_v1 }
 0x1e9   :  { %v4307_v39 = vrot.slane %v4306_v9, 4  ;;  %v3581_v41 = vadd.f32 %v7718_v57, %v3449_v19  ;;  %v3516_v5 = vmul.f32 %v7680_v29, %v3384_v45  ;;  %v2619_v21 = vmul.f32 %v8157_v61, %v8157_v61 }
 0x1ea   :  { %1502 = vadd.xlane.f32.xlu1 %v7687_v8  ;;  %v3708_v38 = vmul.f32 %v3580_v7, %v7760_v4  ;;  %v3582_v16 = vadd.f32 %v7718_v57, %v3450_v59  ;;  %v2681_v6 = vsub.f32 %v2425_v2, %v2553_v53  ;;  %v2424_v1 = vmul.f32 0.03125, %v8094_v63 }
 0x1eb   :  { %v8183_v17 = vpop.xlane.xlu1 %1625  ;;  %2154 = vadd.xlane.f32.xlu0 %v7813_v54  ;;  %v4344_v47 = vrot.slane %v4343_v40, 2  ;;  %v3513_v45 = vmul.f32 %v7680_v29, %v8042_v25  ;;  %v3644_v19 = vadd.f32 %v7718_v57, %v3512_v43  ;;  %v2747_v30 = vsub.f32 %v2491_v13, %v2619_v21  ;;  %v8206_v25 = vld [vmem:[%s11510_s2] ss:$0 sm:$0xff] }
 0x1ec   :  { %v8189_v8 = vpop.xlane.xlu0 %1433  ;;  %v3862_v35 = vadd.f32 %v3861_v22, %v3860_v62  ;;  %v3777_v44 = vmul.f32 %v3649_v14, %v7760_v4  ;;  %v3774_v54 = vmul.f32 %v3646_v58, %v7760_v4  ;;  %v2552_v7 = vmul.f32 %v8173_v33, %v8173_v33 }
 0x1ed   :  { %v4308_v63 = vadd.f32 %v4307_v39, %v4306_v9  ;;  %v3648_v59 = vadd.f32 %v7718_v57, %v3516_v5  ;;  %v2875_v2 = vmax.f32 %v2747_v30, 0.0  ;;  %v8210_v62 = vadd.f32 %v8206_v25, %v7736_v52 }
 0x1ee   :  { %2142 = vadd.xlane.f32.xlu1 %v7741_v36  ;;  %v3872_v43 = vsel %vm172_vm0, %v3708_v38, 0.0  ;;  %v3710_v36 = vmul.f32 %v3582_v16, %v7760_v4  ;;  %v2809_v9 = vmax.f32 %v2681_v6, 0.0  ;;  %v2680_v22 = vsub.f32 %v2424_v1, %v2552_v7 }
 0x1ef   :  { %v8200_v53 = vpop.xlane.xlu1 %2268  ;;  %1517 = vadd.xlane.f32.xlu0 %v7835_v10  ;;  %v5975_v14 = vpop.eup %5974  ;;  %v3709_v10 = vmul.f32 %v3581_v41, %v7760_v4  ;;  %v3645_v58 = vadd.f32 %v7718_v57, %v3513_v45  ;;  %v3772_v13 = vmul.f32 %v3644_v19, %v7760_v4  ;;  %v3131_v39 = vadd.f32 1e-05, %v2875_v2  ;;  %v11861_v45 = vld [vmem:[#allocation59_spill] sm:$0xff] }
 0x1f0   :  { %v8214_v30 = vpop.xlane.xlu0 %1631  ;;  %v4345_v5 = vadd.f32 %v4344_v47, %v4343_v40  ;;  %v3863_v21 = vrot.slane %v3862_v35, 1  ;;  %v4355_v52 = vsel %vm172_vm0, %v3777_v44, 0.0  ;;  %v4334_v38 = vsel %vm172_vm0, %v3774_v54, 0.0  ;;  %v8229_v19 = vpop.f32.mrb[58].mxu0 }
 0x1f1   :  { %v3873_v16 = vrot.slane %v3872_v43, 4  ;;  %v3776_v6 = vmul.f32 %v3648_v59, %v7760_v4  ;;  %v8224_v1 = vmul.f32 0.03125, %v8058_v46  ;;  %5976 = vrsqrt.f32 %v3131_v39  ;;  %11862 = vst [vmem:[#allocation68_spill] sm:$0xff] %v8229_v19  ;;  %v8237_v7 = vpop.f32.mrb[59].mxu0 }
 0x1f2   :  { %2139 = vadd.xlane.f32.xlu1 %v7744_v23  ;;  %v3886_v47 = vsel %vm172_vm0, %v3710_v36, 0.0  ;;  %v3319_v44 = vmul.f32 %v5975_v14, %v2935_v32  ;;  %v3065_v23 = vadd.f32 1e-05, %v2809_v9  ;;  %v2808_v40 = vmax.f32 %v2680_v22, 0.0 }
 0x1f3   :  { %v8226_v41 = vpop.xlane.xlu1 %2265  ;;  %2160 = vadd.xlane.f32.xlu0 %v11861_v45  ;;  %v4309_v46 = vrot.slane %v4308_v63, 2  ;;  %v8240_v59 = vsel %vm172_vm0, %v3709_v10, 0.0  ;;  %v4335_v2 = vrot.slane %v4334_v38, 4  ;;  %v2490_v39 = vmul.f32 0.03125, %v8108_v15 }
 0x1f4   :  { %v8235_v54 = vpop.xlane.xlu0 %2076  ;;  %v4346_v45 = vrot.slane %v4345_v5, 1  ;;  %v3773_v36 = vmul.f32 %v3645_v58, %v7760_v4  ;;  %v4320_v48 = vsel %vm172_vm0, %v3772_v13, 0.0  ;;  %v4356_v18 = vrot.slane %v4355_v52, 4 }
 0x1f5   :  { %v3864_v32 = vadd.f32 %v3863_v21, %v3862_v35  ;;  %v3874_v9 = vadd.f32 %v3873_v16, %v3872_v43  ;;  %v3887_v22 = vrot.slane %v3886_v47, 4  ;;  %v2618_v14 = vmul.f32 %v8224_v1, %v8224_v1 }
 0x1f6   :  { %1508 = vadd.xlane.f32.xlu1 %v11863_v37  ;;  %v4348_v10 = vsel %vm172_vm0, %v3776_v6, 0.0  ;;  %v3451_v15 = vmul.f32 %v7680_v29, %v3319_v44  ;;  %5978 = vrsqrt.f32 %v3065_v23  ;;  %v3064_v34 = vadd.f32 1e-05, %v2808_v40  ;;  %v11868_v44 = vld [vmem:[#allocation89_spill] sm:$0xff] }
 0x1f7   :  { %2157 = vadd.xlane.f32.xlu0 %v11864_v31  ;;  %v1437_v58 = vpop.xlane.xlu1 %1436  ;;  %v8251_v50 = vadd.f32 %v4309_v46, %v4308_v63  ;;  %v4336_v37 = vadd.f32 %v4335_v2, %v4334_v38  ;;  %v2746_v35 = vsub.f32 %v2490_v39, %v2618_v14  ;;  %v8257_v21 = vsel %vm172_vm0, %v3773_v36, 0.0  ;;  %v11867_v31 = vld [vmem:[#allocation22_spill] sm:$0xff]  ;;  %v11869_v38 = vld [vmem:[#allocation100_spill] sm:$0xff] }
 0x1f8   :  { %v8254_v43 = vpop.xlane.xlu0 %2073  ;;  %11866 = vst [vmem:[#allocation75_spill] sm:$0xff] %v8257_v21  ;;  %v4357_v16 = vadd.f32 %v4356_v18, %v4355_v52  ;;  %v3003_v6 = vsub.f32 %v11867_v31, %v8157_v61  ;;  %v8262_v29 = vmul.f32 0.03125, %v8132_v60  ;;  %v4321_v63 = vrot.slane %v4320_v48, 4  ;;  %v11890_v21 = vld [vmem:[#allocation106_spill] sm:$0xff] }
 0x1f9   :  { %11865 = vst [vmem:[#allocation9_spill] sm:$0xff] %v8251_v50  ;;  %v3875_v23 = vrot.slane %v3874_v9, 2  ;;  %v4349_v40 = vrot.slane %v4348_v10, 4  ;;  %v3888_v46 = vadd.f32 %v3887_v22, %v3886_v47  ;;  %v4347_v2 = vadd.f32 %v4346_v45, %v4345_v5 }
 0x1fa   :  { %2148 = vadd.xlane.f32.xlu1 %v11868_v44  ;;  %v8267_v39 = vadd.f32 %v11853_v27, %v3864_v32  ;;  %v3583_v52 = vadd.f32 %v7718_v57, %v3451_v15  ;;  %5980 = vrsqrt.f32 %v3064_v34  ;;  %v4337_v61 = vrot.slane %v4336_v37, 2  ;;  %v11870_v57 = vld [vmem:[#allocation92_spill] sm:$0xff] }
 0x1fb   :  { %1523 = vadd.xlane.f32.xlu0 %v11869_v38  ;;  %v5977_v36 = vpop.eup %5976  ;;  %v2874_v18 = vmax.f32 %v2746_v35, 0.0  ;;  %v8271_v60 = vmul.f32 0.03125, %v8112_v20  ;;  %v2426_v14 = vmul.f32 0.03125, %v8166_v24  ;;  %v4358_v31 = vrot.slane %v4357_v16, 2  ;;  %v8279_v45 = vpop.xlane.xlu1 %1634  ;;  %v11871_v24 = vld [vmem:[#allocation101_spill] sm:$0xff] }
 0x1fc   :  { %v8274_v44 = vmul.f32 %v5977_v36, %v3003_v6  ;;  %v2555_v5 = vmul.f32 %v8262_v29, %v8262_v29  ;;  %v2427_v47 = vmul.f32 0.03125, %v8139_v51  ;;  %v3876_v34 = vadd.f32 %v3875_v23, %v3874_v9  ;;  %v8284_v15 = vpop.xlane.xlu0 %2271  ;;  %v11873_v51 = vld [vmem:[#allocation21_spill] sm:$0xff]  ;;  %v11874_v9 = vld [vmem:[#allocation23_spill] sm:$0xff] }
 0x1fd   :  { %v4350_v32 = vadd.f32 %v4349_v40, %v4348_v10  ;;  %v3889_v22 = vrot.slane %v3888_v46, 2  ;;  %v2554_v20 = vmul.f32 %v8271_v60, %v8271_v60  ;;  %v8288_v6 = vadd.f32 %v4321_v63, %v4320_v48  ;;  %v11876_v63 = vld [vmem:[#allocation93_spill] sm:$0xff] }
 0x1fe   :  { %2145 = vadd.xlane.f32.xlu1 %v11870_v57  ;;  %v2937_v38 = vsub.f32 %v11873_v51, %v8145_v49  ;;  %v3711_v36 = vmul.f32 %v3583_v52, %v7760_v4  ;;  %v4338_v57 = vadd.f32 %v4337_v61, %v4336_v37  ;;  %v2936_v10 = vsub.f32 %v11874_v9, %v8173_v33  ;;  %v11878_v52 = vld [vmem:[#allocation8_spill] sm:$0xff]  ;;  %v11880_v9 = vld [vmem:[#allocation94_spill] sm:$0xff] }
 0x1ff   :  { %2166 = vadd.xlane.f32.xlu0 %v11871_v24  ;;  %11872 = vst [vmem:[#allocation13_spill] sm:$0xff] %v8288_v6  ;;  %v3130_v23 = vadd.f32 1e-05, %v2874_v18  ;;  %v2682_v40 = vsub.f32 %v2426_v14, %v2554_v20  ;;  %v8296_v50 = vadd.f32 %v11853_v27, %v4347_v2  ;;  %v2683_v35 = vsub.f32 %v2427_v47, %v2555_v5  ;;  %v2275_v18 = vpop.xlane.xlu1 %2274  ;;  %v11879_v47 = vld [vmem:[#allocation24_spill] sm:$0xff] }
 0x200   :  { %v5979_v13 = vpop.eup %5978  ;;  %v8299_v48 = vmul.f32 0.03125, %v1437_v58  ;;  %v3877_v49 = vrot.slane %v3876_v34, 1  ;;  %v8302_v51 = vadd.f32 %v4358_v31, %v4357_v16  ;;  %v4351_v4 = vrot.slane %v4350_v32, 2  ;;  %v8312_v31 = vpop.xlane.xlu0 %1640 }
 0x201   :  { %11875 = vst [vmem:[#allocation74_spill] sm:$0xff] %v8296_v50  ;;  %v3890_v37 = vadd.f32 %v3889_v22, %v3888_v46  ;;  %v3893_v33 = vsel %vm172_vm0, %v3711_v36, 0.0  ;;  %v8307_v61 = vmul.f32 0.03125, %v8159_v42  ;;  %v2429_v2 = vmul.f32 0.03125, %v8235_v54 }
 0x202   :  { %1514 = vadd.xlane.f32.xlu1 %v11876_v63  ;;  %11877 = vst [vmem:[#allocation15_spill] sm:$0xff] %v8302_v51  ;;  %v2557_v58 = vmul.f32 %v8299_v48, %v8299_v48  ;;  %v4339_v14 = vrot.slane %v4338_v57, 1  ;;  %v3321_v5 = vmul.f32 %v5979_v13, %v2937_v38  ;;  %5982 = vrsqrt.f32 %v3130_v23  ;;  %v11881_v13 = vld [vmem:[#allocation61_spill] sm:$0xff]  ;;  %v11883_v51 = vld [vmem:[#allocation104_spill] sm:$0xff] }
 0x203   :  { %2163 = vadd.xlane.f32.xlu0 %v11878_v52  ;;  %v2810_v16 = vmax.f32 %v2682_v40, 0.0  ;;  %v2811_v20 = vmax.f32 %v2683_v35, 0.0  ;;  %v2493_v42 = vmul.f32 0.03125, %v8200_v53  ;;  %v4352_v63 = vadd.f32 %v4351_v4, %v4350_v32  ;;  %v8334_v54 = vpop.xlane.xlu1 %1442 }
 0x204   :  { %v5981_v46 = vpop.eup %5980  ;;  %v2685_v36 = vsub.f32 %v2429_v2, %v2557_v58  ;;  %v3891_v52 = vrot.slane %v3890_v37, 1  ;;  %v3894_v24 = vrot.slane %v3893_v33, 4  ;;  %v8320_v38 = vadd.f32 %v3877_v49, %v3876_v34  ;;  %v8330_v2 = vld [vmem:[%s11510_s2 + $0x1] ss:$0 sm:$0xff]  ;;  %v1440_v50 = vpop.xlane.xlu0 %1439 }
 0x205   :  { %v2621_v23 = vmul.f32 %v8307_v61, %v8307_v61  ;;  %v8325_v40 = vmul.f32 0.03125, %v8183_v17  ;;  %v4340_v53 = vadd.f32 %v4339_v14, %v4338_v57  ;;  %v3453_v32 = vmul.f32 %v8330_v2, %v3321_v5  ;;  %v11882_v17 = vld [vmem:[#allocation97_spill] sm:$0xff] }
 0x206   :  { %2151 = vadd.xlane.f32.xlu1 %v11880_v9  ;;  %v2813_v35 = vmax.f32 %v2685_v36, 0.0  ;;  %v3320_v4 = vmul.f32 %v5981_v46, %v2936_v10  ;;  %v3066_v58 = vadd.f32 1e-05, %v2810_v16  ;;  %v3067_v9 = vadd.f32 1e-05, %v2811_v20 }
 0x207   :  { %1529 = vadd.xlane.f32.xlu0 %v11881_v13  ;;  %v2749_v34 = vsub.f32 %v2493_v42, %v2621_v23  ;;  %v2492_v49 = vmul.f32 0.03125, %v8226_v41  ;;  %v4353_v36 = vrot.slane %v4352_v63, 1  ;;  %v3892_v57 = vadd.f32 %v3891_v52, %v3890_v37  ;;  %v8350_v37 = vld [vmem:[%s11510_s2 + $0x2] ss:$0 sm:$0xff] }
 0x208   :  { %v3069_v13 = vadd.f32 1e-05, %v2813_v35  ;;  %v3895_v14 = vadd.f32 %v3894_v24, %v3893_v33  ;;  %v8338_v22 = vmul.f32 0.03125, %v8279_v45  ;;  %v2620_v10 = vmul.f32 %v8325_v40, %v8325_v40 }
 0x209   :  { %v8344_v5 = vmul.f32 0.03125, %v8189_v8  ;;  %v2428_v41 = vmul.f32 0.03125, %v8254_v43  ;;  %v3585_v45 = vadd.f32 %v8350_v37, %v3453_v32  ;;  %v3452_v24 = vmul.f32 %v8330_v2, %v3320_v4  ;;  %v11884_v43 = vld [vmem:[#allocation102_spill] sm:$0xff] }
 0x20a   :  { %1520 = vadd.xlane.f32.xlu1 %v11882_v17  ;;  %5984 = vrsqrt.f32 %v3069_v13  ;;  %v2877_v33 = vmax.f32 %v2749_v34, 0.0  ;;  %v2748_v16 = vsub.f32 %v2492_v49, %v2620_v10  ;;  %v2623_v42 = vmul.f32 %v8338_v22, %v8338_v22  ;;  %v8372_v34 = vpop.f32.mrb[60].mxu0  ;;  %v8377_v49 = vld [vmem:[%s11510_s2 + $0x4] sm:$0xff]  ;;  %v8381_v17 = vpop.xlane.xlu0 %1637 }
 0x20b   :  { %2172 = vadd.xlane.f32.xlu0 %v11883_v51  ;;  %5986 = vrsqrt.f32 %v3066_v58  ;;  %v8355_v51 = vmul.f32 0.03125, %v8214_v30  ;;  %v2556_v8 = vmul.f32 %v8344_v5, %v8344_v5  ;;  %v2494_v52 = vmul.f32 0.03125, %v8284_v15  ;;  %v11885_v30 = vld [vmem:[#allocation105_spill] sm:$0xff] }
 0x20c   :  { %5988 = vrsqrt.f32 %v3067_v9  ;;  %v5983_v46 = vpop.eup %5982  ;;  %v2495_v23 = vmul.f32 0.03125, %v2275_v18  ;;  %v8367_v35 = vadd.f32 %v11853_v27, %v4340_v53  ;;  %v8370_v32 = vadd.f32 %v11853_v27, %v3892_v57  ;;  %v2080_v9 = vpop.xlane.xlu1 %2079 }
 0x20d   :  { %v2622_v20 = vmul.f32 %v8355_v51, %v8355_v51  ;;  %v3896_v4 = vrot.slane %v3895_v14, 2  ;;  %v2684_v58 = vsub.f32 %v2428_v41, %v2556_v8  ;;  %v3713_v15 = vmul.f32 %v8377_v49, %v3585_v45  ;;  %v8383_v57 = vpop.f32.mrb[61].mxu0 }
 0x20e   :  { %1526 = vadd.xlane.f32.xlu1 %v11884_v43  ;;  %11886 = vst [vmem:[#allocation76_spill] sm:$0xff] %v8367_v35  ;;  %v3584_v18 = vadd.f32 %v8350_v37, %v3452_v24  ;;  %v2751_v53 = vsub.f32 %v2495_v23, %v2623_v42  ;;  %v8385_v10 = vadd.f32 %v4353_v36, %v4352_v63  ;;  %v11889_v43 = vld [vmem:[#allocation26_spill] sm:$0xff]  ;;  %v2876_v35 = vmax.f32 %v2748_v16, 0.0  ;;  %v11891_v36 = vld [vmem:[#allocation25_spill] sm:$0xff] }
 0x20f   :  { %2169 = vadd.xlane.f32.xlu0 %v11885_v30  ;;  %v2750_v13 = vsub.f32 %v2494_v52, %v2622_v20  ;;  %v11888_v41 = vsub.f32 %v11879_v47, %v8224_v1  ;;  %v2938_v30 = vsub.f32 %v11889_v43, %v8271_v60  ;;  %v3519_v45 = vmul.f32 %v8330_v2, %v8274_v44  ;;  %v11892_v1 = vld [vmem:[#allocation27_spill] sm:$0xff] }
 0x210   :  { %11887 = vst [vmem:[#allocation77_spill] sm:$0xff] %v8385_v10  ;;  %v3133_v24 = vadd.f32 1e-05, %v2877_v33  ;;  %v2879_v42 = vmax.f32 %v2751_v53, 0.0  ;;  %v3897_v63 = vadd.f32 %v3896_v4, %v3895_v14  ;;  %v2939_v52 = vsub.f32 %v11891_v36, %v8262_v29  ;;  %v1449_v4 = vpop.xlane.xlu1 %1448 }
 0x211   :  { %v3386_v8 = vmul.f32 %v5983_v46, %v11888_v41  ;;  %v2878_v20 = vmax.f32 %v2750_v13, 0.0  ;;  %v2812_v46 = vmax.f32 %v2684_v58, 0.0  ;;  %v3712_v16 = vmul.f32 %v8377_v49, %v3584_v18  ;;  %v11893_v58 = vld [vmem:[#allocation29_spill] sm:$0xff]  ;;  %v2083_v18 = vpop.xlane.xlu0 %2082 }
 0x212   :  { %1532 = vadd.xlane.f32.xlu1 %v11890_v21  ;;  %v3907_v21 = vsel %vm172_vm0, %v3713_v15, 0.0  ;;  %v3132_v13 = vadd.f32 1e-05, %v2876_v35  ;;  %v8404_v14 = vmul.f32 0.03125, %v1440_v50  ;;  %v3651_v53 = vadd.f32 %v8350_v37, %v3519_v45  ;;  %v11894_v15 = vld [vmem:[#allocation31_spill] sm:$0xff]  ;;  %v8414_v50 = vpop.f32.mrb[62].mxu0 }
 0x213   :  { %1535 = vadd.xlane.f32.xlu0 %v8116_v55  ;;  %v3134_v44 = vadd.f32 1e-05, %v2878_v20  ;;  %v3518_v23 = vmul.f32 %v8330_v2, %v3386_v8  ;;  %v3135_v55 = vadd.f32 1e-05, %v2879_v42  ;;  %5990 = vrsqrt.f32 %v3133_v24  ;;  %v8417_v41 = vpop.f32.mrb[63].mxu0 }
 0x214   :  { %v5985_v33 = vpop.eup %5984  ;;  %v2941_v43 = vsub.f32 %v11894_v15, %v8299_v48  ;;  %v3898_v36 = vrot.slane %v3897_v63, 1  ;;  %v3068_v60 = vadd.f32 1e-05, %v2812_v46  ;;  %v8412_v35 = vmul.f32 0.03125, %v8334_v54  ;;  %11895 = vst [vmem:[#allocation17_spill] sm:$0xff] %v8417_v41  ;;  %v11896_v15 = vld [vmem:[#allocation28_spill] sm:$0xff] }
 0x215   :  { %v5987_v29 = vpop.eup %5986  ;;  %5992 = vrsqrt.f32 %v3134_v44  ;;  %v3908_v8 = vrot.slane %v3907_v21, 4  ;;  %v3900_v45 = vsel %vm172_vm0, %v3712_v16, 0.0  ;;  %v3650_v24 = vadd.f32 %v8350_v37, %v3518_v23 }
 0x216   :  { %v5989_v20 = vpop.eup %5988  ;;  %v3325_v42 = vmul.f32 %v5985_v33, %v2941_v43  ;;  %5994 = vrsqrt.f32 %v3135_v55  ;;  %v2558_v48 = vmul.f32 %v8404_v14, %v8404_v14  ;;  %v2430_v46 = vmul.f32 0.03125, %v2080_v9  ;;  %v2089_v55 = vpop.xlane.xlu1 %2088 }
 0x217   :  { %5996 = vrsqrt.f32 %v3132_v13  ;;  %v3779_v44 = vmul.f32 %v8377_v49, %v3651_v53  ;;  %v3322_v54 = vmul.f32 %v5987_v29, %v2938_v30  ;;  %v2431_v10 = vmul.f32 0.03125, %v2083_v18  ;;  %v2281_v53 = vpop.xlane.xlu0 %2280 }
 0x218   :  { %v3323_v6 = vmul.f32 %v5989_v20, %v2939_v52  ;;  %5998 = vrsqrt.f32 %v3068_v60  ;;  %v2559_v16 = vmul.f32 %v8412_v35, %v8412_v35  ;;  %v2686_v33 = vsub.f32 %v2430_v46, %v2558_v48 }
 0x219   :  { %v8427_v23 = vadd.f32 %v3908_v8, %v3907_v21  ;;  %v3901_v13 = vrot.slane %v3900_v45, 4  ;;  %v3457_v43 = vmul.f32 %v8330_v2, %v3325_v42  ;;  %v8430_v9 = vmul.f32 0.03125, %v1449_v4  ;;  %v11897_v21 = vld [vmem:[#allocation30_spill] sm:$0xff] }
 0x21a   :  { %v8432_v30 = vadd.f32 %v3898_v36, %v3897_v63  ;;  %v3778_v29 = vmul.f32 %v8377_v49, %v3650_v24  ;;  %v2814_v18 = vmax.f32 %v2686_v33, 0.0  ;;  %v2687_v52 = vsub.f32 %v2431_v10, %v2559_v16 }
 0x21b   :  { %v8436_v60 = vsel %vm172_vm0, %v3779_v44, 0.0  ;;  %v3454_v20 = vmul.f32 %v8330_v2, %v3322_v54  ;;  %v3006_v8 = vsub.f32 %v11897_v21, %v8355_v51  ;;  %v2433_v48 = vmul.f32 0.03125, %v2089_v55 }
 0x21c   :  { %v3455_v42 = vmul.f32 %v8330_v2, %v3323_v6  ;;  %v8443_v4 = vmul.f32 0.03125, %v8312_v31  ;;  %v3070_v63 = vadd.f32 1e-05, %v2814_v18  ;;  %v2497_v36 = vmul.f32 0.03125, %v2281_v53  ;;  %v11898_v6 = vld [vmem:[#allocation32_spill] sm:$0xff] }
 0x21d   :  { %v5991_v46 = vpop.eup %5990  ;;  %v3902_v10 = vadd.f32 %v3901_v13, %v3900_v45  ;;  %v3589_v44 = vadd.f32 %v8350_v37, %v3457_v43  ;;  %v2561_v54 = vmul.f32 %v8430_v9, %v8430_v9  ;;  %v8450_v51 = vsel %vm172_vm0, %v3778_v29, 0.0  ;;  %v2278_v43 = vpop.xlane.xlu0 %2277 }
 0x21e   :  { %v3007_v33 = vsub.f32 %v11898_v6, %v8338_v22  ;;  %v2625_v31 = vmul.f32 %v8443_v4, %v8443_v4  ;;  %v2815_v55 = vmax.f32 %v2687_v52, 0.0  ;;  %v3586_v18 = vadd.f32 %v8350_v37, %v3454_v20  ;;  %v8480_v22 = vpop.f32.mrb[64].mxu0 }
 0x21f   :  { %v5993_v16 = vpop.eup %5992  ;;  %6000 = vrsqrt.f32 %v3070_v63  ;;  %v2689_v13 = vsub.f32 %v2433_v48, %v2561_v54  ;;  %v3587_v24 = vadd.f32 %v8350_v37, %v3455_v42  ;;  %v8459_v29 = vmul.f32 0.03125, %v8381_v17  ;;  %v8466_v54 = vpop.xlane.xlu1 %2085 }
 0x220   :  { %v5995_v53 = vpop.eup %5994  ;;  %v3390_v45 = vmul.f32 %v5993_v16, %v3006_v8  ;;  %v2753_v41 = vsub.f32 %v2497_v36, %v2625_v31  ;;  %v3903_v6 = vrot.slane %v3902_v10, 2  ;;  %v3717_v52 = vmul.f32 %v8377_v49, %v3589_v44  ;;  %v11901_v31 = vld [vmem:[#allocation86_spill] sm:$0xff] }
 0x221   :  { %v5997_v21 = vpop.eup %5996  ;;  %v3391_v47 = vmul.f32 %v5995_v53, %v3007_v33  ;;  %v4363_v8 = vrot.slane %v8450_v51, 4  ;;  %v3071_v63 = vadd.f32 1e-05, %v2815_v55  ;;  %v2496_v42 = vmul.f32 0.03125, %v2278_v43 }
 0x222   :  { %v3522_v19 = vmul.f32 %v8330_v2, %v3390_v45  ;;  %v5999_v20 = vpop.eup %5998  ;;  %v11899_v17 = vsub.f32 %v11892_v1, %v8307_v61  ;;  %v11900_v16 = vsub.f32 %v11893_v58, %v8325_v40  ;;  %v2817_v44 = vmax.f32 %v2689_v13, 0.0 }
 0x223   :  { %v3523_v48 = vmul.f32 %v8330_v2, %v3391_v47  ;;  %v874_v53 = vadd.f32 %v8206_v25, %v11901_v31  ;;  %v3715_v45 = vmul.f32 %v8377_v49, %v3587_v24  ;;  %v3714_v47 = vmul.f32 %v8377_v49, %v3586_v18  ;;  %v8489_v24 = vpop.f32.mrb[65].mxu0 }
 0x224   :  { %v3389_v36 = vmul.f32 %v5991_v46, %v11899_v17  ;;  %v3388_v33 = vmul.f32 %v5997_v21, %v11900_v16  ;;  %v2624_v55 = vmul.f32 %v8459_v29, %v8459_v29  ;;  %v2881_v43 = vmax.f32 %v2753_v41, 0.0  ;;  %v8499_v16 = vpop.xlane.xlu1 %1454 }
 0x225   :  { %v3935_v61 = vsel %vm172_vm0, %v3717_v52, 0.0  ;;  %v11902_v40 = vsub.f32 %v11896_v15, %v8344_v5  ;;  %v3654_v58 = vadd.f32 %v8350_v37, %v3522_v19  ;;  %v1537_v46 = vsel %vm172_vm0, %v8076_v56, 0.0 }
 0x226   :  { %v3655_v18 = vadd.f32 %v8350_v37, %v3523_v48  ;;  %6002 = vrsqrt.f32 %v3071_v63  ;;  %v2752_v13 = vsub.f32 %v2496_v42, %v2624_v55  ;;  %1538 = vadd.xlane.f32.xlu1 %v1537_v46  ;;  %v1951_v41 = vmul.f32 %v8076_v56, %v8076_v56 }
 0x227   :  { %v3324_v1 = vmul.f32 %v5999_v20, %v11902_v40  ;;  %v3904_v21 = vadd.f32 %v3903_v6, %v3902_v10  ;;  %v3520_v52 = vmul.f32 %v8330_v2, %v3388_v33  ;;  %v3073_v5 = vadd.f32 1e-05, %v2817_v44  ;;  %v11904_v44 = vld [vmem:[#allocation35_spill] sm:$0xff] }
 0x228   :  { %v8495_v15 = vmax.f32 %v874_v53, 0.0  ;;  %v3914_v19 = vsel %vm172_vm0, %v3714_v47, 0.0  ;;  %v3521_v20 = vmul.f32 %v8330_v2, %v3389_v36  ;;  %v3137_v17 = vadd.f32 1e-05, %v2881_v43 }
 0x229   :  { %v2177_v48 = vsel %vm172_vm0, %v1951_v41, 0.0  ;;  %v6001_v63 = vpop.eup %6000  ;;  %v3921_v42 = vsel %vm172_vm0, %v3715_v45, 0.0  ;;  %v3936_v31 = vrot.slane %v3935_v61, 4  ;;  %v3456_v10 = vmul.f32 %v8330_v2, %v3324_v1 }
 0x22a   :  { %11903 = vst [vmem:[#allocation20_spill] sm:$0xff] %v8495_v15  ;;  %v3782_v6 = vmul.f32 %v8377_v49, %v3654_v58  ;;  %2178 = vadd.xlane.f32.xlu0 %v2177_v48  ;;  %v3783_v33 = vmul.f32 %v8377_v49, %v3655_v18  ;;  %v2942_v53 = vsub.f32 %v11904_v44, %v8404_v14  ;;  %v2880_v36 = vmax.f32 %v2752_v13, 0.0  ;;  %v2095_v48 = vpop.xlane.xlu1 %2094 }
 0x22b   :  { %v1950_v47 = vmul.f32 %v8086_v11, %v8086_v11  ;;  %v3915_v55 = vrot.slane %v3914_v19, 4  ;;  %v3652_v43 = vadd.f32 %v8350_v37, %v3520_v52  ;;  %6004 = vrsqrt.f32 %v3073_v5 }
 0x22c   :  { %v1540_v45 = vsel %vm172_vm0, %v8495_v15, 0.0  ;;  %v4364_v40 = vadd.f32 %v4363_v8, %v8450_v51  ;;  %v3326_v1 = vmul.f32 %v6001_v63, %v2942_v53  ;;  %6006 = vrsqrt.f32 %v3137_v17  ;;  %v8524_v17 = vpop.xlane.xlu0 %1646 }
 0x22d   :  { %v2174_v58 = vsel %vm172_vm0, %v1950_v47, 0.0  ;;  %v11905_v14 = vrot.slane %v8427_v23, 2  ;;  %v3937_v18 = vadd.f32 %v3936_v31, %v3935_v61  ;;  %v3588_v13 = vadd.f32 %v8350_v37, %v3456_v10 }
 0x22e   :  { %v4390_v41 = vsel %vm172_vm0, %v3782_v6, 0.0  ;;  %2175 = vadd.xlane.f32.xlu1 %v2174_v58  ;;  %1541 = vadd.xlane.f32.xlu0 %v1540_v45  ;;  %v3922_v52 = vrot.slane %v3921_v42, 4  ;;  %v3653_v5 = vadd.f32 %v8350_v37, %v3521_v20  ;;  %v4397_v51 = vsel %vm172_vm0, %v3783_v33, 0.0 }
 0x22f   :  { %v8518_v46 = vadd.f32 %v11905_v14, %v8427_v23  ;;  %v3136_v8 = vadd.f32 1e-05, %v2880_v36  ;;  %v8528_v23 = vadd.f32 %v11853_v27, %v8432_v30  ;;  %v11906_v61 = vrot.slane %v8436_v60, 4  ;;  %v11908_v30 = vld [vmem:[#allocation34_spill] sm:$0xff]  ;;  %v8540_v14 = vpop.f32.mrb[28].mxu1 }
 0x230   :  { %v3916_v31 = vadd.f32 %v3915_v55, %v3914_v19  ;;  %v3780_v10 = vmul.f32 %v8377_v49, %v3652_v43  ;;  %v6003_v6 = vpop.eup %6002  ;;  %v3905_v20 = vrot.slane %v3904_v21, 1  ;;  %v4365_v44 = vrot.slane %v4364_v40, 2  ;;  %11909 = vst [vmem:[#allocation14_spill] sm:$0xff] %v8540_v14  ;;  %v8546_v43 = vpop.f32.mrb[29].mxu1 }
 0x231   :  { %v8533_v63 = vadd.f32 %v11906_v61, %v8436_v60  ;;  %v4391_v33 = vrot.slane %v4390_v41, 4  ;;  %v3458_v53 = vmul.f32 %v8330_v2, %v3326_v1  ;;  %v3938_v36 = vrot.slane %v3937_v18, 2  ;;  %11910 = vst [vmem:[#allocation18_spill] sm:$0xff] %v8546_v43  ;;  %v11912_v1 = vld [vmem:[#allocation33_spill] sm:$0xff] }
 0x232   :  { %v3716_v47 = vmul.f32 %v8377_v49, %v3588_v13  ;;  %v4398_v45 = vrot.slane %v4397_v51, 4  ;;  %v2943_v58 = vsub.f32 %v11908_v30, %v8412_v35  ;;  %v8543_v19 = vadd.f32 %v3922_v52, %v3921_v42  ;;  %v1446_v42 = vpop.xlane.xlu0 %1445  ;;  %v8555_v52 = vpop.xlane.xlu1 %2091 }
 0x233   :  { %11907 = vst [vmem:[#allocation42_spill] sm:$0xff] %v8533_v63  ;;  %v3781_v55 = vmul.f32 %v8377_v49, %v3653_v5  ;;  %6008 = vrsqrt.f32 %v3136_v8  ;;  %v3917_v61 = vrot.slane %v3916_v31, 2  ;;  %v4376_v13 = vsel %vm172_vm0, %v3780_v10, 0.0 }
 0x234   :  { %v3327_v11 = vmul.f32 %v6003_v6, %v2943_v58  ;;  %v8550_v56 = vadd.f32 %v3905_v20, %v3904_v21  ;;  %v8552_v35 = vadd.f32 %v4365_v44, %v4364_v40  ;;  %v4392_v30 = vadd.f32 %v4391_v33, %v4390_v41  ;;  %v11914_v6 = vld [vmem:[#allocation36_spill] sm:$0xff] }
 0x235   :  { %v3590_v60 = vadd.f32 %v8350_v37, %v3458_v53  ;;  %v6005_v5 = vpop.eup %6004  ;;  %v3939_v8 = vadd.f32 %v3938_v36, %v3937_v18  ;;  %v3928_v14 = vsel %vm172_vm0, %v3716_v47, 0.0  ;;  %v4399_v43 = vadd.f32 %v4398_v45, %v4397_v51 }
 0x236   :  { %11911 = vst [vmem:[#allocation19_spill] sm:$0xff] %v8552_v35  ;;  %v3009_v63 = vsub.f32 %v11912_v1, %v8443_v4  ;;  %v6007_v10 = vpop.eup %6006  ;;  %v8562_v40 = vsel %vm172_vm0, %v3781_v55, 0.0  ;;  %v4377_v41 = vrot.slane %v4376_v13, 4  ;;  %v2945_v20 = vsub.f32 %v11914_v6, %v8430_v9  ;;  %v8586_v6 = vpop.xlane.xlu1 %1460  ;;  %v11920_v35 = vld [vmem:[#allocation95_spill] sm:$0xff] }
 0x237   :  { %11913 = vst [vmem:[#allocation16_spill] sm:$0xff] %v8562_v40  ;;  %v8566_v44 = vadd.f32 %v3917_v61, %v3916_v31  ;;  %v3459_v18 = vmul.f32 %v8330_v2, %v3327_v11  ;;  %v8570_v33 = vmax.f32 %v8210_v62, 0.0  ;;  %v8573_v51 = vmul.f32 0.03125, %v8499_v16  ;;  %v11917_v11 = vld [vmem:[#allocation37_spill] sm:$0xff]  ;;  %v8584_v16 = vpop.xlane.xlu0 %1643 }
 0x238   :  { %v3929_v4 = vrot.slane %v3928_v14, 4  ;;  %v4393_v53 = vrot.slane %v4392_v30, 2  ;;  %v3718_v36 = vmul.f32 %v8377_v49, %v3590_v60  ;;  %v3329_v47 = vmul.f32 %v6005_v5, %v2945_v20 }
 0x239   :  { %11915 = vst [vmem:[#allocation59_spill] sm:$0xff] %v8570_v33  ;;  %v3940_v45 = vrot.slane %v3939_v8, 1  ;;  %v4400_v58 = vrot.slane %v4399_v43, 2  ;;  %v3393_v55 = vmul.f32 %v6007_v10, %v3009_v63  ;;  %v2435_v1 = vmul.f32 0.03125, %v2095_v48  ;;  %v11918_v48 = vld [vmem:[#allocation103_spill] sm:$0xff] }
 0x23a   :  { %v8577_v31 = vadd.f32 %v4377_v41, %v4376_v13  ;;  %v3008_v62 = vsub.f32 %v11917_v11, %v8459_v29  ;;  %v8582_v61 = vmul.f32 0.03125, %v8466_v54  ;;  %v3591_v60 = vadd.f32 %v8350_v37, %v3459_v18 }
 0x23b   :  { %v2563_v63 = vmul.f32 %v8573_v51, %v8573_v51  ;;  %v884_v5 = vadd.f32 %v8206_v25, %v11918_v48  ;;  %v1543_v13 = vsel %vm172_vm0, %v8570_v33, 0.0  ;;  %v8595_v29 = vadd.f32 %v3929_v4, %v3928_v14 }
 0x23c   :  { %11916 = vst [vmem:[#allocation87_spill] sm:$0xff] %v8577_v31  ;;  %v4394_v54 = vadd.f32 %v4393_v53, %v4392_v30  ;;  %v3942_v41 = vsel %vm172_vm0, %v3718_v36, 0.0  ;;  %v3461_v20 = vmul.f32 %v8330_v2, %v3329_v47  ;;  %1544 = vadd.xlane.f32.xlu1 %v1543_v13  ;;  %v8599_v11 = vadd.f32 %v3940_v45, %v3939_v8 }
 0x23d   :  { %v6009_v10 = vpop.eup %6008  ;;  %v4401_v18 = vadd.f32 %v4400_v58, %v4399_v43  ;;  %v3525_v9 = vmul.f32 %v8330_v2, %v3393_v55  ;;  %v2691_v21 = vsub.f32 %v2435_v1, %v2563_v63  ;;  %v8603_v48 = vmul.f32 0.03125, %v8524_v17  ;;  %v11922_v1 = vld [vmem:[#allocation39_spill] sm:$0xff] }
 0x23e   :  { %v889_v40 = vadd.f32 %v8206_v25, %v11920_v35  ;;  %v8607_v14 = vmul.f32 0.03125, %v1446_v42  ;;  %v1952_v30 = vmul.f32 %v8495_v15, %v8495_v15  ;;  %v3943_v4 = vrot.slane %v3942_v41, 4  ;;  %v1452_v35 = vpop.xlane.xlu0 %1451  ;;  %v8618_v42 = vpop.xlane.xlu1 %1658 }
 0x23f   :  { %11919 = vst [vmem:[#allocation98_spill] sm:$0xff] %v8603_v48  ;;  %v3719_v53 = vmul.f32 %v8377_v49, %v3591_v60  ;;  %v3392_v8 = vmul.f32 %v6009_v10, %v3008_v62  ;;  %v8612_v36 = vmax.f32 %v884_v5, 0.0  ;;  %v4395_v43 = vrot.slane %v4394_v54, 1 }
 0x240   :  { %v3593_v47 = vadd.f32 %v8350_v37, %v3461_v20  ;;  %v2180_v17 = vsel %vm172_vm0, %v1952_v30, 0.0  ;;  %v1953_v45 = vmul.f32 %v8570_v33, %v8570_v33  ;;  %v4402_v58 = vrot.slane %v4401_v18, 1 }
 0x241   :  { %11921 = vst [vmem:[#allocation22_spill] sm:$0xff] %v8612_v36  ;;  %v3657_v55 = vadd.f32 %v8350_v37, %v3525_v9  ;;  %v2819_v62 = vmax.f32 %v2691_v21, 0.0  ;;  %2181 = vadd.xlane.f32.xlu0 %v2180_v17  ;;  %v8625_v63 = vmul.f32 %v8603_v48, %v8603_v48  ;;  %v8627_v5 = vmax.f32 %v889_v40, 0.0 }
 0x242   :  { %v2560_v13 = vmul.f32 %v8607_v14, %v8607_v14  ;;  %v2183_v10 = vsel %vm172_vm0, %v1953_v45, 0.0  ;;  %v3944_v20 = vadd.f32 %v3943_v4, %v3942_v41  ;;  %v3949_v30 = vsel %vm172_vm0, %v3719_v53, 0.0 }
 0x243   :  { %11923 = vst [vmem:[#allocation89_spill] sm:$0xff] %v8625_v63  ;;  %11924 = vst [vmem:[#allocation100_spill] sm:$0xff] %v8627_v5  ;;  %v3524_v9 = vmul.f32 %v8330_v2, %v3392_v8  ;;  %2184 = vadd.xlane.f32.xlu1 %v2183_v10  ;;  %v8634_v60 = vmul.f32 0.03125, %v1452_v35  ;;  %v4396_v21 = vadd.f32 %v4395_v43, %v4394_v54  ;;  %v1546_v63 = vsel %vm172_vm0, %v8612_v36, 0.0  ;;  %v8656_v10 = vpop.xlane.xlu0 %1457 }
 0x244   :  { %v3721_v17 = vmul.f32 %v8377_v49, %v3593_v47  ;;  %v4403_v33 = vadd.f32 %v4402_v58, %v4401_v18  ;;  %v3785_v45 = vmul.f32 %v8377_v49, %v3657_v55  ;;  %v3075_v41 = vadd.f32 1e-05, %v2819_v62  ;;  %v8649_v47 = vpop.xlane.xlu1 %2100 }
 0x245   :  { %1547 = vadd.xlane.f32.xlu0 %v1546_v63  ;;  %v2562_v4 = vmul.f32 %v8634_v60, %v8634_v60  ;;  %v3950_v53 = vrot.slane %v3949_v30, 4  ;;  %v2434_v8 = vmul.f32 0.03125, %v8555_v52  ;;  %v1549_v54 = vsel %vm172_vm0, %v8627_v5, 0.0 }
 0x246   :  { %v1955_v43 = vmul.f32 %v8627_v5, %v8627_v5  ;;  %v3945_v35 = vrot.slane %v3944_v20, 2  ;;  %v3656_v18 = vadd.f32 %v8350_v37, %v3524_v9  ;;  %v2688_v58 = vsub.f32 %v8582_v61, %v2560_v13  ;;  %v8661_v5 = vpop.f32.mrb[30].mxu1  ;;  %v11929_v13 = vld [vmem:[#allocation10_spill] sm:$0xff] }
 0x247   :  { %1550 = vadd.xlane.f32.xlu1 %v1549_v54  ;;  %v3963_v55 = vsel %vm172_vm0, %v3721_v17, 0.0  ;;  %v2690_v62 = vsub.f32 %v2434_v8, %v2562_v4  ;;  %v11620_v52 = vmov 0.0|0.0   ;;  %v11926_v40 = vrot.slane %v8119_v3, 2  ;;  %11927 = vst [vmem:[#allocation92_spill] sm:$0xff] %v8661_v5  ;;  %v8674_v54 = vpop.f32.mrb[31].mxu1  ;;  %v8702_v5 = vpop.xlane.xlu0 %1655 }
 0x248   :  { %v2189_v63 = vsel %vm172_vm0, %v1955_v43, 0.0  ;;  %5895 = vmatprep.subr.bf16.mxu1 %v11620_v52  ;;  %v8664_v9 = vadd.f32 %v11853_v27, %v4396_v21  ;;  %v8667_v61 = vsel %vm172_vm0, %v3785_v45, 0.0  ;;  %v899_v17 = vadd.f32 %v8206_v25, %v11929_v13  ;;  %11931 = vst [vmem:[#allocation21_spill] sm:$0xff] %v8674_v54  ;;  %v8681_v43 = vpop.f32.mrb[32].mxu1 }
 0x249   :  { %v3869_v48 = vadd.f32 %v11926_v40, %v8119_v3  ;;  %2190 = vadd.xlane.f32.xlu0 %v2189_v63  ;;  %v11930_v4 = vrot.slane %v8240_v59, 4  ;;  %v8677_v3 = vadd.f32 %v11853_v27, %v4403_v33  ;;  %v8679_v40 = vadd.f32 %v3950_v53, %v3949_v30  ;;  %11933 = vst [vmem:[#allocation93_spill] sm:$0xff] %v8681_v43  ;;  %v11936_v53 = vld [vmem:[#allocation38_spill] sm:$0xff] }
 0x24a   :  { %11928 = vst [vmem:[#allocation101_spill] sm:$0xff] %v8664_v9  ;;  %6010 = vrsqrt.f32 %v3075_v41  ;;  %v3964_v45 = vrot.slane %v3963_v55, 4  ;;  %v3784_v52 = vmul.f32 %v8377_v49, %v3656_v18  ;;  %v2816_v13 = vmax.f32 %v2688_v58, 0.0  ;;  %v8684_v9 = vpop.f32.mrb[33].mxu1  ;;  %v8692_v41 = vpop.xlane.xlu1 %2298 }
 0x24b   :  { %v3881_v8 = vadd.f32 %v11930_v4, %v8240_v59  ;;  %11932 = vst [vmem:[#allocation23_spill] sm:$0xff] %v8677_v3  ;;  %v3870_v21 = vrot.slane %v3869_v48, 1  ;;  %11934 = vst [vmem:[#allocation8_spill] sm:$0xff] %v8684_v9  ;;  %v8686_v15 = vadd.f32 %v3945_v35, %v3944_v20  ;;  %v2818_v4 = vmax.f32 %v2690_v62, 0.0 }
 0x24c   :  { %v11935_v33 = vrot.slane %v8543_v19, 2  ;;  %v3919_v18 = vrot.slane %v8566_v44, 1  ;;  %v3931_v58 = vrot.slane %v8595_v29, 2  ;;  %v11937_v35 = vrot.slane %v8079_v12, 1 }
 0x24d   :  { %v3882_v63 = vrot.slane %v3881_v8, 2  ;;  %v3871_v59 = vadd.f32 %v3870_v21, %v3869_v48  ;;  %v8710_v31 = vsel %vm172_vm0, %v3784_v52, 0.0  ;;  %v3074_v20 = vadd.f32 1e-05, %v2818_v4 }
 0x24e   :  { %v3925_v30 = vadd.f32 %v11935_v33, %v8543_v19  ;;  %v3857_v62 = vadd.f32 %v11937_v35, %v8079_v12  ;;  %v3072_v19 = vadd.f32 1e-05, %v2816_v13  ;;  %v11938_v33 = vld [vmem:[#allocation62_spill] sm:$0xff]  ;;  %v11939_v12 = vrot.slane %v8518_v46, 1 }
 0x24f   :  { %v3883_v43 = vadd.f32 %v3882_v63, %v3881_v8  ;;  %v904_v54 = vadd.f32 %v8206_v25, %v11938_v33  ;;  %v3932_v8 = vadd.f32 %v3931_v58, %v8595_v29  ;;  %v8707_v63 = vadd.f32 %v3964_v45, %v3963_v55  ;;  %v8722_v45 = vpop.xlane.xlu1 %2097 }
 0x250   :  { %v3926_v9 = vrot.slane %v3925_v30, 1  ;;  %v3913_v48 = vadd.f32 %v11939_v12, %v8518_v46  ;;  %v3920_v35 = vadd.f32 %v3919_v18, %v8566_v44  ;;  %v4730_v25 = vadd.f32 %v11853_v27, %v8135_v26 }
 0x251   :  { %v3884_v3 = vrot.slane %v3883_v43, 1  ;;  %v3933_v13 = vrot.slane %v3932_v8, 1  ;;  %v8718_v33 = vmax.f32 %v899_v17, 0.0  ;;  %v4731_v55 = vadd.f32 %v11853_v27, %v3857_v62 }
 0x252   :  { %v3927_v29 = vadd.f32 %v3926_v9, %v3925_v30  ;;  %v4733_v52 = vadd.f32 %v11853_v27, %v3871_v59  ;;  %6012 = vrsqrt.f32 %v3072_v19  ;;  %v8725_v46 = vmax.f32 %v904_v54, 0.0  ;;  %v8736_v59 = vpop.f32.mrb[34].mxu1 }
 0x253   :  { %v3885_v21 = vadd.f32 %v3884_v3, %v3883_v43  ;;  %11940 = vst [vmem:[#allocation24_spill] sm:$0xff] %v8718_v33  ;;  %v4734_v44 = vadd.f32 %v11853_v27, %v8320_v38  ;;  %6014 = vrsqrt.f32 %v3074_v20  ;;  %v3934_v26 = vadd.f32 %v3933_v13, %v3932_v8  ;;  %v8734_v43 = vpop.xlane.xlu0 %2295  ;;  %v8741_v58 = vpop.f32.mrb[35].mxu1 }
 0x254   :  { %11941 = vst [vmem:[#allocation94_spill] sm:$0xff] %v8725_v46  ;;  %v8729_v3 = vpop.eup %6010  ;;  %v4738_v9 = vadd.f32 %v11853_v27, %v8550_v56  ;;  %v4857_v17 = vmax.f32 %v8127_v28, 0.0  ;;  %v4739_v54 = vadd.f32 %v11853_v27, %v3913_v48  ;;  %v4740_v18 = vadd.f32 %v11853_v27, %v3920_v35  ;;  %v8746_v19 = vpop.f32.mrb[36].mxu1 }
 0x255   :  { %v4735_v30 = vadd.f32 %v11853_v27, %v3885_v21  ;;  %v4858_v38 = vmax.f32 %v4730_v25, 0.0  ;;  %v4741_v20 = vadd.f32 %v11853_v27, %v3927_v29  ;;  %v4743_v56 = vadd.f32 %v11853_v27, %v8599_v11  ;;  %v8749_v48 = vpop.f32.mrb[37].mxu1  ;;  %v8755_v11 = vpop.xlane.xlu1 %1466 }
 0x256   :  { %v4859_v62 = vmax.f32 %v4731_v55, 0.0  ;;  %v4861_v28 = vmax.f32 %v4733_v52, 0.0  ;;  %v4862_v8 = vmax.f32 %v4734_v44, 0.0  ;;  %v4865_v12 = vmax.f32 %v8528_v23, 0.0  ;;  %11942 = vst [vmem:[#allocation61_spill] sm:$0xff] %v8749_v48  ;;  %v8757_v29 = vpop.f32.mrb[38].mxu1 }
 0x257   :  { %v4742_v21 = vadd.f32 %v11853_v27, %v3934_v26  ;;  %v4866_v35 = vmax.f32 %v4738_v9, 0.0  ;;  %v11943_v13 = vmax.f32 %v8097_v0, 0.0  ;;  %v4863_v55 = vmax.f32 %v4735_v30, 0.0  ;;  %v8760_v23 = vpop.f32.mrb[39].mxu1  ;;  %v8763_v0 = vpop.xlane.xlu0 %1463 }
 0x258   :  { %v4867_v44 = vmax.f32 %v4739_v54, 0.0  ;;  %v4868_v4 = vmax.f32 %v4740_v18, 0.0  ;;  %v11944_v9 = vmax.f32 %v8267_v39, 0.0  ;;  %v11945_v30 = vmax.f32 %v8370_v32, 0.0  ;;  %v8780_v32 = vld [vmem:[%s11510_s2] ss:$0 sm:$0xff] }
 0x259   :  { %v5115_v25 = vsel %vm5114_vm1, %v4857_v17, %v11943_v13  ;;  %v1558_v13 = vsel %vm172_vm0, %v8725_v46, 0.0  ;;  %v4870_v54 = vmax.f32 %v4742_v21, 0.0  ;;  %v4871_v48 = vmax.f32 %v4743_v56, 0.0 }
 0x25a   :  { %v5117_v52 = vsel %vm5116_vm2, %v4858_v38, %v5115_v25  ;;  %v5128_v38 = vsel %vm5114_vm1, %v4865_v12, %v11945_v30  ;;  %v4869_v25 = vmax.f32 %v4741_v20, 0.0  ;;  %1559 = vadd.xlane.f32.xlu1 %v1558_v13  ;;  %v914_v20 = vadd.f32 %v8780_v32, %v8237_v7 }
 0x25b   :  { %v5119_v26 = vsel %vm5118_vm3, %v4859_v62, %v5117_v52  ;;  %v5129_v62 = vsel %vm5116_vm2, %v4866_v35, %v5128_v38  ;;  %v4405_v56 = vrot.slane %v8710_v31, 4  ;;  %v8797_v30 = vmul.f32 0.03125, %v8618_v42 }
 0x25c   :  { %v5121_v17 = vsel %vm5120_vm4, %v11944_v9, %v5119_v26  ;;  %v6013_v52 = vpop.eup %6012  ;;  %v5130_v26 = vsel %vm5118_vm3, %v4867_v44, %v5129_v62  ;;  %v8792_v44 = vpop.xlane.xlu1 %1664  ;;  %v11947_v9 = vld [vmem:[#allocation57_spill] sm:$0xff]  ;;  %v8803_v13 = vmax.f32 %v914_v20, 0.0  ;;  %v11949_v42 = vrot.slane %v8679_v40, 2 }
 0x25d   :  { %v5123_v18 = vsel %vm5122_vm5, %v4861_v28, %v5121_v17  ;;  %v6015_v12 = vpop.eup %6014  ;;  %v11946_v28 = vrot.slane %v8667_v61, 4  ;;  %v5131_v35 = vsel %vm5120_vm4, %v4868_v4, %v5130_v26  ;;  %v894_v17 = vadd.f32 %v8780_v32, %v11947_v9 }
 0x25e   :  { %v5125_v39 = vsel %vm5124_vm6, %v4862_v8, %v5123_v18  ;;  %v5132_v7 = vsel %vm5122_vm5, %v4869_v25, %v5131_v35  ;;  %11948 = vst [vmem:[#allocation97_spill] sm:$0xff] %v8803_v13  ;;  %v1958_v4 = vmul.f32 %v8725_v46, %v8725_v46  ;;  %v2107_v18 = vpop.xlane.xlu0 %2106  ;;  %v8813_v62 = vadd.f32 %v11949_v42, %v8679_v40 }
 0x25f   :  { %v8787_v21 = vadd.f32 %v11946_v28, %v8667_v61  ;;  %v5127_v8 = vsel %vm5126_vm7, %v4863_v55, %v5125_v39  ;;  %v1954_v61 = vmul.f32 %v8612_v36, %v8612_v36  ;;  %v5133_v38 = vsel %vm5124_vm6, %v4870_v54, %v5132_v7 }
 0x260   :  { %v8806_v55 = vmul.f32 0.03125, %v8702_v5  ;;  %v5134_v39 = vsel %vm5126_vm7, %v4871_v48, %v5133_v38  ;;  %v11950_v54 = vmov 0  ;;  %v11953_v26 = vrot.slane %v8686_v15, 1  ;;  %v8831_v48 = vpop.f32.mrb[40].mxu1 }
 0x261   :  { %v11951_v54 = vsel %vm8819_vm8, 4294967295, %v11950_v54  ;;  %v2186_v5 = vsel %vm172_vm0, %v1954_v61, 0.0  ;;  %v5896_v28 = vpack.c.bf16 %v5134_v39, %v5127_v8  ;;  %v2198_v35 = vsel %vm172_vm0, %v1958_v4, 0.0  ;;  %v8842_v42 = vpop.f32.mrb[41].mxu1 }
 0x262   :  { %11952 = vst [vmem:[#allocation104_spill] sm:$0xff] %v11951_v54  ;;  %v8827_v20 = vadd.f32 %v11953_v26, %v8686_v15  ;;  %2187 = vadd.xlane.f32.xlu0 %v2186_v5  ;;  %v8834_v9 = vadd.f32 %v4405_v56, %v8710_v31  ;;  %v11954_v7 = vsub.f32 %v11936_v53, %v8607_v14  ;;  %v2503_v15 = vmul.f32 0.03125, %v8692_v41  ;;  %v8853_v53 = vpop.xlane.xlu1 %1661 }
 0x263   :  { %v2631_v38 = vmul.f32 %v8797_v30, %v8797_v30  ;;  %2199 = vadd.xlane.f32.xlu1 %v2198_v35  ;;  %v8844_v8 = vmax.f32 %v894_v17, 0.0  ;;  %5898 = vmatpush3.bf16.xpose.msk.msra.mxu1 %vm8819_vm8, %v5896_v28  ;;  %v2630_v31 = vmul.f32 %v8806_v55, %v8806_v55  ;;  %v2502_v56 = vmul.f32 0.03125, %v8734_v43 }
 0x264   :  { %v3328_v61 = vmul.f32 %v6013_v52, %v11954_v7  ;;  %v1564_v14 = vsel %vm172_vm0, %v8803_v13, 0.0  ;;  %v11956_v52 = vld [vmem:[#allocation40_spill] sm:$0xff]  ;;  %v1555_v17 = vsel %vm172_vm0, %v8718_v33, 0.0  ;;  %v924_v39 = vadd.f32 %v8780_v32, %v8383_v57 }
 0x265   :  { %11955 = vst [vmem:[#allocation102_spill] sm:$0xff] %v8844_v8  ;;  %v2946_v41 = vsub.f32 %v11956_v52, %v8634_v60  ;;  %v2759_v4 = vsub.f32 %v2503_v15, %v2631_v38  ;;  %v11957_v5 = vmov 0.0|0.0   ;;  %v3954_v26 = vrot.slane %v8813_v62, 1  ;;  %v8868_v60 = vpop.xlane.xlu0 %1469 }
 0x266   :  { %5899 = vmatprep.subr.bf16.mxu1 %v11957_v5  ;;  %v8864_v43 = vmul.f32 0.03125, %v8586_v6  ;;  %1556 = vadd.xlane.f32.xlu0 %v1555_v17  ;;  %v2758_v28 = vsub.f32 %v2502_v56, %v2630_v31  ;;  %v929_v35 = vadd.f32 %v8780_v32, %v8372_v34  ;;  %v3460_v7 = vmul.f32 %v8330_v2, %v3328_v61 }
 0x267   :  { %v3330_v38 = vmul.f32 %v6015_v12, %v2946_v41  ;;  %v8872_v15 = vmul.f32 0.03125, %v8656_v10  ;;  %v2887_v57 = vmax.f32 %v2759_v4, 0.0  ;;  %1565 = vadd.xlane.f32.xlu1 %v1564_v14  ;;  %v2437_v52 = vmul.f32 0.03125, %v8649_v47 }
 0x268   :  { %v2886_v40 = vmax.f32 %v2758_v28, 0.0  ;;  %v1960_v6 = vmul.f32 %v8803_v13, %v8803_v13  ;;  %v8878_v31 = vmul.f32 0.03125, %v8755_v11  ;;  %v8880_v56 = vmax.f32 %v924_v39, 0.0  ;;  %v2305_v11 = vpop.xlane.xlu1 %2304  ;;  %v11960_v28 = vld [vmem:[#allocation11_spill] sm:$0xff] }
 0x269   :  { %v3143_v34 = vadd.f32 1e-05, %v2887_v57  ;;  %v1552_v12 = vsel %vm172_vm0, %v8844_v8, 0.0  ;;  %v1957_v10 = vmul.f32 %v8718_v33, %v8718_v33  ;;  %v2565_v61 = vmul.f32 %v8864_v43, %v8864_v43 }
 0x26a   :  { %11958 = vst [vmem:[#allocation105_spill] sm:$0xff] %v8880_v56  ;;  %v3142_v47 = vadd.f32 1e-05, %v2886_v40  ;;  %v8888_v14 = vmax.f32 %v929_v35, 0.0  ;;  %1553 = vadd.xlane.f32.xlu0 %v1552_v12  ;;  %v2204_v41 = vsel %vm172_vm0, %v1960_v6, 0.0  ;;  %v3592_v4 = vadd.f32 %v8350_v37, %v3460_v7  ;;  %v8898_v12 = vpop.xlane.xlu0 %2112 }
 0x26b   :  { %6016 = vrsqrt.f32 %v3143_v34  ;;  %v2436_v17 = vmul.f32 0.03125, %v8722_v45  ;;  %2205 = vadd.xlane.f32.xlu1 %v2204_v41  ;;  %v2567_v39 = vmul.f32 %v8878_v31, %v8878_v31  ;;  %v909_v57 = vadd.f32 %v8780_v32, %v11960_v28 }
 0x26c   :  { %11959 = vst [vmem:[#allocation26_spill] sm:$0xff] %v8888_v14  ;;  %v3462_v40 = vmul.f32 %v8330_v2, %v3330_v38  ;;  %v2693_v35 = vsub.f32 %v2437_v52, %v2565_v61  ;;  %v2439_v25 = vmul.f32 0.03125, %v2107_v18  ;;  %v2564_v6 = vmul.f32 %v8872_v15, %v8872_v15 }
 0x26d   :  { %6018 = vrsqrt.f32 %v3142_v47  ;;  %v2195_v7 = vsel %vm172_vm0, %v1957_v10, 0.0  ;;  %v1570_v45 = vsel %vm172_vm0, %v8880_v56, 0.0  ;;  %v11961_v34 = vrot.slane %v8707_v63, 2 }
 0x26e   :  { %2196 = vadd.xlane.f32.xlu0 %v2195_v7  ;;  %v2695_v2 = vsub.f32 %v2439_v25, %v2567_v39  ;;  %v1956_v18 = vmul.f32 %v8844_v8, %v8844_v8  ;;  %v1963_v38 = vmul.f32 %v8888_v14, %v8888_v14  ;;  %v8916_v52 = vadd.f32 %v11853_v27, %v8827_v20 }
 0x26f   :  { %v8908_v41 = vadd.f32 %v11961_v34, %v8707_v63  ;;  %v11963_v10 = vrot.slane %v8787_v21, 2  ;;  %v3720_v63 = vmul.f32 %v8377_v49, %v3592_v4  ;;  %v2692_v47 = vsub.f32 %v2436_v17, %v2564_v6  ;;  %1571 = vadd.xlane.f32.xlu1 %v1570_v45  ;;  %v2104_v34 = vpop.xlane.xlu1 %2103  ;;  %v11967_v17 = vld [vmem:[#allocation46_spill] sm:$0xff] }
 0x270   :  { %11962 = vst [vmem:[#allocation106_spill] sm:$0xff] %v8916_v52  ;;  %v3594_v25 = vadd.f32 %v8350_v37, %v3462_v40  ;;  %v2821_v39 = vmax.f32 %v2693_v35, 0.0  ;;  %v2823_v28 = vmax.f32 %v2695_v2, 0.0  ;;  %v939_v7 = vadd.f32 %v8780_v32, %v8414_v50 }
 0x271   :  { %v8921_v61 = vadd.f32 %v11963_v10, %v8787_v21  ;;  %v8928_v20 = vadd.f32 %v3954_v26, %v8813_v62  ;;  %v4407_v8 = vrot.slane %v8834_v9, 2  ;;  %v8931_v13 = vmax.f32 %v909_v57, 0.0  ;;  %v2110_v62 = vpop.xlane.xlu0 %2109  ;;  %v11968_v26 = vld [vmem:[#allocation68_spill] sm:$0xff] }
 0x272   :  { %v2192_v21 = vsel %vm172_vm0, %v1956_v18, 0.0  ;;  %v11966_v4 = vsub.f32 %v11922_v1, %v8573_v51  ;;  %v3015_v40 = vsub.f32 %v11967_v17, %v8797_v30  ;;  %v3079_v35 = vadd.f32 1e-05, %v2823_v28 }
 0x273   :  { %11964 = vst [vmem:[#allocation25_spill] sm:$0xff] %v8921_v61  ;;  %11965 = vst [vmem:[#allocation27_spill] sm:$0xff] %v8931_v13  ;;  %2193 = vadd.xlane.f32.xlu0 %v2192_v21  ;;  %v2213_v50 = vsel %vm172_vm0, %v1963_v38, 0.0  ;;  %v919_v6 = vadd.f32 %v8780_v32, %v11968_v26  ;;  %v2820_v57 = vmax.f32 %v2692_v47, 0.0  ;;  %v8944_v45 = vmul.f32 0.03125, %v8792_v44  ;;  %v11975_v61 = vld [vmem:[#allocation49_spill] sm:$0xff] }
 0x274   :  { %v3331_v37 = vmul.f32 %v8729_v3, %v11966_v4  ;;  %2214 = vadd.xlane.f32.xlu1 %v2213_v50  ;;  %v1962_v51 = vmul.f32 %v8880_v56, %v8880_v56  ;;  %v8949_v1 = vsel %vm172_vm0, %v3720_v63, 0.0  ;;  %v3722_v3 = vmul.f32 %v8377_v49, %v3594_v25  ;;  %v11970_v63 = vld [vmem:[#allocation17_spill] sm:$0xff] }
 0x275   :  { %v3077_v30 = vadd.f32 1e-05, %v2821_v39  ;;  %v8952_v2 = vmax.f32 %v939_v7, 0.0  ;;  %v6017_v18 = vpop.eup %6016  ;;  %v8955_v38 = vmul.f32 0.03125, %v8868_v60  ;;  %v1561_v44 = vsel %vm172_vm0, %v8931_v13, 0.0  ;;  %v2302_v39 = vpop.xlane.xlu1 %2301 }
 0x276   :  { %v2505_v10 = vmul.f32 0.03125, %v2305_v11  ;;  %v1959_v47 = vmul.f32 %v8931_v13, %v8931_v13  ;;  %6020 = vrsqrt.f32 %v3079_v35  ;;  %v934_v28 = vadd.f32 %v8780_v32, %v11970_v63  ;;  %v11972_v35 = vld [vmem:[#allocation47_spill] sm:$0xff] }
 0x277   :  { %11969 = vst [vmem:[#allocation29_spill] sm:$0xff] %v8952_v2  ;;  %1562 = vadd.xlane.f32.xlu0 %v1561_v44  ;;  %v2210_v49 = vsel %vm172_vm0, %v1962_v51, 0.0  ;;  %v2440_v25 = vmul.f32 0.03125, %v2110_v62  ;;  %v6019_v7 = vpop.eup %6018  ;;  %v8964_v21 = vmax.f32 %v919_v6, 0.0  ;;  %v3399_v60 = vmul.f32 %v6017_v18, %v3015_v40  ;;  %v8975_v51 = vpop.xlane.xlu0 %1475 }
 0x278   :  { %v3076_v4 = vadd.f32 1e-05, %v2820_v57  ;;  %v2633_v11 = vmul.f32 %v8944_v45, %v8944_v45  ;;  %2211 = vadd.xlane.f32.xlu1 %v2210_v49  ;;  %v3970_v17 = vsel %vm172_vm0, %v3722_v3, 0.0  ;;  %v3014_v50 = vsub.f32 %v11972_v35, %v8806_v55  ;;  %v8977_v6 = vpop.f32.mrb[42].mxu1  ;;  %v8990_v35 = vld [vmem:[%s11510_s2 + $0x1] ss:$0 sm:$0xff] }
 0x279   :  { %11971 = vst [vmem:[#allocation31_spill] sm:$0xff] %v8964_v21  ;;  %v2568_v26 = vmul.f32 %v8955_v38, %v8955_v38  ;;  %v1579_v62 = vsel %vm172_vm0, %v8952_v2, 0.0  ;;  %v8980_v40 = vmul.f32 0.03125, %v8763_v0  ;;  %v2201_v18 = vsel %vm172_vm0, %v1959_v47, 0.0  ;;  %v8983_v44 = vpop.f32.mrb[43].mxu1 }
 0x27a   :  { %v2761_v57 = vsub.f32 %v2505_v10, %v2633_v11  ;;  %v2438_v3 = vmul.f32 0.03125, %v2104_v34  ;;  %6022 = vrsqrt.f32 %v3077_v30  ;;  %v3398_v55 = vmul.f32 %v6019_v7, %v3014_v50  ;;  %v1473_v7 = vpop.xlane.xlu1 %1472 }
 0x27b   :  { %v8985_v63 = vmax.f32 %v934_v28, 0.0  ;;  %2202 = vadd.xlane.f32.xlu0 %v2201_v18  ;;  %v2696_v49 = vsub.f32 %v2440_v25, %v2568_v26  ;;  %v3463_v0 = vmul.f32 %v8990_v35, %v3331_v37  ;;  %v3531_v10 = vmul.f32 %v8990_v35, %v3399_v60  ;;  %v9010_v18 = vpop.xlane.xlu0 %2118 }
 0x27c   :  { %6024 = vrsqrt.f32 %v3076_v4  ;;  %v2566_v34 = vmul.f32 %v8980_v40, %v8980_v40  ;;  %1580 = vadd.xlane.f32.xlu1 %v1579_v62  ;;  %v3957_v47 = vrot.slane %v8949_v1, 4  ;;  %v8999_v28 = vmul.f32 0.03125, %v8584_v16 }
 0x27d   :  { %11973 = vst [vmem:[#allocation28_spill] sm:$0xff] %v8985_v63  ;;  %v3971_v25 = vrot.slane %v3970_v17, 4  ;;  %v9002_v11 = vmul.f32 0.03125, %v8853_v53  ;;  %v2889_v37 = vmax.f32 %v2761_v57, 0.0  ;;  %v1567_v60 = vsel %vm172_vm0, %v8964_v21, 0.0 }
 0x27e   :  { %11974 = vst [vmem:[#allocation30_spill] sm:$0xff] %v8999_v28  ;;  %v2694_v50 = vsub.f32 %v2438_v3, %v2566_v34  ;;  %v3530_v26 = vmul.f32 %v8990_v35, %v3398_v55  ;;  %v2824_v62 = vmax.f32 %v2696_v49, 0.0  ;;  %v1576_v16 = vsel %vm172_vm0, %v8985_v63, 0.0  ;;  %v9015_v53 = vld [vmem:[%s11510_s2 + $0x2] ss:$0 sm:$0xff] }
 0x27f   :  { %1568 = vadd.xlane.f32.xlu0 %v1567_v60  ;;  %v3595_v57 = vadd.f32 %v9015_v53, %v3463_v0  ;;  %v3663_v3 = vadd.f32 %v9015_v53, %v3531_v10  ;;  %v2504_v34 = vmul.f32 0.03125, %v2302_v39  ;;  %v1961_v55 = vmul.f32 %v8964_v21, %v8964_v21 }
 0x280   :  { %1577 = vadd.xlane.f32.xlu1 %v1576_v16  ;;  %v6021_v49 = vpop.eup %6020  ;;  %v9024_v60 = vadd.f32 %v4407_v8, %v8834_v9  ;;  %v3958_v4 = vadd.f32 %v3957_v47, %v8949_v1  ;;  %v3972_v30 = vadd.f32 %v3971_v25, %v3970_v17  ;;  %v2951_v13 = vsub.f32 %v11975_v61, %v8878_v31  ;;  %v11977_v9 = vld [vmem:[#allocation44_spill] sm:$0xff]  ;;  %v9039_v47 = vpop.xlane.xlu1 %1670 }
 0x281   :  { %v2632_v0 = vmul.f32 %v9002_v11, %v9002_v11  ;;  %v3145_v10 = vadd.f32 1e-05, %v2889_v37  ;;  %v2822_v39 = vmax.f32 %v2694_v50, 0.0  ;;  %v2207_v16 = vsel %vm172_vm0, %v1961_v55, 0.0  ;;  %v9044_v31 = vld [vmem:[%s11510_s2 + $0x4] sm:$0xff] }
 0x282   :  { %v9034_v21 = vadd.f32 %v11853_v27, %v8928_v20  ;;  %v2949_v8 = vsub.f32 %v11977_v9, %v8864_v43  ;;  %v3662_v1 = vadd.f32 %v9015_v53, %v3530_v26  ;;  %v3080_v17 = vadd.f32 1e-05, %v2824_v62  ;;  %v11978_v43 = vld [vmem:[#allocation45_spill] sm:$0xff]  ;;  %v2116_v9 = vpop.xlane.xlu0 %2115 }
 0x283   :  { %2208 = vadd.xlane.f32.xlu0 %v2207_v16  ;;  %v3723_v61 = vmul.f32 %v9044_v31, %v3595_v57  ;;  %v3791_v25 = vmul.f32 %v9044_v31, %v3663_v3  ;;  %v3335_v20 = vmul.f32 %v6021_v49, %v2951_v13  ;;  %v2760_v37 = vsub.f32 %v2504_v34, %v2632_v0 }
 0x284   :  { %11976 = vst [vmem:[#allocation32_spill] sm:$0xff] %v9034_v21  ;;  %v6023_v50 = vpop.eup %6022  ;;  %v3959_v55 = vrot.slane %v3958_v4, 2  ;;  %v2948_v26 = vsub.f32 %v11978_v43, %v8872_v15  ;;  %v1965_v62 = vmul.f32 %v8952_v2, %v8952_v2  ;;  %v9052_v16 = vmul.f32 0.03125, %v1473_v7  ;;  %v9069_v43 = vpop.xlane.xlu1 %1667 }
 0x285   :  { %v3973_v33 = vrot.slane %v3972_v30, 2  ;;  %6026 = vrsqrt.f32 %v3145_v10  ;;  %v3078_v46 = vadd.f32 1e-05, %v2822_v39  ;;  %v1573_v57 = vsel %vm172_vm0, %v8888_v14, 0.0  ;;  %v11980_v39 = vld [vmem:[#allocation43_spill] sm:$0xff] }
 0x286   :  { %v6025_v56 = vpop.eup %6024  ;;  %v3790_v13 = vmul.f32 %v9044_v31, %v3662_v1  ;;  %v2441_v3 = vmul.f32 0.03125, %v8898_v12  ;;  %6028 = vrsqrt.f32 %v3080_v17  ;;  %v2219_v15 = vsel %vm172_vm0, %v1965_v62, 0.0  ;;  %v9076_v14 = vpop.xlane.xlu0 %1481 }
 0x287   :  { %1574 = vadd.xlane.f32.xlu0 %v1573_v57  ;;  %v4453_v34 = vsel %vm172_vm0, %v3791_v25, 0.0  ;;  %v3467_v7 = vmul.f32 %v8990_v35, %v3335_v20  ;;  %v2888_v49 = vmax.f32 %v2760_v37, 0.0  ;;  %2220 = vadd.xlane.f32.xlu1 %v2219_v15  ;;  %v2569_v0 = vmul.f32 %v9052_v16, %v9052_v16 }
 0x288   :  { %v9065_v10 = vmul.f32 %v8999_v28, %v8999_v28  ;;  %v3333_v1 = vmul.f32 %v6023_v50, %v2949_v8  ;;  %v3332_v17 = vmul.f32 %v6025_v56, %v2948_v26  ;;  %v3977_v25 = vsel %vm172_vm0, %v3723_v61, 0.0 }
 0x289   :  { %v3960_v62 = vadd.f32 %v3959_v55, %v3958_v4  ;;  %6030 = vrsqrt.f32 %v3078_v46  ;;  %v2697_v20 = vsub.f32 %v2441_v3, %v2569_v0  ;;  %v3974_v37 = vadd.f32 %v3973_v33, %v3972_v30 }
 0x28a   :  { %11979 = vst [vmem:[#allocation86_spill] sm:$0xff] %v9065_v10  ;;  %v4454_v57 = vrot.slane %v4453_v34, 4  ;;  %v4446_v15 = vsel %vm172_vm0, %v3790_v13, 0.0  ;;  %v9074_v2 = vmul.f32 0.03125, %v8975_v51  ;;  %v3599_v12 = vadd.f32 %v9015_v53, %v3467_v7  ;;  %v9090_v7 = vpop.xlane.xlu1 %1478 }
 0x28b   :  { %v3144_v8 = vadd.f32 1e-05, %v2888_v49  ;;  %v944_v56 = vadd.f32 %v8780_v32, %v8489_v24  ;;  %v2442_v50 = vmul.f32 0.03125, %v2116_v9  ;;  %v4409_v4 = vrot.slane %v9024_v60, 1 }
 0x28c   :  { %v3465_v46 = vmul.f32 %v8990_v35, %v3333_v1  ;;  %v3464_v33 = vmul.f32 %v8990_v35, %v3332_v17  ;;  %v2570_v30 = vmul.f32 %v9074_v2, %v9074_v2  ;;  %v4447_v51 = vrot.slane %v4446_v15, 4 }
 0x28d   :  { %v949_v61 = vadd.f32 %v8780_v32, %v8480_v22  ;;  %v2825_v55 = vmax.f32 %v2697_v20, 0.0  ;;  %v1964_v26 = vmul.f32 %v8985_v63, %v8985_v63  ;;  %v3978_v13 = vrot.slane %v3977_v25, 4  ;;  %v11982_v20 = vld [vmem:[#allocation52_spill] sm:$0xff]  ;;  %v11983_v63 = vld [vmem:[#allocation55_spill] sm:$0xff] }
 0x28e   :  { %v3961_v24 = vrot.slane %v3960_v62, 1  ;;  %v3975_v9 = vrot.slane %v3974_v37, 1  ;;  %v4455_v3 = vadd.f32 %v4454_v57, %v4453_v34  ;;  %v3727_v0 = vmul.f32 %v9044_v31, %v3599_v12  ;;  %v9101_v57 = vpop.xlane.xlu0 %2124 }
 0x28f   :  { %v6027_v49 = vpop.eup %6026  ;;  %6032 = vrsqrt.f32 %v3144_v8  ;;  %v9093_v1 = vmax.f32 %v944_v56, 0.0  ;;  %v2698_v17 = vsub.f32 %v2442_v50, %v2570_v30  ;;  %v3597_v22 = vadd.f32 %v9015_v53, %v3465_v46 }
 0x290   :  { %v6029_v28 = vpop.eup %6028  ;;  %v3017_v10 = vsub.f32 %v11982_v20, %v8944_v45  ;;  %v2952_v36 = vsub.f32 %v11983_v63, %v8955_v38  ;;  %v2216_v34 = vsel %vm172_vm0, %v1964_v26, 0.0  ;;  %v4448_v5 = vadd.f32 %v4447_v51, %v4446_v15 }
 0x291   :  { %11981 = vst [vmem:[#allocation35_spill] sm:$0xff] %v9093_v1  ;;  %v3596_v12 = vadd.f32 %v9015_v53, %v3464_v33  ;;  %v9104_v8 = vmax.f32 %v949_v61, 0.0  ;;  %v3081_v56 = vadd.f32 1e-05, %v2825_v55  ;;  %2217 = vadd.xlane.f32.xlu1 %v2216_v34  ;;  %v9106_v50 = vadd.f32 %v3978_v13, %v3977_v25  ;;  %v11986_v25 = vld [vmem:[#allocation51_spill] sm:$0xff] }
 0x292   :  { %v3962_v46 = vadd.f32 %v3961_v24, %v3960_v62  ;;  %v4456_v30 = vrot.slane %v4455_v3, 2  ;;  %v3401_v54 = vmul.f32 %v6027_v49, %v3017_v10  ;;  %v4005_v20 = vsel %vm172_vm0, %v3727_v0, 0.0  ;;  %v1485_v62 = vpop.xlane.xlu1 %1484 }
 0x293   :  { %11984 = vst [vmem:[#allocation34_spill] sm:$0xff] %v9104_v8  ;;  %v6031_v45 = vpop.eup %6030  ;;  %v3336_v38 = vmul.f32 %v6029_v28, %v2952_v36  ;;  %v2826_v63 = vmax.f32 %v2698_v17, 0.0  ;;  %v1582_v26 = vsel %vm172_vm0, %v9093_v1, 0.0  ;;  %v9112_v15 = vadd.f32 %v4409_v4, %v9024_v60 }
 0x294   :  { %v3976_v33 = vadd.f32 %v3975_v9, %v3974_v37  ;;  %v3725_v51 = vmul.f32 %v9044_v31, %v3597_v22  ;;  %v2950_v61 = vsub.f32 %v11986_v25, %v8980_v40  ;;  %1583 = vadd.xlane.f32.xlu0 %v1582_v26  ;;  %v4449_v10 = vrot.slane %v4448_v5, 2  ;;  %v9121_v37 = vpop.xlane.xlu0 %2121  ;;  %v11990_v22 = vld [vmem:[#allocation18_spill] sm:$0xff] }
 0x295   :  { %11985 = vst [vmem:[#allocation33_spill] sm:$0xff] %v9112_v15  ;;  %v3724_v55 = vmul.f32 %v9044_v31, %v3596_v12  ;;  %6034 = vrsqrt.f32 %v3081_v56  ;;  %v1585_v36 = vsel %vm172_vm0, %v9104_v8, 0.0  ;;  %v4457_v28 = vadd.f32 %v4456_v30, %v4455_v3  ;;  %v11989_v3 = vld [vmem:[#allocation53_spill] sm:$0xff] }
 0x296   :  { %v4006_v13 = vrot.slane %v4005_v20, 4  ;;  %v3533_v60 = vmul.f32 %v8990_v35, %v3401_v54  ;;  %v3334_v4 = vmul.f32 %v6031_v45, %v2950_v61  ;;  %1586 = vadd.xlane.f32.xlu1 %v1585_v36  ;;  %v9125_v40 = vadd.f32 %v11853_v27, %v3962_v46 }
 0x297   :  { %v3468_v9 = vmul.f32 %v8990_v35, %v3336_v38  ;;  %v3082_v49 = vadd.f32 1e-05, %v2826_v63  ;;  %v9129_v0 = vadd.f32 %v11853_v27, %v3976_v33  ;;  %v3016_v17 = vsub.f32 %v11989_v3, %v9002_v11  ;;  %v9145_v33 = vpop.xlane.xlu1 %1490 }
 0x298   :  { %11987 = vst [vmem:[#allocation36_spill] sm:$0xff] %v9125_v40  ;;  %v1094_v54 = vadd.f32 %v8780_v32, %v11990_v22  ;;  %v1966_v34 = vmul.f32 %v9093_v1, %v9093_v1  ;;  %v9138_v56 = vsel %vm172_vm0, %v3725_v51, 0.0  ;;  %v4450_v46 = vadd.f32 %v4449_v10, %v4448_v5  ;;  %v9156_v36 = vpop.xlane.xlu0 %1487 }
 0x299   :  { %11988 = vst [vmem:[#allocation37_spill] sm:$0xff] %v9129_v0  ;;  %v6033_v12 = vpop.eup %6032  ;;  %v3984_v30 = vsel %vm172_vm0, %v3724_v55, 0.0  ;;  %v1967_v45 = vmul.f32 %v9104_v8, %v9104_v8  ;;  %v4458_v38 = vrot.slane %v4457_v28, 1  ;;  %v4007_v63 = vadd.f32 %v4006_v13, %v4005_v20  ;;  %v12006_v0 = vld [vmem:[#allocation64_spill] sm:$0xff] }
 0x29a   :  { %v3665_v11 = vadd.f32 %v9015_v53, %v3533_v60  ;;  %v3466_v26 = vmul.f32 %v8990_v35, %v3334_v4  ;;  %v3600_v25 = vadd.f32 %v9015_v53, %v3468_v9  ;;  %6036 = vrsqrt.f32 %v3082_v49 }
 0x29b   :  { %v2222_v51 = vsel %vm172_vm0, %v1966_v34, 0.0  ;;  %v2225_v5 = vsel %vm172_vm0, %v1967_v45, 0.0  ;;  %v3400_v10 = vmul.f32 %v6033_v12, %v3016_v17  ;;  %v9151_v55 = vmax.f32 %v1094_v54, 0.0  ;;  %v11992_v45 = vld [vmem:[#allocation50_spill] sm:$0xff]  ;;  %v9173_v61 = vpop.xlane.xlu1 %2127 }
 0x29c   :  { %2223 = vadd.xlane.f32.xlu0 %v2222_v51  ;;  %2226 = vadd.xlane.f32.xlu1 %v2225_v5  ;;  %v9154_v20 = vmul.f32 0.03125, %v9090_v7  ;;  %v4451_v4 = vrot.slane %v4450_v46, 1  ;;  %v3985_v9 = vrot.slane %v3984_v30, 4  ;;  %v4459_v49 = vadd.f32 %v4458_v38, %v4457_v28  ;;  %v11993_v28 = vld [vmem:[#allocation54_spill] sm:$0xff] }
 0x29d   :  { %11991 = vst [vmem:[#allocation103_spill] sm:$0xff] %v9151_v55  ;;  %v4008_v3 = vrot.slane %v4007_v63, 2  ;;  %v2443_v22 = vmul.f32 0.03125, %v9010_v18  ;;  %v3793_v34 = vmul.f32 %v9044_v31, %v3665_v11  ;;  %v3728_v7 = vmul.f32 %v9044_v31, %v3600_v25 }
 0x29e   :  { %v2571_v17 = vmul.f32 %v9154_v20, %v9154_v20  ;;  %v3598_v12 = vadd.f32 %v9015_v53, %v3466_v26  ;;  %v1648_v51 = vsel %vm172_vm0, %v11992_v45, 0.0  ;;  %v3532_v5 = vmul.f32 %v8990_v35, %v3400_v10  ;;  %v11994_v26 = vld [vmem:[#allocation60_spill] sm:$0xff] }
 0x29f   :  { %v6035_v54 = vpop.eup %6034  ;;  %v2953_v38 = vsub.f32 %v11993_v28, %v9052_v16  ;;  %v1672_v18 = vsel %vm172_vm0, %v9151_v55, 0.0  ;;  %v4452_v11 = vadd.f32 %v4451_v4, %v4450_v46  ;;  %v9175_v24 = vadd.f32 %v3985_v9, %v3984_v30 }
 0x2a0   :  { %v2699_v13 = vsub.f32 %v2443_v22, %v2571_v17  ;;  %1649 = vadd.xlane.f32.xlu0 %v1648_v51  ;;  %v2954_v25 = vsub.f32 %v11994_v26, %v9074_v2  ;;  %1673 = vadd.xlane.f32.xlu1 %v1672_v18  ;;  %v9179_v60 = vmul.f32 0.03125, %v1485_v62  ;;  %v9182_v10 = vadd.f32 %v11853_v27, %v4459_v49  ;;  %v2131_v51 = vpop.xlane.xlu0 %2130 }
 0x2a1   :  { %v3337_v16 = vmul.f32 %v6035_v54, %v2953_v38  ;;  %v1986_v17 = vmul.f32 %v11980_v39, %v11980_v39  ;;  %v9186_v28 = vadd.f32 %v4008_v3, %v4007_v63  ;;  %v4467_v46 = vsel %vm172_vm0, %v3793_v34, 0.0  ;;  %v11996_v63 = vld [vmem:[#allocation14_spill] sm:$0xff] }
 0x2a2   :  { %11995 = vst [vmem:[#allocation95_spill] sm:$0xff] %v9182_v10  ;;  %v2827_v22 = vmax.f32 %v2699_v13, 0.0  ;;  %v4012_v30 = vsel %vm172_vm0, %v3728_v7, 0.0  ;;  %v3726_v2 = vmul.f32 %v9044_v31, %v3598_v12  ;;  %v3664_v62 = vadd.f32 %v9015_v53, %v3532_v5  ;;  %v9202_v12 = vpop.f32.mrb[44].mxu1 }
 0x2a3   :  { %v2445_v4 = vmul.f32 0.03125, %v9101_v57  ;;  %v2573_v13 = vmul.f32 %v9179_v60, %v9179_v60  ;;  %v9196_v54 = vmul.f32 0.03125, %v9076_v14  ;;  %v1099_v3 = vadd.f32 %v8780_v32, %v11996_v63  ;;  %11997 = vst [vmem:[#allocation39_spill] sm:$0xff] %v9202_v12  ;;  %v9211_v14 = vpop.xlane.xlu1 %1496  ;;  %v9213_v26 = vpop.f32.mrb[45].mxu1  ;;  %v12001_v63 = vld [vmem:[#allocation66_spill] sm:$0xff] }
 0x2a4   :  { %v3083_v9 = vadd.f32 1e-05, %v2827_v22  ;;  %v6037_v49 = vpop.eup %6036  ;;  %v2444_v34 = vmul.f32 0.03125, %v9121_v37  ;;  %v2282_v7 = vsel %vm172_vm0, %v1986_v17, 0.0  ;;  %v9205_v5 = vadd.f32 %v11853_v27, %v4452_v11  ;;  %12000 = vst [vmem:[#allocation62_spill] sm:$0xff] %v9213_v26 }
 0x2a5   :  { %v3469_v57 = vmul.f32 %v8990_v35, %v3337_v16  ;;  %v9209_v38 = vmul.f32 0.03125, %v9039_v47  ;;  %v2701_v18 = vsub.f32 %v2445_v4, %v2573_v13  ;;  %2283 = vadd.xlane.f32.xlu0 %v2282_v7  ;;  %v4468_v22 = vrot.slane %v4467_v46, 4  ;;  %v9221_v4 = vpop.xlane.xlu0 %1493 }
 0x2a6   :  { %11998 = vst [vmem:[#allocation10_spill] sm:$0xff] %v9205_v5  ;;  %v4013_v37 = vrot.slane %v4012_v30, 4  ;;  %v2572_v17 = vmul.f32 %v9196_v54, %v9196_v54  ;;  %v1994_v11 = vmul.f32 %v12001_v63, %v12001_v63  ;;  %v3998_v10 = vsel %vm172_vm0, %v3726_v2, 0.0  ;;  %v12003_v2 = vld [vmem:[#allocation48_spill] sm:$0xff] }
 0x2a7   :  { %11999 = vst [vmem:[#allocation38_spill] sm:$0xff] %v9209_v38  ;;  %v3792_v16 = vmul.f32 %v9044_v31, %v3664_v62  ;;  %v3338_v47 = vmul.f32 %v6037_v49, %v2954_v25  ;;  %6038 = vrsqrt.f32 %v3083_v9  ;;  %v4010_v13 = vrot.slane %v9186_v28, 1 }
 0x2a8   :  { %v9224_v7 = vmax.f32 %v1099_v3, 0.0  ;;  %v2700_v5 = vsub.f32 %v2444_v34, %v2572_v17  ;;  %v2306_v15 = vsel %vm172_vm0, %v1994_v11, 0.0  ;;  %v3601_v39 = vadd.f32 %v9015_v53, %v3469_v57 }
 0x2a9   :  { %v2829_v8 = vmax.f32 %v2701_v18, 0.0  ;;  %2307 = vadd.xlane.f32.xlu1 %v2306_v15  ;;  %v9229_v1 = vmul.f32 0.03125, %v9145_v33  ;;  %v1651_v25 = vsel %vm172_vm0, %v12003_v2, 0.0  ;;  %v3999_v62 = vrot.slane %v3998_v10, 4  ;;  %v9244_v18 = vpop.xlane.xlu1 %2136 }
 0x2aa   :  { %12002 = vst [vmem:[#allocation57_spill] sm:$0xff] %v9224_v7  ;;  %v9235_v9 = vmul.f32 %v9209_v38, %v9209_v38  ;;  %v9238_v49 = vmul.f32 0.03125, %v9156_v36  ;;  %1652 = vadd.xlane.f32.xlu0 %v1651_v25  ;;  %v2447_v3 = vmul.f32 0.03125, %v2131_v51  ;;  %v4014_v34 = vadd.f32 %v4013_v37, %v4012_v30 }
 0x2ab   :  { %v4460_v57 = vsel %vm172_vm0, %v3792_v16, 0.0  ;;  %v3470_v15 = vmul.f32 %v8990_v35, %v3338_v47  ;;  %v2575_v33 = vmul.f32 %v9229_v1, %v9229_v1  ;;  %v2828_v17 = vmax.f32 %v2700_v5, 0.0  ;;  %v12005_v16 = vld [vmem:[#allocation41_spill] sm:$0xff] }
 0x2ac   :  { %12004 = vst [vmem:[#allocation40_spill] sm:$0xff] %v9235_v9  ;;  %v2574_v11 = vmul.f32 %v9238_v49, %v9238_v49  ;;  %v1675_v36 = vsel %vm172_vm0, %v9224_v7, 0.0  ;;  %v2446_v25 = vmul.f32 0.03125, %v9173_v61  ;;  %v3729_v51 = vmul.f32 %v9044_v31, %v3601_v39  ;;  %v9254_v9 = vpop.xlane.xlu0 %1499 }
 0x2ad   :  { %v3085_v30 = vadd.f32 1e-05, %v2829_v8  ;;  %v2703_v37 = vsub.f32 %v2447_v3, %v2575_v33  ;;  %1676 = vadd.xlane.f32.xlu1 %v1675_v36  ;;  %v1987_v47 = vmul.f32 %v12005_v16, %v12005_v16  ;;  %v9256_v12 = vadd.f32 %v4468_v22, %v4467_v46  ;;  %v9261_v8 = vpop.f32.mrb[46].mxu1  ;;  %v12008_v36 = vld [vmem:[#allocation21_spill] sm:$0xff] }
 0x2ae   :  { %v4000_v5 = vadd.f32 %v3999_v62, %v3998_v10  ;;  %v2702_v26 = vsub.f32 %v2446_v25, %v2574_v11  ;;  %v1995_v40 = vmul.f32 %v12006_v0, %v12006_v0  ;;  %v4015_v52 = vrot.slane %v4014_v34, 2  ;;  %12007 = vst [vmem:[#allocation11_spill] sm:$0xff] %v9261_v8  ;;  %v9266_v10 = vpop.f32.mrb[47].mxu1 }
 0x2af   :  { %v4461_v21 = vrot.slane %v4460_v57, 4  ;;  %v2831_v61 = vmax.f32 %v2703_v37, 0.0  ;;  %v2285_v39 = vsel %vm172_vm0, %v1987_v47, 0.0  ;;  %v3602_v3 = vadd.f32 %v9015_v53, %v3470_v15  ;;  %12009 = vst [vmem:[#allocation46_spill] sm:$0xff] %v9266_v10  ;;  %v9270_v37 = vpop.xlane.xlu1 %2133 }
 0x2b0   :  { %v3084_v33 = vadd.f32 1e-05, %v2828_v17  ;;  %v1104_v16 = vadd.f32 %v8780_v32, %v12008_v36  ;;  %v2830_v46 = vmax.f32 %v2702_v26, 0.0  ;;  %2286 = vadd.xlane.f32.xlu0 %v2285_v39  ;;  %v4019_v62 = vsel %vm172_vm0, %v3729_v51, 0.0  ;;  %v12010_v17 = vld [vmem:[#allocation56_spill] sm:$0xff]  ;;  %v9275_v26 = vpop.f32.mrb[48].mxu1 }
 0x2b1   :  { %v6039_v22 = vpop.eup %6038  ;;  %6040 = vrsqrt.f32 %v3085_v30  ;;  %v3087_v11 = vadd.f32 1e-05, %v2831_v61  ;;  %v2309_v25 = vsel %vm172_vm0, %v1995_v40, 0.0  ;;  %v4011_v47 = vadd.f32 %v4010_v13, %v9186_v28  ;;  %12011 = vst [vmem:[#allocation68_spill] sm:$0xff] %v9275_v26  ;;  %v9281_v30 = vpop.xlane.xlu0 %1505  ;;  %v12022_v51 = vld [vmem:[#allocation67_spill] sm:$0xff] }
 0x2b2   :  { %v4001_v15 = vrot.slane %v4000_v5, 2  ;;  %v2955_v8 = vsub.f32 %v12010_v17, %v9154_v20  ;;  %v3086_v36 = vadd.f32 1e-05, %v2830_v46  ;;  %2310 = vadd.xlane.f32.xlu1 %v2309_v25  ;;  %v4016_v39 = vadd.f32 %v4015_v52, %v4014_v34  ;;  %v9283_v61 = vpop.f32.mrb[49].mxu1  ;;  %v12013_v20 = vld [vmem:[#allocation92_spill] sm:$0xff] }
 0x2b3   :  { %v4462_v10 = vadd.f32 %v4461_v21, %v4460_v57  ;;  %v1988_v40 = vmul.f32 %v11992_v45, %v11992_v45  ;;  %12012 = vst [vmem:[#allocation17_spill] sm:$0xff] %v9283_v61  ;;  %v4020_v28 = vrot.slane %v4019_v62, 4  ;;  %6042 = vrsqrt.f32 %v3084_v33 }
 0x2b4   :  { %v3339_v13 = vmul.f32 %v6039_v22, %v2955_v8  ;;  %v1109_v46 = vadd.f32 %v8780_v32, %v12013_v20  ;;  %v3730_v25 = vmul.f32 %v9044_v31, %v3602_v3  ;;  %v9288_v52 = vmax.f32 %v1104_v16, 0.0  ;;  %v9301_v22 = vpop.xlane.xlu1 %1502 }
 0x2b5   :  { %6044 = vrsqrt.f32 %v3087_v11  ;;  %v2288_v21 = vsel %vm172_vm0, %v1988_v40, 0.0  ;;  %v4470_v34 = vrot.slane %v9256_v12, 2  ;;  %v4002_v57 = vadd.f32 %v4001_v15, %v4000_v5 }
 0x2b6   :  { %12014 = vst [vmem:[#allocation47_spill] sm:$0xff] %v9288_v52  ;;  %6046 = vrsqrt.f32 %v3086_v36  ;;  %2289 = vadd.xlane.f32.xlu0 %v2288_v21  ;;  %v1144_v17 = vadd.f32 %v8780_v32, %v8760_v23  ;;  %v4463_v8 = vrot.slane %v4462_v10, 2  ;;  %v9295_v33 = vmul.f32 0.03125, %v9069_v43  ;;  %v9306_v36 = vpop.f32.mrb[50].mxu1 }
 0x2b7   :  { %v1149_v3 = vadd.f32 %v8780_v32, %v8757_v29  ;;  %v1996_v16 = vmul.f32 %v9151_v55, %v9151_v55  ;;  %v4017_v11 = vrot.slane %v4016_v39, 1  ;;  %v4021_v40 = vadd.f32 %v4020_v28, %v4019_v62  ;;  %12017 = vst [vmem:[#allocation45_spill] sm:$0xff] %v9306_v36  ;;  %v9314_v32 = vpop.xlane.xlu0 %1511  ;;  %v9316_v21 = vpop.f32.mrb[51].mxu1 }
 0x2b8   :  { %12015 = vst [vmem:[#allocation49_spill] sm:$0xff] %v9295_v33  ;;  %v3471_v5 = vmul.f32 %v8990_v35, %v3339_v13  ;;  %v9304_v15 = vmax.f32 %v1109_v46, 0.0  ;;  %v4026_v23 = vsel %vm172_vm0, %v3730_v25, 0.0  ;;  %v9309_v43 = vmax.f32 %v1144_v17, 0.0  ;;  %12019 = vst [vmem:[#allocation55_spill] sm:$0xff] %v9316_v21  ;;  %v9327_v25 = vpop.f32.mrb[52].mxu1 }
 0x2b9   :  { %v2312_v20 = vsel %vm172_vm0, %v1996_v16, 0.0  ;;  %v1678_v29 = vsel %vm172_vm0, %v9288_v52, 0.0  ;;  %v9319_v62 = vadd.f32 %v11853_v27, %v4011_v47  ;;  %v9322_v28 = vadd.f32 %v4470_v34, %v9256_v12  ;;  %12021 = vst [vmem:[#allocation53_spill] sm:$0xff] %v9327_v25  ;;  %v9335_v12 = vpop.f32.mrb[53].mxu1 }
 0x2ba   :  { %12016 = vst [vmem:[#allocation44_spill] sm:$0xff] %v9304_v15  ;;  %12018 = vst [vmem:[#allocation52_spill] sm:$0xff] %v9309_v43  ;;  %v4003_v13 = vrot.slane %v4002_v57, 1  ;;  %v9325_v46 = vmul.f32 0.03125, %v9211_v14  ;;  %2313 = vadd.xlane.f32.xlu1 %v2312_v20  ;;  %1679 = vadd.xlane.f32.xlu0 %v1678_v29  ;;  %v4464_v16 = vadd.f32 %v4463_v8, %v4462_v10  ;;  %v9331_v0 = vmax.f32 %v1149_v3, 0.0  ;;  %v12025_v20 = vld [vmem:[#allocation65_spill] sm:$0xff]  ;;  %v9351_v3 = vpop.xlane.xlu1 %2142 }
 0x2bb   :  { %12020 = vst [vmem:[#allocation51_spill] sm:$0xff] %v9322_v28  ;;  %v6041_v17 = vpop.eup %6040  ;;  %v2956_v38 = vsub.f32 %v12022_v51, %v9196_v54  ;;  %v1702_v47 = vsel %vm172_vm0, %v9309_v43, 0.0  ;;  %12024 = vst [vmem:[#allocation54_spill] sm:$0xff] %v9335_v12  ;;  %v4027_v34 = vrot.slane %v4026_v23, 4  ;;  %v3603_v14 = vadd.f32 %v9015_v53, %v3471_v5  ;;  %v9341_v45 = vpop.f32.mrb[54].mxu1 }
 0x2bc   :  { %12023 = vst [vmem:[#allocation18_spill] sm:$0xff] %v9331_v0  ;;  %v2957_v29 = vsub.f32 %v12025_v20, %v9179_v60  ;;  %v2449_v55 = vmul.f32 0.03125, %v9244_v18  ;;  %12026 = vst [vmem:[#allocation60_spill] sm:$0xff] %v9341_v45  ;;  %v9343_v10 = vadd.f32 %v4017_v11, %v4016_v39  ;;  %v4022_v54 = vrot.slane %v4021_v40, 2  ;;  %v9362_v36 = vpop.xlane.xlu0 %2154  ;;  %v9371_v45 = vpop.f32.mrb[55].mxu1 }
 0x2bd   :  { %v9347_v51 = vmul.f32 %v9295_v33, %v9295_v33  ;;  %v1681_v8 = vsel %vm172_vm0, %v9304_v15, 0.0  ;;  %v6043_v5 = vpop.eup %6042  ;;  %v4004_v60 = vadd.f32 %v4003_v13, %v4002_v57  ;;  %v2577_v18 = vmul.f32 %v9325_v46, %v9325_v46  ;;  %12030 = vst [vmem:[#allocation21_spill] sm:$0xff] %v9371_v45 }
 0x2be   :  { %v3341_v20 = vmul.f32 %v6041_v17, %v2957_v29  ;;  %1682 = vadd.xlane.f32.xlu1 %v1681_v8  ;;  %1703 = vadd.xlane.f32.xlu0 %v1702_v47  ;;  %v4465_v11 = vrot.slane %v4464_v16, 1  ;;  %v9357_v25 = vmul.f32 0.03125, %v9221_v4  ;;  %v1705_v21 = vsel %vm172_vm0, %v9331_v0, 0.0  ;;  %v12028_v17 = vld [vmem:[#allocation73_spill] sm:$0xff]  ;;  %v12029_v4 = vld [vmem:[#allocation70_spill] sm:$0xff] }
 0x2bf   :  { %12027 = vst [vmem:[#allocation14_spill] sm:$0xff] %v9347_v51  ;;  %v6045_v39 = vpop.eup %6044  ;;  %v2448_v51 = vmul.f32 0.03125, %v9270_v37  ;;  %v4028_v57 = vadd.f32 %v4027_v34, %v4026_v23  ;;  %v3731_v13 = vmul.f32 %v9044_v31, %v3603_v14  ;;  %v2959_v29 = vsub.f32 %v12028_v17, %v9229_v1  ;;  %v9379_v1 = vld [vmem:[%s11510_s2] ss:$0 sm:$0xff] }
 0x2c0   :  { %v6047_v12 = vpop.eup %6046  ;;  %v2705_v47 = vsub.f32 %v2449_v55, %v2577_v18  ;;  %v4023_v8 = vadd.f32 %v4022_v54, %v4021_v40  ;;  %v3340_v28 = vmul.f32 %v6043_v5, %v2956_v38  ;;  %v2958_v61 = vsub.f32 %v12029_v4, %v9238_v49  ;;  %v12031_v49 = vld [vmem:[#allocation8_spill] sm:$0xff]  ;;  %v2140_v5 = vpop.xlane.xlu1 %2139  ;;  %v12033_v18 = vld [vmem:[#allocation93_spill] sm:$0xff] }
 0x2c1   :  { %v2576_v37 = vmul.f32 %v9357_v25, %v9357_v25  ;;  %v3473_v23 = vmul.f32 %v8990_v35, %v3341_v20  ;;  %v3343_v34 = vmul.f32 %v6045_v39, %v2959_v29  ;;  %v1154_v55 = vadd.f32 %v9379_v1, %v8842_v42  ;;  %v9396_v26 = vpop.xlane.xlu0 %1517 }
 0x2c2   :  { %1706 = vadd.xlane.f32.xlu1 %v1705_v21  ;;  %v9384_v38 = vadd.f32 %v11853_v27, %v4004_v60  ;;  %v1114_v40 = vadd.f32 %v9379_v1, %v12031_v49  ;;  %v3342_v14 = vmul.f32 %v6047_v12, %v2958_v61  ;;  %v9388_v20 = vadd.f32 %v4465_v11, %v4464_v16 }
 0x2c3   :  { %v2704_v54 = vsub.f32 %v2448_v51, %v2576_v37  ;;  %v4033_v21 = vsel %vm172_vm0, %v3731_v13, 0.0  ;;  %v1119_v39 = vadd.f32 %v9379_v1, %v12033_v18  ;;  %v2833_v17 = vmax.f32 %v2705_v47, 0.0 }
 0x2c4   :  { %12032 = vst [vmem:[#allocation56_spill] sm:$0xff] %v9388_v20  ;;  %v4024_v29 = vrot.slane %v4023_v8, 1  ;;  %v4029_v4 = vrot.slane %v4028_v57, 2  ;;  %v3472_v42 = vmul.f32 %v8990_v35, %v3340_v28  ;;  %v1989_v60 = vmul.f32 %v12003_v2, %v12003_v2 }
 0x2c5   :  { %v3605_v61 = vadd.f32 %v9015_v53, %v3473_v23  ;;  %v3475_v16 = vmul.f32 %v8990_v35, %v3343_v34  ;;  %v9400_v12 = vmax.f32 %v1154_v55, 0.0  ;;  %v1997_v51 = vmul.f32 %v9224_v7, %v9224_v7  ;;  %v12043_v7 = vld [vmem:[#allocation61_spill] sm:$0xff] }
 0x2c6   :  { %v4034_v11 = vrot.slane %v4033_v21, 4  ;;  %v9404_v13 = vmax.f32 %v1114_v40, 0.0  ;;  %v3474_v47 = vmul.f32 %v8990_v35, %v3342_v14  ;;  %v2832_v28 = vmax.f32 %v2704_v54, 0.0  ;;  %v9416_v14 = vpop.xlane.xlu1 %1508 }
 0x2c7   :  { %12034 = vst [vmem:[#allocation92_spill] sm:$0xff] %v9400_v12  ;;  %v3089_v37 = vadd.f32 1e-05, %v2833_v17  ;;  %v1159_v49 = vadd.f32 %v9379_v1, %v8831_v48  ;;  %v2291_v18 = vsel %vm172_vm0, %v1989_v60, 0.0  ;;  %v2315_v23 = vsel %vm172_vm0, %v1997_v51, 0.0  ;;  %v9427_v60 = vpop.xlane.xlu0 %2160 }
 0x2c8   :  { %12035 = vst [vmem:[#allocation67_spill] sm:$0xff] %v9404_v13  ;;  %v4025_v34 = vadd.f32 %v4024_v29, %v4023_v8  ;;  %v3604_v55 = vadd.f32 %v9015_v53, %v3472_v42  ;;  %v9412_v20 = vmax.f32 %v1119_v39, 0.0  ;;  %v1129_v40 = vadd.f32 %v9379_v1, %v8736_v59  ;;  %2292 = vadd.xlane.f32.xlu0 %v2291_v18 }
 0x2c9   :  { %2316 = vadd.xlane.f32.xlu1 %v2315_v23  ;;  %v9418_v54 = vadd.f32 %v4029_v4, %v4028_v57  ;;  %v3733_v48 = vmul.f32 %v9044_v31, %v3605_v61  ;;  %v3607_v17 = vadd.f32 %v9015_v53, %v3475_v16  ;;  %v1708_v8 = vsel %vm172_vm0, %v9400_v12, 0.0 }
 0x2ca   :  { %12036 = vst [vmem:[#allocation65_spill] sm:$0xff] %v9412_v20  ;;  %v4035_v29 = vadd.f32 %v4034_v11, %v4033_v21  ;;  %v1124_v39 = vadd.f32 %v9379_v1, %v8741_v58  ;;  %v3606_v42 = vadd.f32 %v9015_v53, %v3474_v47  ;;  %v3088_v59 = vadd.f32 1e-05, %v2832_v28  ;;  %v9451_v23 = vpop.xlane.xlu1 %2148 }
 0x2cb   :  { %6048 = vrsqrt.f32 %v3089_v37  ;;  %v9429_v51 = vmax.f32 %v1159_v49, 0.0  ;;  %v9432_v57 = vmul.f32 0.03125, %v9301_v22  ;;  %v1684_v4 = vsel %vm172_vm0, %v9404_v13, 0.0 }
 0x2cc   :  { %v9437_v61 = vadd.f32 %v11853_v27, %v4025_v34  ;;  %v3732_v21 = vmul.f32 %v9044_v31, %v3604_v55  ;;  %v9440_v58 = vmax.f32 %v1129_v40, 0.0  ;;  %v1139_v16 = vadd.f32 %v9379_v1, %v8746_v19  ;;  %1685 = vadd.xlane.f32.xlu0 %v1684_v4  ;;  %v12042_v4 = vld [vmem:[#allocation79_spill] sm:$0xff] }
 0x2cd   :  { %12037 = vst [vmem:[#allocation73_spill] sm:$0xff] %v9429_v51  ;;  %1709 = vadd.xlane.f32.xlu1 %v1708_v8  ;;  %v4047_v11 = vsel %vm172_vm0, %v3733_v48, 0.0  ;;  %v3735_v22 = vmul.f32 %v9044_v31, %v3607_v17  ;;  %v9447_v47 = vmul.f32 0.03125, %v9254_v9  ;;  %v2451_v28 = vmul.f32 0.03125, %v9351_v3  ;;  %v9461_v3 = vpop.f32.mrb[56].mxu1  ;;  %v2158_v8 = vpop.xlane.xlu0 %2157 }
 0x2ce   :  { %12038 = vst [vmem:[#allocation70_spill] sm:$0xff] %v9440_v58  ;;  %v4036_v37 = vrot.slane %v4035_v29, 2  ;;  %v3734_v49 = vmul.f32 %v9044_v31, %v3606_v42  ;;  %6050 = vrsqrt.f32 %v3088_v59  ;;  %v2450_v18 = vmul.f32 0.03125, %v2140_v5  ;;  %12039 = vst [vmem:[#allocation8_spill] sm:$0xff] %v9461_v3  ;;  %v9468_v42 = vpop.f32.mrb[57].mxu1 }
 0x2cf   :  { %v2579_v19 = vmul.f32 %v9432_v57, %v9432_v57  ;;  %v1687_v34 = vsel %vm172_vm0, %v9412_v20, 0.0  ;;  %v1711_v55 = vsel %vm172_vm0, %v9429_v51, 0.0  ;;  %v1998_v9 = vmul.f32 %v9288_v52, %v9288_v52  ;;  %12041 = vst [vmem:[#allocation107_spill] sm:$0xff] %v9468_v42 }
 0x2d0   :  { %v4048_v48 = vrot.slane %v4047_v11, 4  ;;  %v9464_v5 = vmax.f32 %v1124_v39, 0.0  ;;  %v2578_v17 = vmul.f32 %v9447_v47, %v9447_v47  ;;  %1688 = vadd.xlane.f32.xlu0 %v1687_v34  ;;  %v4061_v59 = vsel %vm172_vm0, %v3735_v22, 0.0 }
 0x2d1   :  { %1712 = vadd.xlane.f32.xlu1 %v1711_v55  ;;  %v2960_v52 = vsub.f32 %v12042_v4, %v9357_v25  ;;  %v1134_v2 = vadd.f32 %v9379_v1, %v12043_v7  ;;  %v2707_v40 = vsub.f32 %v2451_v28, %v2579_v19  ;;  %v4037_v33 = vadd.f32 %v4036_v37, %v4035_v29  ;;  %v12044_v7 = vld [vmem:[#allocation78_spill] sm:$0xff] }
 0x2d2   :  { %12040 = vst [vmem:[#allocation93_spill] sm:$0xff] %v9464_v5  ;;  %v4040_v39 = vsel %vm172_vm0, %v3732_v21, 0.0  ;;  %v4054_v63 = vsel %vm172_vm0, %v3734_v49, 0.0  ;;  %v2706_v3 = vsub.f32 %v2450_v18, %v2578_v17  ;;  %v9478_v34 = vmul.f32 0.03125, %v9396_v26  ;;  %v9487_v21 = vpop.xlane.xlu1 %2145 }
 0x2d3   :  { %v2318_v55 = vsel %vm172_vm0, %v1998_v9, 0.0  ;;  %v2456_v42 = vmul.f32 0.03125, %v2158_v8  ;;  %v1999_v22 = vmul.f32 %v9304_v15, %v9304_v15  ;;  %v4049_v25 = vadd.f32 %v4048_v48, %v4047_v11 }
 0x2d4   :  { %v4062_v4 = vrot.slane %v4061_v59, 4  ;;  %v2961_v28 = vsub.f32 %v12044_v7, %v9325_v46  ;;  %2319 = vadd.xlane.f32.xlu0 %v2318_v55  ;;  %v1164_v29 = vadd.f32 %v9379_v1, %v8983_v44  ;;  %v2835_v26 = vmax.f32 %v2707_v40, 0.0  ;;  %v9497_v55 = vpop.xlane.xlu0 %1523 }
 0x2d5   :  { %v6049_v37 = vpop.eup %6048  ;;  %v2584_v49 = vmul.f32 %v9478_v34, %v9478_v34  ;;  %v2321_v18 = vsel %vm172_vm0, %v1999_v22, 0.0  ;;  %v2006_v11 = vmul.f32 %v9309_v43, %v9309_v43  ;;  %v4038_v19 = vrot.slane %v4037_v33, 1 }
 0x2d6   :  { %v4041_v9 = vrot.slane %v4040_v39, 4  ;;  %v4055_v48 = vrot.slane %v4054_v63, 4  ;;  %v2834_v46 = vmax.f32 %v2706_v3, 0.0  ;;  %2322 = vadd.xlane.f32.xlu1 %v2321_v18  ;;  %v9494_v8 = vmax.f32 %v1164_v29, 0.0  ;;  %v12048_v3 = vld [vmem:[#allocation80_spill] sm:$0xff] }
 0x2d7   :  { %v2712_v17 = vsub.f32 %v2456_v42, %v2584_v49  ;;  %v2342_v44 = vsel %vm172_vm0, %v2006_v11, 0.0  ;;  %v2007_v40 = vmul.f32 %v9331_v0, %v9331_v0  ;;  %v4050_v22 = vrot.slane %v4049_v25, 2 }
 0x2d8   :  { %12045 = vst [vmem:[#allocation79_spill] sm:$0xff] %v9494_v8  ;;  %v6051_v7 = vpop.eup %6050  ;;  %v4063_v15 = vadd.f32 %v4062_v4, %v4061_v59  ;;  %v9501_v45 = vmax.f32 %v1139_v16, 0.0  ;;  %v3345_v43 = vmul.f32 %v6049_v37, %v2961_v28  ;;  %2343 = vadd.xlane.f32.xlu0 %v2342_v44  ;;  %v9503_v51 = vmax.f32 %v1134_v2, 0.0  ;;  %v1515_v16 = vpop.xlane.xlu1 %1514 }
 0x2d9   :  { %v3091_v29 = vadd.f32 1e-05, %v2835_v26  ;;  %v2345_v49 = vsel %vm172_vm0, %v2007_v40, 0.0  ;;  %v9508_v18 = vadd.f32 %v4041_v9, %v4040_v39  ;;  %v4056_v11 = vadd.f32 %v4055_v48, %v4054_v63 }
 0x2da   :  { %12046 = vst [vmem:[#allocation61_spill] sm:$0xff] %v9501_v45  ;;  %12047 = vst [vmem:[#allocation78_spill] sm:$0xff] %v9503_v51  ;;  %v9511_v0 = vmul.f32 0.03125, %v9281_v30  ;;  %v3090_v20 = vadd.f32 1e-05, %v2834_v46  ;;  %2346 = vadd.xlane.f32.xlu1 %v2345_v49  ;;  %v4039_v59 = vadd.f32 %v4038_v19, %v4037_v33  ;;  %v2840_v4 = vmax.f32 %v2712_v17, 0.0  ;;  %v9521_v30 = vpop.xlane.xlu0 %2166 }
 0x2db   :  { %v1690_v2 = vsel %vm172_vm0, %v9464_v5, 0.0  ;;  %v1714_v28 = vsel %vm172_vm0, %v9494_v8, 0.0  ;;  %v4051_v37 = vadd.f32 %v4050_v22, %v4049_v25  ;;  %v4064_v26 = vrot.slane %v4063_v15, 2 }
 0x2dc   :  { %v3477_v39 = vmul.f32 %v8990_v35, %v3345_v43  ;;  %v3344_v9 = vmul.f32 %v6051_v7, %v2960_v52  ;;  %1691 = vadd.xlane.f32.xlu0 %v1690_v2  ;;  %6052 = vrsqrt.f32 %v3091_v29  ;;  %v9519_v63 = vmul.f32 0.03125, %v9416_v14 }
 0x2dd   :  { %v9523_v33 = vmul.f32 0.03125, %v1515_v16  ;;  %v2000_v19 = vmul.f32 %v9404_v13, %v9404_v13  ;;  %v4057_v48 = vrot.slane %v4056_v11, 2  ;;  %v9528_v46 = vmul.f32 0.03125, %v9314_v32 }
 0x2de   :  { %v2455_v25 = vmul.f32 0.03125, %v9362_v36  ;;  %6054 = vrsqrt.f32 %v3090_v20  ;;  %1715 = vadd.xlane.f32.xlu1 %v1714_v28  ;;  %v3096_v35 = vadd.f32 1e-05, %v2840_v4  ;;  %v2453_v52 = vmul.f32 0.03125, %v9451_v23  ;;  %v9546_v20 = vld [vmem:[%s11510_s2 + $0x1] ss:$0 sm:$0xff] }
 0x2df   :  { %12049 = vst [vmem:[#allocation80_spill] sm:$0xff] %v9528_v46  ;;  %v2583_v43 = vmul.f32 %v9523_v33, %v9523_v33  ;;  %v2324_v14 = vsel %vm172_vm0, %v2000_v19, 0.0  ;;  %v9536_v17 = vadd.f32 %v11853_v27, %v4039_v59  ;;  %v4052_v44 = vrot.slane %v4051_v37, 1 }
 0x2e0   :  { %v4065_v40 = vadd.f32 %v4064_v26, %v4063_v15  ;;  %v9540_v32 = vmul.f32 %v9511_v0, %v9511_v0  ;;  %2325 = vadd.xlane.f32.xlu0 %v2324_v14  ;;  %v3609_v36 = vadd.f32 %v9015_v53, %v3477_v39  ;;  %v3476_v23 = vmul.f32 %v9546_v20, %v3344_v9  ;;  %v12050_v15 = vld [vmem:[#allocation82_spill] sm:$0xff]  ;;  %v2164_v39 = vpop.xlane.xlu0 %2163  ;;  %v9563_v9 = vpop.f32.mrb[58].mxu1 }
 0x2e1   :  { %v2581_v7 = vmul.f32 %v9519_v63, %v9519_v63  ;;  %v2711_v22 = vsub.f32 %v2455_v25, %v2583_v43  ;;  %v9555_v49 = vmul.f32 %v9528_v46, %v9528_v46  ;;  %v3987_v53 = vrot.slane %v9175_v24, 2  ;;  %12053 = vst [vmem:[#allocation82_spill] sm:$0xff] %v9563_v9  ;;  %v12054_v43 = vld [vmem:[#allocation81_spill] sm:$0xff]  ;;  %v9568_v42 = vpop.f32.mrb[59].mxu1 }
 0x2e2   :  { %v12051_v16 = vrot.slane %v9138_v56, 4  ;;  %v4058_v4 = vadd.f32 %v4057_v48, %v4056_v11  ;;  %6056 = vrsqrt.f32 %v3096_v35  ;;  %v4066_v25 = vrot.slane %v4065_v40, 1  ;;  %12055 = vst [vmem:[#allocation81_spill] sm:$0xff] %v9568_v42  ;;  %v9576_v11 = vld [vmem:[%s11510_s2 + $0x2] ss:$0 sm:$0xff] }
 0x2e3   :  { %v2709_v26 = vsub.f32 %v2453_v52, %v2581_v7  ;;  %v2963_v14 = vsub.f32 %v12054_v43, %v9432_v57  ;;  %v2839_v29 = vmax.f32 %v2711_v22, 0.0  ;;  %v9570_v13 = vadd.f32 %v4052_v44, %v4051_v37 }
 0x2e4   :  { %v3993_v59 = vadd.f32 %v12051_v16, %v9138_v56  ;;  %v3737_v56 = vmul.f32 %v9044_v31, %v3609_v36  ;;  %v3608_v48 = vadd.f32 %v9576_v11, %v3476_v23  ;;  %v2452_v35 = vmul.f32 0.03125, %v9487_v21  ;;  %v12056_v31 = vld [vmem:[#allocation90_spill] sm:$0xff] }
 0x2e5   :  { %v9581_v52 = vmul.f32 0.03125, %v9497_v55  ;;  %v2458_v57 = vmul.f32 0.03125, %v2164_v39  ;;  %v3988_v7 = vadd.f32 %v3987_v53, %v9175_v24  ;;  %v4059_v44 = vrot.slane %v4058_v4, 1 }
 0x2e6   :  { %v3994_v22 = vrot.slane %v3993_v59, 2  ;;  %v6053_v37 = vpop.eup %6052  ;;  %v2968_v36 = vsub.f32 %v12056_v31, %v9478_v34  ;;  %v2837_v16 = vmax.f32 %v2709_v26, 0.0  ;;  %v12057_v43 = vrot.slane %v9106_v50, 2  ;;  %v9600_v34 = vld [vmem:[%s11510_s2 + $0x4] sm:$0xff] }
 0x2e7   :  { %v9589_v19 = vadd.f32 %v4066_v25, %v4065_v40  ;;  %v2586_v21 = vmul.f32 %v9581_v52, %v9581_v52  ;;  %v3095_v55 = vadd.f32 1e-05, %v2839_v29  ;;  %v4043_v24 = vrot.slane %v9508_v18, 2 }
 0x2e8   :  { %v3981_v28 = vadd.f32 %v12057_v43, %v9106_v50  ;;  %v6055_v23 = vpop.eup %6054  ;;  %v9595_v53 = vsel %vm172_vm0, %v3737_v56, 0.0  ;;  %v3736_v26 = vmul.f32 %v9600_v34, %v3608_v48  ;;  %v1169_v50 = vadd.f32 %v9379_v1, %v8977_v6 }
 0x2e9   :  { %v2708_v40 = vsub.f32 %v2452_v35, %v9540_v32  ;;  %v2714_v39 = vsub.f32 %v2458_v57, %v2586_v21  ;;  %v3989_v25 = vrot.slane %v3988_v7, 1  ;;  %v3995_v29 = vadd.f32 %v3994_v22, %v3993_v59 }
 0x2ea   :  { %v4044_v31 = vadd.f32 %v4043_v24, %v9508_v18  ;;  %v3347_v43 = vmul.f32 %v6053_v37, %v2963_v14  ;;  %v3093_v56 = vadd.f32 1e-05, %v2837_v16  ;;  %v3982_v9 = vrot.slane %v3981_v28, 1  ;;  %v12061_v24 = vld [vmem:[#allocation85_spill] sm:$0xff] }
 0x2eb   :  { %v4031_v42 = vrot.slane %v9418_v54, 1  ;;  %v12058_v46 = vsub.f32 %v12048_v3, %v9447_v47  ;;  %6058 = vrsqrt.f32 %v3095_v55  ;;  %v12059_v6 = vrot.slane %v8908_v41, 1 }
 0x2ec   :  { %v4045_v32 = vrot.slane %v4044_v31, 1  ;;  %v6057_v35 = vpop.eup %6056  ;;  %v9614_v57 = vadd.f32 %v4059_v44, %v4058_v4  ;;  %v4076_v18 = vrot.slane %v9595_v53, 4  ;;  %v9618_v59 = vsel %vm172_vm0, %v3736_v26, 0.0 }
 0x2ed   :  { %v3346_v2 = vmul.f32 %v6055_v23, %v12058_v46  ;;  %v3969_v48 = vadd.f32 %v12059_v6, %v8908_v41  ;;  %v9620_v14 = vmax.f32 %v1169_v50, 0.0  ;;  %v2836_v22 = vmax.f32 %v2708_v40, 0.0  ;;  %v9624_v23 = vpop.xlane.xlu1 %2151  ;;  %v12062_v50 = vld [vmem:[#allocation32_spill] sm:$0xff] }
 0x2ee   :  { %v2842_v37 = vmax.f32 %v2714_v39, 0.0  ;;  %v3990_v47 = vadd.f32 %v3989_v25, %v3988_v7  ;;  %v3996_v3 = vrot.slane %v3995_v29, 1  ;;  %v3479_v46 = vmul.f32 %v9546_v20, %v3347_v43  ;;  %v12063_v25 = vld [vmem:[#allocation106_spill] sm:$0xff]  ;;  %v9639_v43 = vpop.xlane.xlu0 %1529 }
 0x2ef   :  { %12060 = vst [vmem:[#allocation90_spill] sm:$0xff] %v9620_v14  ;;  %6060 = vrsqrt.f32 %v3093_v56  ;;  %v3983_v16 = vadd.f32 %v3982_v9, %v3981_v28  ;;  %v4032_v41 = vadd.f32 %v4031_v42, %v9418_v54  ;;  %v3478_v4 = vmul.f32 %v9546_v20, %v3346_v2 }
 0x2f0   :  { %v3352_v44 = vmul.f32 %v6057_v35, %v2968_v36  ;;  %v4046_v21 = vadd.f32 %v4045_v32, %v4044_v31  ;;  %v4747_v55 = vadd.f32 %v11853_v27, %v3969_v48  ;;  %v2967_v26 = vsub.f32 %v12061_v24, %v9523_v33  ;;  %v9655_v24 = vpop.f32.mrb[60].mxu1 }
 0x2f1   :  { %v4754_v7 = vadd.f32 %v11853_v27, %v9343_v10  ;;  %v4873_v40 = vmax.f32 %v12062_v50, 0.0  ;;  %v4880_v28 = vmax.f32 %v9384_v38, 0.0  ;;  %v3092_v9 = vadd.f32 1e-05, %v2836_v22  ;;  %v1521_v22 = vpop.xlane.xlu1 %1520  ;;  %12066 = vst [vmem:[#allocation85_spill] sm:$0xff] %v9655_v24  ;;  %v12067_v50 = vld [vmem:[#allocation37_spill] sm:$0xff] }
 0x2f2   :  { %v3098_v54 = vadd.f32 1e-05, %v2842_v37  ;;  %v3997_v42 = vadd.f32 %v3996_v3, %v3995_v29  ;;  %v4750_v39 = vadd.f32 %v11853_v27, %v3990_v47  ;;  %v4749_v2 = vadd.f32 %v11853_v27, %v3983_v16  ;;  %v12064_v3 = vld [vmem:[#allocation36_spill] sm:$0xff] }
 0x2f3   :  { %v4756_v36 = vadd.f32 %v11853_v27, %v4032_v41  ;;  %v4872_v31 = vmax.f32 %v12063_v25, 0.0  ;;  %v4881_v33 = vmax.f32 %v9319_v62, 0.0  ;;  %v3484_v10 = vmul.f32 %v9546_v20, %v3352_v44  ;;  %v9664_v25 = vpop.f32.mrb[61].mxu1 }
 0x2f4   :  { %v4758_v56 = vadd.f32 %v11853_v27, %v4046_v21  ;;  %v4759_v38 = vadd.f32 %v11853_v27, %v9570_v13  ;;  %v4875_v29 = vmax.f32 %v4747_v55, 0.0  ;;  %v4882_v6 = vmax.f32 %v4754_v7, 0.0  ;;  %12070 = vst [vmem:[#allocation32_spill] sm:$0xff] %v9664_v25 }
 0x2f5   :  { %v5135_v48 = vsel %vm5114_vm1, %v4873_v40, %v4872_v31  ;;  %v5142_v32 = vsel %vm5114_vm1, %v4881_v33, %v4880_v28  ;;  %v2008_v35 = vmul.f32 %v9400_v12, %v9400_v12  ;;  %v6059_v62 = vpop.eup %6058  ;;  %6062 = vrsqrt.f32 %v3098_v54 }
 0x2f6   :  { %v4751_v37 = vadd.f32 %v11853_v27, %v3997_v42  ;;  %v4878_v47 = vmax.f32 %v4750_v39, 0.0  ;;  %v12065_v16 = vmax.f32 %v12064_v3, 0.0  ;;  %v4877_v13 = vmax.f32 %v4749_v2, 0.0 }
 0x2f7   :  { %v4884_v44 = vmax.f32 %v4756_v36, 0.0  ;;  %v5143_v55 = vsel %vm5116_vm2, %v4882_v6, %v5142_v32  ;;  %v4887_v7 = vmax.f32 %v4759_v38, 0.0  ;;  %v12068_v40 = vmax.f32 %v12067_v50, 0.0 }
 0x2f8   :  { %v5136_v41 = vsel %vm5116_vm2, %v12065_v16, %v5135_v48  ;;  %v12069_v54 = vmax.f32 %v9437_v61, 0.0  ;;  %v2348_v39 = vsel %vm172_vm0, %v2008_v35, 0.0  ;;  %v3351_v36 = vmul.f32 %v6059_v62, %v2967_v26  ;;  %v1527_v62 = vpop.xlane.xlu1 %1526 }
 0x2f9   :  { %v5137_v21 = vsel %vm5118_vm3, %v4875_v29, %v5136_v41  ;;  %v9666_v2 = vpop.eup %6060  ;;  %v4886_v31 = vmax.f32 %v4758_v56, 0.0  ;;  %2349 = vadd.xlane.f32.xlu1 %v2348_v39  ;;  %v9670_v29 = vpop.xlane.xlu0 %2172  ;;  %v4069_v6 = vrot.slane %v9618_v59, 4  ;;  %v4879_v61 = vmax.f32 %v4751_v37, 0.0 }
 0x2fa   :  { %v5138_v28 = vsel %vm5120_vm4, %v12068_v40, %v5137_v21  ;;  %v5144_v42 = vsel %vm5118_vm3, %v12069_v54, %v5143_v55  ;;  %v12071_v32 = vmax.f32 %v9536_v17, 0.0  ;;  %v3611_v3 = vadd.f32 %v9576_v11, %v3479_v46  ;;  %v12072_v17 = vld [vmem:[#allocation83_spill] sm:$0xff] }
 0x2fb   :  { %v5139_v33 = vsel %vm5122_vm5, %v4877_v13, %v5138_v28  ;;  %v5145_v38 = vsel %vm5120_vm4, %v4884_v44, %v5144_v42  ;;  %v3610_v26 = vadd.f32 %v9576_v11, %v3478_v4  ;;  %6064 = vrsqrt.f32 %v3092_v9 }
 0x2fc   :  { %v5140_v48 = vsel %vm5124_vm6, %v4878_v47, %v5139_v33  ;;  %v5146_v35 = vsel %vm5122_vm5, %v12071_v32, %v5145_v38  ;;  %v3616_v16 = vadd.f32 %v9576_v11, %v3484_v10  ;;  %v1693_v47 = vsel %vm172_vm0, %v9440_v58, 0.0  ;;  %v12078_v33 = vld [vmem:[#allocation73_spill] sm:$0xff] }
 0x2fd   :  { %v5147_v56 = vsel %vm5124_vm6, %v4886_v31, %v5146_v35  ;;  %v5141_v41 = vsel %vm5126_vm7, %v4879_v61, %v5140_v48  ;;  %v2965_v13 = vsub.f32 %v12072_v17, %v9519_v63  ;;  %v3483_v46 = vmul.f32 %v9546_v20, %v3351_v36  ;;  %1694 = vadd.xlane.f32.xlu0 %v1693_v47  ;;  %v9709_v40 = vpop.xlane.xlu0 %2169  ;;  %v12079_v61 = vld [vmem:[#allocation58_spill] sm:$0xff] }
 0x2fe   :  { %v5148_v37 = vsel %vm5126_vm7, %v4887_v7, %v5147_v56  ;;  %v2454_v4 = vmul.f32 0.03125, %v9624_v23  ;;  %v9691_v9 = vadd.f32 %v11853_v27, %v9589_v19  ;;  %v9695_v10 = vadd.f32 %v11853_v27, %v9614_v57  ;;  %v12074_v19 = vld [vmem:[#allocation62_spill] sm:$0xff] }
 0x2ff   :  { %v5900_v44 = vpack.c.bf16 %v5148_v37, %v5141_v41  ;;  %v4077_v21 = vadd.f32 %v4076_v18, %v9595_v53  ;;  %v1717_v63 = vsel %vm172_vm0, %v9620_v14, 0.0  ;;  %v4070_v55 = vadd.f32 %v4069_v6, %v9618_v59  ;;  %v6063_v28 = vpop.eup %6062  ;;  %v12075_v59 = vld [vmem:[#allocation65_spill] sm:$0xff]  ;;  %v1533_v6 = vpop.xlane.xlu1 %1532 }
 0x300   :  { %v3738_v23 = vmul.f32 %v9600_v34, %v3610_v26  ;;  %v2457_v7 = vmul.f32 0.03125, %v9427_v60  ;;  %1718 = vadd.xlane.f32.xlu1 %v1717_v63  ;;  %v1174_v57 = vadd.f32 %v9379_v1, %v12074_v19  ;;  %v3739_v53 = vmul.f32 %v9600_v34, %v3611_v3 }
 0x301   :  { %5902 = vmatpush3.bf16.xpose.msk.msra.mxu1 %vm8819_vm8, %v5900_v44  ;;  %v3744_v18 = vmul.f32 %v9600_v34, %v3616_v16  ;;  %v9713_v54 = vmul.f32 0.03125, %v1521_v22  ;;  %v2001_v42 = vmul.f32 %v12075_v59, %v12075_v59  ;;  %v12076_v60 = vmov 0.0|0.0  }
 0x302   :  { %5903 = vmatprep.subr.bf16.mxu1 %v12076_v60  ;;  %v3615_v39 = vadd.f32 %v9576_v11, %v3483_v46  ;;  %v2710_v36 = vsub.f32 %v2454_v4, %v9555_v49  ;;  %v9720_v31 = vmax.f32 %v1174_v57, 0.0  ;;  %v2009_v38 = vmul.f32 %v12078_v33, %v12078_v33  ;;  %v1536_v4 = vpop.xlane.xlu0 %1535 }
 0x303   :  { %v2970_v48 = vsub.f32 %v12079_v61, %v9581_v52  ;;  %v2585_v22 = vmul.f32 %v9713_v54, %v9713_v54  ;;  %v2327_v32 = vsel %vm172_vm0, %v2001_v42, 0.0  ;;  %v9729_v35 = vmul.f32 0.03125, %v1527_v62  ;;  %v1539_v42 = vpop.xlane.xlu1 %1538 }
 0x304   :  { %12077 = vst [vmem:[#allocation106_spill] sm:$0xff] %v9720_v31  ;;  %v4078_v3 = vrot.slane %v4077_v21, 2  ;;  %v4071_v26 = vrot.slane %v4070_v55, 2  ;;  %v4082_v49 = vsel %vm172_vm0, %v3738_v23, 0.0  ;;  %2328 = vadd.xlane.f32.xlu0 %v2327_v32  ;;  %v2351_v56 = vsel %vm172_vm0, %v2009_v38, 0.0 }
 0x305   :  { %v4124_v16 = vsel %vm172_vm0, %v3744_v18, 0.0  ;;  %v2459_v41 = vmul.f32 0.03125, %v9521_v30  ;;  %v3354_v37 = vmul.f32 %v6063_v28, %v2970_v48  ;;  %2352 = vadd.xlane.f32.xlu1 %v2351_v56  ;;  %v2587_v52 = vmul.f32 %v9729_v35, %v9729_v35  ;;  %v6065_v47 = vpop.eup %6064  ;;  %v12081_v48 = vld [vmem:[#allocation39_spill] sm:$0xff] }
 0x306   :  { %v9738_v62 = vsel %vm172_vm0, %v3739_v53, 0.0  ;;  %v3743_v17 = vmul.f32 %v9600_v34, %v3615_v39  ;;  %v2838_v46 = vmax.f32 %v2710_v36, 0.0  ;;  %v1720_v44 = vsel %vm172_vm0, %v9720_v31, 0.0 }
 0x307   :  { %v4083_v63 = vrot.slane %v4082_v49, 4  ;;  %v3349_v23 = vmul.f32 %v9666_v2, %v2965_v13  ;;  %v2713_v30 = vsub.f32 %v2457_v7, %v2585_v22  ;;  %v1696_v19 = vsel %vm172_vm0, %v9503_v51, 0.0 }
 0x308   :  { %v4125_v57 = vrot.slane %v4124_v16, 4  ;;  %v2715_v28 = vsub.f32 %v2459_v41, %v2587_v52  ;;  %1697 = vadd.xlane.f32.xlu0 %v1696_v19  ;;  %v9746_v18 = vmul.f32 0.03125, %v1533_v6  ;;  %v2002_v53 = vmul.f32 %v9464_v5, %v9464_v5  ;;  %v2179_v41 = vpop.xlane.xlu0 %2178 }
 0x309   :  { %v9750_v39 = vadd.f32 %v4078_v3, %v4077_v21  ;;  %v9752_v36 = vadd.f32 %v4071_v26, %v4070_v55  ;;  %v12080_v2 = vsub.f32 %v12050_v15, %v9511_v0  ;;  %v3486_v7 = vmul.f32 %v9546_v20, %v3354_v37  ;;  %1721 = vadd.xlane.f32.xlu1 %v1720_v44  ;;  %v2176_v44 = vpop.xlane.xlu1 %2175 }
 0x30a   :  { %v4090_v38 = vrot.slane %v9738_v62, 4  ;;  %v4117_v6 = vsel %vm172_vm0, %v3743_v17, 0.0  ;;  %v3094_v61 = vadd.f32 1e-05, %v2838_v46  ;;  %v1179_v22 = vadd.f32 %v9379_v1, %v12081_v48 }
 0x30b   :  { %v3348_v13 = vmul.f32 %v6065_v47, %v12080_v2  ;;  %v9762_v32 = vadd.f32 %v4083_v63, %v4082_v49  ;;  %v3481_v21 = vmul.f32 %v9546_v20, %v3349_v23  ;;  %v2841_v55 = vmax.f32 %v2713_v30, 0.0 }
 0x30c   :  { %v2330_v3 = vsel %vm172_vm0, %v2002_v53, 0.0  ;;  %v9766_v0 = vadd.f32 %v4125_v57, %v4124_v16  ;;  %v2843_v15 = vmax.f32 %v2715_v28, 0.0  ;;  %v2589_v26 = vmul.f32 %v9746_v18, %v9746_v18 }
 0x30d   :  { %2331 = vadd.xlane.f32.xlu0 %v2330_v3  ;;  %v2010_v56 = vmul.f32 %v9494_v8, %v9494_v8  ;;  %v3480_v37 = vmul.f32 %v9546_v20, %v3348_v13  ;;  %v4118_v49 = vrot.slane %v4117_v6, 4  ;;  %v3618_v52 = vadd.f32 %v9576_v11, %v3486_v7 }
 0x30e   :  { %v9774_v47 = vmul.f32 0.03125, %v1539_v42  ;;  %6066 = vrsqrt.f32 %v3094_v61  ;;  %v9776_v17 = vmax.f32 %v1179_v22, 0.0  ;;  %v2461_v16 = vmul.f32 0.03125, %v9670_v29 }
 0x30f   :  { %v2354_v46 = vsel %vm172_vm0, %v2010_v56, 0.0  ;;  %v3097_v63 = vadd.f32 1e-05, %v2841_v55  ;;  %v9780_v23 = vmul.f32 0.03125, %v1536_v4  ;;  %v1699_v19 = vsel %vm172_vm0, %v9501_v45, 0.0 }
 0x310   :  { %12082 = vst [vmem:[#allocation36_spill] sm:$0xff] %v9776_v17  ;;  %2355 = vadd.xlane.f32.xlu1 %v2354_v46  ;;  %v2591_v30 = vmul.f32 %v9774_v47, %v9774_v47  ;;  %v3613_v57 = vadd.f32 %v9576_v11, %v3481_v21  ;;  %v3099_v28 = vadd.f32 1e-05, %v2843_v15  ;;  %v2717_v53 = vsub.f32 %v2461_v16, %v2589_v26  ;;  %v1542_v21 = vpop.xlane.xlu0 %1541 }
 0x311   :  { %1700 = vadd.xlane.f32.xlu0 %v1699_v19  ;;  %v2463_v42 = vmul.f32 0.03125, %v2179_v41  ;;  %v3612_v29 = vadd.f32 %v9576_v11, %v3480_v37  ;;  %v3746_v2 = vmul.f32 %v9600_v34, %v3618_v52  ;;  %v2590_v4 = vmul.f32 %v9780_v23, %v9780_v23 }
 0x312   :  { %v2462_v13 = vmul.f32 0.03125, %v2176_v44  ;;  %v4119_v7 = vadd.f32 %v4118_v49, %v4117_v6  ;;  %v1723_v48 = vsel %vm172_vm0, %v9776_v17, 0.0  ;;  %v2003_v22 = vmul.f32 %v9440_v58, %v9440_v58 }
 0x313   :  { %v2719_v61 = vsub.f32 %v2463_v42, %v2591_v30  ;;  %v4127_v55 = vrot.slane %v9766_v0, 2  ;;  %v9797_v3 = vmul.f32 0.03125, %v9639_v43  ;;  %6068 = vrsqrt.f32 %v3097_v63 }
 0x314   :  { %1724 = vadd.xlane.f32.xlu1 %v1723_v48  ;;  %v2718_v15 = vsub.f32 %v2462_v13, %v2590_v4  ;;  %6070 = vrsqrt.f32 %v3099_v28  ;;  %v2845_v26 = vmax.f32 %v2717_v53, 0.0  ;;  %v2333_v6 = vsel %vm172_vm0, %v2003_v22, 0.0  ;;  %v1545_v4 = vpop.xlane.xlu1 %1544  ;;  %v2182_v13 = vpop.xlane.xlu0 %2181 }
 0x315   :  { %v2847_v56 = vmax.f32 %v2719_v61, 0.0  ;;  %v3740_v41 = vmul.f32 %v9600_v34, %v3612_v29  ;;  %v2460_v37 = vmul.f32 0.03125, %v9709_v40  ;;  %2334 = vadd.xlane.f32.xlu0 %v2333_v6  ;;  %v2011_v52 = vmul.f32 %v9620_v14, %v9620_v14 }
 0x316   :  { %v2846_v49 = vmax.f32 %v2718_v15, 0.0  ;;  %v4120_v16 = vrot.slane %v4119_v7, 2  ;;  %v4138_v43 = vsel %vm172_vm0, %v3746_v2, 0.0  ;;  %v2588_v46 = vmul.f32 %v9797_v3, %v9797_v3 }
 0x317   :  { %v3103_v44 = vadd.f32 1e-05, %v2847_v56  ;;  %v9807_v30 = vmul.f32 0.03125, %v1542_v21  ;;  %v2357_v19 = vsel %vm172_vm0, %v2011_v52, 0.0  ;;  %v2004_v40 = vmul.f32 %v9503_v51, %v9503_v51  ;;  %v12084_v52 = vld [vmem:[#allocation80_spill] sm:$0xff] }
 0x318   :  { %v3102_v63 = vadd.f32 1e-05, %v2846_v49  ;;  %v6067_v28 = vpop.eup %6066  ;;  %v4073_v53 = vrot.slane %v9752_v36, 1  ;;  %v9816_v42 = vadd.f32 %v4090_v38, %v9738_v62  ;;  %v4085_v29 = vrot.slane %v9762_v32, 2  ;;  %2358 = vadd.xlane.f32.xlu1 %v2357_v19  ;;  %v12098_v51 = vld [vmem:[#allocation60_spill] sm:$0xff] }
 0x319   :  { %v3101_v2 = vadd.f32 1e-05, %v2845_v26  ;;  %v3741_v61 = vmul.f32 %v9600_v34, %v3613_v57  ;;  %v2716_v48 = vsub.f32 %v2460_v37, %v2588_v46  ;;  %6072 = vrsqrt.f32 %v3103_v44  ;;  %v12083_v37 = vld [vmem:[#allocation84_spill] sm:$0xff] }
 0x31a   :  { %v2592_v22 = vmul.f32 %v9807_v30, %v9807_v30  ;;  %v4128_v15 = vadd.f32 %v4127_v55, %v9766_v0  ;;  %v4096_v62 = vsel %vm172_vm0, %v3740_v41, 0.0  ;;  %v4139_v38 = vrot.slane %v4138_v43, 4 }
 0x31b   :  { %v4121_v56 = vadd.f32 %v4120_v16, %v4119_v7  ;;  %6074 = vrsqrt.f32 %v3102_v63  ;;  %v2336_v26 = vsel %vm172_vm0, %v2004_v40, 0.0  ;;  %v2464_v6 = vmul.f32 0.03125, %v2182_v13  ;;  %v12086_v40 = vld [vmem:[#allocation88_spill] sm:$0xff]  ;;  %v12087_v13 = vld [vmem:[#allocation46_spill] sm:$0xff] }
 0x31c   :  { %v9827_v49 = vadd.f32 %v4073_v53, %v9752_v36  ;;  %v12085_v46 = vsub.f32 %v12083_v37, %v12084_v52  ;;  %6076 = vrsqrt.f32 %v3101_v2  ;;  %2337 = vadd.xlane.f32.xlu0 %v2336_v26  ;;  %v9834_v55 = vadd.f32 %v4085_v29, %v9762_v32  ;;  %v2185_v2 = vpop.xlane.xlu1 %2184  ;;  %v12088_v32 = vld [vmem:[#allocation91_spill] sm:$0xff] }
 0x31d   :  { %v6069_v0 = vpop.eup %6068  ;;  %v9837_v7 = vsel %vm172_vm0, %v3741_v61, 0.0  ;;  %v2844_v41 = vmax.f32 %v2716_v48, 0.0  ;;  %v2720_v16 = vsub.f32 %v2464_v6, %v2592_v22  ;;  %v4129_v36 = vrot.slane %v4128_v15, 1  ;;  %v9845_v61 = vpop.xlane.xlu0 %1547 }
 0x31e   :  { %v3350_v44 = vmul.f32 %v6067_v28, %v12085_v46  ;;  %v6071_v63 = vpop.eup %6070  ;;  %v4097_v19 = vrot.slane %v4096_v62, 4  ;;  %v2969_v53 = vsub.f32 %v12086_v40, %v9713_v54  ;;  %v1184_v28 = vadd.f32 %v9379_v1, %v12087_v13  ;;  %v12089_v13 = vld [vmem:[#allocation11_spill] sm:$0xff] }
 0x31f   :  { %v4122_v26 = vrot.slane %v4121_v56, 1  ;;  %v4140_v37 = vadd.f32 %v4139_v38, %v4138_v43  ;;  %v2971_v29 = vsub.f32 %v12088_v32, %v9729_v35  ;;  %v2848_v52 = vmax.f32 %v2720_v16, 0.0 }
 0x320   :  { %v3482_v22 = vmul.f32 %v9546_v20, %v3350_v44  ;;  %v3353_v6 = vmul.f32 %v6069_v0, %v2969_v53  ;;  %v2012_v54 = vmul.f32 %v9720_v31, %v9720_v31  ;;  %v3100_v40 = vadd.f32 1e-05, %v2844_v41 }
 0x321   :  { %v3355_v46 = vmul.f32 %v6071_v63, %v2971_v29  ;;  %v1189_v21 = vadd.f32 %v9379_v1, %v12089_v13  ;;  %v3104_v43 = vadd.f32 1e-05, %v2848_v52  ;;  %v9853_v38 = vadd.f32 %v4129_v36, %v4128_v15  ;;  %v12091_v63 = vld [vmem:[#allocation99_spill] sm:$0xff] }
 0x322   :  { %v9855_v35 = vmax.f32 %v1184_v28, 0.0  ;;  %v9857_v16 = vmul.f32 0.03125, %v1545_v4  ;;  %v2360_v32 = vsel %vm172_vm0, %v2012_v54, 0.0  ;;  %v9860_v44 = vadd.f32 %v4097_v19, %v4096_v62  ;;  %v12092_v36 = vld [vmem:[#allocation63_spill] sm:$0xff]  ;;  %v1551_v28 = vpop.xlane.xlu1 %1550 }
 0x323   :  { %v6073_v57 = vpop.eup %6072  ;;  %v4123_v0 = vadd.f32 %v4122_v26, %v4121_v56  ;;  %v4141_v53 = vrot.slane %v4140_v37, 2  ;;  %6078 = vrsqrt.f32 %v3104_v43  ;;  %2361 = vadd.xlane.f32.xlu1 %v2360_v32  ;;  %v3614_v41 = vadd.f32 %v9576_v11, %v3482_v22  ;;  %v12094_v56 = vld [vmem:[#allocation69_spill] sm:$0xff]  ;;  %v2191_v26 = vpop.xlane.xlu0 %2190 }
 0x324   :  { %12090 = vst [vmem:[#allocation37_spill] sm:$0xff] %v9855_v35  ;;  %v3485_v15 = vmul.f32 %v9546_v20, %v3353_v6  ;;  %v2975_v4 = vsub.f32 %v12092_v36, %v9774_v47  ;;  %v3487_v54 = vmul.f32 %v9546_v20, %v3355_v46  ;;  %6080 = vrsqrt.f32 %v3100_v40  ;;  %v12095_v46 = vld [vmem:[#allocation96_spill] sm:$0xff] }
 0x325   :  { %v6075_v52 = vpop.eup %6074  ;;  %v9869_v62 = vmax.f32 %v1189_v21, 0.0  ;;  %v2974_v19 = vsub.f32 %v12094_v56, %v9780_v23  ;;  %v2593_v43 = vmul.f32 %v9857_v16, %v9857_v16  ;;  %v2465_v6 = vmul.f32 0.03125, %v2185_v2  ;;  %v12096_v40 = vld [vmem:[#allocation68_spill] sm:$0xff]  ;;  %v12097_v23 = vld [vmem:[#allocation21_spill] sm:$0xff] }
 0x326   :  { %v6077_v22 = vpop.eup %6076  ;;  %v3359_v13 = vmul.f32 %v6073_v57, %v2975_v4  ;;  %v1726_v47 = vsel %vm172_vm0, %v9855_v35, 0.0  ;;  %v9878_v32 = vadd.f32 %v11853_v27, %v4123_v0  ;;  %v2973_v21 = vsub.f32 %v12095_v46, %v9746_v18  ;;  %v12099_v46 = vld [vmem:[#allocation17_spill] sm:$0xff] }
 0x327   :  { %12093 = vst [vmem:[#allocation83_spill] sm:$0xff] %v9869_v62  ;;  %v1199_v36 = vadd.f32 %v9379_v1, %v12096_v40  ;;  %v1224_v56 = vadd.f32 %v9379_v1, %v12097_v23  ;;  %1727 = vadd.xlane.f32.xlu0 %v1726_v47  ;;  %v3742_v57 = vmul.f32 %v9600_v34, %v3614_v41  ;;  %v1729_v41 = vsel %vm172_vm0, %v9869_v62, 0.0 }
 0x328   :  { %v3617_v2 = vadd.f32 %v9576_v11, %v3485_v15  ;;  %v3358_v4 = vmul.f32 %v6075_v52, %v2974_v19  ;;  %v2721_v48 = vsub.f32 %v2465_v6, %v2593_v43  ;;  %v9888_v29 = vadd.f32 %v4141_v53, %v4140_v37  ;;  %v1560_v15 = vpop.xlane.xlu1 %1559  ;;  %v12101_v53 = vld [vmem:[#allocation45_spill] sm:$0xff]  ;;  %1730 = vadd.xlane.f32.xlu1 %v1729_v41 }
 0x329   :  { %v3619_v0 = vadd.f32 %v9576_v11, %v3487_v54  ;;  %v3357_v31 = vmul.f32 %v6077_v22, %v2973_v21  ;;  %v1229_v18 = vadd.f32 %v9379_v1, %v12098_v51  ;;  %v1194_v40 = vadd.f32 %v9379_v1, %v12099_v46  ;;  %v2188_v51 = vpop.xlane.xlu0 %2187 }
 0x32a   :  { %v3491_v23 = vmul.f32 %v9546_v20, %v3359_v13  ;;  %v2849_v47 = vmax.f32 %v2721_v48, 0.0  ;;  %v9899_v37 = vmax.f32 %v1199_v36, 0.0  ;;  %v1209_v54 = vadd.f32 %v9379_v1, %v12101_v53  ;;  %v12103_v48 = vld [vmem:[#allocation55_spill] sm:$0xff] }
 0x32b   :  { %v9903_v19 = vmax.f32 %v1224_v56, 0.0  ;;  %v4110_v22 = vsel %vm172_vm0, %v3742_v57, 0.0  ;;  %v3745_v13 = vmul.f32 %v9600_v34, %v3617_v2  ;;  %v1204_v43 = vadd.f32 %v9379_v1, %v12103_v48  ;;  %v12106_v57 = vld [vmem:[#allocation20_spill] sm:$0xff] }
 0x32c   :  { %12100 = vst [vmem:[#allocation62_spill] sm:$0xff] %v9899_v37  ;;  %v3490_v6 = vmul.f32 %v9546_v20, %v3358_v4  ;;  %v3747_v36 = vmul.f32 %v9600_v34, %v3619_v0  ;;  %v3489_v46 = vmul.f32 %v9546_v20, %v3357_v31  ;;  %v9912_v52 = vmax.f32 %v1229_v18, 0.0  ;;  %v9926_v31 = vld [vmem:[%s11510_s2] ss:$0 sm:$0xff]  ;;  %v12108_v0 = vld [vmem:[#allocation53_spill] sm:$0xff] }
 0x32d   :  { %12102 = vst [vmem:[#allocation58_spill] sm:$0xff] %v9903_v19  ;;  %v6079_v21 = vpop.eup %6078  ;;  %v3105_v56 = vadd.f32 1e-05, %v2849_v47  ;;  %v9914_v53 = vmax.f32 %v1194_v40, 0.0  ;;  %v3623_v41 = vadd.f32 %v9576_v11, %v3491_v23  ;;  %v2976_v2 = vsub.f32 %v12106_v57, %v9807_v30  ;;  %v9940_v8 = vpop.xlane.xlu0 %1556 }
 0x32e   :  { %12104 = vst [vmem:[#allocation39_spill] sm:$0xff] %v9912_v52  ;;  %v9919_v14 = vmul.f32 0.03125, %v1551_v28  ;;  %v6081_v1 = vpop.eup %6080  ;;  %v4111_v48 = vrot.slane %v4110_v22, 4  ;;  %v9921_v4 = vmax.f32 %v1209_v54, 0.0  ;;  %v1219_v18 = vadd.f32 %v9926_v31, %v12108_v0  ;;  %v2200_v54 = vpop.xlane.xlu1 %2199 }
 0x32f   :  { %12105 = vst [vmem:[#allocation84_spill] sm:$0xff] %v9914_v53  ;;  %v1750_v40 = vsel %vm172_vm0, %v9903_v19, 0.0  ;;  %v4131_v23 = vsel %vm172_vm0, %v3745_v13, 0.0  ;;  %v9933_v30 = vmax.f32 %v1204_v43, 0.0  ;;  %v3622_v28 = vadd.f32 %v9576_v11, %v3490_v6  ;;  %v12110_v6 = vld [vmem:[#allocation107_spill] sm:$0xff] }
 0x330   :  { %12107 = vst [vmem:[#allocation80_spill] sm:$0xff] %v9921_v4  ;;  %v3360_v47 = vmul.f32 %v6079_v21, %v2976_v2  ;;  %1751 = vadd.xlane.f32.xlu0 %v1750_v40  ;;  %v4145_v57 = vsel %vm172_vm0, %v3747_v36, 0.0  ;;  %v3621_v58 = vadd.f32 %v9576_v11, %v3489_v46  ;;  %6082 = vrsqrt.f32 %v3105_v56 }
 0x331   :  { %12109 = vst [vmem:[#allocation88_spill] sm:$0xff] %v9933_v30  ;;  %v1753_v0 = vsel %vm172_vm0, %v9912_v52, 0.0  ;;  %v3751_v5 = vmul.f32 %v9600_v34, %v3623_v41  ;;  %v2595_v13 = vmul.f32 %v9919_v14, %v9919_v14  ;;  %v2467_v43 = vmul.f32 0.03125, %v2191_v26 }
 0x332   :  { %1754 = vadd.xlane.f32.xlu1 %v1753_v0  ;;  %v1234_v21 = vadd.f32 %v9926_v31, %v12110_v6  ;;  %v4112_v2 = vadd.f32 %v4111_v48, %v4110_v22  ;;  %v4132_v36 = vrot.slane %v4131_v23, 4  ;;  %v12111_v46 = vsub.f32 %v12091_v63, %v9797_v3  ;;  %v12113_v6 = vld [vmem:[#allocation59_spill] sm:$0xff] }
 0x333   :  { %v9950_v40 = vmax.f32 %v1219_v18, 0.0  ;;  %v4146_v33 = vrot.slane %v4145_v57, 4  ;;  %v3750_v59 = vmul.f32 %v9600_v34, %v3622_v28  ;;  %v3492_v41 = vmul.f32 %v9546_v20, %v3360_v47  ;;  %v9968_v47 = vpop.xlane.xlu1 %1565 }
 0x334   :  { %v3356_v56 = vmul.f32 %v6081_v1, %v12111_v46  ;;  %v2005_v26 = vmul.f32 %v9501_v45, %v9501_v45  ;;  %v3749_v0 = vmul.f32 %v9600_v34, %v3621_v58  ;;  %v2977_v22 = vsub.f32 %v12113_v6, %v9857_v16  ;;  %v12115_v58 = vld [vmem:[#allocation8_spill] sm:$0xff]  ;;  %v9975_v6 = vpop.xlane.xlu0 %1553 }
 0x335   :  { %12112 = vst [vmem:[#allocation46_spill] sm:$0xff] %v9950_v40  ;;  %v9960_v48 = vmul.f32 0.03125, %v9845_v61  ;;  %v2013_v3 = vmul.f32 %v9776_v17, %v9776_v17  ;;  %v4173_v63 = vsel %vm172_vm0, %v3751_v5, 0.0  ;;  %v2723_v1 = vsub.f32 %v2467_v43, %v2595_v13 }
 0x336   :  { %v9965_v18 = vmax.f32 %v1234_v21, 0.0  ;;  %v2339_v28 = vsel %vm172_vm0, %v2005_v26, 0.0  ;;  %v4133_v46 = vadd.f32 %v4132_v36, %v4131_v23  ;;  %v1239_v45 = vadd.f32 %v9926_v31, %v12115_v58 }
 0x337   :  { %v9972_v16 = vmul.f32 0.03125, %v1560_v15  ;;  %2340 = vadd.xlane.f32.xlu0 %v2339_v28  ;;  %v2363_v61 = vsel %vm172_vm0, %v2013_v3, 0.0  ;;  %v4147_v17 = vadd.f32 %v4146_v33, %v4145_v57  ;;  %v4166_v5 = vsel %vm172_vm0, %v3750_v59, 0.0 }
 0x338   :  { %12114 = vst [vmem:[#allocation91_spill] sm:$0xff] %v9965_v18  ;;  %v3624_v13 = vadd.f32 %v9576_v11, %v3492_v41  ;;  %v2466_v43 = vmul.f32 0.03125, %v2188_v51  ;;  %2364 = vadd.xlane.f32.xlu1 %v2363_v61  ;;  %v3488_v21 = vmul.f32 %v9546_v20, %v3356_v56  ;;  %v4159_v23 = vsel %vm172_vm0, %v3749_v0, 0.0  ;;  %v9992_v61 = vpop.xlane.xlu1 %2205  ;;  %v9995_v50 = vpop.xlane.xlu0 %2196 }
 0x339   :  { %v4174_v36 = vrot.slane %v4173_v63, 4  ;;  %v2470_v26 = vmul.f32 0.03125, %v2200_v54  ;;  %v2594_v15 = vmul.f32 %v9960_v48, %v9960_v48  ;;  %v2851_v28 = vmax.f32 %v2723_v1, 0.0 }
 0x33a   :  { %v1732_v3 = vsel %vm172_vm0, %v9914_v53, 0.0  ;;  %v1756_v59 = vsel %vm172_vm0, %v9965_v18, 0.0  ;;  %v6083_v33 = vpop.eup %6082  ;;  %v4134_v57 = vrot.slane %v4133_v46, 2  ;;  %v4167_v51 = vrot.slane %v4166_v5, 4 }
 0x33b   :  { %v9987_v41 = vmax.f32 %v1239_v45, 0.0  ;;  %v2598_v56 = vmul.f32 %v9972_v16, %v9972_v16  ;;  %1733 = vadd.xlane.f32.xlu0 %v1732_v3  ;;  %v4113_v54 = vrot.slane %v4112_v2, 2  ;;  %v4148_v0 = vrot.slane %v4147_v17, 2  ;;  %v12117_v45 = vld [vmem:[#allocation54_spill] sm:$0xff] }
 0x33c   :  { %v3752_v58 = vmul.f32 %v9600_v34, %v3624_v13  ;;  %v2722_v1 = vsub.f32 %v2466_v43, %v2594_v15  ;;  %1757 = vadd.xlane.f32.xlu1 %v1756_v59  ;;  %v3620_v12 = vadd.f32 %v9576_v11, %v3488_v21  ;;  %v4160_v40 = vrot.slane %v4159_v23, 4 }
 0x33d   :  { %12116 = vst [vmem:[#allocation11_spill] sm:$0xff] %v9987_v41  ;;  %v4175_v24 = vadd.f32 %v4174_v36, %v4173_v63  ;;  %v2726_v60 = vsub.f32 %v2470_v26, %v2598_v56  ;;  %v1214_v25 = vadd.f32 %v9926_v31, %v12117_v45  ;;  %v3361_v4 = vmul.f32 %v6083_v33, %v2977_v22 }
 0x33e   :  { %v3107_v3 = vadd.f32 1e-05, %v2851_v28  ;;  %v1735_v18 = vsel %vm172_vm0, %v9899_v37, 0.0  ;;  %v4135_v13 = vadd.f32 %v4134_v57, %v4133_v46  ;;  %v4168_v43 = vadd.f32 %v4167_v51, %v4166_v5  ;;  %v10011_v57 = vpop.xlane.xlu1 %1571 }
 0x33f   :  { %1736 = vadd.xlane.f32.xlu0 %v1735_v18  ;;  %v1759_v15 = vsel %vm172_vm0, %v9987_v41, 0.0  ;;  %v2014_v63 = vmul.f32 %v9855_v35, %v9855_v35  ;;  %v4114_v21 = vadd.f32 %v4113_v54, %v4112_v2  ;;  %v4149_v36 = vadd.f32 %v4148_v0, %v4147_v17  ;;  %v12118_v54 = vld [vmem:[#allocation81_spill] sm:$0xff] }
 0x340   :  { %v4180_v26 = vsel %vm172_vm0, %v3752_v58, 0.0  ;;  %v2850_v59 = vmax.f32 %v2722_v1, 0.0  ;;  %1760 = vadd.xlane.f32.xlu1 %v1759_v15  ;;  %v3748_v22 = vmul.f32 %v9600_v34, %v3620_v12  ;;  %v4161_v28 = vadd.f32 %v4160_v40, %v4159_v23  ;;  %v10015_v40 = vpop.xlane.xlu0 %2193 }
 0x341   :  { %v4176_v33 = vrot.slane %v4175_v24, 2  ;;  %v2854_v56 = vmax.f32 %v2726_v60, 0.0  ;;  %v3493_v46 = vmul.f32 %v9546_v20, %v3361_v4  ;;  %6084 = vrsqrt.f32 %v3107_v3 }
 0x342   :  { %v2366_v18 = vsel %vm172_vm0, %v2014_v63, 0.0  ;;  %v2015_v5 = vmul.f32 %v9869_v62, %v9869_v62  ;;  %v4136_v17 = vrot.slane %v4135_v13, 1  ;;  %v4169_v2 = vrot.slane %v4168_v43, 2 }
 0x343   :  { %v4181_v51 = vrot.slane %v4180_v26, 4  ;;  %2367 = vadd.xlane.f32.xlu0 %v2366_v18  ;;  %v1244_v12 = vadd.f32 %v9926_v31, %v12118_v54  ;;  %v4150_v60 = vrot.slane %v4149_v36, 1  ;;  %v3106_v23 = vadd.f32 1e-05, %v2850_v59 }
 0x344   :  { %v2369_v20 = vsel %vm172_vm0, %v2015_v5, 0.0  ;;  %v2022_v4 = vmul.f32 %v9903_v19, %v9903_v19  ;;  %v4162_v0 = vrot.slane %v4161_v28, 2  ;;  %v4177_v58 = vadd.f32 %v4176_v33, %v4175_v24 }
 0x345   :  { %v10020_v1 = vmax.f32 %v1214_v25, 0.0  ;;  %v3110_v45 = vadd.f32 1e-05, %v2854_v56  ;;  %2370 = vadd.xlane.f32.xlu1 %v2369_v20  ;;  %v4115_v3 = vrot.slane %v4114_v21, 1  ;;  %v4152_v15 = vsel %vm172_vm0, %v3748_v22, 0.0  ;;  %v10032_v56 = vpop.xlane.xlu1 %2214  ;;  %v12121_v20 = vld [vmem:[#allocation100_spill] sm:$0xff] }
 0x346   :  { %v3625_v63 = vadd.f32 %v9576_v11, %v3493_v46  ;;  %v2390_v18 = vsel %vm172_vm0, %v2022_v4, 0.0  ;;  %v4170_v54 = vadd.f32 %v4169_v2, %v4168_v43  ;;  %v4182_v59 = vadd.f32 %v4181_v51, %v4180_v26  ;;  %v10035_v26 = vpop.xlane.xlu0 %1562 }
 0x347   :  { %12119 = vst [vmem:[#allocation99_spill] sm:$0xff] %v10020_v1  ;;  %v10025_v62 = vmax.f32 %v1244_v12, 0.0  ;;  %2391 = vadd.xlane.f32.xlu0 %v2390_v18  ;;  %v2023_v5 = vmul.f32 %v9912_v52, %v9912_v52  ;;  %v4137_v24 = vadd.f32 %v4136_v17, %v4135_v13  ;;  %v4151_v25 = vadd.f32 %v4150_v60, %v4149_v36 }
 0x348   :  { %6086 = vrsqrt.f32 %v3106_v23  ;;  %v10030_v33 = vmul.f32 0.03125, %v9968_v47  ;;  %v4163_v22 = vadd.f32 %v4162_v0, %v4161_v28  ;;  %v4178_v11 = vrot.slane %v4177_v58, 1 }
 0x349   :  { %12120 = vst [vmem:[#allocation63_spill] sm:$0xff] %v10025_v62  ;;  %6088 = vrsqrt.f32 %v3110_v45  ;;  %v2393_v43 = vsel %vm172_vm0, %v2023_v5, 0.0  ;;  %v3753_v46 = vmul.f32 %v9600_v34, %v3625_v63  ;;  %v10039_v2 = vmul.f32 0.03125, %v9940_v8  ;;  %v10062_v5 = vpop.xlane.xlu1 %2211 }
 0x34a   :  { %v2472_v13 = vmul.f32 0.03125, %v9992_v61  ;;  %2394 = vadd.xlane.f32.xlu1 %v2393_v43  ;;  %v1738_v47 = vsel %vm172_vm0, %v9933_v30, 0.0  ;;  %v4116_v36 = vadd.f32 %v4115_v3, %v4114_v21  ;;  %v4171_v17 = vrot.slane %v4170_v54, 1 }
 0x34b   :  { %v4183_v28 = vrot.slane %v4182_v59, 2  ;;  %1739 = vadd.xlane.f32.xlu0 %v1738_v47  ;;  %v1762_v51 = vsel %vm172_vm0, %v10025_v62, 0.0  ;;  %v6085_v12 = vpop.eup %6084  ;;  %v10047_v60 = vadd.f32 %v11853_v27, %v4137_v24  ;;  %v4153_v34 = vrot.slane %v4152_v15, 4  ;;  %v2203_v47 = vpop.xlane.xlu0 %2202 }
 0x34c   :  { %v2600_v8 = vmul.f32 %v10030_v33, %v10030_v33  ;;  %v2469_v61 = vmul.f32 0.03125, %v9995_v50  ;;  %v10053_v23 = vadd.f32 %v11853_v27, %v4151_v25  ;;  %v4164_v21 = vrot.slane %v4163_v22, 1 }
 0x34d   :  { %v2979_v4 = vsub.f32 %v12121_v20, %v9919_v14  ;;  %v2016_v0 = vmul.f32 %v9914_v53, %v9914_v53  ;;  %v4179_v45 = vadd.f32 %v4178_v11, %v4177_v58  ;;  %v4187_v3 = vsel %vm172_vm0, %v3753_v46, 0.0  ;;  %v12122_v58 = vld [vmem:[#allocation22_spill] sm:$0xff] }
 0x34e   :  { %v2597_v63 = vmul.f32 %v10039_v2, %v10039_v2  ;;  %v2728_v18 = vsub.f32 %v2472_v13, %v2600_v8  ;;  %1763 = vadd.xlane.f32.xlu1 %v1762_v51  ;;  %v4172_v50 = vadd.f32 %v4171_v17, %v4170_v54  ;;  %v4184_v24 = vadd.f32 %v4183_v28, %v4182_v59 }
 0x34f   :  { %v3363_v25 = vmul.f32 %v6085_v12, %v2979_v4  ;;  %v2372_v43 = vsel %vm172_vm0, %v2016_v0, 0.0  ;;  %v10066_v14 = vadd.f32 %v11853_v27, %v4116_v36  ;;  %v4154_v20 = vadd.f32 %v4153_v34, %v4152_v15  ;;  %v12124_v36 = vld [vmem:[#allocation94_spill] sm:$0xff]  ;;  %v10106_v13 = vpop.xlane.xlu0 %1568 }
 0x350   :  { %v2978_v11 = vsub.f32 %v12122_v58, %v9960_v48  ;;  %v2725_v46 = vsub.f32 %v2469_v61, %v2597_v63  ;;  %2373 = vadd.xlane.f32.xlu0 %v2372_v43  ;;  %v10072_v8 = vadd.f32 %v4164_v21, %v4163_v22  ;;  %v4188_v54 = vrot.slane %v4187_v3, 4  ;;  %v10088_v22 = vld [vmem:[%s11510_s2 + $0x1] ss:$0 sm:$0xff]  ;;  %v12127_v4 = vld [vmem:[#allocation82_spill] sm:$0xff]  ;;  %v10100_v43 = vpop.xlane.xlu1 %1580 }
 0x351   :  { %v10075_v17 = vadd.f32 %v11853_v27, %v4179_v45  ;;  %v2982_v28 = vsub.f32 %v12124_v36, %v9972_v16  ;;  %v10080_v15 = vmul.f32 0.03125, %v9975_v6  ;;  %v2856_v48 = vmax.f32 %v2728_v18, 0.0  ;;  %v12128_v16 = vld [vmem:[#allocation24_spill] sm:$0xff]  ;;  %v12129_v45 = vld [vmem:[#allocation97_spill] sm:$0xff] }
 0x352   :  { %v6087_v59 = vpop.eup %6086  ;;  %v10083_v34 = vadd.f32 %v11853_v27, %v4172_v50  ;;  %v4185_v61 = vrot.slane %v4184_v24, 1  ;;  %v3495_v21 = vmul.f32 %v10088_v22, %v3363_v25  ;;  %v1249_v0 = vadd.f32 %v9926_v31, %v12127_v4 }
 0x353   :  { %12123 = vst [vmem:[#allocation69_spill] sm:$0xff] %v10075_v17  ;;  %12125 = vst [vmem:[#allocation96_spill] sm:$0xff] %v10080_v15  ;;  %v6089_v12 = vpop.eup %6088  ;;  %v2853_v18 = vmax.f32 %v2725_v46, 0.0  ;;  %v10098_v50 = vmul.f32 0.03125, %v10011_v57  ;;  %v4189_v58 = vadd.f32 %v4188_v54, %v4187_v3  ;;  %v3362_v36 = vmul.f32 %v6087_v59, %v2978_v11  ;;  %v10117_v3 = vld [vmem:[%s11510_s2 + $0x2] ss:$0 sm:$0xff] }
 0x354   :  { %12126 = vst [vmem:[#allocation68_spill] sm:$0xff] %v10083_v34  ;;  %v4099_v51 = vrot.slane %v9860_v44, 2  ;;  %v12131_v25 = vrot.slane %v9837_v7, 4  ;;  %v3366_v6 = vmul.f32 %v6089_v12, %v2982_v28  ;;  %v2596_v63 = vmul.f32 %v10080_v15, %v10080_v15  ;;  %v10134_v35 = vpop.xlane.xlu1 %1577 }
 0x355   :  { %12130 = vst [vmem:[#allocation21_spill] sm:$0xff] %v10098_v50  ;;  %v3112_v53 = vadd.f32 1e-05, %v2856_v48  ;;  %v10112_v52 = vadd.f32 %v4185_v61, %v4184_v24  ;;  %v3627_v11 = vadd.f32 %v10117_v3, %v3495_v21  ;;  %v3109_v59 = vadd.f32 1e-05, %v2853_v18 }
 0x356   :  { %v4105_v4 = vadd.f32 %v12131_v25, %v9837_v7  ;;  %v10120_v7 = vmax.f32 %v1249_v0, 0.0  ;;  %v2602_v28 = vmul.f32 %v10098_v50, %v10098_v50  ;;  %v10125_v12 = vmul.f32 0.03125, %v10035_v26  ;;  %v10139_v26 = vld [vmem:[%s11510_s2 + $0x4] sm:$0xff] }
 0x357   :  { %12133 = vst [vmem:[#allocation60_spill] sm:$0xff] %v10112_v52  ;;  %v12135_v24 = vrot.slane %v9816_v42, 2  ;;  %v4190_v61 = vrot.slane %v4189_v58, 2  ;;  %v3494_v25 = vmul.f32 %v10088_v22, %v3362_v36  ;;  %v4100_v57 = vadd.f32 %v4099_v51, %v9860_v44 }
 0x358   :  { %12134 = vst [vmem:[#allocation17_spill] sm:$0xff] %v10120_v7  ;;  %v4106_v54 = vrot.slane %v4105_v4, 2  ;;  %v4155_v21 = vrot.slane %v4154_v20, 2  ;;  %v3498_v0 = vmul.f32 %v10088_v22, %v3366_v6  ;;  %6090 = vrsqrt.f32 %v3112_v53  ;;  %v10145_v6 = vpop.xlane.xlu0 %2208 }
 0x359   :  { %v4093_v48 = vadd.f32 %v12135_v24, %v9816_v42  ;;  %v2468_v18 = vmul.f32 0.03125, %v10015_v40  ;;  %v2471_v19 = vmul.f32 0.03125, %v2203_v47  ;;  %v3755_v42 = vmul.f32 %v10139_v26, %v3627_v11 }
 0x35a   :  { %v4087_v44 = vrot.slane %v9834_v55, 1  ;;  %v4107_v51 = vadd.f32 %v4106_v54, %v4105_v4  ;;  %v2599_v53 = vmul.f32 %v10125_v12, %v10125_v12  ;;  %v2474_v40 = vmul.f32 0.03125, %v10062_v5 }
 0x35b   :  { %v4094_v47 = vrot.slane %v4093_v48, 1  ;;  %v4156_v17 = vadd.f32 %v4155_v21, %v4154_v20  ;;  %v3626_v34 = vadd.f32 %v10117_v3, %v3494_v25  ;;  %6092 = vrsqrt.f32 %v3109_v59  ;;  %v10165_v21 = vpop.xlane.xlu1 %2220 }
 0x35c   :  { %v4101_v52 = vrot.slane %v4100_v57, 1  ;;  %v4143_v11 = vrot.slane %v9888_v29, 1  ;;  %v10152_v15 = vadd.f32 %v4190_v61, %v4189_v58  ;;  %v3630_v24 = vadd.f32 %v10117_v3, %v3498_v0 }
 0x35d   :  { %v2724_v4 = vsub.f32 %v2468_v18, %v2596_v63  ;;  %v2727_v54 = vsub.f32 %v2471_v19, %v2599_v53  ;;  %v10156_v46 = vsel %vm172_vm0, %v3755_v42, 0.0  ;;  %v4088_v50 = vadd.f32 %v4087_v44, %v9834_v55  ;;  %v10171_v18 = vpop.xlane.xlu0 %1574 }
 0x35e   :  { %v4108_v5 = vrot.slane %v4107_v51, 1  ;;  %v4157_v36 = vrot.slane %v4156_v17, 1  ;;  %v10160_v20 = vmul.f32 0.03125, %v10032_v56  ;;  %v2730_v59 = vsub.f32 %v2474_v40, %v2602_v28 }
 0x35f   :  { %v12137_v25 = vrot.slane %v9750_v39, 1  ;;  %v4095_v61 = vadd.f32 %v4094_v47, %v4093_v48  ;;  %v3754_v19 = vmul.f32 %v10139_v26, %v3626_v34  ;;  %v4102_v63 = vadd.f32 %v4101_v52, %v4100_v57 }
 0x360   :  { %v4144_v0 = vadd.f32 %v4143_v11, %v9888_v29  ;;  %v4762_v55 = vadd.f32 %v11853_v27, %v9827_v49  ;;  %v4202_v56 = vrot.slane %v10156_v46, 4  ;;  %v3758_v28 = vmul.f32 %v10139_v26, %v3630_v24 }
 0x361   :  { %v4081_v58 = vadd.f32 %v12137_v25, %v9750_v39  ;;  %v2852_v42 = vmax.f32 %v2724_v4, 0.0  ;;  %v2855_v44 = vmax.f32 %v2727_v54, 0.0  ;;  %v4109_v39 = vadd.f32 %v4108_v5, %v4107_v51  ;;  %v10190_v4 = vpop.xlane.xlu1 %2217 }
 0x362   :  { %v4158_v48 = vadd.f32 %v4157_v36, %v4156_v17  ;;  %v4764_v53 = vadd.f32 %v11853_v27, %v4088_v50  ;;  %v4770_v52 = vadd.f32 %v11853_v27, %v9853_v38  ;;  %v6091_v34 = vpop.eup %6090  ;;  %v2858_v29 = vmax.f32 %v2730_v59, 0.0 }
 0x363   :  { %v4763_v57 = vadd.f32 %v11853_v27, %v4081_v58  ;;  %v4765_v49 = vadd.f32 %v11853_v27, %v4095_v61  ;;  %v4888_v40 = vmax.f32 %v9695_v10, 0.0  ;;  %v10182_v47 = vsel %vm172_vm0, %v3754_v19, 0.0  ;;  %v10194_v58 = vpop.xlane.xlu0 %1583 }
 0x364   :  { %v4766_v24 = vadd.f32 %v11853_v27, %v4102_v63  ;;  %v4772_v17 = vadd.f32 %v11853_v27, %v4144_v0  ;;  %v4890_v36 = vmax.f32 %v4762_v55, 0.0  ;;  %v3111_v50 = vadd.f32 1e-05, %v2855_v44 }
 0x365   :  { %v4775_v38 = vadd.f32 %v11853_v27, %v10072_v8  ;;  %v4889_v51 = vmax.f32 %v9691_v9, 0.0  ;;  %v4896_v11 = vmax.f32 %v10066_v14, 0.0  ;;  %v6093_v54 = vpop.eup %6092  ;;  %v4767_v10 = vadd.f32 %v11853_v27, %v4109_v39 }
 0x366   :  { %v4774_v5 = vadd.f32 %v11853_v27, %v4158_v48  ;;  %v4892_v59 = vmax.f32 %v4764_v53, 0.0  ;;  %v4898_v25 = vmax.f32 %v4770_v52, 0.0  ;;  %v4891_v61 = vmax.f32 %v4763_v57, 0.0  ;;  %v12140_v57 = vld [vmem:[#allocation91_spill] sm:$0xff] }
 0x367   :  { %v4893_v19 = vmax.f32 %v4765_v49, 0.0  ;;  %v5149_v63 = vsel %vm5114_vm1, %v4889_v51, %v4888_v40  ;;  %v12138_v8 = vmax.f32 %v9878_v32, 0.0  ;;  %v4894_v14 = vmax.f32 %v4766_v24, 0.0 }
 0x368   :  { %v4900_v0 = vmax.f32 %v4772_v17, 0.0  ;;  %v5150_v55 = vsel %vm5116_vm2, %v4890_v36, %v5149_v63  ;;  %v4903_v39 = vmax.f32 %v4775_v38, 0.0  ;;  %v12139_v53 = vmax.f32 %v10047_v60, 0.0 }
 0x369   :  { %v5156_v9 = vsel %vm5114_vm1, %v12138_v8, %v4896_v11  ;;  %v5151_v48 = vsel %vm5118_vm3, %v4891_v61, %v5150_v55  ;;  %v2024_v49 = vmul.f32 %v12140_v57, %v12140_v57  ;;  %6094 = vrsqrt.f32 %v3111_v50  ;;  %v10215_v11 = vpop.xlane.xlu1 %1586 }
 0x36a   :  { %v5157_v44 = vsel %vm5116_vm2, %v4898_v25, %v5156_v9  ;;  %v4902_v32 = vmax.f32 %v4774_v5, 0.0  ;;  %v5152_v40 = vsel %vm5120_vm4, %v4892_v59, %v5151_v48  ;;  %v4895_v17 = vmax.f32 %v4767_v10, 0.0  ;;  %v10220_v59 = vpop.xlane.xlu0 %2223 }
 0x36b   :  { %v5158_v52 = vsel %vm5118_vm3, %v12139_v53, %v5157_v44  ;;  %v5153_v36 = vsel %vm5122_vm5, %v4893_v19, %v5152_v40  ;;  %v12141_v38 = vmax.f32 %v10053_v23, 0.0  ;;  %v2396_v60 = vsel %vm172_vm0, %v2024_v49, 0.0  ;;  %v12144_v44 = vld [vmem:[#allocation32_spill] sm:$0xff]  ;;  %v12145_v53 = vld [vmem:[#allocation27_spill] sm:$0xff] }
 0x36c   :  { %v5159_v24 = vsel %vm5120_vm4, %v4900_v0, %v5158_v52  ;;  %v3108_v61 = vadd.f32 1e-05, %v2852_v42  ;;  %v5154_v50 = vsel %vm5124_vm6, %v4894_v14, %v5153_v36  ;;  %2397 = vadd.xlane.f32.xlu1 %v2396_v60  ;;  %v10223_v10 = vadd.f32 %v4202_v56, %v10156_v46  ;;  %v12142_v42 = vld [vmem:[#allocation80_spill] sm:$0xff] }
 0x36d   :  { %v5160_v51 = vsel %vm5122_vm5, %v12141_v38, %v5159_v24  ;;  %v4222_v23 = vsel %vm172_vm0, %v3758_v28, 0.0  ;;  %v5155_v19 = vsel %vm5126_vm7, %v4895_v17, %v5154_v50  ;;  %v4195_v8 = vrot.slane %v10182_v47, 4 }
 0x36e   :  { %v5161_v5 = vsel %vm5124_vm6, %v4902_v32, %v5160_v51  ;;  %v1741_v14 = vsel %vm172_vm0, %v12142_v42, 0.0  ;;  %v10232_v0 = vmul.f32 0.03125, %v10106_v13  ;;  %v12143_v55 = vsub.f32 %v12129_v45, %v10030_v33 }
 0x36f   :  { %v5162_v63 = vsel %vm5126_vm7, %v4903_v39, %v5161_v5  ;;  %v3114_v56 = vadd.f32 1e-05, %v2858_v29  ;;  %1742 = vadd.xlane.f32.xlu0 %v1741_v14  ;;  %v1765_v28 = vsel %vm172_vm0, %v10120_v7, 0.0  ;;  %v1254_v39 = vadd.f32 %v9926_v31, %v12144_v44  ;;  %v12150_v44 = vld [vmem:[#allocation85_spill] sm:$0xff] }
 0x370   :  { %v5904_v9 = vpack.c.bf16 %v5162_v63, %v5155_v19  ;;  %v3368_v46 = vmul.f32 %v6091_v34, %v12143_v55  ;;  %v4223_v48 = vrot.slane %v4222_v23, 4  ;;  %6096 = vrsqrt.f32 %v3108_v61  ;;  %1766 = vadd.xlane.f32.xlu1 %v1765_v28 }
 0x371   :  { %v2983_v52 = vsub.f32 %v12145_v53, %v10125_v12  ;;  %v2017_v33 = vmul.f32 %v9899_v37, %v9899_v37  ;;  %v12147_v13 = vsub.f32 %v12128_v16, %v10039_v2  ;;  %v2601_v34 = vmul.f32 %v10232_v0, %v10232_v0  ;;  %v2227_v12 = vpop.xlane.xlu1 %2226  ;;  %v10263_v16 = vpop.xlane.xlu0 %1649 }
 0x372   :  { %5906 = vmatpush3.bf16.xpose.msk.msra.mxu1 %vm8819_vm8, %v5904_v9  ;;  %v10253_v29 = vmul.f32 0.03125, %v10134_v35  ;;  %v2473_v32 = vmul.f32 0.03125, %v10145_v6  ;;  %v12148_v40 = vmov 0.0|0.0   ;;  %v10258_v17 = vmax.f32 %v1254_v39, 0.0 }
 0x373   :  { %v3365_v45 = vmul.f32 %v6093_v54, %v12147_v13  ;;  %5907 = vmatprep.subr.bf16.mxu1 %v12148_v40  ;;  %v2375_v36 = vsel %vm172_vm0, %v2017_v33, 0.0  ;;  %v2025_v2 = vmul.f32 %v9987_v41, %v9987_v41  ;;  %v10266_v54 = vadd.f32 %v4195_v8, %v10182_v47  ;;  %v6095_v38 = vpop.eup %6094 }
 0x374   :  { %12149 = vst [vmem:[#allocation45_spill] sm:$0xff] %v10258_v17  ;;  %v3500_v35 = vmul.f32 %v10088_v22, %v3368_v46  ;;  %6098 = vrsqrt.f32 %v3114_v56  ;;  %2376 = vadd.xlane.f32.xlu0 %v2375_v36  ;;  %v2729_v6 = vsub.f32 %v2473_v32, %v2601_v34  ;;  %v4224_v51 = vadd.f32 %v4223_v48, %v4222_v23 }
 0x375   :  { %v2399_v60 = vsel %vm172_vm0, %v2025_v2, 0.0  ;;  %v10271_v61 = vmul.f32 0.03125, %v10171_v18  ;;  %v2476_v50 = vmul.f32 0.03125, %v10190_v4  ;;  %v3497_v5 = vmul.f32 %v10088_v22, %v3365_v45  ;;  %v10289_v56 = vpop.xlane.xlu1 %1673 }
 0x376   :  { %v2604_v47 = vmul.f32 %v10253_v29, %v10253_v29  ;;  %v2857_v19 = vmax.f32 %v2729_v6, 0.0  ;;  %2400 = vadd.xlane.f32.xlu1 %v2399_v60  ;;  %v1744_v63 = vsel %vm172_vm0, %v10020_v1, 0.0  ;;  %v1768_v8 = vsel %vm172_vm0, %v10258_v17, 0.0 }
 0x377   :  { %v2603_v23 = vmul.f32 %v10271_v61, %v10271_v61  ;;  %v2018_v18 = vmul.f32 %v9933_v30, %v9933_v30  ;;  %v10286_v4 = vmul.f32 0.03125, %v10194_v58  ;;  %v4197_v9 = vrot.slane %v10266_v54, 2  ;;  %v2284_v58 = vpop.xlane.xlu0 %2283 }
 0x378   :  { %v3367_v14 = vmul.f32 %v6095_v38, %v2983_v52  ;;  %v3113_v55 = vadd.f32 1e-05, %v2857_v19  ;;  %1745 = vadd.xlane.f32.xlu0 %v1744_v63  ;;  %v2732_v46 = vsub.f32 %v2476_v50, %v2604_v47  ;;  %v3632_v28 = vadd.f32 %v10117_v3, %v3500_v35  ;;  %v12152_v63 = vld [vmem:[#allocation46_spill] sm:$0xff] }
 0x379   :  { %v1259_v39 = vadd.f32 %v9926_v31, %v12150_v44  ;;  %v2731_v48 = vsub.f32 %v10160_v20, %v2603_v23  ;;  %v2606_v53 = vmul.f32 %v10286_v4, %v10286_v4  ;;  %v10298_v33 = vmul.f32 0.03125, %v10100_v43 }
 0x37a   :  { %6100 = vrsqrt.f32 %v3113_v55  ;;  %1769 = vadd.xlane.f32.xlu1 %v1768_v8  ;;  %v2026_v52 = vmul.f32 %v10025_v62, %v10025_v62  ;;  %v10303_v13 = vmul.f32 0.03125, %v10215_v11  ;;  %v6097_v45 = vpop.eup %6096  ;;  %v4225_v34 = vrot.slane %v4224_v51, 2 }
 0x37b   :  { %v2859_v31 = vmax.f32 %v2731_v48, 0.0  ;;  %v2378_v20 = vsel %vm172_vm0, %v2018_v18, 0.0  ;;  %v2478_v32 = vmul.f32 0.03125, %v10220_v59  ;;  %v10308_v36 = vadd.f32 %v10117_v3, %v3497_v5 }
 0x37c   :  { %v3499_v43 = vmul.f32 %v10088_v22, %v3367_v14  ;;  %v2477_v2 = vmul.f32 0.03125, %v10165_v21  ;;  %v2860_v35 = vmax.f32 %v2732_v46, 0.0  ;;  %2379 = vadd.xlane.f32.xlu0 %v2378_v20  ;;  %v10312_v6 = vmax.f32 %v1259_v39, 0.0  ;;  %v2308_v21 = vpop.xlane.xlu1 %2307  ;;  %v10324_v14 = vpop.xlane.xlu0 %1652 }
 0x37d   :  { %v3115_v11 = vadd.f32 1e-05, %v2859_v31  ;;  %v2402_v38 = vsel %vm172_vm0, %v2026_v52, 0.0  ;;  %v2734_v60 = vsub.f32 %v2478_v32, %v2606_v53  ;;  %v3760_v47 = vmul.f32 %v10139_v26, %v3632_v28  ;;  %v12153_v52 = vld [vmem:[#allocation105_spill] sm:$0xff] }
 0x37e   :  { %12151 = vst [vmem:[#allocation55_spill] sm:$0xff] %v10312_v6  ;;  %v6099_v50 = vpop.eup %6098  ;;  %v2605_v59 = vmul.f32 %v10298_v33, %v10298_v33  ;;  %2403 = vadd.xlane.f32.xlu1 %v2402_v38  ;;  %v2607_v5 = vmul.f32 %v10303_v13, %v10303_v13  ;;  %v2479_v19 = vmul.f32 0.03125, %v2227_v12  ;;  %v1747_v23 = vsel %vm172_vm0, %v12152_v63, 0.0  ;;  %v12154_v31 = vld [vmem:[#allocation21_spill] sm:$0xff] }
 0x37f   :  { %6102 = vrsqrt.f32 %v3115_v11  ;;  %v2862_v8 = vmax.f32 %v2734_v60, 0.0  ;;  %v2019_v18 = vmul.f32 %v12142_v42, %v12142_v42  ;;  %v10326_v55 = vadd.f32 %v4225_v34, %v4224_v51  ;;  %v12156_v51 = vld [vmem:[#allocation31_spill] sm:$0xff] }
 0x380   :  { %v2733_v46 = vsub.f32 %v2477_v2, %v2605_v59  ;;  %v3116_v28 = vadd.f32 1e-05, %v2860_v35  ;;  %1748 = vadd.xlane.f32.xlu0 %v1747_v23  ;;  %v2735_v44 = vsub.f32 %v2479_v19, %v2607_v5  ;;  %v3631_v39 = vadd.f32 %v10117_v3, %v3499_v43  ;;  %v12157_v19 = vld [vmem:[#allocation86_spill] sm:$0xff]  ;;  %v10342_v23 = vpop.xlane.xlu1 %1676 }
 0x381   :  { %v3118_v12 = vadd.f32 1e-05, %v2862_v8  ;;  %v1771_v48 = vsel %vm172_vm0, %v10312_v6, 0.0  ;;  %v2027_v53 = vmul.f32 %v10120_v7, %v10120_v7  ;;  %v12155_v20 = vsub.f32 %v12153_v52, %v12154_v31 }
 0x382   :  { %v2985_v34 = vsub.f32 %v12156_v51, %v10232_v0  ;;  %1772 = vadd.xlane.f32.xlu1 %v1771_v48  ;;  %v2863_v2 = vmax.f32 %v2735_v44, 0.0  ;;  %v2498_v35 = vmul.f32 0.03125, %v2284_v58  ;;  %v2381_v43 = vsel %vm172_vm0, %v2019_v18, 0.0  ;;  %v12158_v18 = vld [vmem:[#allocation14_spill] sm:$0xff]  ;;  %v12160_v48 = vld [vmem:[#allocation96_spill] sm:$0xff] }
 0x383   :  { %v3370_v32 = vmul.f32 %v6099_v50, %v12155_v20  ;;  %6104 = vrsqrt.f32 %v3118_v12  ;;  %v2020_v11 = vmul.f32 %v10020_v1, %v10020_v1  ;;  %v2506_v38 = vmul.f32 0.03125, %v2308_v21  ;;  %v2287_v12 = vpop.xlane.xlu0 %2286  ;;  %v12159_v21 = vld [vmem:[#allocation102_spill] sm:$0xff] }
 0x384   :  { %v6101_v60 = vpop.eup %6100  ;;  %v2861_v59 = vmax.f32 %v2733_v46, 0.0  ;;  %6106 = vrsqrt.f32 %v3116_v28  ;;  %v3119_v5 = vadd.f32 1e-05, %v2863_v2  ;;  %2382 = vadd.xlane.f32.xlu0 %v2381_v43  ;;  %v2754_v50 = vsub.f32 %v2498_v35, %v12157_v19  ;;  %v12162_v43 = vld [vmem:[#allocation26_spill] sm:$0xff] }
 0x385   :  { %v3759_v0 = vmul.f32 %v10139_v26, %v3631_v39  ;;  %v2405_v58 = vsel %vm172_vm0, %v2027_v53, 0.0  ;;  %v2028_v8 = vmul.f32 %v10258_v17, %v10258_v17  ;;  %v2762_v44 = vsub.f32 %v2506_v38, %v12158_v18  ;;  %v12184_v17 = vld [vmem:[#allocation38_spill] sm:$0xff] }
 0x386   :  { %v12161_v46 = vsub.f32 %v12159_v21, %v12160_v48  ;;  %v3369_v52 = vmul.f32 %v6101_v60, %v2985_v34  ;;  %6108 = vrsqrt.f32 %v3119_v5  ;;  %2406 = vadd.xlane.f32.xlu1 %v2405_v58  ;;  %v2882_v31 = vmax.f32 %v2754_v50, 0.0  ;;  %v12163_v21 = vld [vmem:[#allocation35_spill] sm:$0xff] }
 0x387   :  { %v3502_v20 = vmul.f32 %v10088_v22, %v3370_v32  ;;  %v2384_v39 = vsel %vm172_vm0, %v2020_v11, 0.0  ;;  %v2890_v51 = vmax.f32 %v2762_v44, 0.0  ;;  %v2021_v53 = vmul.f32 %v12152_v63, %v12152_v63  ;;  %v2290_v18 = vpop.xlane.xlu0 %2289 }
 0x388   :  { %v3364_v28 = vmul.f32 %v6097_v45, %v12161_v46  ;;  %v4236_v2 = vsel %vm172_vm0, %v3760_v47, 0.0  ;;  %v3117_v35 = vadd.f32 1e-05, %v2861_v59  ;;  %v2987_v38 = vsub.f32 %v12162_v43, %v10271_v61  ;;  %2385 = vadd.xlane.f32.xlu0 %v2384_v39  ;;  %v2311_v59 = vpop.xlane.xlu1 %2310 }
 0x389   :  { %v3138_v45 = vadd.f32 1e-05, %v2882_v31  ;;  %v6103_v34 = vpop.eup %6102  ;;  %v4229_v60 = vsel %vm172_vm0, %v3759_v0, 0.0  ;;  %v2408_v5 = vsel %vm172_vm0, %v2028_v8, 0.0  ;;  %v3146_v32 = vadd.f32 1e-05, %v2890_v51 }
 0x38a   :  { %v2029_v11 = vmul.f32 %v10312_v6, %v10312_v6  ;;  %v3501_v19 = vmul.f32 %v10088_v22, %v3369_v52  ;;  %v3371_v50 = vmul.f32 %v6103_v34, %v2987_v38  ;;  %2409 = vadd.xlane.f32.xlu1 %v2408_v5  ;;  %v2499_v47 = vmul.f32 0.03125, %v2287_v12  ;;  %v12182_v6 = vld [vmem:[#allocation48_spill] sm:$0xff] }
 0x38b   :  { %6110 = vrsqrt.f32 %v3138_v45  ;;  %v3496_v61 = vmul.f32 %v10088_v22, %v3364_v28  ;;  %v3634_v58 = vadd.f32 %v10117_v3, %v3502_v20  ;;  %v2387_v0 = vsel %vm172_vm0, %v2021_v53, 0.0 }
 0x38c   :  { %6112 = vrsqrt.f32 %v3146_v32  ;;  %v4230_v8 = vrot.slane %v4229_v60, 4  ;;  %v3503_v44 = vmul.f32 %v10088_v22, %v3371_v50  ;;  %v2990_v48 = vsub.f32 %v12163_v21, %v10286_v4  ;;  %2388 = vadd.xlane.f32.xlu0 %v2387_v0  ;;  %v12164_v4 = vld [vmem:[#allocation89_spill] sm:$0xff]  ;;  %v12167_v21 = vld [vmem:[#allocation40_spill] sm:$0xff] }
 0x38d   :  { %6114 = vrsqrt.f32 %v3117_v35  ;;  %v6105_v46 = vpop.eup %6104  ;;  %v10373_v12 = vadd.f32 %v4197_v9, %v10266_v54  ;;  %v3757_v28 = vmul.f32 %v10139_v26, %v10308_v36  ;;  %v2411_v52 = vsel %vm172_vm0, %v2029_v11, 0.0  ;;  %v12165_v54 = vld [vmem:[#allocation28_spill] sm:$0xff]  ;;  %v12166_v36 = vld [vmem:[#allocation34_spill] sm:$0xff] }
 0x38e   :  { %v2507_v31 = vmul.f32 0.03125, %v2311_v59  ;;  %v6107_v20 = vpop.eup %6106  ;;  %v3633_v39 = vadd.f32 %v10117_v3, %v3501_v19  ;;  %v3635_v51 = vadd.f32 %v10117_v3, %v3503_v44  ;;  %v3374_v53 = vmul.f32 %v6105_v46, %v2990_v48  ;;  %2412 = vadd.xlane.f32.xlu1 %v2411_v52  ;;  %v10393_v44 = vpop.xlane.xlu0 %1679 }
 0x38f   :  { %v2755_v35 = vsub.f32 %v2499_v47, %v12164_v4  ;;  %v4237_v38 = vrot.slane %v4236_v2, 4  ;;  %v2988_v9 = vsub.f32 %v12165_v54, %v10253_v29  ;;  %v2991_v45 = vsub.f32 %v12166_v36, %v10303_v13 }
 0x390   :  { %v6109_v34 = vpop.eup %6108  ;;  %v3628_v5 = vadd.f32 %v10117_v3, %v3496_v61  ;;  %v3762_v32 = vmul.f32 %v10139_v26, %v3634_v58  ;;  %v4231_v11 = vadd.f32 %v4230_v8, %v4229_v60  ;;  %v3763_v19 = vmul.f32 %v10139_v26, %v3635_v51 }
 0x391   :  { %v3372_v50 = vmul.f32 %v6107_v20, %v2988_v9  ;;  %v3506_v47 = vmul.f32 %v10088_v22, %v3374_v53  ;;  %v3375_v59 = vmul.f32 %v6109_v34, %v2991_v45  ;;  %v10391_v0 = vmul.f32 0.03125, %v10263_v16  ;;  %v12169_v34 = vld [vmem:[#allocation43_spill] sm:$0xff] }
 0x392   :  { %v10396_v29 = vsel %vm172_vm0, %v3757_v28, 0.0  ;;  %v3761_v13 = vmul.f32 %v10139_v26, %v3633_v39  ;;  %v2883_v61 = vmax.f32 %v2755_v35, 0.0  ;;  %v2763_v58 = vsub.f32 %v2507_v31, %v12167_v21 }
 0x393   :  { %v4257_v60 = vsel %vm172_vm0, %v3763_v19, 0.0  ;;  %v3638_v8 = vadd.f32 %v10117_v3, %v3506_v47  ;;  %v3507_v48 = vmul.f32 %v10088_v22, %v3375_v59  ;;  %v2500_v46 = vmul.f32 0.03125, %v2290_v18  ;;  %v12168_v18 = vld [vmem:[#allocation29_spill] sm:$0xff] }
 0x394   :  { %v4238_v16 = vadd.f32 %v4237_v38, %v4236_v2  ;;  %v3756_v20 = vmul.f32 %v10139_v26, %v3628_v5  ;;  %v4250_v51 = vsel %vm172_vm0, %v3762_v32, 0.0  ;;  %v4232_v28 = vrot.slane %v4231_v11, 2  ;;  %v12170_v5 = vld [vmem:[#allocation30_spill] sm:$0xff]  ;;  %v12173_v47 = vld [vmem:[#allocation49_spill] sm:$0xff] }
 0x395   :  { %v6111_v52 = vpop.eup %6110  ;;  %v3504_v39 = vmul.f32 %v10088_v22, %v3372_v50  ;;  %v3766_v4 = vmul.f32 %v10139_v26, %v3638_v8  ;;  %v3639_v31 = vadd.f32 %v10117_v3, %v3507_v48  ;;  %v2628_v35 = vmul.f32 %v10391_v0, %v10391_v0  ;;  %v12172_v50 = vld [vmem:[#allocation66_spill] sm:$0xff]  ;;  %v10419_v48 = vpop.xlane.xlu0 %1703 }
 0x396   :  { %v6113_v53 = vpop.eup %6112  ;;  %v2989_v9 = vsub.f32 %v12168_v18, %v10298_v33  ;;  %v4258_v2 = vrot.slane %v4257_v60, 4  ;;  %v3139_v38 = vadd.f32 1e-05, %v2883_v61  ;;  %v2891_v36 = vmax.f32 %v2763_v58, 0.0 }
 0x397   :  { %v6115_v54 = vpop.eup %6114  ;;  %v4243_v45 = vsel %vm172_vm0, %v3761_v13, 0.0  ;;  %v12171_v32 = vsub.f32 %v12169_v34, %v12170_v5  ;;  %v12174_v59 = vsub.f32 %v12172_v50, %v12173_v47  ;;  %v2756_v8 = vsub.f32 %v2500_v46, %v2628_v35 }
 0x398   :  { %v4239_v25 = vrot.slane %v4238_v16, 2  ;;  %v4251_v24 = vrot.slane %v4250_v51, 4  ;;  %v4233_v43 = vadd.f32 %v4232_v28, %v4231_v11  ;;  %v4278_v33 = vsel %vm172_vm0, %v3766_v4, 0.0 }
 0x399   :  { %v3394_v19 = vmul.f32 %v6111_v52, %v12171_v32  ;;  %v3402_v21 = vmul.f32 %v6113_v53, %v12174_v59  ;;  %v4208_v61 = vsel %vm172_vm0, %v3756_v20, 0.0  ;;  %v3373_v58 = vmul.f32 %v6115_v54, %v2989_v9  ;;  %v2314_v52 = vpop.xlane.xlu1 %2313 }
 0x39a   :  { %v3636_v13 = vadd.f32 %v10117_v3, %v3504_v39  ;;  %v3767_v18 = vmul.f32 %v10139_v26, %v3639_v31  ;;  %v4244_v34 = vrot.slane %v4243_v45, 4  ;;  %v4259_v5 = vadd.f32 %v4258_v2, %v4257_v60  ;;  %v10433_v2 = vpop.xlane.xlu0 %2292 }
 0x39b   :  { %6116 = vrsqrt.f32 %v3139_v38  ;;  %v3147_v53 = vadd.f32 1e-05, %v2891_v36  ;;  %v4279_v46 = vrot.slane %v4278_v33, 4  ;;  %v3526_v35 = vmul.f32 %v10088_v22, %v3394_v19 }
 0x39c   :  { %v3534_v32 = vmul.f32 %v10088_v22, %v3402_v21  ;;  %v2884_v11 = vmax.f32 %v2756_v8, 0.0  ;;  %v4240_v28 = vadd.f32 %v4239_v25, %v4238_v16  ;;  %v4252_v20 = vadd.f32 %v4251_v24, %v4250_v51 }
 0x39d   :  { %v4234_v54 = vrot.slane %v4233_v43, 1  ;;  %v4209_v9 = vrot.slane %v4208_v61, 4  ;;  %v3505_v39 = vmul.f32 %v10088_v22, %v3373_v58  ;;  %v4285_v31 = vsel %vm172_vm0, %v3767_v18, 0.0  ;;  %v1683_v50 = vpop.xlane.xlu1 %1682 }
 0x39e   :  { %v10431_v60 = vmul.f32 0.03125, %v10289_v56  ;;  %v4245_v38 = vadd.f32 %v4244_v34, %v4243_v45  ;;  %v4260_v36 = vrot.slane %v4259_v5, 2  ;;  %v3764_v19 = vmul.f32 %v10139_v26, %v3636_v13 }
 0x39f   :  { %6118 = vrsqrt.f32 %v3147_v53  ;;  %v4280_v25 = vadd.f32 %v4279_v46, %v4278_v33  ;;  %v3658_v16 = vadd.f32 %v10117_v3, %v3526_v35  ;;  %v3666_v24 = vadd.f32 %v10117_v3, %v3534_v32  ;;  %v10449_v32 = vpop.xlane.xlu0 %1685 }
 0x3a0   :  { %v3140_v51 = vadd.f32 1e-05, %v2884_v11  ;;  %v4253_v47 = vrot.slane %v4252_v20, 2  ;;  %v4235_v59 = vadd.f32 %v4234_v54, %v4233_v43  ;;  %v4286_v21 = vrot.slane %v4285_v31, 4 }
 0x3a1   :  { %v2508_v8 = vmul.f32 0.03125, %v2314_v52  ;;  %v12175_v56 = vrot.slane %v10326_v55, 1  ;;  %v4241_v45 = vrot.slane %v4240_v28, 1  ;;  %v10441_v18 = vadd.f32 %v4209_v9, %v4208_v61 }
 0x3a2   :  { %v2636_v33 = vmul.f32 %v10431_v60, %v10431_v60  ;;  %v4246_v13 = vrot.slane %v4245_v38, 2  ;;  %v3637_v34 = vadd.f32 %v10117_v3, %v3505_v39  ;;  %v4261_v53 = vadd.f32 %v4260_v36, %v4259_v5 }
 0x3a3   :  { %v4228_v58 = vadd.f32 %v12175_v56, %v10326_v55  ;;  %v4264_v46 = vsel %vm172_vm0, %v3764_v19, 0.0  ;;  %v4281_v35 = vrot.slane %v4280_v25, 2  ;;  %v3786_v43 = vmul.f32 %v10139_v26, %v3658_v16  ;;  %v10465_v16 = vpop.xlane.xlu1 %1706 }
 0x3a4   :  { %v3794_v52 = vmul.f32 %v10139_v26, %v3666_v24  ;;  %6120 = vrsqrt.f32 %v3140_v51  ;;  %v10451_v61 = vadd.f32 %v4253_v47, %v4252_v20  ;;  %v10454_v11 = vadd.f32 %v11853_v27, %v4235_v59 }
 0x3a5   :  { %v6117_v55 = vpop.eup %6116  ;;  %v4287_v54 = vadd.f32 %v4286_v21, %v4285_v31  ;;  %v2764_v9 = vsub.f32 %v2508_v8, %v2636_v33  ;;  %v10457_v5 = vadd.f32 %v11853_v27, %v4228_v58  ;;  %v10459_v39 = vadd.f32 %v4241_v45, %v4240_v28  ;;  %v12176_v8 = vld [vmem:[#allocation41_spill] sm:$0xff]  ;;  %v12177_v28 = vld [vmem:[#allocation98_spill] sm:$0xff] }
 0x3a6   :  { %v10463_v19 = vmul.f32 0.03125, %v10324_v14  ;;  %v4247_v24 = vadd.f32 %v4246_v13, %v4245_v38  ;;  %v3765_v20 = vmul.f32 %v10139_v26, %v3637_v34  ;;  %v4262_v51 = vrot.slane %v4261_v53, 1  ;;  %v12179_v13 = vld [vmem:[#allocation50_spill] sm:$0xff] }
 0x3a7   :  { %v4265_v47 = vrot.slane %v4264_v46, 4  ;;  %v4282_v59 = vadd.f32 %v4281_v35, %v4280_v25  ;;  %v4418_v31 = vsel %vm172_vm0, %v3786_v43, 0.0  ;;  %v4474_v21 = vsel %vm172_vm0, %v3794_v52, 0.0  ;;  %v12180_v25 = vld [vmem:[#allocation103_spill] sm:$0xff]  ;;  %v10490_v35 = vpop.xlane.xlu1 %2316 }
 0x3a8   :  { %v12178_v56 = vsub.f32 %v12176_v8, %v12177_v28  ;;  %v4288_v4 = vrot.slane %v4287_v54, 2  ;;  %v2892_v38 = vmax.f32 %v2764_v9, 0.0  ;;  %v3012_v34 = vsub.f32 %v12179_v13, %v10391_v0 }
 0x3a9   :  { %v6119_v45 = vpop.eup %6118  ;;  %v10481_v43 = vmul.f32 %v10463_v19, %v10463_v19  ;;  %v10484_v52 = vmul.f32 0.03125, %v10342_v23  ;;  %v4271_v8 = vsel %vm172_vm0, %v3765_v20, 0.0  ;;  %v4263_v28 = vadd.f32 %v4262_v51, %v4261_v53  ;;  %v12183_v23 = vld [vmem:[#allocation64_spill] sm:$0xff] }
 0x3aa   :  { %v3395_v58 = vmul.f32 %v6117_v55, %v12178_v56  ;;  %v10486_v55 = vpop.xlane.xlu0 %1688  ;;  %v4419_v56 = vrot.slane %v4418_v31, 4  ;;  %v4475_v9 = vrot.slane %v4474_v21, 4  ;;  %v4248_v33 = vrot.slane %v4247_v24, 1 }
 0x3ab   :  { %12181 = vst [vmem:[#allocation20_spill] sm:$0xff] %v10484_v52  ;;  %v4266_v14 = vadd.f32 %v4265_v47, %v4264_v46  ;;  %v4283_v0 = vrot.slane %v4282_v59, 1  ;;  %v4289_v36 = vadd.f32 %v4288_v4, %v4287_v54  ;;  %v12185_v1 = vsub.f32 %v12183_v23, %v12184_v17 }
 0x3ac   :  { %v3527_v13 = vmul.f32 %v10088_v22, %v3395_v58  ;;  %v3148_v42 = vadd.f32 1e-05, %v2892_v38  ;;  %v10499_v53 = vmul.f32 %v10484_v52, %v10484_v52  ;;  %v10504_v47 = vmul.f32 0.03125, %v10393_v44 }
 0x3ad   :  { %v3403_v7 = vmul.f32 %v6119_v45, %v12185_v1  ;;  %v10506_v4 = vmul.f32 0.03125, %v1683_v50  ;;  %v4272_v54 = vrot.slane %v4271_v8, 4  ;;  %v10509_v58 = vadd.f32 %v11853_v27, %v4263_v28  ;;  %v12187_v50 = vld [vmem:[#allocation47_spill] sm:$0xff] }
 0x3ae   :  { %v6121_v20 = vpop.eup %6120  ;;  %v4420_v17 = vadd.f32 %v4419_v56, %v4418_v31  ;;  %v4476_v1 = vadd.f32 %v4475_v9, %v4474_v21  ;;  %v4249_v45 = vadd.f32 %v4248_v33, %v4247_v24  ;;  %v4267_v38 = vrot.slane %v4266_v14, 2  ;;  %v2320_v62 = vpop.xlane.xlu0 %2319  ;;  %v12188_v9 = vld [vmem:[#allocation44_spill] sm:$0xff] }
 0x3af   :  { %v4284_v23 = vadd.f32 %v4283_v0, %v4282_v59  ;;  %v3659_v63 = vadd.f32 %v10117_v3, %v3527_v13  ;;  %v4290_v30 = vrot.slane %v4289_v36, 1  ;;  %v3535_v51 = vmul.f32 %v10088_v22, %v3403_v7  ;;  %v10524_v59 = vpop.xlane.xlu1 %1709 }
 0x3b0   :  { %v3396_v41 = vmul.f32 %v6121_v20, %v3012_v34  ;;  %6122 = vrsqrt.f32 %v3148_v42  ;;  %v2638_v44 = vmul.f32 %v10504_v47, %v10504_v47  ;;  %v10519_v31 = vmul.f32 %v10506_v4, %v10506_v4 }
 0x3b1   :  { %v10522_v24 = vmul.f32 0.03125, %v10419_v48  ;;  %v4421_v7 = vrot.slane %v4420_v17, 2  ;;  %v4477_v33 = vrot.slane %v4476_v1, 2  ;;  %v2510_v42 = vmul.f32 0.03125, %v2320_v62 }
 0x3b2   :  { %v10528_v34 = vadd.f32 %v11853_v27, %v4284_v23  ;;  %v3787_v56 = vmul.f32 %v10139_v26, %v3659_v63  ;;  %v12189_v13 = vrot.slane %v10223_v10, 2  ;;  %v4291_v20 = vadd.f32 %v4290_v30, %v4289_v36 }
 0x3b3   :  { %v3667_v28 = vadd.f32 %v10117_v3, %v3535_v51  ;;  %v10538_v21 = vmul.f32 %v10088_v22, %v3396_v41  ;;  %v2766_v37 = vsub.f32 %v2510_v42, %v2638_v44  ;;  %v4199_v62 = vrot.slane %v10373_v12, 1  ;;  %v10554_v22 = vpop.xlane.xlu1 %1712 }
 0x3b4   :  { %v4205_v48 = vadd.f32 %v12189_v13, %v10223_v10  ;;  %v12190_v63 = vrot.slane %v10441_v18, 2  ;;  %v12191_v0 = vrot.slane %v10396_v29, 4  ;;  %v10547_v46 = vadd.f32 %v4421_v7, %v4420_v17  ;;  %12192 = vst [vmem:[#allocation53_spill] sm:$0xff] %v10554_v22  ;;  %v12195_v22 = vld [vmem:[#allocation60_spill] sm:$0xff] }
 0x3b5   :  { %v10549_v30 = vadd.f32 %v4477_v33, %v4476_v1  ;;  %v4268_v3 = vadd.f32 %v4267_v38, %v4266_v14  ;;  %v4273_v10 = vadd.f32 %v4272_v54, %v4271_v8  ;;  %v10552_v41 = vsel %vm172_vm0, %v3787_v56, 0.0 }
 0x3b6   :  { %v4206_v23 = vrot.slane %v4205_v48, 1  ;;  %v4212_v57 = vadd.f32 %v12190_v63, %v10441_v18  ;;  %v4217_v52 = vadd.f32 %v12191_v0, %v10396_v29  ;;  %v2894_v36 = vmax.f32 %v2766_v37, 0.0 }
 0x3b7   :  { %v10558_v18 = vmul.f32 %v10522_v24, %v10522_v24  ;;  %v12193_v29 = vrot.slane %v10152_v15, 1  ;;  %v4269_v1 = vrot.slane %v4268_v3, 1  ;;  %v4274_v7 = vrot.slane %v4273_v10, 2 }
 0x3b8   :  { %v4213_v51 = vrot.slane %v4212_v57, 1  ;;  %v4218_v44 = vrot.slane %v4217_v52, 2  ;;  %v4200_v8 = vadd.f32 %v4199_v62, %v10373_v12  ;;  %v4207_v54 = vadd.f32 %v4206_v23, %v4205_v48  ;;  %v2344_v12 = vpop.xlane.xlu0 %2343 }
 0x3b9   :  { %v4193_v17 = vadd.f32 %v12193_v29, %v10152_v15  ;;  %v10568_v37 = vadd.f32 %v11853_v27, %v4291_v20  ;;  %v12194_v56 = vrot.slane %v10451_v61, 1  ;;  %v4275_v13 = vadd.f32 %v4274_v7, %v4273_v10 }
 0x3ba   :  { %v4219_v38 = vadd.f32 %v4218_v44, %v4217_v52  ;;  %v10565_v33 = vpop.eup %6122  ;;  %v4214_v42 = vadd.f32 %v4213_v51, %v4212_v57  ;;  %v3150_v15 = vadd.f32 1e-05, %v2894_v36  ;;  %v4270_v29 = vadd.f32 %v4269_v1, %v4268_v3  ;;  %v2323_v3 = vpop.xlane.xlu1 %2322  ;;  %v12196_v44 = vld [vmem:[#allocation68_spill] sm:$0xff] }
 0x3bb   :  { %v4256_v0 = vadd.f32 %v12194_v56, %v10451_v61  ;;  %v4778_v14 = vadd.f32 %v11853_v27, %v12195_v22  ;;  %v4426_v52 = vrot.slane %v10552_v41, 4  ;;  %v4276_v48 = vrot.slane %v4275_v13, 1 }
 0x3bc   :  { %v4220_v63 = vrot.slane %v4219_v38, 1  ;;  %v4779_v62 = vadd.f32 %v11853_v27, %v4193_v17  ;;  %v4787_v20 = vadd.f32 %v11853_v27, %v4249_v45  ;;  %v4780_v23 = vadd.f32 %v11853_v27, %v4200_v8  ;;  %v12197_v8 = vld [vmem:[#allocation69_spill] sm:$0xff] }
 0x3bd   :  { %v4781_v61 = vadd.f32 %v11853_v27, %v4207_v54  ;;  %v4786_v10 = vadd.f32 %v11853_v27, %v10459_v39  ;;  %v3795_v36 = vmul.f32 %v10139_v26, %v3667_v28  ;;  %v4277_v22 = vadd.f32 %v4276_v48, %v4275_v13 }
 0x3be   :  { %v4221_v57 = vadd.f32 %v4220_v63, %v4219_v38  ;;  %v4782_v51 = vadd.f32 %v11853_v27, %v4214_v42  ;;  %v4904_v1 = vmax.f32 %v12196_v44, 0.0  ;;  %6124 = vrsqrt.f32 %v3150_v15  ;;  %v10590_v42 = vpop.xlane.xlu0 %1691 }
 0x3bf   :  { %v4788_v17 = vadd.f32 %v11853_v27, %v4256_v0  ;;  %v4790_v45 = vadd.f32 %v11853_v27, %v4270_v29  ;;  %v4906_v7 = vmax.f32 %v4778_v14, 0.0  ;;  %v4905_v38 = vmax.f32 %v12197_v8, 0.0 }
 0x3c0   :  { %v4907_v54 = vmax.f32 %v4779_v62, 0.0  ;;  %v4912_v56 = vmax.f32 %v10457_v5, 0.0  ;;  %v4915_v39 = vmax.f32 %v4787_v20, 0.0  ;;  %v4783_v63 = vadd.f32 %v11853_v27, %v4221_v57  ;;  %v2347_v57 = vpop.xlane.xlu1 %2346 }
 0x3c1   :  { %v4908_v26 = vmax.f32 %v4780_v23, 0.0  ;;  %v4909_v28 = vmax.f32 %v4781_v61, 0.0  ;;  %v4914_v13 = vmax.f32 %v4786_v10, 0.0  ;;  %v4791_v15 = vadd.f32 %v11853_v27, %v4277_v22 }
 0x3c2   :  { %v4910_v48 = vmax.f32 %v4782_v51, 0.0  ;;  %v5163_v0 = vsel %vm5114_vm1, %v4905_v38, %v4904_v1  ;;  %v12198_v14 = vmax.f32 %v10454_v11, 0.0  ;;  %v4916_v62 = vmax.f32 %v4788_v17, 0.0 }
 0x3c3   :  { %v4918_v44 = vmax.f32 %v4790_v45, 0.0  ;;  %v5164_v5 = vsel %vm5116_vm2, %v4906_v7, %v5163_v0  ;;  %v2511_v10 = vmul.f32 0.03125, %v2323_v3  ;;  %v2518_v22 = vmul.f32 0.03125, %v2344_v12  ;;  %v12222_v0 = vld [vmem:[#allocation72_spill] sm:$0xff] }
 0x3c4   :  { %v5170_v29 = vsel %vm5114_vm1, %v12198_v14, %v4912_v56  ;;  %v5165_v23 = vsel %vm5118_vm3, %v4907_v54, %v5164_v5  ;;  %v10602_v51 = vmul.f32 0.03125, %v10465_v16  ;;  %v2501_v11 = vmul.f32 0.03125, %v10433_v2  ;;  %v2326_v56 = vpop.xlane.xlu0 %2325 }
 0x3c5   :  { %v5171_v20 = vsel %vm5116_vm2, %v4914_v13, %v5170_v29  ;;  %v5166_v1 = vsel %vm5120_vm4, %v4908_v26, %v5165_v23  ;;  %v4911_v45 = vmax.f32 %v4783_v63, 0.0  ;;  %v4919_v7 = vmax.f32 %v4791_v15, 0.0 }
 0x3c6   :  { %v5172_v61 = vsel %vm5118_vm3, %v4915_v39, %v5171_v20  ;;  %v5167_v8 = vsel %vm5122_vm5, %v4909_v28, %v5166_v1  ;;  %v12199_v38 = vmax.f32 %v10509_v58, 0.0  ;;  %v2509_v3 = vmul.f32 0.03125, %v10490_v35  ;;  %v10636_v20 = vld [vmem:[%s11510_s2 + $0x2] ss:$0 sm:$0xff] }
 0x3c7   :  { %v5173_v17 = vsel %vm5120_vm4, %v4916_v62, %v5172_v61  ;;  %v10613_v12 = vmul.f32 0.03125, %v10449_v32  ;;  %v5168_v16 = vsel %vm5124_vm6, %v4910_v48, %v5167_v8  ;;  %v2767_v26 = vsub.f32 %v2511_v10, %v10519_v31  ;;  %v10624_v48 = vpop.xlane.xlu1 %1715 }
 0x3c8   :  { %v5174_v54 = vsel %vm5122_vm5, %v12199_v38, %v5173_v17  ;;  %v5169_v39 = vsel %vm5126_vm7, %v4911_v45, %v5168_v16  ;;  %v2774_v58 = vsub.f32 %v2518_v22, %v10558_v18  ;;  %v6125_v28 = vpop.eup %6124  ;;  %v2647_v32 = vmul.f32 %v10602_v51, %v10602_v51  ;;  %v12203_v38 = vld [vmem:[#allocation13_spill] sm:$0xff] }
 0x3c9   :  { %v5175_v2 = vsel %vm5124_vm6, %v4918_v44, %v5174_v54  ;;  %v2519_v15 = vmul.f32 0.03125, %v2347_v57  ;;  %v2895_v14 = vmax.f32 %v2767_v26, 0.0  ;;  %v2512_v62 = vmul.f32 0.03125, %v2326_v56 }
 0x3ca   :  { %v5176_v63 = vsel %vm5126_vm7, %v4919_v7, %v5175_v2  ;;  %v2902_v29 = vmax.f32 %v2774_v58, 0.0  ;;  %v4481_v44 = vsel %vm172_vm0, %v3795_v36, 0.0  ;;  %v2757_v31 = vsub.f32 %v2501_v11, %v10481_v43  ;;  %v10678_v58 = vld [vmem:[%s11510_s2 + $0x4] sm:$0xff] }
 0x3cb   :  { %v5908_v35 = vpack.c.bf16 %v5176_v63, %v5169_v39  ;;  %v2640_v18 = vmul.f32 %v10613_v12, %v10613_v12  ;;  %v2775_v5 = vsub.f32 %v2519_v15, %v2647_v32  ;;  %v3660_v57 = vadd.f32 %v10636_v20, %v10538_v21  ;;  %v10670_v63 = vpop.xlane.xlu0 %1694 }
 0x3cc   :  { %v2765_v23 = vsub.f32 %v2509_v3, %v10499_v53  ;;  %v3151_v36 = vadd.f32 1e-05, %v2895_v14  ;;  %v3158_v61 = vadd.f32 1e-05, %v2902_v29  ;;  %v12200_v43 = vsub.f32 %v12180_v25, %v10431_v60  ;;  %v12204_v3 = vld [vmem:[#allocation75_spill] sm:$0xff] }
 0x3cd   :  { %5910 = vmatpush3.bf16.xpose.msk.msra.mxu1 %vm8819_vm8, %v5908_v35  ;;  %v12201_v22 = vsub.f32 %v12187_v50, %v10504_v47  ;;  %v2903_v1 = vmax.f32 %v2775_v5, 0.0  ;;  %v2768_v17 = vsub.f32 %v2512_v62, %v2640_v18  ;;  %v4921_v45 = vmax.f32 %v10568_v37, 0.0  ;;  %v12202_v47 = vld [vmem:[#allocation52_spill] sm:$0xff]  ;;  %v12206_v14 = vld [vmem:[#allocation71_spill] sm:$0xff] }
 0x3ce   :  { %5911 = vmatprep.subr.bf16.mxu1 %v12148_v40  ;;  %v3404_v10 = vmul.f32 %v10565_v33, %v12200_v43  ;;  %v10653_v53 = vadd.f32 %v4426_v52, %v10552_v41  ;;  %v4482_v21 = vrot.slane %v4481_v44, 4  ;;  %6126 = vrsqrt.f32 %v3151_v36  ;;  %v10655_v33 = vpop.xlane.xlu1 %2349  ;;  %v10666_v41 = vld [vmem:[%s11510_s2 + $0x1] ss:$0 sm:$0xff] }
 0x3cf   :  { %v3406_v11 = vmul.f32 %v6125_v28, %v12201_v22  ;;  %v2885_v7 = vmax.f32 %v2757_v31, 0.0  ;;  %6128 = vrsqrt.f32 %v3158_v61  ;;  %v3159_v60 = vadd.f32 1e-05, %v2903_v1  ;;  %v12208_v31 = vld [vmem:[#allocation87_spill] sm:$0xff] }
 0x3d0   :  { %v2896_v25 = vmax.f32 %v2768_v17, 0.0  ;;  %v3030_v50 = vsub.f32 %v12202_v47, %v10522_v24  ;;  %v2893_v8 = vmax.f32 %v2765_v23, 0.0  ;;  %v4323_v54 = vrot.slane %v12203_v38, 2  ;;  %v12209_v23 = vld [vmem:[#allocation16_spill] sm:$0xff]  ;;  %v12212_v1 = vld [vmem:[#allocation67_spill] sm:$0xff] }
 0x3d1   :  { %v12205_v16 = vrot.slane %v12204_v3, 4  ;;  %v3536_v52 = vmul.f32 %v10666_v41, %v3404_v10  ;;  %v3538_v56 = vmul.f32 %v10666_v41, %v3406_v11  ;;  %6130 = vrsqrt.f32 %v3159_v60 }
 0x3d2   :  { %v3152_v39 = vadd.f32 1e-05, %v2896_v25  ;;  %v4428_v24 = vrot.slane %v10653_v53, 2  ;;  %v10673_v26 = vadd.f32 %v4482_v21, %v4481_v44  ;;  %v10681_v28 = vmul.f32 %v10678_v58, %v3660_v57  ;;  %v10700_v11 = vpop.xlane.xlu1 %1718  ;;  %v12213_v21 = vld [vmem:[#allocation42_spill] sm:$0xff] }
 0x3d3   :  { %v4329_v2 = vadd.f32 %v12205_v16, %v12204_v3  ;;  %v3141_v35 = vadd.f32 1e-05, %v2885_v7  ;;  %v10684_v15 = vmul.f32 0.03125, %v10524_v59  ;;  %v12207_v29 = vrot.slane %v12206_v14, 2  ;;  %v12211_v59 = vld [vmem:[#allocation18_spill] sm:$0xff]  ;;  %v10712_v3 = vpop.xlane.xlu0 %2328 }
 0x3d4   :  { %v4379_v44 = vrot.slane %v12208_v31, 2  ;;  %v3149_v18 = vadd.f32 1e-05, %v2893_v8  ;;  %6132 = vrsqrt.f32 %v3152_v39  ;;  %v4324_v5 = vadd.f32 %v4323_v54, %v12203_v38 }
 0x3d5   :  { %v4330_v32 = vrot.slane %v4329_v2, 2  ;;  %v4317_v62 = vadd.f32 %v12207_v29, %v12206_v14  ;;  %v12210_v36 = vrot.slane %v12209_v23, 4  ;;  %v10695_v61 = vadd.f32 %v10636_v20, %v3536_v52  ;;  %v12217_v14 = vld [vmem:[#allocation19_spill] sm:$0xff] }
 0x3d6   :  { %v3031_v43 = vsub.f32 %v12211_v59, %v10602_v51  ;;  %v3670_v10 = vadd.f32 %v10636_v20, %v3538_v56  ;;  %v3024_v17 = vsub.f32 %v12212_v1, %v10613_v12  ;;  %v12214_v7 = vrot.slane %v12213_v21, 2  ;;  %v12215_v51 = vld [vmem:[#allocation9_spill] sm:$0xff] }
 0x3d7   :  { %v4385_v57 = vadd.f32 %v12210_v36, %v12209_v23  ;;  %v4331_v22 = vadd.f32 %v4330_v32, %v4329_v2  ;;  %v4380_v25 = vadd.f32 %v4379_v44, %v12208_v31  ;;  %6134 = vrsqrt.f32 %v3141_v35  ;;  %v12218_v44 = vld [vmem:[#allocation12_spill] sm:$0xff] }
 0x3d8   :  { %v4373_v60 = vadd.f32 %v12214_v7, %v12213_v21  ;;  %v10709_v8 = vmul.f32 0.03125, %v10486_v55  ;;  %v4311_v38 = vrot.slane %v12215_v51, 1  ;;  %v4318_v54 = vrot.slane %v4317_v62, 1  ;;  %v6127_v16 = vpop.eup %6126  ;;  %v12220_v7 = vld [vmem:[#allocation15_spill] sm:$0xff] }
 0x3d9   :  { %v4386_v47 = vrot.slane %v4385_v57, 2  ;;  %6136 = vrsqrt.f32 %v3149_v18  ;;  %v10716_v12 = vmul.f32 %v10684_v15, %v10684_v15  ;;  %v4325_v2 = vrot.slane %v4324_v5, 1  ;;  %v6129_v56 = vpop.eup %6128 }
 0x3da   :  { %v3798_v39 = vmul.f32 %v10678_v58, %v3670_v10  ;;  %v12216_v55 = vsub.f32 %v12188_v9, %v10506_v4  ;;  %v4332_v35 = vrot.slane %v4331_v22, 1  ;;  %v4367_v29 = vrot.slane %v12217_v14, 1 }
 0x3db   :  { %v4387_v52 = vadd.f32 %v4386_v47, %v4385_v57  ;;  %v3414_v31 = vmul.f32 %v6129_v56, %v3030_v50  ;;  %v12219_v18 = vrot.slane %v12218_v44, 1  ;;  %v4374_v36 = vrot.slane %v4373_v60, 1  ;;  %v6131_v1 = vpop.eup %6130  ;;  %v10731_v47 = vpop.xlane.xlu1 %2352 }
 0x3dc   :  { %v3407_v32 = vmul.f32 %v6127_v16, %v12216_v55  ;;  %v4381_v59 = vrot.slane %v4380_v25, 1  ;;  %v4312_v21 = vadd.f32 %v4311_v38, %v12215_v51  ;;  %v4319_v10 = vadd.f32 %v4318_v54, %v4317_v62  ;;  %v10740_v51 = vpop.xlane.xlu0 %1697 }
 0x3dd   :  { %v4305_v23 = vadd.f32 %v12219_v18, %v12218_v44  ;;  %v12221_v4 = vrot.slane %v12220_v7, 1  ;;  %v3546_v50 = vmul.f32 %v10666_v41, %v3414_v31  ;;  %v3415_v16 = vmul.f32 %v6131_v1, %v3031_v43  ;;  %v12223_v31 = vld [vmem:[#allocation77_spill] sm:$0xff]  ;;  %v12224_v1 = vld [vmem:[#allocation76_spill] sm:$0xff] }
 0x3de   :  { %v3539_v57 = vmul.f32 %v10666_v41, %v3407_v32  ;;  %v4326_v56 = vadd.f32 %v4325_v2, %v4324_v5  ;;  %v4388_v55 = vrot.slane %v4387_v52, 1  ;;  %v10735_v44 = vsel %vm172_vm0, %v3798_v39, 0.0  ;;  %v6133_v38 = vpop.eup %6132 }
 0x3df   :  { %v4361_v9 = vadd.f32 %v12221_v4, %v12220_v7  ;;  %v4333_v18 = vadd.f32 %v4332_v35, %v4331_v22  ;;  %v4368_v32 = vadd.f32 %v4367_v29, %v12217_v14  ;;  %v4794_v62 = vadd.f32 %v11853_v27, %v12222_v0 }
 0x3e0   :  { %v3547_v54 = vmul.f32 %v10666_v41, %v3415_v16  ;;  %v4375_v7 = vadd.f32 %v4374_v36, %v4373_v60  ;;  %v4382_v4 = vadd.f32 %v4381_v59, %v4380_v25  ;;  %v4802_v5 = vadd.f32 %v11853_v27, %v12223_v31 }
 0x3e1   :  { %v3671_v43 = vadd.f32 %v10636_v20, %v3539_v57  ;;  %v4795_v2 = vadd.f32 %v11853_v27, %v4305_v23  ;;  %v4796_v22 = vadd.f32 %v11853_v27, %v4312_v21  ;;  %v4797_v39 = vadd.f32 %v11853_v27, %v4319_v10  ;;  %v6135_v60 = vpop.eup %6134  ;;  %v10755_v23 = vpop.xlane.xlu1 %1721 }
 0x3e2   :  { %v3678_v0 = vadd.f32 %v10636_v20, %v3546_v50  ;;  %v4389_v35 = vadd.f32 %v4388_v55, %v4387_v52  ;;  %v4798_v14 = vadd.f32 %v11853_v27, %v4326_v56  ;;  %v4803_v29 = vadd.f32 %v11853_v27, %v4361_v9  ;;  %v12225_v55 = vld [vmem:[#allocation74_spill] sm:$0xff] }
 0x3e3   :  { %v3408_v25 = vmul.f32 %v6133_v38, %v3024_v17  ;;  %v4799_v36 = vadd.f32 %v11853_v27, %v4333_v18  ;;  %v4804_v59 = vadd.f32 %v11853_v27, %v4368_v32  ;;  %v4928_v57 = vmax.f32 %v12224_v1, 0.0  ;;  %v6137_v21 = vpop.eup %6136  ;;  %v10762_v38 = vpop.xlane.xlu0 %2331 }
 0x3e4   :  { %v3679_v10 = vadd.f32 %v10636_v20, %v3547_v54  ;;  %v4805_v50 = vadd.f32 %v11853_v27, %v4375_v7  ;;  %v4806_v52 = vadd.f32 %v11853_v27, %v4382_v4  ;;  %v4930_v16 = vmax.f32 %v4802_v5, 0.0 }
 0x3e5   :  { %v3799_v9 = vmul.f32 %v10678_v58, %v3671_v43  ;;  %v4922_v56 = vmax.f32 %v4794_v62, 0.0  ;;  %v4923_v17 = vmax.f32 %v4795_v2, 0.0  ;;  %v4929_v18 = vmax.f32 %v12225_v55, 0.0 }
 0x3e6   :  { %v3806_v32 = vmul.f32 %v10678_v58, %v3678_v0  ;;  %v4807_v31 = vadd.f32 %v11853_v27, %v4389_v35  ;;  %v4924_v1 = vmax.f32 %v4796_v22, 0.0  ;;  %v4925_v13 = vmax.f32 %v4797_v39, 0.0 }
 0x3e7   :  { %v3540_v54 = vmul.f32 %v10666_v41, %v3408_v25  ;;  %v4931_v7 = vmax.f32 %v4803_v29, 0.0  ;;  %v12226_v4 = vmax.f32 %v10528_v34, 0.0  ;;  %v5184_v5 = vsel %vm5114_vm1, %v4929_v18, %v4928_v57  ;;  %v10778_v34 = vpop.xlane.xlu1 %2355 }
 0x3e8   :  { %v3807_v43 = vmul.f32 %v10678_v58, %v3679_v10  ;;  %v4932_v2 = vmax.f32 %v4804_v59, 0.0  ;;  %v5185_v35 = vsel %vm5116_vm2, %v4930_v16, %v5184_v5  ;;  %v4509_v22 = vsel %vm172_vm0, %v3799_v9, 0.0 }
 0x3e9   :  { %v5177_v62 = vsel %vm5114_vm1, %v4921_v45, %v12226_v4  ;;  %v4926_v39 = vmax.f32 %v4798_v14, 0.0  ;;  %v4927_v25 = vmax.f32 %v4799_v36, 0.0  ;;  %v4558_v37 = vsel %vm172_vm0, %v3806_v32, 0.0  ;;  %v10786_v14 = vpop.xlane.xlu0 %1700 }
 0x3ea   :  { %v5178_v0 = vsel %vm5116_vm2, %v4922_v56, %v5177_v62  ;;  %v5186_v57 = vsel %vm5118_vm3, %v4931_v7, %v5185_v35  ;;  %v2520_v59 = vmul.f32 0.03125, %v10655_v33  ;;  %v3672_v10 = vadd.f32 %v10636_v20, %v3540_v54  ;;  %v12231_v35 = vld [vmem:[#allocation53_spill] sm:$0xff] }
 0x3eb   :  { %v5179_v29 = vsel %vm5118_vm3, %v4923_v17, %v5178_v0  ;;  %v4933_v56 = vmax.f32 %v4805_v50, 0.0  ;;  %v4934_v16 = vmax.f32 %v4806_v52, 0.0  ;;  %v4565_v36 = vsel %vm172_vm0, %v3807_v43, 0.0 }
 0x3ec   :  { %v5180_v45 = vsel %vm5120_vm4, %v4924_v1, %v5179_v29  ;;  %v5187_v55 = vsel %vm5120_vm4, %v4932_v2, %v5186_v57  ;;  %v2776_v18 = vsub.f32 %v2520_v59, %v10716_v12  ;;  %v12227_v32 = vsub.f32 %v12182_v6, %v10463_v19  ;;  %v10802_v6 = vpop.xlane.xlu1 %1724  ;;  %v12228_v19 = vld [vmem:[#allocation57_spill] sm:$0xff] }
 0x3ed   :  { %v5181_v9 = vsel %vm5122_vm5, %v4925_v13, %v5180_v45  ;;  %v4503_v1 = vrot.slane %v10735_v44, 4  ;;  %v4510_v50 = vrot.slane %v4509_v22, 4  ;;  %v4559_v13 = vrot.slane %v4558_v37, 4  ;;  %v10816_v59 = vpop.xlane.xlu0 %2334 }
 0x3ee   :  { %v5182_v17 = vsel %vm5124_vm6, %v4926_v39, %v5181_v9  ;;  %v3397_v33 = vmul.f32 %v6135_v60, %v12227_v32  ;;  %v4935_v54 = vmax.f32 %v4807_v31, 0.0  ;;  %v5188_v7 = vsel %vm5122_vm5, %v4933_v56, %v5187_v55  ;;  %v12229_v60 = vld [vmem:[#allocation20_spill] sm:$0xff] }
 0x3ef   :  { %v5183_v52 = vsel %vm5126_vm7, %v4927_v25, %v5182_v17  ;;  %v2904_v4 = vmax.f32 %v2776_v18, 0.0  ;;  %v3796_v62 = vmul.f32 %v10678_v58, %v10695_v61  ;;  %v4566_v5 = vrot.slane %v4565_v36, 4 }
 0x3f0   :  { %v3800_v12 = vmul.f32 %v10678_v58, %v3672_v10  ;;  %v5189_v43 = vsel %vm5124_vm6, %v4934_v16, %v5188_v7  ;;  %v12230_v2 = vsub.f32 %v12228_v19, %v12229_v60  ;;  %v10808_v39 = vmul.f32 0.03125, %v12231_v35 }
 0x3f1   :  { %v5190_v31 = vsel %vm5126_vm7, %v4935_v54, %v5189_v43  ;;  %v3160_v25 = vadd.f32 1e-05, %v2904_v4  ;;  %v4432_v61 = vsel %vm172_vm0, %v10681_v28, 0.0  ;;  %v3529_v29 = vmul.f32 %v10666_v41, %v3397_v33  ;;  %v10841_v4 = vpop.xlane.xlu0 %2337 }
 0x3f2   :  { %v3405_v0 = vmul.f32 %v6137_v21, %v12230_v2  ;;  %v2641_v45 = vmul.f32 %v10709_v8, %v10709_v8  ;;  %v5912_v57 = vpack.c.bf16 %v5190_v31, %v5183_v52  ;;  %v4504_v10 = vadd.f32 %v4503_v1, %v10735_v44 }
 0x3f3   :  { %v4511_v21 = vadd.f32 %v4510_v50, %v4509_v22  ;;  %v4560_v56 = vadd.f32 %v4559_v13, %v4558_v37  ;;  %v10820_v16 = vmul.f32 0.03125, %v10590_v42  ;;  %v4567_v9 = vadd.f32 %v4566_v5, %v4565_v36 }
 0x3f4   :  { %v4516_v17 = vsel %vm172_vm0, %v3800_v12, 0.0  ;;  %5914 = vmatpush3.bf16.xpose.msk.msra.mxu1 %vm8819_vm8, %v5912_v57  ;;  %6138 = vrsqrt.f32 %v3160_v25  ;;  %v2513_v28 = vmul.f32 0.03125, %v10712_v3  ;;  %v4488_v55 = vsel %vm172_vm0, %v3796_v62, 0.0  ;;  %v10837_v3 = vpop.xlane.xlu1 %2358 }
 0x3f5   :  { %v3537_v18 = vmul.f32 %v10666_v41, %v3405_v0  ;;  %v2649_v44 = vmul.f32 %v10808_v39, %v10808_v39  ;;  %v2521_v22 = vmul.f32 0.03125, %v10731_v47  ;;  %5915 = vmatprep.subr.bf16.mxu1 %v12148_v40  ;;  %v3661_v42 = vadd.f32 %v10636_v20, %v3529_v29 }
 0x3f6   :  { %v10834_v37 = vmul.f32 0.03125, %v10624_v48  ;;  %v2769_v36 = vsub.f32 %v2513_v28, %v2641_v45  ;;  %v2514_v32 = vmul.f32 0.03125, %v10762_v38  ;;  %v4505_v33 = vrot.slane %v4504_v10, 2 }
 0x3f7   :  { %v4512_v1 = vrot.slane %v4511_v21, 2  ;;  %v4561_v50 = vrot.slane %v4560_v56, 2  ;;  %v4517_v52 = vrot.slane %v4516_v17, 4  ;;  %v4433_v13 = vrot.slane %v4432_v61, 4 }
 0x3f8   :  { %v4568_v54 = vrot.slane %v4567_v9, 2  ;;  %v2642_v47 = vmul.f32 %v10820_v16, %v10820_v16  ;;  %v2777_v7 = vsub.f32 %v2521_v22, %v2649_v44  ;;  %v4484_v48 = vrot.slane %v10673_v26, 2  ;;  %v10856_v57 = vpop.xlane.xlu1 %2361 }
 0x3f9   :  { %v4489_v62 = vrot.slane %v4488_v55, 4  ;;  %v3669_v5 = vadd.f32 %v10636_v20, %v3537_v18  ;;  %v2522_v38 = vmul.f32 0.03125, %v10778_v34  ;;  %v3789_v12 = vmul.f32 %v10678_v58, %v3661_v42 }
 0x3fa   :  { %v2650_v43 = vmul.f32 %v10834_v37, %v10834_v37  ;;  %v2897_v19 = vmax.f32 %v2769_v36, 0.0  ;;  %v2770_v60 = vsub.f32 %v2514_v32, %v2642_v47  ;;  %v4506_v2 = vadd.f32 %v4505_v33, %v4504_v10  ;;  %v12232_v10 = vld [vmem:[#allocation92_spill] sm:$0xff]  ;;  %v12233_v32 = vld [vmem:[#allocation65_spill] sm:$0xff] }
 0x3fb   :  { %v4513_v0 = vadd.f32 %v4512_v1, %v4511_v21  ;;  %v4562_v35 = vadd.f32 %v4561_v50, %v4560_v56  ;;  %v4518_v31 = vadd.f32 %v4517_v52, %v4516_v17  ;;  %v10852_v25 = vadd.f32 %v4428_v24, %v10653_v53 }
 0x3fc   :  { %v10854_v29 = vadd.f32 %v4433_v13, %v4432_v61  ;;  %v4569_v45 = vadd.f32 %v4568_v54, %v4567_v9  ;;  %v2905_v34 = vmax.f32 %v2777_v7, 0.0  ;;  %v10859_v28 = vadd.f32 %v4484_v48, %v10673_v26  ;;  %v10867_v9 = vpop.xlane.xlu0 %1727 }
 0x3fd   :  { %v10861_v18 = vadd.f32 %v4489_v62, %v4488_v55  ;;  %v3032_v21 = vsub.f32 %v12232_v10, %v10684_v15  ;;  %v2778_v56 = vsub.f32 %v2522_v38, %v2650_v43  ;;  %v4439_v44 = vsel %vm172_vm0, %v3789_v12, 0.0  ;;  %v10877_v62 = vpop.xlane.xlu1 %1730 }
 0x3fe   :  { %v6139_v17 = vpop.eup %6138  ;;  %v3797_v53 = vmul.f32 %v10678_v58, %v3669_v5  ;;  %v3153_v24 = vadd.f32 1e-05, %v2897_v19  ;;  %v2898_v61 = vmax.f32 %v2770_v60, 0.0  ;;  %v4507_v22 = vrot.slane %v4506_v2, 1 }
 0x3ff   :  { %v4514_v42 = vrot.slane %v4513_v0, 1  ;;  %v4563_v36 = vrot.slane %v4562_v35, 1  ;;  %v4519_v26 = vrot.slane %v4518_v31, 2  ;;  %v4435_v55 = vrot.slane %v10854_v29, 2 }
 0x400   :  { %v3025_v33 = vsub.f32 %v12233_v32, %v10709_v8  ;;  %v4570_v15 = vrot.slane %v4569_v45, 1  ;;  %v3161_v1 = vadd.f32 1e-05, %v2905_v34  ;;  %v4491_v50 = vrot.slane %v10861_v18, 2  ;;  %v10883_v10 = vpop.xlane.xlu0 %1751 }
 0x401   :  { %v4440_v52 = vrot.slane %v4439_v44, 4  ;;  %v3416_v13 = vmul.f32 %v6139_v17, %v3032_v21  ;;  %v2906_v54 = vmax.f32 %v2778_v56, 0.0  ;;  %v4495_v47 = vsel %vm172_vm0, %v3797_v53, 0.0  ;;  %v12234_v53 = vld [vmem:[#allocation73_spill] sm:$0xff] }
 0x402   :  { %v10875_v7 = vmul.f32 0.03125, %v10670_v63  ;;  %6140 = vrsqrt.f32 %v3153_v24  ;;  %v3154_v48 = vadd.f32 1e-05, %v2898_v61  ;;  %v4508_v5 = vadd.f32 %v4507_v22, %v4506_v2  ;;  %v10907_v22 = vpop.xlane.xlu1 %1754 }
 0x403   :  { %v4515_v38 = vadd.f32 %v4514_v42, %v4513_v0  ;;  %v4564_v12 = vadd.f32 %v4563_v36, %v4562_v35  ;;  %v4520_v43 = vadd.f32 %v4519_v26, %v4518_v31  ;;  %v4571_v19 = vadd.f32 %v4570_v15, %v4569_v45  ;;  %v12238_v45 = vld [vmem:[#allocation93_spill] sm:$0xff]  ;;  %v12240_v15 = vld [vmem:[#allocation79_spill] sm:$0xff] }
 0x404   :  { %v10880_v60 = vmul.f32 0.03125, %v10700_v11  ;;  %6142 = vrsqrt.f32 %v3161_v1  ;;  %v2515_v34 = vmul.f32 0.03125, %v10816_v59  ;;  %v4496_v21 = vrot.slane %v4495_v47, 4 }
 0x405   :  { %v3548_v63 = vmul.f32 %v10666_v41, %v3416_v13  ;;  %v3162_v56 = vadd.f32 1e-05, %v2906_v54  ;;  %v4441_v17 = vadd.f32 %v4440_v52, %v4439_v44  ;;  %v3033_v2 = vsub.f32 %v12234_v53, %v10808_v39  ;;  %v10918_v54 = vpop.xlane.xlu0 %2340 }
 0x406   :  { %v2643_v0 = vmul.f32 %v10875_v7, %v10875_v7  ;;  %6144 = vrsqrt.f32 %v3154_v48  ;;  %v2523_v11 = vmul.f32 0.03125, %v10837_v3  ;;  %v10892_v35 = vadd.f32 %v11853_v27, %v4508_v5 }
 0x407   :  { %v10895_v59 = vadd.f32 %v11853_v27, %v4515_v38  ;;  %v10898_v31 = vadd.f32 %v11853_v27, %v4564_v12  ;;  %v3026_v44 = vsub.f32 %v12238_v45, %v10820_v16  ;;  %v10903_v39 = vadd.f32 %v11853_v27, %v4571_v19  ;;  %v12245_v38 = vld [vmem:[#allocation25_spill] sm:$0xff] }
 0x408   :  { %12235 = vst [vmem:[#allocation107_spill] sm:$0xff] %v10892_v35  ;;  %v4521_v24 = vrot.slane %v4520_v43, 1  ;;  %v2651_v61 = vmul.f32 %v10880_v60, %v10880_v60  ;;  %v2771_v3 = vsub.f32 %v2515_v34, %v2643_v0  ;;  %v3680_v42 = vadd.f32 %v10636_v20, %v3548_v63 }
 0x409   :  { %12236 = vst [vmem:[#allocation59_spill] sm:$0xff] %v10895_v59  ;;  %12237 = vst [vmem:[#allocation8_spill] sm:$0xff] %v10898_v31  ;;  %6146 = vrsqrt.f32 %v3162_v56  ;;  %v4442_v36 = vrot.slane %v4441_v17, 2  ;;  %v4497_v26 = vadd.f32 %v4496_v21, %v4495_v47  ;;  %v3034_v1 = vsub.f32 %v12240_v15, %v10834_v37  ;;  %v12241_v47 = vld [vmem:[#allocation70_spill] sm:$0xff]  ;;  %v10960_v32 = vpop.xlane.xlu0 %1733  ;;  %v12251_v59 = vld [vmem:[#allocation33_spill] sm:$0xff] }
 0x40a   :  { %12239 = vst [vmem:[#allocation54_spill] sm:$0xff] %v10903_v39  ;;  %v10913_v16 = vmul.f32 0.03125, %v10740_v51  ;;  %v10916_v52 = vmul.f32 0.03125, %v10755_v23  ;;  %v2779_v13 = vsub.f32 %v2523_v11, %v2651_v61  ;;  %v10925_v37 = vadd.f32 %v4521_v24, %v4520_v43  ;;  %v12243_v51 = vld [vmem:[#allocation90_spill] sm:$0xff] }
 0x40b   :  { %v2899_v23 = vmax.f32 %v2771_v3, 0.0  ;;  %v4436_v21 = vadd.f32 %v4435_v55, %v10854_v29  ;;  %v3808_v56 = vmul.f32 %v10678_v58, %v3680_v42  ;;  %v4443_v53 = vadd.f32 %v4442_v36, %v4441_v17  ;;  %v12244_v43 = vld [vmem:[#allocation78_spill] sm:$0xff]  ;;  %v10942_v29 = vpop.xlane.xlu1 %2364 }
 0x40c   :  { %v6141_v19 = vpop.eup %6140  ;;  %12242 = vst [vmem:[#allocation81_spill] sm:$0xff] %v10925_v37  ;;  %v4498_v0 = vrot.slane %v4497_v26, 2  ;;  %v10934_v45 = vmul.f32 %v10913_v16, %v10913_v16  ;;  %v10940_v61 = vmul.f32 %v10916_v52, %v10916_v52  ;;  %v2907_v3 = vmax.f32 %v2779_v13, 0.0 }
 0x40d   :  { %v3409_v55 = vmul.f32 %v6141_v19, %v3025_v33  ;;  %v10948_v17 = vmul.f32 0.03125, %v10786_v14  ;;  %v4430_v42 = vrot.slane %v10852_v25, 1  ;;  %v4492_v36 = vadd.f32 %v4491_v50, %v10861_v18 }
 0x40e   :  { %v6143_v11 = vpop.eup %6142  ;;  %v10955_v63 = vmul.f32 0.03125, %v10802_v6  ;;  %v3155_v13 = vadd.f32 1e-05, %v2899_v23  ;;  %v12246_v5 = vrot.slane %v12245_v38, 1  ;;  %v4437_v8 = vrot.slane %v4436_v21, 1  ;;  %v12248_v6 = vld [vmem:[#allocation51_spill] sm:$0xff] }
 0x40f   :  { %v4572_v14 = vsel %vm172_vm0, %v3808_v56, 0.0  ;;  %v3417_v33 = vmul.f32 %v6143_v11, %v3033_v2  ;;  %v4444_v19 = vrot.slane %v4443_v53, 1  ;;  %v4499_v24 = vadd.f32 %v4498_v0, %v4497_v26 }
 0x410   :  { %v6145_v15 = vpop.eup %6144  ;;  %v4417_v48 = vadd.f32 %v12246_v5, %v12245_v38  ;;  %v3163_v34 = vadd.f32 1e-05, %v2907_v3  ;;  %v12247_v18 = vrot.slane %v10547_v46, 1  ;;  %v12249_v23 = vrot.slane %v12248_v6, 1  ;;  %v10975_v3 = vpop.xlane.xlu1 %1757 }
 0x411   :  { %v4486_v39 = vrot.slane %v10859_v28, 1  ;;  %v3541_v38 = vmul.f32 %v10666_v41, %v3409_v55  ;;  %v3410_v31 = vmul.f32 %v6145_v15, %v3026_v44  ;;  %v4431_v56 = vadd.f32 %v4430_v42, %v10852_v25 }
 0x412   :  { %v4424_v50 = vadd.f32 %v12247_v18, %v10547_v46  ;;  %v4473_v12 = vadd.f32 %v12249_v23, %v12248_v6  ;;  %v4493_v2 = vrot.slane %v4492_v36, 1  ;;  %v4573_v11 = vrot.slane %v4572_v14, 4 }
 0x413   :  { %v6147_v5 = vpop.eup %6146  ;;  %6148 = vrsqrt.f32 %v3155_v13  ;;  %v4438_v26 = vadd.f32 %v4437_v8, %v4436_v21  ;;  %v12250_v0 = vrot.slane %v10549_v30, 1  ;;  %v3549_v18 = vmul.f32 %v10666_v41, %v3417_v33  ;;  %v10982_v21 = vpop.xlane.xlu0 %1736 }
 0x414   :  { %v4445_v6 = vadd.f32 %v4444_v19, %v4443_v53  ;;  %v4500_v23 = vrot.slane %v4499_v24, 1  ;;  %v4810_v55 = vadd.f32 %v11853_v27, %v12251_v59  ;;  %v3418_v44 = vmul.f32 %v6147_v5, %v3034_v1  ;;  %12252 = vst [vmem:[#allocation100_spill] sm:$0xff] %v10982_v21  ;;  %v12253_v1 = vld [vmem:[#allocation56_spill] sm:$0xff] }
 0x415   :  { %v4480_v46 = vadd.f32 %v12250_v0, %v10549_v30  ;;  %6150 = vrsqrt.f32 %v3163_v34  ;;  %v4487_v25 = vadd.f32 %v4486_v39, %v10859_v28  ;;  %v4811_v42 = vadd.f32 %v11853_v27, %v4417_v48 }
 0x416   :  { %v3673_v15 = vadd.f32 %v10636_v20, %v3541_v38  ;;  %v3542_v30 = vmul.f32 %v10666_v41, %v3410_v31  ;;  %v4494_v13 = vadd.f32 %v4493_v2, %v4492_v36  ;;  %v4812_v8 = vadd.f32 %v11853_v27, %v4424_v50  ;;  %v12254_v50 = vld [vmem:[#allocation23_spill] sm:$0xff]  ;;  %v11000_v38 = vpop.xlane.xlu1 %1760 }
 0x417   :  { %v10987_v53 = vadd.f32 %v4573_v11, %v4572_v14  ;;  %v4813_v33 = vadd.f32 %v11853_v27, %v4431_v56  ;;  %v4814_v59 = vadd.f32 %v11853_v27, %v4438_v26  ;;  %v4818_v28 = vadd.f32 %v11853_v27, %v12253_v1  ;;  %12255 = vst [vmem:[#allocation22_spill] sm:$0xff] %v11000_v38  ;;  %v12256_v26 = vld [vmem:[#allocation101_spill] sm:$0xff] }
 0x418   :  { %v3681_v39 = vadd.f32 %v10636_v20, %v3549_v18  ;;  %v4501_v48 = vadd.f32 %v4500_v23, %v4499_v24  ;;  %v4815_v34 = vadd.f32 %v11853_v27, %v4445_v6  ;;  %v4819_v19 = vadd.f32 %v11853_v27, %v4473_v12  ;;  %v12257_v12 = vld [vmem:[#allocation10_spill] sm:$0xff]  ;;  %v12258_v6 = vld [vmem:[#allocation95_spill] sm:$0xff] }
 0x419   :  { %v3550_v31 = vmul.f32 %v10666_v41, %v3418_v44  ;;  %v4820_v36 = vadd.f32 %v11853_v27, %v4480_v46  ;;  %v4821_v14 = vadd.f32 %v11853_v27, %v4487_v25  ;;  %v4937_v5 = vmax.f32 %v12254_v50, 0.0  ;;  %v11008_v44 = vpop.xlane.xlu0 %2367 }
 0x41a   :  { %v3801_v56 = vmul.f32 %v10678_v58, %v3673_v15  ;;  %v3674_v2 = vadd.f32 %v10636_v20, %v3542_v30  ;;  %v4822_v24 = vadd.f32 %v11853_v27, %v4494_v13  ;;  %v4938_v11 = vmax.f32 %v4810_v55, 0.0 }
 0x41b   :  { %v4936_v0 = vmax.f32 %v12256_v26, 0.0  ;;  %v4944_v18 = vmax.f32 %v12257_v12, 0.0  ;;  %v4945_v23 = vmax.f32 %v12258_v6, 0.0  ;;  %v4946_v46 = vmax.f32 %v4818_v28, 0.0 }
 0x41c   :  { %v4823_v25 = vadd.f32 %v11853_v27, %v4501_v48  ;;  %v4939_v1 = vmax.f32 %v4811_v42, 0.0  ;;  %v4940_v50 = vmax.f32 %v4812_v8, 0.0  ;;  %v4941_v35 = vmax.f32 %v4813_v33, 0.0  ;;  %v2371_v33 = vpop.xlane.xlu1 %2370 }
 0x41d   :  { %v6149_v15 = vpop.eup %6148  ;;  %v4947_v37 = vmax.f32 %v4819_v19, 0.0  ;;  %v4948_v30 = vmax.f32 %v4820_v36, 0.0  ;;  %v4949_v38 = vmax.f32 %v4821_v14, 0.0  ;;  %v5191_v55 = vsel %vm5114_vm1, %v4937_v5, %v4936_v0 }
 0x41e   :  { %v5192_v13 = vsel %vm5116_vm2, %v4938_v11, %v5191_v55  ;;  %v5198_v26 = vsel %vm5114_vm1, %v4945_v23, %v4944_v18  ;;  %v2516_v12 = vmul.f32 0.03125, %v10841_v4  ;;  %v2524_v28 = vmul.f32 0.03125, %v10856_v57 }
 0x41f   :  { %v6151_v6 = vpop.eup %6150  ;;  %v4942_v21 = vmax.f32 %v4814_v59, 0.0  ;;  %v4943_v48 = vmax.f32 %v4815_v34, 0.0  ;;  %v4950_v42 = vmax.f32 %v4822_v24, 0.0  ;;  %v5199_v8 = vsel %vm5116_vm2, %v4946_v46, %v5198_v26  ;;  %v2392_v34 = vpop.xlane.xlu0 %2391 }
 0x420   :  { %v4951_v19 = vmax.f32 %v4823_v25, 0.0  ;;  %v5193_v36 = vsel %vm5118_vm3, %v4939_v1, %v5192_v13  ;;  %v5200_v14 = vsel %vm5118_vm3, %v4947_v37, %v5199_v8  ;;  %v2772_v5 = vsub.f32 %v2516_v12, %v10934_v45 }
 0x421   :  { %v3809_v11 = vmul.f32 %v10678_v58, %v3681_v39  ;;  %v5194_v4 = vsel %vm5120_vm4, %v4940_v50, %v5193_v36  ;;  %v5201_v57 = vsel %vm5120_vm4, %v4948_v30, %v5200_v14  ;;  %v2780_v59 = vsub.f32 %v2524_v28, %v10940_v61 }
 0x422   :  { %v3682_v24 = vadd.f32 %v10636_v20, %v3550_v31  ;;  %v12259_v0 = vsub.f32 %v12241_v47, %v10875_v7  ;;  %v5195_v23 = vsel %vm5122_vm5, %v4941_v35, %v5194_v4  ;;  %v5202_v37 = vsel %vm5122_vm5, %v4949_v38, %v5201_v57 }
 0x423   :  { %v4523_v45 = vsel %vm172_vm0, %v3801_v56, 0.0  ;;  %v3802_v39 = vmul.f32 %v10678_v58, %v3674_v2  ;;  %v5196_v46 = vsel %vm5124_vm6, %v4942_v21, %v5195_v23  ;;  %v5203_v25 = vsel %vm5124_vm6, %v4950_v42, %v5202_v37  ;;  %v2395_v2 = vpop.xlane.xlu1 %2394  ;;  %v12261_v21 = vld [vmem:[#allocation106_spill] sm:$0xff]  ;;  %v11057_v12 = vpop.xlane.xlu0 %1739 }
 0x424   :  { %v3411_v18 = vmul.f32 %v6149_v15, %v12259_v0  ;;  %v12260_v61 = vsub.f32 %v12243_v51, %v10880_v60  ;;  %v5197_v1 = vsel %vm5126_vm7, %v4943_v48, %v5196_v46  ;;  %v5204_v7 = vsel %vm5126_vm7, %v4951_v19, %v5203_v25 }
 0x425   :  { %v2900_v47 = vmax.f32 %v2772_v5, 0.0  ;;  %v4579_v35 = vsel %vm172_vm0, %v3809_v11, 0.0  ;;  %v5916_v38 = vpack.c.bf16 %v5204_v7, %v5197_v1  ;;  %v2908_v50 = vmax.f32 %v2780_v59, 0.0 }
 0x426   :  { %v3419_v31 = vmul.f32 %v6151_v6, %v12260_v61  ;;  %v11041_v56 = vmul.f32 0.03125, %v10867_v9  ;;  %v3036_v15 = vsub.f32 %v12261_v21, %v10916_v52  ;;  %v2645_v60 = vmul.f32 %v10948_v17, %v10948_v17  ;;  %v12267_v21 = vld [vmem:[#allocation83_spill] sm:$0xff] }
 0x427   :  { %v2653_v51 = vmul.f32 %v10955_v63, %v10955_v63  ;;  %v11050_v30 = vmul.f32 0.03125, %v10877_v62  ;;  %v4575_v55 = vrot.slane %v10987_v53, 2  ;;  %v4524_v13 = vrot.slane %v4523_v45, 4  ;;  %5918 = vmatpush3.bf16.xpose.msk.msra.mxu1 %vm8819_vm8, %v5916_v38  ;;  %v2374_v37 = vpop.xlane.xlu0 %2373 }
 0x428   :  { %v3810_v26 = vmul.f32 %v10678_v58, %v3682_v24  ;;  %v3543_v9 = vmul.f32 %v10666_v41, %v3411_v18  ;;  %v4580_v28 = vrot.slane %v4579_v35, 4  ;;  %v11060_v6 = vsel %vm172_vm0, %v3802_v39, 0.0  ;;  %5919 = vmatprep.subr.bf16.mxu1 %v12148_v40 }
 0x429   :  { %v3551_v48 = vmul.f32 %v10666_v41, %v3419_v31  ;;  %v3156_v62 = vadd.f32 1e-05, %v2900_v47  ;;  %v3164_v42 = vadd.f32 1e-05, %v2908_v50  ;;  %v2654_v8 = vmul.f32 %v11041_v56, %v11041_v56 }
 0x42a   :  { %v11067_v19 = vmul.f32 0.03125, %v10907_v22  ;;  %v2526_v36 = vmul.f32 0.03125, %v11008_v44  ;;  %v2655_v14 = vmul.f32 %v11050_v30, %v11050_v30  ;;  %v11073_v5 = vmul.f32 0.03125, %v10883_v10  ;;  %v11079_v22 = vpop.xlane.xlu1 %1763 }
 0x42b   :  { %v2517_v11 = vmul.f32 0.03125, %v10918_v54  ;;  %v2527_v4 = vmul.f32 0.03125, %v2371_v33  ;;  %v4525_v57 = vadd.f32 %v4524_v13, %v4523_v45  ;;  %v4531_v59 = vrot.slane %v11060_v6, 4 }
 0x42c   :  { %v3675_v24 = vadd.f32 %v10636_v20, %v3543_v9  ;;  %v2525_v0 = vmul.f32 0.03125, %v10942_v29  ;;  %6152 = vrsqrt.f32 %v3156_v62  ;;  %v2662_v44 = vmul.f32 %v11073_v5, %v11073_v5 }
 0x42d   :  { %v2782_v18 = vsub.f32 %v2526_v36, %v2654_v8  ;;  %v2783_v23 = vsub.f32 %v2527_v4, %v2655_v14  ;;  %6154 = vrsqrt.f32 %v3164_v42  ;;  %v2663_v10 = vmul.f32 %v11067_v19, %v11067_v19 }
 0x42e   :  { %v2534_v54 = vmul.f32 0.03125, %v2392_v34  ;;  %v2535_v33 = vmul.f32 0.03125, %v2395_v2  ;;  %v3683_v45 = vadd.f32 %v10636_v20, %v3551_v48  ;;  %v2773_v39 = vsub.f32 %v2517_v11, %v2645_v60  ;;  %v2398_v20 = vpop.xlane.xlu1 %2397 }
 0x42f   :  { %v2910_v46 = vmax.f32 %v2782_v18, 0.0  ;;  %v2911_v29 = vmax.f32 %v2783_v23, 0.0  ;;  %v2781_v25 = vsub.f32 %v2525_v0, %v2653_v51  ;;  %v11087_v61 = vmul.f32 0.03125, %v10960_v32 }
 0x430   :  { %v2790_v31 = vsub.f32 %v2534_v54, %v2662_v44  ;;  %v2791_v1 = vsub.f32 %v2535_v33, %v2663_v10  ;;  %v4581_v7 = vadd.f32 %v4580_v28, %v4579_v35  ;;  %v4586_v47 = vsel %vm172_vm0, %v3810_v26, 0.0  ;;  %v11097_v28 = vpop.xlane.xlu0 %1742 }
 0x431   :  { %v3166_v38 = vadd.f32 1e-05, %v2910_v46  ;;  %v3167_v50 = vadd.f32 1e-05, %v2911_v29  ;;  %v3803_v34 = vmul.f32 %v10678_v58, %v3675_v24  ;;  %v2528_v9 = vmul.f32 0.03125, %v2374_v37 }
 0x432   :  { %v2918_v2 = vmax.f32 %v2790_v31, 0.0  ;;  %v2919_v13 = vmax.f32 %v2791_v1, 0.0  ;;  %v3811_v60 = vmul.f32 %v10678_v58, %v3683_v45  ;;  %v2901_v48 = vmax.f32 %v2773_v39, 0.0 }
 0x433   :  { %v11093_v51 = vmul.f32 0.03125, %v10975_v3  ;;  %6156 = vrsqrt.f32 %v3166_v38  ;;  %v2909_v32 = vmax.f32 %v2781_v25, 0.0  ;;  %v2656_v35 = vmul.f32 %v11087_v61, %v11087_v61  ;;  %v12262_v3 = vld [vmem:[#allocation61_spill] sm:$0xff] }
 0x434   :  { %6158 = vrsqrt.f32 %v3167_v50  ;;  %v3174_v26 = vadd.f32 1e-05, %v2918_v2  ;;  %v4526_v62 = vrot.slane %v4525_v57, 2  ;;  %v4587_v42 = vrot.slane %v4586_v47, 4  ;;  %v2377_v1 = vpop.xlane.xlu0 %2376 }
 0x435   :  { %v3175_v8 = vadd.f32 1e-05, %v2919_v13  ;;  %v2536_v36 = vmul.f32 0.03125, %v2398_v20  ;;  %v4576_v58 = vadd.f32 %v4575_v55, %v10987_v53  ;;  %v3029_v14 = vsub.f32 %v12262_v3, %v10948_v17  ;;  %v12263_v53 = vld [vmem:[#allocation36_spill] sm:$0xff]  ;;  %v12266_v13 = vld [vmem:[#allocation37_spill] sm:$0xff] }
 0x436   :  { %v4537_v11 = vsel %vm172_vm0, %v3803_v34, 0.0  ;;  %v2784_v4 = vsub.f32 %v2528_v9, %v2656_v35  ;;  %v6153_v24 = vpop.eup %6152  ;;  %v4593_v0 = vsel %vm172_vm0, %v3811_v60, 0.0  ;;  %v3157_v44 = vadd.f32 1e-05, %v2901_v48 }
 0x437   :  { %v2664_v18 = vmul.f32 %v11093_v51, %v11093_v51  ;;  %6160 = vrsqrt.f32 %v3174_v26  ;;  %v6155_v23 = vpop.eup %6154  ;;  %v4582_v10 = vrot.slane %v4581_v7, 2  ;;  %v4532_v54 = vadd.f32 %v4531_v59, %v11060_v6  ;;  %v12265_v59 = vld [vmem:[#allocation100_spill] sm:$0xff] }
 0x438   :  { %v3037_v55 = vsub.f32 %v12263_v53, %v10955_v63  ;;  %v3165_v33 = vadd.f32 1e-05, %v2909_v32  ;;  %v4527_v37 = vadd.f32 %v4526_v62, %v4525_v57  ;;  %v4588_v45 = vadd.f32 %v4587_v42, %v4586_v47  ;;  %v11120_v57 = vpop.xlane.xlu1 %1766 }
 0x439   :  { %6162 = vrsqrt.f32 %v3175_v8  ;;  %v2792_v39 = vsub.f32 %v2536_v36, %v2664_v18  ;;  %v4577_v46 = vrot.slane %v4576_v58, 1  ;;  %v4538_v29 = vrot.slane %v4537_v11, 4 }
 0x43a   :  { %v4594_v25 = vrot.slane %v4593_v0, 4  ;;  %v2912_v31 = vmax.f32 %v2784_v4, 0.0  ;;  %v12264_v38 = vsub.f32 %v12244_v43, %v10913_v16  ;;  %v3420_v6 = vmul.f32 %v6155_v23, %v3036_v15 }
 0x43b   :  { %6164 = vrsqrt.f32 %v3157_v44  ;;  %v11118_v34 = vmul.f32 0.03125, %v12265_v59  ;;  %v4583_v47 = vadd.f32 %v4582_v10, %v4581_v7  ;;  %v4533_v2 = vrot.slane %v4532_v54, 2  ;;  %v12268_v10 = vld [vmem:[#allocation58_spill] sm:$0xff] }
 0x43c   :  { %v3412_v50 = vmul.f32 %v6153_v24, %v12264_v38  ;;  %v3038_v9 = vsub.f32 %v12266_v13, %v11041_v56  ;;  %6166 = vrsqrt.f32 %v3165_v33  ;;  %v4528_v60 = vrot.slane %v4527_v37, 1  ;;  %v2401_v23 = vpop.xlane.xlu1 %2400 }
 0x43d   :  { %v6157_v20 = vpop.eup %6156  ;;  %v4589_v16 = vrot.slane %v4588_v45, 2  ;;  %v2920_v43 = vmax.f32 %v2792_v39, 0.0  ;;  %v2529_v48 = vmul.f32 0.03125, %v2377_v1  ;;  %v4539_v52 = vadd.f32 %v4538_v29, %v4537_v11  ;;  %v12269_v39 = vld [vmem:[#allocation22_spill] sm:$0xff] }
 0x43e   :  { %v6159_v32 = vpop.eup %6158  ;;  %v3039_v15 = vsub.f32 %v12267_v21, %v11050_v30  ;;  %v3422_v35 = vmul.f32 %v6157_v20, %v3038_v9  ;;  %v3168_v26 = vadd.f32 1e-05, %v2912_v31  ;;  %v4595_v62 = vadd.f32 %v4594_v25, %v4593_v0 }
 0x43f   :  { %v3544_v7 = vmul.f32 %v10666_v41, %v3412_v50  ;;  %v3552_v42 = vmul.f32 %v10666_v41, %v3420_v6  ;;  %v2657_v56 = vmul.f32 %v11118_v34, %v11118_v34  ;;  %v11130_v8 = vadd.f32 %v4577_v46, %v4576_v58 }
 0x440   :  { %v4584_v36 = vrot.slane %v4583_v47, 1  ;;  %v11132_v4 = vadd.f32 %v4533_v2, %v4532_v54  ;;  %v3423_v24 = vmul.f32 %v6159_v32, %v3039_v15  ;;  %v11134_v44 = vadd.f32 %v4528_v60, %v4527_v37  ;;  %v11147_v37 = vld [vmem:[%s11510_s2 + $0x2] ss:$0 sm:$0xff] }
 0x441   :  { %v6161_v11 = vpop.eup %6160  ;;  %v11136_v30 = vadd.f32 %v4589_v16, %v4588_v45  ;;  %v3176_v18 = vadd.f32 1e-05, %v2920_v43  ;;  %v2785_v0 = vsub.f32 %v2529_v48, %v2657_v56  ;;  %v3046_v33 = vsub.f32 %v12268_v10, %v11073_v5  ;;  %v12270_v5 = vld [vmem:[#allocation39_spill] sm:$0xff]  ;;  %v11161_v48 = vpop.xlane.xlu0 %1745  ;;  %v12271_v56 = vld [vmem:[#allocation84_spill] sm:$0xff] }
 0x442   :  { %v11141_v29 = vmul.f32 0.03125, %v12269_v39  ;;  %v3554_v58 = vmul.f32 %v10666_v41, %v3422_v35  ;;  %6168 = vrsqrt.f32 %v3168_v26  ;;  %v4540_v46 = vrot.slane %v4539_v52, 2 }
 0x443   :  { %v6163_v54 = vpop.eup %6162  ;;  %v4596_v25 = vrot.slane %v4595_v62, 2  ;;  %v3676_v45 = vadd.f32 %v11147_v37, %v3544_v7  ;;  %v3684_v31 = vadd.f32 %v11147_v37, %v3552_v42  ;;  %v3047_v1 = vsub.f32 %v12270_v5, %v11067_v19 }
 0x444   :  { %v3555_v38 = vmul.f32 %v10666_v41, %v3423_v24  ;;  %v3430_v50 = vmul.f32 %v6161_v11, %v3046_v33  ;;  %v2537_v6 = vmul.f32 0.03125, %v2401_v23  ;;  %v11154_v2 = vadd.f32 %v4584_v36, %v4583_v47  ;;  %v11170_v47 = vld [vmem:[%s11510_s2 + $0x4] sm:$0xff]  ;;  %v12272_v24 = vld [vmem:[#allocation91_spill] sm:$0xff] }
 0x445   :  { %v6165_v59 = vpop.eup %6164  ;;  %6170 = vrsqrt.f32 %v3176_v18  ;;  %v2913_v9 = vmax.f32 %v2785_v0, 0.0  ;;  %v2665_v16 = vmul.f32 %v11141_v29, %v11141_v29  ;;  %v3686_v43 = vadd.f32 %v11147_v37, %v3554_v58  ;;  %v12273_v18 = vld [vmem:[#allocation62_spill] sm:$0xff] }
 0x446   :  { %v6167_v20 = vpop.eup %6166  ;;  %v3431_v19 = vmul.f32 %v6163_v54, %v3047_v1  ;;  %v11163_v41 = vadd.f32 %v4540_v46, %v4539_v52  ;;  %v11165_v32 = vadd.f32 %v4596_v25, %v4595_v62  ;;  %v3804_v21 = vmul.f32 %v11170_v47, %v3676_v45  ;;  %v11181_v52 = vld [vmem:[%s11510_s2 + $0x1] ss:$0 sm:$0xff]  ;;  %v2380_v46 = vpop.xlane.xlu0 %2379 }
 0x447   :  { %v3812_v15 = vmul.f32 %v11170_v47, %v3684_v31  ;;  %v3413_v35 = vmul.f32 %v6165_v59, %v3029_v14  ;;  %v3687_v26 = vadd.f32 %v11147_v37, %v3555_v38  ;;  %v3562_v62 = vmul.f32 %v11181_v52, %v3430_v50  ;;  %v11192_v14 = vpop.xlane.xlu1 %1769  ;;  %v12275_v31 = vld [vmem:[#allocation88_spill] sm:$0xff] }
 0x448   :  { %v2793_v7 = vsub.f32 %v2537_v6, %v2665_v16  ;;  %v3421_v42 = vmul.f32 %v6167_v20, %v3037_v55  ;;  %v3040_v36 = vsub.f32 %v12271_v56, %v11087_v61  ;;  %v11190_v17 = vmul.f32 0.03125, %v11057_v12  ;;  %v12274_v12 = vld [vmem:[#allocation11_spill] sm:$0xff] }
 0x449   :  { %v3169_v3 = vadd.f32 1e-05, %v2913_v9  ;;  %v3048_v11 = vsub.f32 %v12272_v24, %v11093_v51  ;;  %v3041_v0 = vsub.f32 %v12273_v18, %v11118_v34  ;;  %v3814_v23 = vmul.f32 %v11170_v47, %v3686_v43 }
 0x44a   :  { %v3563_v63 = vmul.f32 %v11181_v52, %v3431_v19  ;;  %v4544_v53 = vsel %vm172_vm0, %v3804_v21, 0.0  ;;  %v4600_v61 = vsel %vm172_vm0, %v3812_v15, 0.0  ;;  %v11205_v10 = vmul.f32 0.03125, %v11079_v22 }
 0x44b   :  { %v3545_v51 = vmul.f32 %v11181_v52, %v3413_v35  ;;  %v3815_v39 = vmul.f32 %v11170_v47, %v3687_v26  ;;  %v3694_v58 = vadd.f32 %v11147_v37, %v3562_v62  ;;  %v2921_v54 = vmax.f32 %v2793_v7, 0.0  ;;  %v2404_v43 = vpop.xlane.xlu1 %2403 }
 0x44c   :  { %v6169_v33 = vpop.eup %6168  ;;  %v3553_v25 = vmul.f32 %v11181_v52, %v3421_v42  ;;  %v2658_v45 = vmul.f32 %v11190_v17, %v11190_v17  ;;  %6172 = vrsqrt.f32 %v3169_v3  ;;  %v4545_v22 = vrot.slane %v4544_v53, 4 }
 0x44d   :  { %v4614_v1 = vsel %vm172_vm0, %v3814_v23, 0.0  ;;  %v3695_v38 = vadd.f32 %v11147_v37, %v3563_v63  ;;  %v11218_v50 = vmul.f32 0.03125, %v11097_v28  ;;  %v4601_v59 = vrot.slane %v4600_v61, 4  ;;  %v12276_v28 = vld [vmem:[#allocation63_spill] sm:$0xff]  ;;  %v11234_v23 = vpop.xlane.xlu0 %1748 }
 0x44e   :  { %v2666_v9 = vmul.f32 %v11205_v10, %v11205_v10  ;;  %v3424_v20 = vmul.f32 %v6169_v33, %v3040_v36  ;;  %v2530_v16 = vmul.f32 0.03125, %v2380_v46  ;;  %v3677_v19 = vadd.f32 %v11147_v37, %v3545_v51  ;;  %v12277_v46 = vld [vmem:[#allocation80_spill] sm:$0xff] }
 0x44f   :  { %v6171_v6 = vpop.eup %6170  ;;  %v4621_v21 = vsel %vm172_vm0, %v3815_v39, 0.0  ;;  %v3822_v15 = vmul.f32 %v11170_v47, %v3694_v58  ;;  %v3177_v35 = vadd.f32 1e-05, %v2921_v54  ;;  %v3685_v26 = vadd.f32 %v11147_v37, %v3553_v25 }
 0x450   :  { %v4615_v62 = vrot.slane %v4614_v1, 4  ;;  %v11229_v42 = vmul.f32 0.03125, %v11120_v57  ;;  %v4546_v56 = vadd.f32 %v4545_v22, %v4544_v53  ;;  %v3823_v36 = vmul.f32 %v11170_v47, %v3695_v38  ;;  %v11246_v22 = vpop.xlane.xlu1 %1772 }
 0x451   :  { %v3432_v3 = vmul.f32 %v6171_v6, %v3048_v11  ;;  %v2659_v24 = vmul.f32 %v11218_v50, %v11218_v50  ;;  %v11236_v63 = vadd.f32 %v4601_v59, %v4600_v61  ;;  %v4622_v33 = vrot.slane %v4621_v21, 4  ;;  %v12278_v6 = vld [vmem:[#allocation17_spill] sm:$0xff]  ;;  %v2383_v25 = vpop.xlane.xlu0 %2382 }
 0x452   :  { %v3556_v51 = vmul.f32 %v11181_v52, %v3424_v20  ;;  %v2786_v39 = vsub.f32 %v2530_v16, %v2658_v45  ;;  %v3805_v58 = vmul.f32 %v11170_v47, %v3677_v19  ;;  %v4670_v57 = vsel %vm172_vm0, %v3822_v15, 0.0 }
 0x453   :  { %6174 = vrsqrt.f32 %v3177_v35  ;;  %v2538_v53 = vmul.f32 0.03125, %v2404_v43  ;;  %v3813_v54 = vmul.f32 %v11170_v47, %v3685_v26  ;;  %v4616_v11 = vadd.f32 %v4615_v62, %v4614_v1 }
 0x454   :  { %v2667_v61 = vmul.f32 %v11229_v42, %v11229_v42  ;;  %v4677_v38 = vsel %vm172_vm0, %v3823_v36, 0.0  ;;  %v3564_v45 = vmul.f32 %v11181_v52, %v3432_v3  ;;  %v11253_v20 = vmul.f32 0.03125, %v11161_v48 }
 0x455   :  { %v4623_v1 = vadd.f32 %v4622_v33, %v4621_v21  ;;  %v4671_v43 = vrot.slane %v4670_v57, 4  ;;  %v3688_v19 = vadd.f32 %v11147_v37, %v3556_v51  ;;  %v2914_v15 = vmax.f32 %v2786_v39, 0.0 }
 0x456   :  { %v6173_v16 = vpop.eup %6172  ;;  %v4547_v35 = vrot.slane %v4546_v56, 2  ;;  %v4603_v26 = vrot.slane %v11236_v63, 2  ;;  %v4551_v62 = vsel %vm172_vm0, %v3805_v58, 0.0  ;;  %v2794_v36 = vsub.f32 %v2538_v53, %v2666_v9  ;;  %v2407_v53 = vpop.xlane.xlu1 %2406 }
 0x457   :  { %v4607_v3 = vsel %vm172_vm0, %v3813_v54, 0.0  ;;  %v4617_v7 = vrot.slane %v4616_v11, 2  ;;  %v4678_v59 = vrot.slane %v4677_v38, 4  ;;  %v11260_v48 = vmul.f32 0.03125, %v11192_v14 }
 0x458   :  { %v3696_v21 = vadd.f32 %v11147_v37, %v3564_v45  ;;  %v3425_v33 = vmul.f32 %v6173_v16, %v3041_v0  ;;  %v3170_v51 = vadd.f32 1e-05, %v2914_v15  ;;  %v2922_v39 = vmax.f32 %v2794_v36, 0.0 }
 0x459   :  { %v4624_v5 = vrot.slane %v4623_v1, 2  ;;  %v4672_v60 = vadd.f32 %v4671_v43, %v4670_v57  ;;  %v3816_v9 = vmul.f32 %v11170_v47, %v3688_v19  ;;  %v2531_v58 = vmul.f32 0.03125, %v2383_v25 }
 0x45a   :  { %v4552_v54 = vrot.slane %v4551_v62, 4  ;;  %v4608_v13 = vrot.slane %v4607_v3, 4  ;;  %6176 = vrsqrt.f32 %v3170_v51  ;;  %v3178_v55 = vadd.f32 1e-05, %v2922_v39 }
 0x45b   :  { %v11267_v14 = vadd.f32 %v4617_v7, %v4616_v11  ;;  %v11269_v40 = vadd.f32 %v4678_v59, %v4677_v38  ;;  %v11273_v34 = vmul.f32 %v11253_v20, %v11253_v20  ;;  %v11277_v18 = vmul.f32 %v11260_v48, %v11260_v48 }
 0x45c   :  { %v3824_v57 = vmul.f32 %v11170_v47, %v3696_v21  ;;  %v3557_v25 = vmul.f32 %v11181_v52, %v3425_v33  ;;  %v2787_v45 = vsub.f32 %v2531_v58, %v2659_v24  ;;  %v2539_v16 = vmul.f32 0.03125, %v2407_v53 }
 0x45d   :  { %v6175_v0 = vpop.eup %6174  ;;  %v11281_v43 = vadd.f32 %v4624_v5, %v4623_v1  ;;  %v4673_v7 = vrot.slane %v4672_v60, 2  ;;  %v11284_v11 = vsel %vm172_vm0, %v3816_v9, 0.0  ;;  %v4548_v38 = vadd.f32 %v4547_v35, %v4546_v56 }
 0x45e   :  { %6178 = vrsqrt.f32 %v3178_v55  ;;  %v2915_v59 = vmax.f32 %v2787_v45, 0.0  ;;  %v2795_v19 = vsub.f32 %v2539_v16, %v2667_v61  ;;  %v4553_v15 = vadd.f32 %v4552_v54, %v4551_v62 }
 0x45f   :  { %v4619_v36 = vrot.slane %v11267_v14, 1  ;;  %v4680_v51 = vrot.slane %v11269_v40, 2  ;;  %v12279_v21 = vsub.f32 %v12274_v12, %v11141_v29  ;;  %v4542_v5 = vrot.slane %v11163_v41, 1 }
 0x460   :  { %v3171_v1 = vadd.f32 1e-05, %v2915_v59  ;;  %v2923_v33 = vmax.f32 %v2795_v19, 0.0  ;;  %v4554_v39 = vrot.slane %v4553_v15, 2  ;;  %v4604_v9 = vadd.f32 %v4603_v26, %v11236_v63 }
 0x461   :  { %v3433_v24 = vmul.f32 %v6175_v0, %v12279_v21  ;;  %v4629_v55 = vrot.slane %v11284_v11, 4  ;;  %v11295_v56 = vsel %vm172_vm0, %v3824_v57, 0.0  ;;  %v4549_v61 = vrot.slane %v4548_v38, 1 }
 0x462   :  { %v4609_v35 = vadd.f32 %v4608_v13, %v4607_v3  ;;  %6180 = vrsqrt.f32 %v3171_v1  ;;  %v3179_v62 = vadd.f32 1e-05, %v2923_v33  ;;  %v4555_v58 = vadd.f32 %v4554_v39, %v4553_v15 }
 0x463   :  { %v4598_v29 = vrot.slane %v11165_v32, 1  ;;  %v4626_v12 = vrot.slane %v11281_v43, 1  ;;  %v11299_v53 = vadd.f32 %v4673_v7, %v4672_v60  ;;  %v4605_v54 = vrot.slane %v4604_v9, 1 }
 0x464   :  { %v4610_v0 = vrot.slane %v4609_v35, 2  ;;  %v6177_v45 = vpop.eup %6176  ;;  %6182 = vrsqrt.f32 %v3179_v62  ;;  %v12280_v63 = vrot.slane %v11132_v4, 1  ;;  %v4543_v57 = vadd.f32 %v4542_v5, %v11163_v41  ;;  %v12283_v5 = vld [vmem:[#allocation81_spill] sm:$0xff] }
 0x465   :  { %v4556_v13 = vrot.slane %v4555_v58, 1  ;;  %v4685_v3 = vrot.slane %v11295_v56, 4  ;;  %v4550_v16 = vadd.f32 %v4549_v61, %v4548_v38  ;;  %v12281_v59 = vrot.slane %v11136_v30, 1 }
 0x466   :  { %v4536_v26 = vadd.f32 %v12280_v63, %v11132_v4  ;;  %v4611_v60 = vadd.f32 %v4610_v0, %v4609_v35  ;;  %v3689_v7 = vadd.f32 %v11147_v37, %v3557_v25  ;;  %v12282_v15 = vsub.f32 %v12275_v31, %v11190_v17 }
 0x467   :  { %v4592_v19 = vadd.f32 %v12281_v59, %v11136_v30  ;;  %v4557_v1 = vadd.f32 %v4556_v13, %v4555_v58  ;;  %v4599_v4 = vadd.f32 %v4598_v29, %v11165_v32  ;;  %v4606_v33 = vadd.f32 %v4605_v54, %v4604_v9 }
 0x468   :  { %v3426_v21 = vmul.f32 %v6177_v45, %v12282_v15  ;;  %v4612_v41 = vrot.slane %v4611_v60, 1  ;;  %v4826_v39 = vadd.f32 %v11853_v27, %v12283_v5  ;;  %v4834_v38 = vadd.f32 %v11853_v27, %v11130_v8  ;;  %v6179_v61 = vpop.eup %6178  ;;  %v2386_v15 = vpop.xlane.xlu0 %2385 }
 0x469   :  { %v4827_v30 = vadd.f32 %v11853_v27, %v11134_v44  ;;  %v4828_v25 = vadd.f32 %v11853_v27, %v4536_v26  ;;  %v4829_v17 = vadd.f32 %v11853_v27, %v4543_v57  ;;  %v4835_v31 = vadd.f32 %v11853_v27, %v11154_v2 }
 0x46a   :  { %v4613_v32 = vadd.f32 %v4612_v41, %v4611_v60  ;;  %v4830_v9 = vadd.f32 %v11853_v27, %v4550_v16  ;;  %v4831_v35 = vadd.f32 %v11853_v27, %v4557_v1  ;;  %v4836_v62 = vadd.f32 %v11853_v27, %v4592_v19  ;;  %v12288_v41 = vld [vmem:[#allocation59_spill] sm:$0xff] }
 0x46b   :  { %v11328_v8 = vmul.f32 %v11170_v47, %v3689_v7  ;;  %v3565_v58 = vmul.f32 %v11181_v52, %v3433_v24  ;;  %v3558_v44 = vmul.f32 %v11181_v52, %v3426_v21  ;;  %v4837_v29 = vadd.f32 %v11853_v27, %v4599_v4  ;;  %v12286_v4 = vld [vmem:[#allocation107_spill] sm:$0xff] }
 0x46c   :  { %v12284_v54 = vsub.f32 %v12276_v28, %v11205_v10  ;;  %v4838_v0 = vadd.f32 %v11853_v27, %v4606_v33  ;;  %v4954_v45 = vmax.f32 %v4826_v39, 0.0  ;;  %v4962_v63 = vmax.f32 %v4834_v38, 0.0  ;;  %v6181_v26 = vpop.eup %6180  ;;  %v12290_v38 = vld [vmem:[#allocation8_spill] sm:$0xff] }
 0x46d   :  { %v4839_v57 = vadd.f32 %v11853_v27, %v4613_v32  ;;  %v4955_v13 = vmax.f32 %v4827_v30, 0.0  ;;  %v4956_v16 = vmax.f32 %v4828_v25, 0.0  ;;  %v4963_v59 = vmax.f32 %v4835_v31, 0.0  ;;  %v12292_v30 = vld [vmem:[#allocation54_spill] sm:$0xff]  ;;  %v2410_v31 = vpop.xlane.xlu1 %2409 }
 0x46e   :  { %v3434_v2 = vmul.f32 %v6179_v61, %v12284_v54  ;;  %v4957_v19 = vmax.f32 %v4829_v17, 0.0  ;;  %v4958_v24 = vmax.f32 %v4830_v9, 0.0  ;;  %v4959_v60 = vmax.f32 %v4831_v35, 0.0  ;;  %v6183_v21 = vpop.eup %6182 }
 0x46f   :  { %v4964_v7 = vmax.f32 %v4836_v62, 0.0  ;;  %v12285_v10 = vsub.f32 %v12277_v46, %v11218_v50  ;;  %v4965_v1 = vmax.f32 %v4837_v29, 0.0  ;;  %v12287_v33 = vmax.f32 %v12286_v4, 0.0 }
 0x470   :  { %v12289_v5 = vmax.f32 %v12288_v41, 0.0  ;;  %v12291_v61 = vmax.f32 %v12290_v38, 0.0  ;;  %v12293_v25 = vmax.f32 %v12292_v30, 0.0  ;;  %v12294_v32 = vsub.f32 %v12278_v6, %v11229_v42 }
 0x471   :  { %v3427_v28 = vmul.f32 %v6181_v26, %v12285_v10  ;;  %v4966_v50 = vmax.f32 %v4838_v0, 0.0  ;;  %v4967_v62 = vmax.f32 %v4839_v57, 0.0  ;;  %v2532_v26 = vmul.f32 0.03125, %v2386_v15  ;;  %v2389_v15 = vpop.xlane.xlu0 %2388 }
 0x472   :  { %v5205_v39 = vsel %vm5114_vm1, %v12289_v5, %v12287_v33  ;;  %v5212_v17 = vsel %vm5114_vm1, %v12293_v25, %v12291_v61  ;;  %v3435_v9 = vmul.f32 %v6183_v21, %v12294_v32  ;;  %v3566_v10 = vmul.f32 %v11181_v52, %v3434_v2 }
 0x473   :  { %v5206_v46 = vsel %vm5116_vm2, %v4954_v45, %v5205_v39  ;;  %v5213_v35 = vsel %vm5116_vm2, %v4962_v63, %v5212_v17  ;;  %v11360_v4 = vmul.f32 0.03125, %v11234_v23  ;;  %v11365_v6 = vmul.f32 0.03125, %v11246_v22 }
 0x474   :  { %v5207_v29 = vsel %vm5118_vm3, %v4955_v13, %v5206_v46  ;;  %v5214_v54 = vsel %vm5118_vm3, %v4963_v59, %v5213_v35  ;;  %v3559_v0 = vmul.f32 %v11181_v52, %v3427_v28  ;;  %v3697_v57 = vadd.f32 %v11147_v37, %v3565_v58 }
 0x475   :  { %v5208_v33 = vsel %vm5120_vm4, %v4956_v16, %v5207_v29  ;;  %v5215_v42 = vsel %vm5120_vm4, %v4964_v7, %v5214_v54  ;;  %v3567_v2 = vmul.f32 %v11181_v52, %v3435_v9  ;;  %v3690_v16 = vadd.f32 %v11147_v37, %v3558_v44 }
 0x476   :  { %v5209_v45 = vsel %vm5122_vm5, %v4957_v19, %v5208_v33  ;;  %v5216_v63 = vsel %vm5122_vm5, %v4965_v1, %v5215_v42  ;;  %v2788_v7 = vsub.f32 %v2532_v26, %v11273_v34  ;;  %v2413_v19 = vpop.xlane.xlu1 %2412  ;;  %v4620_v58 = vadd.f32 %v4619_v36, %v11267_v14 }
 0x477   :  { %v5210_v23 = vsel %vm5124_vm6, %v4958_v24, %v5209_v45  ;;  %v5217_v13 = vsel %vm5124_vm6, %v4966_v50, %v5216_v63  ;;  %v3698_v21 = vadd.f32 %v11147_v37, %v3566_v10  ;;  %v2540_v24 = vmul.f32 0.03125, %v2410_v31 }
 0x478   :  { %v5211_v59 = vsel %vm5126_vm7, %v4959_v60, %v5210_v23  ;;  %v5218_v22 = vsel %vm5126_vm7, %v4967_v62, %v5217_v13  ;;  %v2661_v1 = vmul.f32 %v11360_v4, %v11360_v4  ;;  %v2669_v44 = vmul.f32 %v11365_v6, %v11365_v6 }
 0x479   :  { %v5920_v28 = vpack.c.bf16 %v5218_v22, %v5211_v59  ;;  %v3691_v60 = vadd.f32 %v11147_v37, %v3559_v0  ;;  %v2916_v41 = vmax.f32 %v2788_v7, 0.0  ;;  %v3699_v34 = vadd.f32 %v11147_v37, %v3567_v2  ;;  %v12296_v2 = vld [vmem:[#allocation99_spill] sm:$0xff] }
 0x47a   :  { %v2796_v14 = vsub.f32 %v2540_v24, %v11277_v18  ;;  %v2533_v36 = vmul.f32 0.03125, %v2389_v15  ;;  %v2541_v5 = vmul.f32 0.03125, %v2413_v19  ;;  %v4635_v39 = vsel %vm172_vm0, %v11328_v8, 0.0 }
 0x47b   :  { %5922 = vmatpush3.bf16.xpose.msk.msra.mxu1 %vm8819_vm8, %v5920_v28  ;;  %v3825_v38 = vmul.f32 %v11170_v47, %v3697_v57  ;;  %v3818_v61 = vmul.f32 %v11170_v47, %v3690_v16  ;;  %v3172_v30 = vadd.f32 1e-05, %v2916_v41  ;;  %v12295_v25 = vmov 0.0|0.0  }
 0x47c   :  { %5923 = vmatprep.subr.bf16.mxu1 %v12295_v25  ;;  %v3826_v17 = vmul.f32 %v11170_v47, %v3698_v21  ;;  %v2924_v31 = vmax.f32 %v2796_v14, 0.0  ;;  %v2789_v32 = vsub.f32 %v2533_v36, %v2661_v1  ;;  %v2797_v9 = vsub.f32 %v2541_v5, %v2669_v44 }
 0x47d   :  { %v4681_v18 = vadd.f32 %v4680_v51, %v11269_v40  ;;  %v4630_v8 = vadd.f32 %v4629_v55, %v11284_v11  ;;  %v3819_v50 = vmul.f32 %v11170_v47, %v3691_v60  ;;  %6184 = vrsqrt.f32 %v3172_v30 }
 0x47e   :  { %v3827_v46 = vmul.f32 %v11170_v47, %v3699_v34  ;;  %v3180_v35 = vadd.f32 1e-05, %v2924_v31  ;;  %v2917_v62 = vmax.f32 %v2789_v32, 0.0  ;;  %v2925_v29 = vmax.f32 %v2797_v9, 0.0  ;;  %v12298_v9 = vld [vmem:[#allocation46_spill] sm:$0xff] }
 0x47f   :  { %v4627_v54 = vadd.f32 %v4626_v12, %v11281_v43  ;;  %v4636_v26 = vrot.slane %v4635_v39, 4  ;;  %v4691_v10 = vsel %vm172_vm0, %v3825_v38, 0.0  ;;  %v4642_v40 = vsel %vm172_vm0, %v3818_v61, 0.0 }
 0x480   :  { %v4698_v51 = vsel %vm172_vm0, %v3826_v17, 0.0  ;;  %6186 = vrsqrt.f32 %v3180_v35  ;;  %v3173_v11 = vadd.f32 1e-05, %v2917_v62  ;;  %v3181_v55 = vadd.f32 1e-05, %v2925_v29  ;;  %v12299_v35 = vld [vmem:[#allocation55_spill] sm:$0xff] }
 0x481   :  { %v4675_v33 = vrot.slane %v11299_v53, 1  ;;  %v4682_v42 = vrot.slane %v4681_v18, 1  ;;  %v4686_v0 = vadd.f32 %v4685_v3, %v11295_v56  ;;  %v4649_v45 = vsel %vm172_vm0, %v3819_v50, 0.0 }
 0x482   :  { %v4692_v43 = vrot.slane %v4691_v10, 4  ;;  %v4643_v12 = vrot.slane %v4642_v40, 4  ;;  %v4705_v63 = vsel %vm172_vm0, %v3827_v46, 0.0  ;;  %6188 = vrsqrt.f32 %v3173_v11 }
 0x483   :  { %v4631_v57 = vrot.slane %v4630_v8, 2  ;;  %v3044_v23 = vsub.f32 %v12296_v2, %v11253_v20  ;;  %v4699_v13 = vrot.slane %v4698_v51, 4  ;;  %6190 = vrsqrt.f32 %v3181_v55  ;;  %v12297_v20 = vld [vmem:[#allocation45_spill] sm:$0xff] }
 0x484   :  { %v11420_v16 = vadd.f32 %v11853_v27, %v4620_v58  ;;  %v11423_v59 = vadd.f32 %v11853_v27, %v4627_v54  ;;  %v4637_v56 = vadd.f32 %v4636_v26, %v4635_v39  ;;  %v4650_v3 = vrot.slane %v4649_v45, 4 }
 0x485   :  { %v4676_v22 = vadd.f32 %v4675_v33, %v11299_v53  ;;  %v4683_v7 = vadd.f32 %v4682_v42, %v4681_v18  ;;  %v4687_v15 = vrot.slane %v4686_v0, 2  ;;  %v4706_v19 = vrot.slane %v4705_v63, 4 }
 0x486   :  { %v4693_v21 = vadd.f32 %v4692_v43, %v4691_v10  ;;  %v4644_v28 = vadd.f32 %v4643_v12, %v4642_v40  ;;  %v4632_v1 = vadd.f32 %v4631_v57, %v4630_v8  ;;  %v3052_v44 = vsub.f32 %v12297_v20, %v11260_v48 }
 0x487   :  { %v6185_v24 = vpop.eup %6184  ;;  %v4700_v60 = vadd.f32 %v4699_v13, %v4698_v51  ;;  %v6256_v58 = vmov 0.0   ;;  %v4968_v41 = vmax.f32 %v11420_v16, 0.0  ;;  %v4638_v34 = vrot.slane %v4637_v56, 2 }
 0x488   :  { %5884 = vmatprep.mubr.msk.f32.mxu1 %vm6255_vm9, %v6256_v58  ;;  %v4651_v14 = vadd.f32 %v4650_v3, %v4649_v45  ;;  %v3428_v36 = vmul.f32 %v6185_v24, %v3044_v23  ;;  %v4969_v53 = vmax.f32 %v11423_v59, 0.0  ;;  %v11431_v5 = vadd.f32 %v11853_v27, %v4676_v22 }
 0x489   :  { %v4688_v39 = vadd.f32 %v4687_v15, %v4686_v0  ;;  %v4707_v38 = vadd.f32 %v4706_v19, %v4705_v63  ;;  %v11434_v30 = vadd.f32 %v11853_v27, %v4683_v7  ;;  %v4694_v48 = vrot.slane %v4693_v21, 2 }
 0x48a   :  { %v6187_v61 = vpop.eup %6186  ;;  %v4645_v25 = vrot.slane %v4644_v28, 2  ;;  %v3560_v17 = vmul.f32 %v11181_v52, %v3428_v36  ;;  %v4633_v31 = vrot.slane %v4632_v1, 1  ;;  %v4701_v32 = vrot.slane %v4700_v60, 2 }
 0x48b   :  { %v3045_v18 = vsub.f32 %v12298_v9, %v11360_v4  ;;  %v3436_v8 = vmul.f32 %v6187_v61, %v3052_v44  ;;  %v4639_v46 = vadd.f32 %v4638_v34, %v4637_v56  ;;  %v3053_v62 = vsub.f32 %v12299_v35, %v11365_v6 }
 0x48c   :  { %v6189_v50 = vpop.eup %6188  ;;  %v4652_v29 = vrot.slane %v4651_v14, 2  ;;  %v3692_v54 = vadd.f32 %v11147_v37, %v3560_v17  ;;  %v4976_v10 = vmax.f32 %v11431_v5, 0.0  ;;  %v4708_v40 = vrot.slane %v4707_v38, 2 }
 0x48d   :  { %v6191_v26 = vpop.eup %6190  ;;  %v3568_v51 = vmul.f32 %v11181_v52, %v3436_v8  ;;  %v3429_v11 = vmul.f32 %v6189_v50, %v3045_v18  ;;  %v4695_v55 = vadd.f32 %v4694_v48, %v4693_v21  ;;  %v4646_v33 = vadd.f32 %v4645_v25, %v4644_v28 }
 0x48e   :  { %v3820_v4 = vmul.f32 %v11170_v47, %v3692_v54  ;;  %v3437_v42 = vmul.f32 %v6191_v26, %v3053_v62  ;;  %v4689_v0 = vrot.slane %v4688_v39, 1  ;;  %v4702_v45 = vadd.f32 %v4701_v32, %v4700_v60 }
 0x48f   :  { %v3700_v43 = vadd.f32 %v11147_v37, %v3568_v51  ;;  %v3561_v6 = vmul.f32 %v11181_v52, %v3429_v11  ;;  %v4640_v12 = vrot.slane %v4639_v46, 1  ;;  %v4653_v63 = vadd.f32 %v4652_v29, %v4651_v14 }
 0x490   :  { %v4656_v57 = vsel %vm172_vm0, %v3820_v4, 0.0  ;;  %v3569_v2 = vmul.f32 %v11181_v52, %v3437_v42  ;;  %v4709_v23 = vadd.f32 %v4708_v40, %v4707_v38  ;;  %v4634_v22 = vadd.f32 %v4633_v31, %v4632_v1 }
 0x491   :  { %v4657_v13 = vrot.slane %v4656_v57, 4  ;;  %v3828_v56 = vmul.f32 %v11170_v47, %v3700_v43  ;;  %v3693_v3 = vadd.f32 %v11147_v37, %v3561_v6  ;;  %v4696_v7 = vrot.slane %v4695_v55, 1 }
 0x492   :  { %v4647_v15 = vrot.slane %v4646_v33, 1  ;;  %v3701_v19 = vadd.f32 %v11147_v37, %v3569_v2  ;;  %v4703_v21 = vrot.slane %v4702_v45, 1  ;;  %v4690_v44 = vadd.f32 %v4689_v0, %v4688_v39 }
 0x493   :  { %v4658_v28 = vadd.f32 %v4657_v13, %v4656_v57  ;;  %v4712_v24 = vsel %vm172_vm0, %v3828_v56, 0.0  ;;  %v3821_v20 = vmul.f32 %v11170_v47, %v3693_v3  ;;  %v4641_v60 = vadd.f32 %v4640_v12, %v4639_v46 }
 0x494   :  { %v4713_v52 = vrot.slane %v4712_v24, 4  ;;  %v3829_v58 = vmul.f32 %v11170_v47, %v3701_v19  ;;  %v4654_v36 = vrot.slane %v4653_v63, 1  ;;  %v4710_v1 = vrot.slane %v4709_v23, 1 }
 0x495   :  { %v4659_v34 = vrot.slane %v4658_v28, 2  ;;  %v4663_v14 = vsel %vm172_vm0, %v3821_v20, 0.0  ;;  %v4648_v48 = vadd.f32 %v4647_v15, %v4646_v33  ;;  %v4697_v25 = vadd.f32 %v4696_v7, %v4695_v55 }
 0x496   :  { %v4714_v38 = vadd.f32 %v4713_v52, %v4712_v24  ;;  %v4664_v61 = vrot.slane %v4663_v14, 4  ;;  %v4719_v37 = vsel %vm172_vm0, %v3829_v58, 0.0  ;;  %v4704_v32 = vadd.f32 %v4703_v21, %v4702_v45 }
 0x497   :  { %v4720_v17 = vrot.slane %v4719_v37, 4  ;;  %v4660_v31 = vadd.f32 %v4659_v34, %v4658_v28  ;;  %v4842_v18 = vadd.f32 %v11853_v27, %v4634_v22  ;;  %v4843_v47 = vadd.f32 %v11853_v27, %v4641_v60 }
 0x498   :  { %v4715_v9 = vrot.slane %v4714_v38, 2  ;;  %v4665_v39 = vadd.f32 %v4664_v61, %v4663_v14  ;;  %v4655_v50 = vadd.f32 %v4654_v36, %v4653_v63  ;;  %v4711_v35 = vadd.f32 %v4710_v1, %v4709_v23 }
 0x499   :  { %v4721_v8 = vadd.f32 %v4720_v17, %v4719_v37  ;;  %v4661_v46 = vrot.slane %v4660_v31, 1  ;;  %v4844_v54 = vadd.f32 %v11853_v27, %v4648_v48  ;;  %v4850_v26 = vadd.f32 %v11853_v27, %v4690_v44  ;;  %v34_v48 = vld [vmem:[%s11510_s2 + $0x3] sm:$0x1] }
 0x49a   :  { %v4666_v62 = vrot.slane %v4665_v39, 2  ;;  %v4716_v29 = vadd.f32 %v4715_v9, %v4714_v38  ;;  %v4851_v11 = vadd.f32 %v11853_v27, %v4697_v25  ;;  %v4852_v55 = vadd.f32 %v11853_v27, %v4704_v32 }
 0x49b   :  { %v4662_v40 = vadd.f32 %v4661_v46, %v4660_v31  ;;  %v4722_v51 = vrot.slane %v4721_v8, 2  ;;  %v4977_v33 = vmax.f32 %v11434_v30, 0.0  ;;  %v4970_v0 = vmax.f32 %v4842_v18, 0.0 }
 0x49c   :  { %v4667_v4 = vadd.f32 %v4666_v62, %v4665_v39  ;;  %v4717_v42 = vrot.slane %v4716_v29, 1  ;;  %v4845_v43 = vadd.f32 %v11853_v27, %v4655_v50  ;;  %v4853_v6 = vadd.f32 %v11853_v27, %v4711_v35 }
 0x49d   :  { %v4723_v45 = vadd.f32 %v4722_v51, %v4721_v8  ;;  %v4971_v12 = vmax.f32 %v4843_v47, 0.0  ;;  %v4846_v2 = vadd.f32 %v11853_v27, %v4662_v40  ;;  %v4978_v23 = vmax.f32 %v4850_v26, 0.0 }
 0x49e   :  { %v4668_v63 = vrot.slane %v4667_v4, 1  ;;  %v4718_v57 = vadd.f32 %v4717_v42, %v4716_v29  ;;  %v4972_v56 = vmax.f32 %v4844_v54, 0.0  ;;  %v4979_v3 = vmax.f32 %v4851_v11, 0.0 }
 0x49f   :  { %v4724_v13 = vrot.slane %v4723_v45, 1  ;;  %v4980_v22 = vmax.f32 %v4852_v55, 0.0  ;;  %v5219_v15 = vsel %vm5114_vm1, %v4969_v53, %v4968_v41  ;;  %v5226_v19 = vsel %vm5114_vm1, %v4977_v33, %v4976_v10 }
 0x4a0   :  { %v4669_v7 = vadd.f32 %v4668_v63, %v4667_v4  ;;  %v4854_v30 = vadd.f32 %v11853_v27, %v4718_v57  ;;  %v4973_v28 = vmax.f32 %v4845_v43, 0.0  ;;  %v4981_v24 = vmax.f32 %v4853_v6, 0.0 }
 0x4a1   :  { %v4725_v21 = vadd.f32 %v4724_v13, %v4723_v45  ;;  %v5220_v20 = vsel %vm5116_vm2, %v4970_v0, %v5219_v15  ;;  %v4974_v60 = vmax.f32 %v4846_v2, 0.0  ;;  %v5227_v58 = vsel %vm5116_vm2, %v4978_v23, %v5226_v19 }
 0x4a2   :  { %v4847_v44 = vadd.f32 %v11853_v27, %v4669_v7  ;;  %v4982_v52 = vmax.f32 %v4854_v30, 0.0  ;;  %v5221_v59 = vsel %vm5118_vm3, %v4971_v12, %v5220_v20  ;;  %v5228_v41 = vsel %vm5118_vm3, %v4979_v3, %v5227_v58 }
 0x4a3   :  { %v4855_v16 = vadd.f32 %v11853_v27, %v4725_v21  ;;  %v5222_v5 = vsel %vm5120_vm4, %v4972_v56, %v5221_v59  ;;  %v5229_v10 = vsel %vm5120_vm4, %v4980_v22, %v5228_v41  ;;  %v4985_v25 = vstv %s5485_s30 }
 0x4a4   :  { %v4975_v53 = vmax.f32 %v4847_v44, 0.0  ;;  %v5223_v14 = vsel %vm5122_vm5, %v4973_v28, %v5222_v5  ;;  %v5230_v36 = vsel %vm5122_vm5, %v4981_v24, %v5229_v10 }
 0x4a5   :  { %v4983_v34 = vmax.f32 %v4855_v16, 0.0  ;;  %v5224_v1 = vsel %vm5124_vm6, %v4974_v60, %v5223_v14  ;;  %v5231_v38 = vsel %vm5124_vm6, %v4982_v52, %v5230_v36 }
 0x4a6   :  { %v5225_v27 = vsel %vm5126_vm7, %v4975_v53, %v5224_v1 }
 0x4a7   :  { %v5232_v61 = vsel %vm5126_vm7, %v4983_v34, %v5231_v38 }
 0x4a8   :  { %v5924_v37 = vpack.c.bf16 %v5232_v61, %v5225_v27 }
 0x4aa   :  { %5926 = vmatpush3.bf16.xpose.msk.msra.mxu1 %vm8819_vm8, %v5924_v37 }
 0x4b1   :  { %5885 = vmatmul.mubr.msk.f32.vlgmr.msra.gmra.mrb[62].mxu1 %vm172_vm0, %v34_v48 }
 0x584   :  { %v5334_v17 = vpop.f32.mrb[62].mxu1 }
 0x585   :  { %v5335_v31 = vadd.f32 %v5334_v17, %v4985_v25  ;;  %v5886_v32 = vpop.f32.mrb[63].mxu1 }
 0x587   :  { %5338 = vst [vmem:[#allocation5] sm:$0x1] %v5335_v31 }
 0x588   :  { %6238 = shalt.err (!%p6235_p9)
}
 0x589   :  { %s6239_s0 = scalar_lea.hbm %s11512_s4, 16 }
 0x58a   :  { %p6240_p10 = scmp.ne.s32.totalorder %s11512_s4, %s6239_s0  ;;  %p6243_p11 = scmp.lt.u32.totalorder %s6239_s0, %s11512_s4 }
 0x58c   :  { %p6245_p12 = pnand %p6243_p11, %p6240_p10 }
 0x58e   :  { %6248 = shalt.err (!%p6245_p12)
}
 0x58f   :  { %5348 = dma.vmem_to_hbm [thread:$0]  %s5346_s5, 16, %s11512_s4, [#allocation3]  }
 0x590   :  { %6251 = dma.done.wait [#allocation3], 16  }
 0x591   :  { %6252 = vsyncadd [#allocation3], 4294967280 }
 0x592   :  { %5352 = vsyncpa [#allocation3], 1 }
 0x593   :  { %5353 = vsyncpa [#allocation4], 1 }

</bundles_post_ra>
